<compile_context>
chip_gen: v7x
topology: tpu7x:2x2x1
jax: 0.10.0
libtpu: 0.0.40
codegen_flags: <defaults>
</compile_context>

<pallas_src>
import functools

import jax
import jax.numpy as jnp
from jax import lax
from jax.experimental import pallas as pl
from jax.experimental.pallas import tpu as pltpu

EPS = 1e-5          # torch.nn.BatchNorm2d default
LANE = 128          # TPU lane width: channel padding target


def _device_kind():
    try:
        return jax.devices()[0].device_kind.lower()
    except Exception:
        return ""


_KIND = _device_kind()
# v5e has no bf16 VPU path -> keep the fused BN prologue math in f32 there.
_F32_PROLOGUE = "v5" in _KIND
# 128 MiB physical VMEM on v5e/v6e, 64 MiB per TensorCore on v7x.
VMEM_LIMIT = (100 if ("v5" in _KIND or "v6" in _KIND) else 48) * 1024 * 1024


def _round_up(x, m):
    return ((x + m - 1) // m) * m


# ---------------------------------------------------------------------------
# Fused 3x3 "SAME" conv kernel: optional BN+ReLU prologue, in-kernel zero halo,
# bf16 im2col slab in VMEM, a single MXU dot (f32 accumulation, register /
# MXU-result-buffer resident), per-image BN sum / sum-of-squares outputs.
# ---------------------------------------------------------------------------
def _conv3x3_kernel(H, W, Cin, Cp, apply_prologue,
                    x_ref, w_ref, s_ref, b_ref,
                    y_ref, sum_ref, sq_ref,
                    xs_ref, slab_ref):
    # x_ref   : (1, H, W, Cin)   unpadded activation for this image
    # w_ref   : (9*Cin, Cp)      bf16 weights (tap-major rows, channel-minor)
    # s_ref/b_ref : (1, Cin)     BN scale/shift for the fused prologue (conv2)
    # y_ref   : (1, H, W, Cp)    conv output (bf16)
    # sum_ref/sq_ref : (1, 1, Cp) per-image channel stats of the conv output
    # xs_ref  : VMEM (H+2, W+2, Cin) bf16  zero-halo activation
    # slab_ref: VMEM (H, W, 9*Cin)   bf16  im2col slab (LHS of the single dot)
    Hp, Wp = H + 2, W + 2

    x = x_ref[0]
    if apply_prologue:
        # BN(scale, shift) + ReLU of the previous conv output.  The PyTorch
        # graph zero-pads *after* this activation, so the in-kernel zero halo
        # below is exactly correct.
        if _F32_PROLOGUE:
            s = s_ref[...].astype(jnp.float32).reshape(1, 1, Cin)
            b = b_ref[...].astype(jnp.float32).reshape(1, 1, Cin)
            x = jnp.maximum(x.astype(jnp.float32) * s + b, 0.0)
        else:  # bf16 VPU path (v6e/v7x): half the prologue VALU work / vregs
            s = s_ref[...].astype(jnp.bfloat16).reshape(1, 1, Cin)
            b = b_ref[...].astype(jnp.bfloat16).reshape(1, 1, Cin)
            x = jnp.maximum(x.astype(jnp.bfloat16) * s + b, 0.0)
    x = x.astype(jnp.bfloat16)

    # Zero only the four 1-pixel halo strips.  Done every step on purpose: with
    # a "parallel" grid each core owns a disjoint slice of steps, so a
    # program_id==0 one-shot init would not run on every core.
    zr = jnp.zeros((1, Wp, Cin), jnp.bfloat16)
    zc = jnp.zeros((Hp, 1, Cin), jnp.bfloat16)
    xs_ref[0:1, :, :] = zr
    xs_ref[Hp - 1:Hp, :, :] = zr
    xs_ref[:, 0:1, :] = zc
    xs_ref[:, Wp - 1:Wp, :] = zc
    xs_ref[1:1 + H, 1:1 + W, :] = x

    # im2col slab: 9 shifted windows stacked along channels (static unroll).
    for k in range(9):
        dy, dx = divmod(k, 3)
        slab_ref[:, :, k * Cin:(k + 1) * Cin] = xs_ref[dy:dy + H, dx:dx + W, :]

    # One MXU matmul (K = 9*Cin), f32 accumulation; no f32 accumulator
    # round-trips through VMEM, output and stats are written exactly once.
    acc = jnp.dot(slab_ref[...].reshape(H * W, 9 * Cin), w_ref[...],
                  preferred_element_type=jnp.float32)

    sum_ref[0] = jnp.sum(acc, axis=0, keepdims=True)
    sq_ref[0] = jnp.sum(acc * acc, axis=0, keepdims=True)
    y_ref[0] = acc.reshape(H, W, Cp).astype(y_ref.dtype)


def conv3x3_fused(x, w_flat, scale, shift, *, apply_prologue, out_dtype):
    N, H, W, Cin = x.shape
    Cp = w_flat.shape[-1]
    assert w_flat.shape[0] == 9 * Cin
    assert scale.shape == (1, Cin) and shift.shape == (1, Cin)
    kernel = functools.partial(_conv3x3_kernel, H, W, Cin, Cp, apply_prologue)
    return pl.pallas_call(
        kernel,
        out_shape=(jax.ShapeDtypeStruct((N, H, W, Cp), out_dtype),
                   jax.ShapeDtypeStruct((N, 1, Cp), jnp.float32),
                   jax.ShapeDtypeStruct((N, 1, Cp), jnp.float32)),
        grid=(N,),
        in_specs=[
            pl.BlockSpec((1, H, W, Cin), lambda n: (n, 0, 0, 0)),
            pl.BlockSpec((9 * Cin, Cp), lambda n: (0, 0)),
            pl.BlockSpec((1, Cin), lambda n: (0, 0)),
            pl.BlockSpec((1, Cin), lambda n: (0, 0)),
        ],
        out_specs=(
            pl.BlockSpec((1, H, W, Cp), lambda n: (n, 0, 0, 0)),
            pl.BlockSpec((1, 1, Cp), lambda n: (n, 0, 0)),
            pl.BlockSpec((1, 1, Cp), lambda n: (n, 0, 0)),
        ),
        scratch_shapes=[pltpu.VMEM((H + 2, W + 2, Cin), jnp.bfloat16),
                        pltpu.VMEM((H, W, 9 * Cin), jnp.bfloat16)],
        compiler_params=pltpu.CompilerParams(
            dimension_semantics=("parallel",),
            vmem_limit_bytes=VMEM_LIMIT),
    )(x, w_flat, scale, shift)


# ---------------------------------------------------------------------------
# BN2 + ReLU + 2x2 average pool.  Input is the conv2 output host-reshaped
# (free, row-major) to (N, H/2, 2, W/2, 2*Cp): the even/odd column channels
# sit side-by-side in a lane-dense 2*Cp minor dim, so column pooling is two
# lane-tile-aligned slices; rows pool by adding the two row slabs.  The kernel
# emits (N, H/2, W/2, Cp) directly -- no extra HBM columns, no host slice pass.
# ---------------------------------------------------------------------------
def _bn_relu_pool_kernel(x_ref, s_ref, b_ref, o_ref):
    Cp = o_ref.shape[-1]
    s = s_ref[...].reshape(1, 1, -1)
    b = b_ref[...].reshape(1, 1, -1)

    def act(v):
        return jnp.maximum(v.astype(jnp.float32) * s + b, 0.0)

    r0 = x_ref[0, :, 0, :, :]                       # (H/2, W/2, 2*Cp)
    r1 = x_ref[0, :, 1, :, :]
    pooled = (act(r0[:, :, :Cp]) + act(r0[:, :, Cp:]) +
              act(r1[:, :, :Cp]) + act(r1[:, :, Cp:]))
    o_ref[0] = pooled * 0.25


def bn_relu_avgpool2x2(y, scale, shift):
    N, H, W, Cp = y.shape
    Hh, Wh = H // 2, W // 2
    y5 = y.reshape(N, Hh, 2, Wh, 2 * Cp)            # free row-major reshape
    return pl.pallas_call(
        _bn_relu_pool_kernel,
        out_shape=jax.ShapeDtypeStruct((N, Hh, Wh, Cp), jnp.float32),
        grid=(N,),
        in_specs=[
            pl.BlockSpec((1, Hh, 2, Wh, 2 * Cp), lambda n: (n, 0, 0, 0, 0)),
            pl.BlockSpec((1, Cp), lambda n: (0, 0)),
            pl.BlockSpec((1, Cp), lambda n: (0, 0)),
        ],
        out_specs=pl.BlockSpec((1, Hh, Wh, Cp), lambda n: (n, 0, 0, 0)),
        compiler_params=pltpu.CompilerParams(
            dimension_semantics=("parallel",),
            vmem_limit_bytes=VMEM_LIMIT),
    )(y5, scale, shift)


# ---------------------------------------------------------------------------
# Host glue: weight/channel padding, BN stat finalization, layout plumbing.
# ---------------------------------------------------------------------------
def _bn_scale_shift(sum_per_img, sq_per_img, count, gamma_p, beta_p, eps=EPS):
    # NOTE: E[x^2]-E[x]^2 in f32 is fine at these sizes.
    # TODO(synk): switch to a shifted / Welford-style reduction for very large N*H*W.
    total = jnp.sum(sum_per_img, axis=0)            # (1, Cp)
    total_sq = jnp.sum(sq_per_img, axis=0)
    mean = total / count
    var = jnp.maximum(total_sq / count - mean * mean, 0.0)   # biased, clamped
    scale = gamma_p[None, :] * lax.rsqrt(var + eps)
    shift = beta_p[None, :] - mean * scale
    return scale, shift


def conv_block_forward(x_nchw, w1, w2, g1, b1, g2, b2,
                       pool_size=(2, 2), pool_type='avg'):
    # TODO(synk): only the default pool_type='avg', pool_size=(2,2) path is
    # implemented ('max' / 'avg+max' branches are not emitted).
    assert pool_type == 'avg' and tuple(pool_size) == (2, 2)
    N, Cin, H, W = x_nchw.shape
    assert H % 2 == 0 and W % 2 == 0
    Cout = w1.shape[0]
    Cp = _round_up(max(Cout, LANE), LANE)           # lane-dense channel padding
    M = N * H * W

    # NHWC for lane-dense channels (no zero-padding pass: halos are done in-kernel).
    x = jnp.transpose(x_nchw, (0, 2, 3, 1)).astype(jnp.float32)

    # torch conv weight (O, I, 3, 3) -> (9*I_pad, Cp) bf16, rows ordered
    # (tap-major, input-channel-minor) to match the in-kernel im2col slab.
    def prep_w(w, cin_pad):
        O, I = w.shape[0], w.shape[1]
        w9 = jnp.transpose(w, (2, 3, 1, 0)).reshape(9, I, O)
        w9 = jnp.pad(w9, ((0, 0), (0, cin_pad - I), (0, Cp - O)))
        return w9.reshape(9 * cin_pad, Cp).astype(jnp.bfloat16)

    def pad_c(v):
        return jnp.pad(v.astype(jnp.float32), (0, Cp - Cout))

    w1_f = prep_w(w1, Cin)                          # (9*Cin, Cp)
    w2_f = prep_w(w2, Cp)                           # (9*Cp,  Cp)
    g1p, b1p, g2p, b2p = pad_c(g1), pad_c(b1), pad_c(g2), pad_c(b2)

    # conv1 (+ per-image BN1 batch stats).
    dummy = jnp.zeros((1, Cin), jnp.float32)
    y1, s1, q1 = conv3x3_fused(x, w1_f, dummy, dummy,
                               apply_prologue=False, out_dtype=jnp.bfloat16)
    sc1, sh1 = _bn_scale_shift(s1, q1, M, g1p, b1p)

    # conv2 with fused BN1-apply + ReLU prologue (+ per-image BN2 batch stats).
    y2, s2, q2 = conv3x3_fused(y1, w2_f, sc1, sh1,
                               apply_prologue=True, out_dtype=jnp.bfloat16)
    sc2, sh2 = _bn_scale_shift(s2, q2, M, g2p, b2p)

    # BN2 + ReLU + 2x2 average pool, then back to NCHW with the real channels.
    pooled = bn_relu_avgpool2x2(y2, sc2, sh2)       # (N, H/2, W/2, Cp)
    return jnp.transpose(pooled[..., :Cout], (0, 3, 1, 2))


# ---------------------------------------------------------------------------
# Pure-JAX f32 reference of the PyTorch forward (train-mode BN), for sanity.
# ---------------------------------------------------------------------------
def reference_forward(x, w1, w2, g1, b1, g2, b2, eps=EPS):
    def conv(z, w):
        return lax.conv_general_dilated(z, w, (1, 1), 'SAME',
                                        dimension_numbers=('NCHW', 'OIHW', 'NCHW'))

    def bn_relu(y, g, b):
        mean = y.mean(axis=(0, 2, 3), keepdims=True)
        var = y.var(axis=(0, 2, 3), keepdims=True)
        yhat = (y - mean) * lax.rsqrt(var + eps)
        return jax.nn.relu(yhat * g[None, :, None, None] + b[None, :, None, None])

    y = bn_relu(conv(x, w1), g1, b1)
    y = bn_relu(conv(y, w2), g2, b2)
    N, C, H, W = y.shape
    return y.reshape(N, C, H // 2, 2, W // 2, 2).mean(axis=(3, 5))


if __name__ == "__main__":
    key = jax.random.PRNGKey(0)
    kx, k1, k2 = jax.random.split(key, 3)

    N, Cin, Cout, H, W = 2, 4, 8, 16, 16
    x = jax.random.normal(kx, (N, Cin, H, W), dtype=jnp.float32)

    def xavier_uniform(k, cout, cin):
        fan_in, fan_out = cin * 9, cout * 9
        bound = (6.0 / (fan_in + fan_out)) ** 0.5
        return jax.random.uniform(k, (cout, cin, 3, 3), jnp.float32, -bound, bound)

    w1 = xavier_uniform(k1, Cout, Cin)
    w2 = xavier_uniform(k2, Cout, Cout)
    g1 = jnp.ones((Cout,), jnp.float32); b1 = jnp.zeros((Cout,), jnp.float32)
    g2 = jnp.ones((Cout,), jnp.float32); b2 = jnp.zeros((Cout,), jnp.float32)

    out = jax.jit(conv_block_forward)(x, w1, w2, g1, b1, g2, b2)
    out = jax.block_until_ready(out)

    ref = reference_forward(x, w1, w2, g1, b1, g2, b2)
    assert out.shape == (N, Cout, H // 2, W // 2), out.shape
    # bf16 matmul inputs / bf16 intermediate activations -> looser tolerance
    # than a pure-f32 pipeline, still tight enough to catch structural bugs.
    err_max = float(jnp.max(jnp.abs(out - ref)))
    err_mean = float(jnp.mean(jnp.abs(out - ref)))
    assert err_max < 0.15 and err_mean < 0.02, (err_max, err_mean)
    print("KERNEL_OK")
</pallas_src>

<mosaic_0001>
module attributes {stable_mosaic.version = 11 : i64} {
  func.func @_conv3x3_kernel(%arg0: i32, %arg1: memref<1x16x16x4xf32, #tpu.memory_space<vmem>>, %arg2: memref<36x128xbf16, #tpu.memory_space<vmem>>, %arg3: memref<1x4xf32, #tpu.memory_space<vmem>>, %arg4: memref<1x4xf32, #tpu.memory_space<vmem>>, %arg5: memref<1x16x16x128xbf16, #tpu.memory_space<vmem>>, %arg6: memref<1x1x128xf32, #tpu.memory_space<vmem>>, %arg7: memref<1x1x128xf32, #tpu.memory_space<vmem>>, %arg8: memref<18x18x4xbf16, #tpu.memory_space<vmem>>, %arg9: memref<16x16x36xbf16, #tpu.memory_space<vmem>>) attributes {dimension_semantics = [#tpu.dimension_semantics<parallel>], iteration_bounds = array<i64: 2>, scalar_prefetch = 0 : i64, scratch_operands = 2 : i64, tpu.core_type = #tpu.core_type<tc>, window_params = [{transform_indices = @transform_0, window_bounds = array<i64: 1, 16, 16, 4>}, {pipeline_mode = #tpu.pipeline_mode<synchronous>, transform_indices = @transform_1, window_bounds = array<i64: 36, 128>}, {pipeline_mode = #tpu.pipeline_mode<synchronous>, transform_indices = @transform_2, window_bounds = array<i64: 1, 4>}, {pipeline_mode = #tpu.pipeline_mode<synchronous>, transform_indices = @transform_3, window_bounds = array<i64: 1, 4>}, {transform_indices = @transform_4, window_bounds = array<i64: 1, 16, 16, 128>}, {transform_indices = @transform_5, window_bounds = array<i64: 1, 1, 128>}, {transform_indices = @transform_6, window_bounds = array<i64: 1, 1, 128>}]} {
    %c0 = arith.constant 0 : index
    %c0_0 = arith.constant 0 : index
    %c0_1 = arith.constant 0 : index
    %c0_2 = arith.constant 0 : index
    %0 = vector.load %arg1[%c0, %c0_0, %c0_1, %c0_2] : memref<1x16x16x4xf32, #tpu.memory_space<vmem>>, vector<1x16x16x4xf32>
    %1 = vector.shape_cast %0 : vector<1x16x16x4xf32> to vector<16x16x4xf32>
    %2 = arith.truncf %1 : vector<16x16x4xf32> to vector<16x16x4xbf16>
    %cst = arith.constant 0.000000e+00 : bf16
    %3 = vector.broadcast %cst : bf16 to vector<1x18x4xbf16>
    %cst_3 = arith.constant 0.000000e+00 : bf16
    %4 = vector.broadcast %cst_3 : bf16 to vector<18x1x4xbf16>
    %c0_4 = arith.constant 0 : index
    %c0_5 = arith.constant 0 : index
    %c0_6 = arith.constant 0 : index
    %5 = vector.load %arg8[%c0_4, %c0_5, %c0_6] : memref<18x18x4xbf16, #tpu.memory_space<vmem>>, vector<1x18x4xbf16>
    tpu.vector_store %arg8[%c0_4, %c0_5, %c0_6], %3 {strides = array<i32>} : memref<18x18x4xbf16, #tpu.memory_space<vmem>>, vector<1x18x4xbf16>,
    %c17 = arith.constant 17 : index
    %c0_7 = arith.constant 0 : index
    %c0_8 = arith.constant 0 : index
    %6 = vector.load %arg8[%c17, %c0_7, %c0_8] : memref<18x18x4xbf16, #tpu.memory_space<vmem>>, vector<1x18x4xbf16>
    tpu.vector_store %arg8[%c17, %c0_7, %c0_8], %3 {strides = array<i32>} : memref<18x18x4xbf16, #tpu.memory_space<vmem>>, vector<1x18x4xbf16>,
    %c0_9 = arith.constant 0 : index
    %c0_10 = arith.constant 0 : index
    %c0_11 = arith.constant 0 : index
    %7 = vector.load %arg8[%c0_9, %c0_10, %c0_11] : memref<18x18x4xbf16, #tpu.memory_space<vmem>>, vector<18x1x4xbf16>
    tpu.vector_store %arg8[%c0_9, %c0_10, %c0_11], %4 {strides = array<i32>} : memref<18x18x4xbf16, #tpu.memory_space<vmem>>, vector<18x1x4xbf16>,
    %c0_12 = arith.constant 0 : index
    %c17_13 = arith.constant 17 : index
    %c0_14 = arith.constant 0 : index
    %8 = vector.load %arg8[%c0_12, %c17_13, %c0_14] : memref<18x18x4xbf16, #tpu.memory_space<vmem>>, vector<18x1x4xbf16>
    tpu.vector_store %arg8[%c0_12, %c17_13, %c0_14], %4 {strides = array<i32>} : memref<18x18x4xbf16, #tpu.memory_space<vmem>>, vector<18x1x4xbf16>,
    %c1 = arith.constant 1 : index
    %c1_15 = arith.constant 1 : index
    %c0_16 = arith.constant 0 : index
    %9 = vector.load %arg8[%c1, %c1_15, %c0_16] : memref<18x18x4xbf16, #tpu.memory_space<vmem>>, vector<16x16x4xbf16>
    tpu.vector_store %arg8[%c1, %c1_15, %c0_16], %2 {strides = array<i32>} : memref<18x18x4xbf16, #tpu.memory_space<vmem>>, vector<16x16x4xbf16>,
    %c0_17 = arith.constant 0 : index
    %c0_18 = arith.constant 0 : index
    %c0_19 = arith.constant 0 : index
    %10 = vector.load %arg8[%c0_17, %c0_18, %c0_19] : memref<18x18x4xbf16, #tpu.memory_space<vmem>>, vector<16x16x4xbf16>
    %c0_20 = arith.constant 0 : index
    %c0_21 = arith.constant 0 : index
    %c0_22 = arith.constant 0 : index
    %11 = vector.load %arg9[%c0_20, %c0_21, %c0_22] : memref<16x16x36xbf16, #tpu.memory_space<vmem>>, vector<16x16x4xbf16>
    tpu.vector_store %arg9[%c0_20, %c0_21, %c0_22], %10 {strides = array<i32>} : memref<16x16x36xbf16, #tpu.memory_space<vmem>>, vector<16x16x4xbf16>,
    %c0_23 = arith.constant 0 : index
    %c1_24 = arith.constant 1 : index
    %c0_25 = arith.constant 0 : index
    %12 = vector.load %arg8[%c0_23, %c1_24, %c0_25] : memref<18x18x4xbf16, #tpu.memory_space<vmem>>, vector<16x16x4xbf16>
    %c0_26 = arith.constant 0 : index
    %c0_27 = arith.constant 0 : index
    %c4 = arith.constant 4 : index
    %13 = vector.load %arg9[%c0_26, %c0_27, %c4] : memref<16x16x36xbf16, #tpu.memory_space<vmem>>, vector<16x16x4xbf16>
    tpu.vector_store %arg9[%c0_26, %c0_27, %c4], %12 {strides = array<i32>} : memref<16x16x36xbf16, #tpu.memory_space<vmem>>, vector<16x16x4xbf16>,
    %c0_28 = arith.constant 0 : index
    %c2 = arith.constant 2 : index
    %c0_29 = arith.constant 0 : index
    %14 = vector.load %arg8[%c0_28, %c2, %c0_29] : memref<18x18x4xbf16, #tpu.memory_space<vmem>>, vector<16x16x4xbf16>
    %c0_30 = arith.constant 0 : index
    %c0_31 = arith.constant 0 : index
    %c8 = arith.constant 8 : index
    %15 = vector.load %arg9[%c0_30, %c0_31, %c8] : memref<16x16x36xbf16, #tpu.memory_space<vmem>>, vector<16x16x4xbf16>
    tpu.vector_store %arg9[%c0_30, %c0_31, %c8], %14 {strides = array<i32>} : memref<16x16x36xbf16, #tpu.memory_space<vmem>>, vector<16x16x4xbf16>,
    %c1_32 = arith.constant 1 : index
    %c0_33 = arith.constant 0 : index
    %c0_34 = arith.constant 0 : index
    %16 = vector.load %arg8[%c1_32, %c0_33, %c0_34] : memref<18x18x4xbf16, #tpu.memory_space<vmem>>, vector<16x16x4xbf16>
    %c0_35 = arith.constant 0 : index
    %c0_36 = arith.constant 0 : index
    %c12 = arith.constant 12 : index
    %17 = vector.load %arg9[%c0_35, %c0_36, %c12] : memref<16x16x36xbf16, #tpu.memory_space<vmem>>, vector<16x16x4xbf16>
    tpu.vector_store %arg9[%c0_35, %c0_36, %c12], %16 {strides = array<i32>} : memref<16x16x36xbf16, #tpu.memory_space<vmem>>, vector<16x16x4xbf16>,
    %c1_37 = arith.constant 1 : index
    %c1_38 = arith.constant 1 : index
    %c0_39 = arith.constant 0 : index
    %18 = vector.load %arg8[%c1_37, %c1_38, %c0_39] : memref<18x18x4xbf16, #tpu.memory_space<vmem>>, vector<16x16x4xbf16>
    %c0_40 = arith.constant 0 : index
    %c0_41 = arith.constant 0 : index
    %c16 = arith.constant 16 : index
    %19 = vector.load %arg9[%c0_40, %c0_41, %c16] : memref<16x16x36xbf16, #tpu.memory_space<vmem>>, vector<16x16x4xbf16>
    tpu.vector_store %arg9[%c0_40, %c0_41, %c16], %18 {strides = array<i32>} : memref<16x16x36xbf16, #tpu.memory_space<vmem>>, vector<16x16x4xbf16>,
    %c1_42 = arith.constant 1 : index
    %c2_43 = arith.constant 2 : index
    %c0_44 = arith.constant 0 : index
    %20 = vector.load %arg8[%c1_42, %c2_43, %c0_44] : memref<18x18x4xbf16, #tpu.memory_space<vmem>>, vector<16x16x4xbf16>
    %c0_45 = arith.constant 0 : index
    %c0_46 = arith.constant 0 : index
    %c20 = arith.constant 20 : index
    %21 = vector.load %arg9[%c0_45, %c0_46, %c20] : memref<16x16x36xbf16, #tpu.memory_space<vmem>>, vector<16x16x4xbf16>
    tpu.vector_store %arg9[%c0_45, %c0_46, %c20], %20 {strides = array<i32>} : memref<16x16x36xbf16, #tpu.memory_space<vmem>>, vector<16x16x4xbf16>,
    %c2_47 = arith.constant 2 : index
    %c0_48 = arith.constant 0 : index
    %c0_49 = arith.constant 0 : index
    %22 = vector.load %arg8[%c2_47, %c0_48, %c0_49] : memref<18x18x4xbf16, #tpu.memory_space<vmem>>, vector<16x16x4xbf16>
    %c0_50 = arith.constant 0 : index
    %c0_51 = arith.constant 0 : index
    %c24 = arith.constant 24 : index
    %23 = vector.load %arg9[%c0_50, %c0_51, %c24] : memref<16x16x36xbf16, #tpu.memory_space<vmem>>, vector<16x16x4xbf16>
    tpu.vector_store %arg9[%c0_50, %c0_51, %c24], %22 {strides = array<i32>} : memref<16x16x36xbf16, #tpu.memory_space<vmem>>, vector<16x16x4xbf16>,
    %c2_52 = arith.constant 2 : index
    %c1_53 = arith.constant 1 : index
    %c0_54 = arith.constant 0 : index
    %24 = vector.load %arg8[%c2_52, %c1_53, %c0_54] : memref<18x18x4xbf16, #tpu.memory_space<vmem>>, vector<16x16x4xbf16>
    %c0_55 = arith.constant 0 : index
    %c0_56 = arith.constant 0 : index
    %c28 = arith.constant 28 : index
    %25 = vector.load %arg9[%c0_55, %c0_56, %c28] : memref<16x16x36xbf16, #tpu.memory_space<vmem>>, vector<16x16x4xbf16>
    tpu.vector_store %arg9[%c0_55, %c0_56, %c28], %24 {strides = array<i32>} : memref<16x16x36xbf16, #tpu.memory_space<vmem>>, vector<16x16x4xbf16>,
    %c2_57 = arith.constant 2 : index
    %c2_58 = arith.constant 2 : index
    %c0_59 = arith.constant 0 : index
    %26 = vector.load %arg8[%c2_57, %c2_58, %c0_59] : memref<18x18x4xbf16, #tpu.memory_space<vmem>>, vector<16x16x4xbf16>
    %c0_60 = arith.constant 0 : index
    %c0_61 = arith.constant 0 : index
    %c32 = arith.constant 32 : index
    %27 = vector.load %arg9[%c0_60, %c0_61, %c32] : memref<16x16x36xbf16, #tpu.memory_space<vmem>>, vector<16x16x4xbf16>
    tpu.vector_store %arg9[%c0_60, %c0_61, %c32], %26 {strides = array<i32>} : memref<16x16x36xbf16, #tpu.memory_space<vmem>>, vector<16x16x4xbf16>,
    %c0_62 = arith.constant 0 : index
    %c0_63 = arith.constant 0 : index
    %c0_64 = arith.constant 0 : index
    %28 = vector.load %arg9[%c0_62, %c0_63, %c0_64] : memref<16x16x36xbf16, #tpu.memory_space<vmem>>, vector<16x16x36xbf16>
    %29 = vector.shape_cast %28 : vector<16x16x36xbf16> to vector<256x36xbf16>
    %c0_65 = arith.constant 0 : index
    %c0_66 = arith.constant 0 : index
    %30 = vector.load %arg2[%c0_65, %c0_66] : memref<36x128xbf16, #tpu.memory_space<vmem>>, vector<36x128xbf16>
    %cst_67 = arith.constant dense<0.000000e+00> : vector<256x128xf32>
    %31 = tpu.matmul %29, %30, %cst_67 {dimension_numbers = #tpu.dot_dimension_numbers<[1], [0], [0], [1], [0, 0, 1, 1], [], []>} : vector<256x36xbf16>, vector<36x128xbf16>, vector<256x128xf32> -> vector<256x128xf32>
    %cst_68 = arith.constant dense<0.000000e+00> : vector<128xf32>
    %32 = vector.multi_reduction <add>, %31, %cst_68 [0] : vector<256x128xf32> to vector<128xf32>
    %33 = vector.shape_cast %32 : vector<128xf32> to vector<1x128xf32>
    %c0_69 = arith.constant 0 : index
    %c0_70 = arith.constant 0 : index
    %c0_71 = arith.constant 0 : index
    %34 = vector.load %arg6[%c0_69, %c0_70, %c0_71] : memref<1x1x128xf32, #tpu.memory_space<vmem>>, vector<1x1x128xf32>
    %35 = vector.shape_cast %34 : vector<1x1x128xf32> to vector<1x128xf32>
    %36 = vector.shape_cast %33 : vector<1x128xf32> to vector<1x1x128xf32>
    tpu.vector_store %arg6[%c0_69, %c0_70, %c0_71], %36 {strides = array<i32>} : memref<1x1x128xf32, #tpu.memory_space<vmem>>, vector<1x1x128xf32>,
    %37 = arith.mulf %31, %31 : vector<256x128xf32>
    %cst_72 = arith.constant dense<0.000000e+00> : vector<128xf32>
    %38 = vector.multi_reduction <add>, %37, %cst_72 [0] : vector<256x128xf32> to vector<128xf32>
    %39 = vector.shape_cast %38 : vector<128xf32> to vector<1x128xf32>
    %c0_73 = arith.constant 0 : index
    %c0_74 = arith.constant 0 : index
    %c0_75 = arith.constant 0 : index
    %40 = vector.load %arg7[%c0_73, %c0_74, %c0_75] : memref<1x1x128xf32, #tpu.memory_space<vmem>>, vector<1x1x128xf32>
    %41 = vector.shape_cast %40 : vector<1x1x128xf32> to vector<1x128xf32>
    %42 = vector.shape_cast %39 : vector<1x128xf32> to vector<1x1x128xf32>
    tpu.vector_store %arg7[%c0_73, %c0_74, %c0_75], %42 {strides = array<i32>} : memref<1x1x128xf32, #tpu.memory_space<vmem>>, vector<1x1x128xf32>,
    %43 = vector.shape_cast %31 : vector<256x128xf32> to vector<16x16x128xf32>
    %44 = arith.truncf %43 : vector<16x16x128xf32> to vector<16x16x128xbf16>
    %c0_76 = arith.constant 0 : index
    %c0_77 = arith.constant 0 : index
    %c0_78 = arith.constant 0 : index
    %c0_79 = arith.constant 0 : index
    %45 = vector.load %arg5[%c0_76, %c0_77, %c0_78, %c0_79] : memref<1x16x16x128xbf16, #tpu.memory_space<vmem>>, vector<1x16x16x128xbf16>
    %46 = vector.shape_cast %45 : vector<1x16x16x128xbf16> to vector<16x16x128xbf16>
    %47 = vector.shape_cast %44 : vector<16x16x128xbf16> to vector<1x16x16x128xbf16>
    tpu.vector_store %arg5[%c0_76, %c0_77, %c0_78, %c0_79], %47 {strides = array<i32>} : memref<1x16x16x128xbf16, #tpu.memory_space<vmem>>, vector<1x16x16x128xbf16>,
    return
  }
  func.func @transform_0(%arg0: i32) -> (i32, i32, i32, i32) {
    %c0_i32 = arith.constant 0 : i32
    %c0_i32_0 = arith.constant 0 : i32
    %c0_i32_1 = arith.constant 0 : i32
    %c0_i32_2 = arith.constant 0 : i32
    return %arg0, %c0_i32, %c0_i32_0, %c0_i32_1 : i32, i32, i32, i32
  }
  func.func @transform_1(%arg0: i32) -> (i32, i32) {
    %c0_i32 = arith.constant 0 : i32
    %c0_i32_0 = arith.constant 0 : i32
    %c0_i32_1 = arith.constant 0 : i32
    return %c0_i32, %c0_i32_0 : i32, i32
  }
  func.func @transform_2(%arg0: i32) -> (i32, i32) {
    %c0_i32 = arith.constant 0 : i32
    %c0_i32_0 = arith.constant 0 : i32
    %c0_i32_1 = arith.constant 0 : i32
    return %c0_i32, %c0_i32_0 : i32, i32
  }
  func.func @transform_3(%arg0: i32) -> (i32, i32) {
    %c0_i32 = arith.constant 0 : i32
    %c0_i32_0 = arith.constant 0 : i32
    %c0_i32_1 = arith.constant 0 : i32
    return %c0_i32, %c0_i32_0 : i32, i32
  }
  func.func @transform_4(%arg0: i32) -> (i32, i32, i32, i32) {
    %c0_i32 = arith.constant 0 : i32
    %c0_i32_0 = arith.constant 0 : i32
    %c0_i32_1 = arith.constant 0 : i32
    %c0_i32_2 = arith.constant 0 : i32
    return %arg0, %c0_i32, %c0_i32_0, %c0_i32_1 : i32, i32, i32, i32
  }
  func.func @transform_5(%arg0: i32) -> (i32, i32, i32) {
    %c0_i32 = arith.constant 0 : i32
    %c0_i32_0 = arith.constant 0 : i32
    %c0_i32_1 = arith.constant 0 : i32
    return %arg0, %c0_i32, %c0_i32_0 : i32, i32, i32
  }
  func.func @transform_6(%arg0: i32) -> (i32, i32, i32) {
    %c0_i32 = arith.constant 0 : i32
    %c0_i32_0 = arith.constant 0 : i32
    %c0_i32_1 = arith.constant 0 : i32
    return %arg0, %c0_i32, %c0_i32_0 : i32, i32, i32
  }
}

module attributes {stable_mosaic.version = 11 : i64} {
  func.func @_bn_relu_pool_kernel(%arg0: i32, %arg1: memref<1x8x2x8x256xbf16, #tpu.memory_space<vmem>>, %arg2: memref<1x128xf32, #tpu.memory_space<vmem>>, %arg3: memref<1x128xf32, #tpu.memory_space<vmem>>, %arg4: memref<1x8x8x128xf32, #tpu.memory_space<vmem>>) attributes {dimension_semantics = [#tpu.dimension_semantics<parallel>], iteration_bounds = array<i64: 2>, scalar_prefetch = 0 : i64, scratch_operands = 0 : i64, tpu.core_type = #tpu.core_type<tc>, window_params = [{transform_indices = @transform_0, window_bounds = array<i64: 1, 8, 2, 8, 256>}, {pipeline_mode = #tpu.pipeline_mode<synchronous>, transform_indices = @transform_1, window_bounds = array<i64: 1, 128>}, {pipeline_mode = #tpu.pipeline_mode<synchronous>, transform_indices = @transform_2, window_bounds = array<i64: 1, 128>}, {transform_indices = @transform_3, window_bounds = array<i64: 1, 8, 8, 128>}]} {
    %c0 = arith.constant 0 : index
    %c0_0 = arith.constant 0 : index
    %0 = vector.load %arg2[%c0, %c0_0] : memref<1x128xf32, #tpu.memory_space<vmem>>, vector<1x128xf32>
    %1 = vector.shape_cast %0 : vector<1x128xf32> to vector<1x1x128xf32>
    %c0_1 = arith.constant 0 : index
    %c0_2 = arith.constant 0 : index
    %2 = vector.load %arg3[%c0_1, %c0_2] : memref<1x128xf32, #tpu.memory_space<vmem>>, vector<1x128xf32>
    %3 = vector.shape_cast %2 : vector<1x128xf32> to vector<1x1x128xf32>
    %c0_3 = arith.constant 0 : index
    %c0_4 = arith.constant 0 : index
    %c0_5 = arith.constant 0 : index
    %c0_6 = arith.constant 0 : index
    %c0_7 = arith.constant 0 : index
    %4 = vector.load %arg1[%c0_3, %c0_4, %c0_5, %c0_6, %c0_7] : memref<1x8x2x8x256xbf16, #tpu.memory_space<vmem>>, vector<1x8x1x8x256xbf16>
    %5 = vector.shape_cast %4 : vector<1x8x1x8x256xbf16> to vector<8x8x256xbf16>
    %c0_8 = arith.constant 0 : index
    %c0_9 = arith.constant 0 : index
    %c1 = arith.constant 1 : index
    %c0_10 = arith.constant 0 : index
    %c0_11 = arith.constant 0 : index
    %6 = vector.load %arg1[%c0_8, %c0_9, %c1, %c0_10, %c0_11] : memref<1x8x2x8x256xbf16, #tpu.memory_space<vmem>>, vector<1x8x1x8x256xbf16>
    %7 = vector.shape_cast %6 : vector<1x8x1x8x256xbf16> to vector<8x8x256xbf16>
    %8 = vector.extract_strided_slice %5 {offsets = [0, 0, 0], sizes = [8, 8, 128], strides = [1, 1, 1]} : vector<8x8x256xbf16> to vector<8x8x128xbf16>
    %9 = arith.extf %8 : vector<8x8x128xbf16> to vector<8x8x128xf32>
    %10 = vector.broadcast %1 : vector<1x1x128xf32> to vector<8x8x128xf32>
    %11 = arith.mulf %9, %10 : vector<8x8x128xf32>
    %12 = vector.broadcast %3 : vector<1x1x128xf32> to vector<8x8x128xf32>
    %13 = arith.addf %11, %12 : vector<8x8x128xf32>
    %cst = arith.constant 0.000000e+00 : f32
    %14 = vector.broadcast %cst : f32 to vector<8x8x128xf32>
    %15 = arith.maximumf %13, %14 : vector<8x8x128xf32>
    %16 = vector.extract_strided_slice %5 {offsets = [0, 0, 128], sizes = [8, 8, 128], strides = [1, 1, 1]} : vector<8x8x256xbf16> to vector<8x8x128xbf16>
    %17 = arith.extf %16 : vector<8x8x128xbf16> to vector<8x8x128xf32>
    %18 = vector.broadcast %1 : vector<1x1x128xf32> to vector<8x8x128xf32>
    %19 = arith.mulf %17, %18 : vector<8x8x128xf32>
    %20 = vector.broadcast %3 : vector<1x1x128xf32> to vector<8x8x128xf32>
    %21 = arith.addf %19, %20 : vector<8x8x128xf32>
    %cst_12 = arith.constant 0.000000e+00 : f32
    %22 = vector.broadcast %cst_12 : f32 to vector<8x8x128xf32>
    %23 = arith.maximumf %21, %22 : vector<8x8x128xf32>
    %24 = arith.addf %15, %23 : vector<8x8x128xf32>
    %25 = vector.extract_strided_slice %7 {offsets = [0, 0, 0], sizes = [8, 8, 128], strides = [1, 1, 1]} : vector<8x8x256xbf16> to vector<8x8x128xbf16>
    %26 = arith.extf %25 : vector<8x8x128xbf16> to vector<8x8x128xf32>
    %27 = vector.broadcast %1 : vector<1x1x128xf32> to vector<8x8x128xf32>
    %28 = arith.mulf %26, %27 : vector<8x8x128xf32>
    %29 = vector.broadcast %3 : vector<1x1x128xf32> to vector<8x8x128xf32>
    %30 = arith.addf %28, %29 : vector<8x8x128xf32>
    %cst_13 = arith.constant 0.000000e+00 : f32
    %31 = vector.broadcast %cst_13 : f32 to vector<8x8x128xf32>
    %32 = arith.maximumf %30, %31 : vector<8x8x128xf32>
    %33 = arith.addf %24, %32 : vector<8x8x128xf32>
    %34 = vector.extract_strided_slice %7 {offsets = [0, 0, 128], sizes = [8, 8, 128], strides = [1, 1, 1]} : vector<8x8x256xbf16> to vector<8x8x128xbf16>
    %35 = arith.extf %34 : vector<8x8x128xbf16> to vector<8x8x128xf32>
    %36 = vector.broadcast %1 : vector<1x1x128xf32> to vector<8x8x128xf32>
    %37 = arith.mulf %35, %36 : vector<8x8x128xf32>
    %38 = vector.broadcast %3 : vector<1x1x128xf32> to vector<8x8x128xf32>
    %39 = arith.addf %37, %38 : vector<8x8x128xf32>
    %cst_14 = arith.constant 0.000000e+00 : f32
    %40 = vector.broadcast %cst_14 : f32 to vector<8x8x128xf32>
    %41 = arith.maximumf %39, %40 : vector<8x8x128xf32>
    %42 = arith.addf %33, %41 : vector<8x8x128xf32>
    %cst_15 = arith.constant 2.500000e-01 : f32
    %43 = vector.broadcast %cst_15 : f32 to vector<8x8x128xf32>
    %44 = arith.mulf %42, %43 : vector<8x8x128xf32>
    %c0_16 = arith.constant 0 : index
    %c0_17 = arith.constant 0 : index
    %c0_18 = arith.constant 0 : index
    %c0_19 = arith.constant 0 : index
    %45 = vector.load %arg4[%c0_16, %c0_17, %c0_18, %c0_19] : memref<1x8x8x128xf32, #tpu.memory_space<vmem>>, vector<1x8x8x128xf32>
    %46 = vector.shape_cast %45 : vector<1x8x8x128xf32> to vector<8x8x128xf32>
    %47 = vector.shape_cast %44 : vector<8x8x128xf32> to vector<1x8x8x128xf32>
    tpu.vector_store %arg4[%c0_16, %c0_17, %c0_18, %c0_19], %47 {strides = array<i32>} : memref<1x8x8x128xf32, #tpu.memory_space<vmem>>, vector<1x8x8x128xf32>,
    return
  }
  func.func @transform_0(%arg0: i32) -> (i32, i32, i32, i32, i32) {
    %c0_i32 = arith.constant 0 : i32
    %c0_i32_0 = arith.constant 0 : i32
    %c0_i32_1 = arith.constant 0 : i32
    %c0_i32_2 = arith.constant 0 : i32
    %c0_i32_3 = arith.constant 0 : i32
    return %arg0, %c0_i32, %c0_i32_0, %c0_i32_1, %c0_i32_2 : i32, i32, i32, i32, i32
  }
  func.func @transform_1(%arg0: i32) -> (i32, i32) {
    %c0_i32 = arith.constant 0 : i32
    %c0_i32_0 = arith.constant 0 : i32
    %c0_i32_1 = arith.constant 0 : i32
    return %c0_i32, %c0_i32_0 : i32, i32
  }
  func.func @transform_2(%arg0: i32) -> (i32, i32) {
    %c0_i32 = arith.constant 0 : i32
    %c0_i32_0 = arith.constant 0 : i32
    %c0_i32_1 = arith.constant 0 : i32
    return %c0_i32, %c0_i32_0 : i32, i32
  }
  func.func @transform_3(%arg0: i32) -> (i32, i32, i32, i32) {
    %c0_i32 = arith.constant 0 : i32
    %c0_i32_0 = arith.constant 0 : i32
    %c0_i32_1 = arith.constant 0 : i32
    %c0_i32_2 = arith.constant 0 : i32
    return %arg0, %c0_i32, %c0_i32_0, %c0_i32_1 : i32, i32, i32, i32
  }
}

module attributes {stable_mosaic.version = 11 : i64} {
  func.func @_conv3x3_kernel(%arg0: i32, %arg1: memref<1x16x16x128xbf16, #tpu.memory_space<vmem>>, %arg2: memref<1152x128xbf16, #tpu.memory_space<vmem>>, %arg3: memref<1x128xf32, #tpu.memory_space<vmem>>, %arg4: memref<1x128xf32, #tpu.memory_space<vmem>>, %arg5: memref<1x16x16x128xbf16, #tpu.memory_space<vmem>>, %arg6: memref<1x1x128xf32, #tpu.memory_space<vmem>>, %arg7: memref<1x1x128xf32, #tpu.memory_space<vmem>>, %arg8: memref<18x18x128xbf16, #tpu.memory_space<vmem>>, %arg9: memref<16x16x1152xbf16, #tpu.memory_space<vmem>>) attributes {dimension_semantics = [#tpu.dimension_semantics<parallel>], iteration_bounds = array<i64: 2>, scalar_prefetch = 0 : i64, scratch_operands = 2 : i64, tpu.core_type = #tpu.core_type<tc>, window_params = [{transform_indices = @transform_0, window_bounds = array<i64: 1, 16, 16, 128>}, {pipeline_mode = #tpu.pipeline_mode<synchronous>, transform_indices = @transform_1, window_bounds = array<i64: 1152, 128>}, {pipeline_mode = #tpu.pipeline_mode<synchronous>, transform_indices = @transform_2, window_bounds = array<i64: 1, 128>}, {pipeline_mode = #tpu.pipeline_mode<synchronous>, transform_indices = @transform_3, window_bounds = array<i64: 1, 128>}, {transform_indices = @transform_4, window_bounds = array<i64: 1, 16, 16, 128>}, {transform_indices = @transform_5, window_bounds = array<i64: 1, 1, 128>}, {transform_indices = @transform_6, window_bounds = array<i64: 1, 1, 128>}]} {
    %c0 = arith.constant 0 : index
    %c0_0 = arith.constant 0 : index
    %c0_1 = arith.constant 0 : index
    %c0_2 = arith.constant 0 : index
    %0 = vector.load %arg1[%c0, %c0_0, %c0_1, %c0_2] : memref<1x16x16x128xbf16, #tpu.memory_space<vmem>>, vector<1x16x16x128xbf16>
    %1 = vector.shape_cast %0 : vector<1x16x16x128xbf16> to vector<16x16x128xbf16>
    %c0_3 = arith.constant 0 : index
    %c0_4 = arith.constant 0 : index
    %2 = vector.load %arg3[%c0_3, %c0_4] : memref<1x128xf32, #tpu.memory_space<vmem>>, vector<1x128xf32>
    %3 = arith.truncf %2 : vector<1x128xf32> to vector<1x128xbf16>
    %4 = vector.shape_cast %3 : vector<1x128xbf16> to vector<1x1x128xbf16>
    %c0_5 = arith.constant 0 : index
    %c0_6 = arith.constant 0 : index
    %5 = vector.load %arg4[%c0_5, %c0_6] : memref<1x128xf32, #tpu.memory_space<vmem>>, vector<1x128xf32>
    %6 = arith.truncf %5 : vector<1x128xf32> to vector<1x128xbf16>
    %7 = vector.shape_cast %6 : vector<1x128xbf16> to vector<1x1x128xbf16>
    %8 = vector.broadcast %4 : vector<1x1x128xbf16> to vector<16x16x128xbf16>
    %9 = arith.mulf %1, %8 : vector<16x16x128xbf16>
    %10 = vector.broadcast %7 : vector<1x1x128xbf16> to vector<16x16x128xbf16>
    %11 = arith.addf %9, %10 : vector<16x16x128xbf16>
    %cst = arith.constant 0.000000e+00 : bf16
    %12 = vector.broadcast %cst : bf16 to vector<16x16x128xbf16>
    %13 = arith.maximumf %11, %12 : vector<16x16x128xbf16>
    %cst_7 = arith.constant 0.000000e+00 : bf16
    %14 = vector.broadcast %cst_7 : bf16 to vector<1x18x128xbf16>
    %cst_8 = arith.constant 0.000000e+00 : bf16
    %15 = vector.broadcast %cst_8 : bf16 to vector<18x1x128xbf16>
    %c0_9 = arith.constant 0 : index
    %c0_10 = arith.constant 0 : index
    %c0_11 = arith.constant 0 : index
    %16 = vector.load %arg8[%c0_9, %c0_10, %c0_11] : memref<18x18x128xbf16, #tpu.memory_space<vmem>>, vector<1x18x128xbf16>
    tpu.vector_store %arg8[%c0_9, %c0_10, %c0_11], %14 {strides = array<i32>} : memref<18x18x128xbf16, #tpu.memory_space<vmem>>, vector<1x18x128xbf16>,
    %c17 = arith.constant 17 : index
    %c0_12 = arith.constant 0 : index
    %c0_13 = arith.constant 0 : index
    %17 = vector.load %arg8[%c17, %c0_12, %c0_13] : memref<18x18x128xbf16, #tpu.memory_space<vmem>>, vector<1x18x128xbf16>
    tpu.vector_store %arg8[%c17, %c0_12, %c0_13], %14 {strides = array<i32>} : memref<18x18x128xbf16, #tpu.memory_space<vmem>>, vector<1x18x128xbf16>,
    %c0_14 = arith.constant 0 : index
    %c0_15 = arith.constant 0 : index
    %c0_16 = arith.constant 0 : index
    %18 = vector.load %arg8[%c0_14, %c0_15, %c0_16] : memref<18x18x128xbf16, #tpu.memory_space<vmem>>, vector<18x1x128xbf16>
    tpu.vector_store %arg8[%c0_14, %c0_15, %c0_16], %15 {strides = array<i32>} : memref<18x18x128xbf16, #tpu.memory_space<vmem>>, vector<18x1x128xbf16>,
    %c0_17 = arith.constant 0 : index
    %c17_18 = arith.constant 17 : index
    %c0_19 = arith.constant 0 : index
    %19 = vector.load %arg8[%c0_17, %c17_18, %c0_19] : memref<18x18x128xbf16, #tpu.memory_space<vmem>>, vector<18x1x128xbf16>
    tpu.vector_store %arg8[%c0_17, %c17_18, %c0_19], %15 {strides = array<i32>} : memref<18x18x128xbf16, #tpu.memory_space<vmem>>, vector<18x1x128xbf16>,
    %c1 = arith.constant 1 : index
    %c1_20 = arith.constant 1 : index
    %c0_21 = arith.constant 0 : index
    %20 = vector.load %arg8[%c1, %c1_20, %c0_21] : memref<18x18x128xbf16, #tpu.memory_space<vmem>>, vector<16x16x128xbf16>
    tpu.vector_store %arg8[%c1, %c1_20, %c0_21], %13 {strides = array<i32>} : memref<18x18x128xbf16, #tpu.memory_space<vmem>>, vector<16x16x128xbf16>,
    %c0_22 = arith.constant 0 : index
    %c0_23 = arith.constant 0 : index
    %c0_24 = arith.constant 0 : index
    %21 = vector.load %arg8[%c0_22, %c0_23, %c0_24] : memref<18x18x128xbf16, #tpu.memory_space<vmem>>, vector<16x16x128xbf16>
    %c0_25 = arith.constant 0 : index
    %c0_26 = arith.constant 0 : index
    %c0_27 = arith.constant 0 : index
    %22 = vector.load %arg9[%c0_25, %c0_26, %c0_27] : memref<16x16x1152xbf16, #tpu.memory_space<vmem>>, vector<16x16x128xbf16>
    tpu.vector_store %arg9[%c0_25, %c0_26, %c0_27], %21 {strides = array<i32>} : memref<16x16x1152xbf16, #tpu.memory_space<vmem>>, vector<16x16x128xbf16>,
    %c0_28 = arith.constant 0 : index
    %c1_29 = arith.constant 1 : index
    %c0_30 = arith.constant 0 : index
    %23 = vector.load %arg8[%c0_28, %c1_29, %c0_30] : memref<18x18x128xbf16, #tpu.memory_space<vmem>>, vector<16x16x128xbf16>
    %c0_31 = arith.constant 0 : index
    %c0_32 = arith.constant 0 : index
    %c128 = arith.constant 128 : index
    %24 = vector.load %arg9[%c0_31, %c0_32, %c128] : memref<16x16x1152xbf16, #tpu.memory_space<vmem>>, vector<16x16x128xbf16>
    tpu.vector_store %arg9[%c0_31, %c0_32, %c128], %23 {strides = array<i32>} : memref<16x16x1152xbf16, #tpu.memory_space<vmem>>, vector<16x16x128xbf16>,
    %c0_33 = arith.constant 0 : index
    %c2 = arith.constant 2 : index
    %c0_34 = arith.constant 0 : index
    %25 = vector.load %arg8[%c0_33, %c2, %c0_34] : memref<18x18x128xbf16, #tpu.memory_space<vmem>>, vector<16x16x128xbf16>
    %c0_35 = arith.constant 0 : index
    %c0_36 = arith.constant 0 : index
    %c256 = arith.constant 256 : index
    %26 = vector.load %arg9[%c0_35, %c0_36, %c256] : memref<16x16x1152xbf16, #tpu.memory_space<vmem>>, vector<16x16x128xbf16>
    tpu.vector_store %arg9[%c0_35, %c0_36, %c256], %25 {strides = array<i32>} : memref<16x16x1152xbf16, #tpu.memory_space<vmem>>, vector<16x16x128xbf16>,
    %c1_37 = arith.constant 1 : index
    %c0_38 = arith.constant 0 : index
    %c0_39 = arith.constant 0 : index
    %27 = vector.load %arg8[%c1_37, %c0_38, %c0_39] : memref<18x18x128xbf16, #tpu.memory_space<vmem>>, vector<16x16x128xbf16>
    %c0_40 = arith.constant 0 : index
    %c0_41 = arith.constant 0 : index
    %c384 = arith.constant 384 : index
    %28 = vector.load %arg9[%c0_40, %c0_41, %c384] : memref<16x16x1152xbf16, #tpu.memory_space<vmem>>, vector<16x16x128xbf16>
    tpu.vector_store %arg9[%c0_40, %c0_41, %c384], %27 {strides = array<i32>} : memref<16x16x1152xbf16, #tpu.memory_space<vmem>>, vector<16x16x128xbf16>,
    %c1_42 = arith.constant 1 : index
    %c1_43 = arith.constant 1 : index
    %c0_44 = arith.constant 0 : index
    %29 = vector.load %arg8[%c1_42, %c1_43, %c0_44] : memref<18x18x128xbf16, #tpu.memory_space<vmem>>, vector<16x16x128xbf16>
    %c0_45 = arith.constant 0 : index
    %c0_46 = arith.constant 0 : index
    %c512 = arith.constant 512 : index
    %30 = vector.load %arg9[%c0_45, %c0_46, %c512] : memref<16x16x1152xbf16, #tpu.memory_space<vmem>>, vector<16x16x128xbf16>
    tpu.vector_store %arg9[%c0_45, %c0_46, %c512], %29 {strides = array<i32>} : memref<16x16x1152xbf16, #tpu.memory_space<vmem>>, vector<16x16x128xbf16>,
    %c1_47 = arith.constant 1 : index
    %c2_48 = arith.constant 2 : index
    %c0_49 = arith.constant 0 : index
    %31 = vector.load %arg8[%c1_47, %c2_48, %c0_49] : memref<18x18x128xbf16, #tpu.memory_space<vmem>>, vector<16x16x128xbf16>
    %c0_50 = arith.constant 0 : index
    %c0_51 = arith.constant 0 : index
    %c640 = arith.constant 640 : index
    %32 = vector.load %arg9[%c0_50, %c0_51, %c640] : memref<16x16x1152xbf16, #tpu.memory_space<vmem>>, vector<16x16x128xbf16>
    tpu.vector_store %arg9[%c0_50, %c0_51, %c640], %31 {strides = array<i32>} : memref<16x16x1152xbf16, #tpu.memory_space<vmem>>, vector<16x16x128xbf16>,
    %c2_52 = arith.constant 2 : index
    %c0_53 = arith.constant 0 : index
    %c0_54 = arith.constant 0 : index
    %33 = vector.load %arg8[%c2_52, %c0_53, %c0_54] : memref<18x18x128xbf16, #tpu.memory_space<vmem>>, vector<16x16x128xbf16>
    %c0_55 = arith.constant 0 : index
    %c0_56 = arith.constant 0 : index
    %c768 = arith.constant 768 : index
    %34 = vector.load %arg9[%c0_55, %c0_56, %c768] : memref<16x16x1152xbf16, #tpu.memory_space<vmem>>, vector<16x16x128xbf16>
    tpu.vector_store %arg9[%c0_55, %c0_56, %c768], %33 {strides = array<i32>} : memref<16x16x1152xbf16, #tpu.memory_space<vmem>>, vector<16x16x128xbf16>,
    %c2_57 = arith.constant 2 : index
    %c1_58 = arith.constant 1 : index
    %c0_59 = arith.constant 0 : index
    %35 = vector.load %arg8[%c2_57, %c1_58, %c0_59] : memref<18x18x128xbf16, #tpu.memory_space<vmem>>, vector<16x16x128xbf16>
    %c0_60 = arith.constant 0 : index
    %c0_61 = arith.constant 0 : index
    %c896 = arith.constant 896 : index
    %36 = vector.load %arg9[%c0_60, %c0_61, %c896] : memref<16x16x1152xbf16, #tpu.memory_space<vmem>>, vector<16x16x128xbf16>
    tpu.vector_store %arg9[%c0_60, %c0_61, %c896], %35 {strides = array<i32>} : memref<16x16x1152xbf16, #tpu.memory_space<vmem>>, vector<16x16x128xbf16>,
    %c2_62 = arith.constant 2 : index
    %c2_63 = arith.constant 2 : index
    %c0_64 = arith.constant 0 : index
    %37 = vector.load %arg8[%c2_62, %c2_63, %c0_64] : memref<18x18x128xbf16, #tpu.memory_space<vmem>>, vector<16x16x128xbf16>
    %c0_65 = arith.constant 0 : index
    %c0_66 = arith.constant 0 : index
    %c1024 = arith.constant 1024 : index
    %38 = vector.load %arg9[%c0_65, %c0_66, %c1024] : memref<16x16x1152xbf16, #tpu.memory_space<vmem>>, vector<16x16x128xbf16>
    tpu.vector_store %arg9[%c0_65, %c0_66, %c1024], %37 {strides = array<i32>} : memref<16x16x1152xbf16, #tpu.memory_space<vmem>>, vector<16x16x128xbf16>,
    %c0_67 = arith.constant 0 : index
    %c0_68 = arith.constant 0 : index
    %c0_69 = arith.constant 0 : index
    %39 = vector.load %arg9[%c0_67, %c0_68, %c0_69] : memref<16x16x1152xbf16, #tpu.memory_space<vmem>>, vector<16x16x1152xbf16>
    %40 = vector.shape_cast %39 : vector<16x16x1152xbf16> to vector<256x1152xbf16>
    %c0_70 = arith.constant 0 : index
    %c0_71 = arith.constant 0 : index
    %41 = vector.load %arg2[%c0_70, %c0_71] : memref<1152x128xbf16, #tpu.memory_space<vmem>>, vector<1152x128xbf16>
    %cst_72 = arith.constant dense<0.000000e+00> : vector<256x128xf32>
    %42 = tpu.matmul %40, %41, %cst_72 {dimension_numbers = #tpu.dot_dimension_numbers<[1], [0], [0], [1], [0, 0, 1, 1], [], []>} : vector<256x1152xbf16>, vector<1152x128xbf16>, vector<256x128xf32> -> vector<256x128xf32>
    %cst_73 = arith.constant dense<0.000000e+00> : vector<128xf32>
    %43 = vector.multi_reduction <add>, %42, %cst_73 [0] : vector<256x128xf32> to vector<128xf32>
    %44 = vector.shape_cast %43 : vector<128xf32> to vector<1x128xf32>
    %c0_74 = arith.constant 0 : index
    %c0_75 = arith.constant 0 : index
    %c0_76 = arith.constant 0 : index
    %45 = vector.load %arg6[%c0_74, %c0_75, %c0_76] : memref<1x1x128xf32, #tpu.memory_space<vmem>>, vector<1x1x128xf32>
    %46 = vector.shape_cast %45 : vector<1x1x128xf32> to vector<1x128xf32>
    %47 = vector.shape_cast %44 : vector<1x128xf32> to vector<1x1x128xf32>
    tpu.vector_store %arg6[%c0_74, %c0_75, %c0_76], %47 {strides = array<i32>} : memref<1x1x128xf32, #tpu.memory_space<vmem>>, vector<1x1x128xf32>,
    %48 = arith.mulf %42, %42 : vector<256x128xf32>
    %cst_77 = arith.constant dense<0.000000e+00> : vector<128xf32>
    %49 = vector.multi_reduction <add>, %48, %cst_77 [0] : vector<256x128xf32> to vector<128xf32>
    %50 = vector.shape_cast %49 : vector<128xf32> to vector<1x128xf32>
    %c0_78 = arith.constant 0 : index
    %c0_79 = arith.constant 0 : index
    %c0_80 = arith.constant 0 : index
    %51 = vector.load %arg7[%c0_78, %c0_79, %c0_80] : memref<1x1x128xf32, #tpu.memory_space<vmem>>, vector<1x1x128xf32>
    %52 = vector.shape_cast %51 : vector<1x1x128xf32> to vector<1x128xf32>
    %53 = vector.shape_cast %50 : vector<1x128xf32> to vector<1x1x128xf32>
    tpu.vector_store %arg7[%c0_78, %c0_79, %c0_80], %53 {strides = array<i32>} : memref<1x1x128xf32, #tpu.memory_space<vmem>>, vector<1x1x128xf32>,
    %54 = vector.shape_cast %42 : vector<256x128xf32> to vector<16x16x128xf32>
    %55 = arith.truncf %54 : vector<16x16x128xf32> to vector<16x16x128xbf16>
    %c0_81 = arith.constant 0 : index
    %c0_82 = arith.constant 0 : index
    %c0_83 = arith.constant 0 : index
    %c0_84 = arith.constant 0 : index
    %56 = vector.load %arg5[%c0_81, %c0_82, %c0_83, %c0_84] : memref<1x16x16x128xbf16, #tpu.memory_space<vmem>>, vector<1x16x16x128xbf16>
    %57 = vector.shape_cast %56 : vector<1x16x16x128xbf16> to vector<16x16x128xbf16>
    %58 = vector.shape_cast %55 : vector<16x16x128xbf16> to vector<1x16x16x128xbf16>
    tpu.vector_store %arg5[%c0_81, %c0_82, %c0_83, %c0_84], %58 {strides = array<i32>} : memref<1x16x16x128xbf16, #tpu.memory_space<vmem>>, vector<1x16x16x128xbf16>,
    return
  }
  func.func @transform_0(%arg0: i32) -> (i32, i32, i32, i32) {
    %c0_i32 = arith.constant 0 : i32
    %c0_i32_0 = arith.constant 0 : i32
    %c0_i32_1 = arith.constant 0 : i32
    %c0_i32_2 = arith.constant 0 : i32
    return %arg0, %c0_i32, %c0_i32_0, %c0_i32_1 : i32, i32, i32, i32
  }
  func.func @transform_1(%arg0: i32) -> (i32, i32) {
    %c0_i32 = arith.constant 0 : i32
    %c0_i32_0 = arith.constant 0 : i32
    %c0_i32_1 = arith.constant 0 : i32
    return %c0_i32, %c0_i32_0 : i32, i32
  }
  func.func @transform_2(%arg0: i32) -> (i32, i32) {
    %c0_i32 = arith.constant 0 : i32
    %c0_i32_0 = arith.constant 0 : i32
    %c0_i32_1 = arith.constant 0 : i32
    return %c0_i32, %c0_i32_0 : i32, i32
  }
  func.func @transform_3(%arg0: i32) -> (i32, i32) {
    %c0_i32 = arith.constant 0 : i32
    %c0_i32_0 = arith.constant 0 : i32
    %c0_i32_1 = arith.constant 0 : i32
    return %c0_i32, %c0_i32_0 : i32, i32
  }
  func.func @transform_4(%arg0: i32) -> (i32, i32, i32, i32) {
    %c0_i32 = arith.constant 0 : i32
    %c0_i32_0 = arith.constant 0 : i32
    %c0_i32_1 = arith.constant 0 : i32
    %c0_i32_2 = arith.constant 0 : i32
    return %arg0, %c0_i32, %c0_i32_0, %c0_i32_1 : i32, i32, i32, i32
  }
  func.func @transform_5(%arg0: i32) -> (i32, i32, i32) {
    %c0_i32 = arith.constant 0 : i32
    %c0_i32_0 = arith.constant 0 : i32
    %c0_i32_1 = arith.constant 0 : i32
    return %arg0, %c0_i32, %c0_i32_0 : i32, i32, i32
  }
  func.func @transform_6(%arg0: i32) -> (i32, i32, i32) {
    %c0_i32 = arith.constant 0 : i32
    %c0_i32_0 = arith.constant 0 : i32
    %c0_i32_1 = arith.constant 0 : i32
    return %arg0, %c0_i32, %c0_i32_0 : i32, i32, i32
  }
}

</mosaic_0001>

<bundles_post_ra>
// kernel: conv_block_forward.5
= control target key start
LH: loop header
LB: loop body
LE: loop exit
PB: predicated region body
PF: predicated region fallthrough
CT: control target
= control target key end

     0   :  { %s532_s12 = smov 0   ;;  %s655_s0 = inlined_call_operand.vmem [shape: bf16[2,8,2,8,256], index: 0, kind: input, shape index: {}]   ;;  %s656_s1 = inlined_call_operand.vmem [shape: f32[1,128], index: 1, kind: input, shape index: {}]   ;;  %s657_s2 = inlined_call_operand.vmem [shape: f32[1,128], index: 2, kind: input, shape index: {}]   ;;  %s658_s3 = inlined_call_operand.vmem [shape: f32[2,8,8,128], index: 3, kind: output, shape index: {}]  }
   0x1 LB: > { %s473_s13 = sadd.s32 4294967295, %s510_s12   ;;  %p477_p0 = scmp.ge.s32.totalorder %s510_s12, 1  ;;  %s510_s12 = sphi %s532_s12, %s13_s12  }
   0x2   : > { %p137_p1 = scmp.lt.s32.totalorder %s510_s12, 3 }
   0x4   : > { %p138_p2 = pnand %p477_p0, %p137_p1 }
   0x5   : > { %p161_p3 = scmp.lt.s32.totalorder (!%p138_p2), %s473_s13, 1  ;;  %v551_v0 = vld [vmem:[%s656_s1] ss:$0 sm:$0xff] (!%p138_p2) }
   0x6   : > { %141 = sbr.rel (%p138_p2) target bundleno = 71 (0x47), region = 32  ;;  %v560_v9 = vld [vmem:[%s657_s2] ss:$0 sm:$0xff] (!%p138_p2) }
   0xd   : > { %s660_s13 = smov (!%p161_p3, %s473_s13), 1 }
   0xe   : > { %s494_s14 = sshll.u32 %s660_s13, 7  ;;  %s495_s22 = sshll.u32 %s660_s13, 6 }
   0xf   : > { %s546_s17 = scalar_lea.vmem %s655_s0, %s494_s14  ;;  %s595_s25 = scalar_lea.vmem %s658_s3, %s495_s22 }
  0x10   : > { %v173_v1 = vld [vmem:[%s546_s17] sm:$0xff]  ;;  %v482_v2 = vld [vmem:[%s546_s17 + $0x8] sm:$0xff]  ;;  %v174_v3 = vld [vmem:[%s546_s17 + $0x10] sm:$0xff] }
  0x11   : > { %v190_v4 = vunpack.c.l.bf16 %v173_v1  ;;  %v242_v5 = vrot.slane %v173_v1, 4  ;;  %v298_v6 = vunpack.c.l.bf16 %v482_v2  ;;  %v346_v7 = vrot.slane %v482_v2, 4  ;;  %v483_v8 = vld [vmem:[%s546_s17 + $0x18] sm:$0xff]  ;;  %v175_v30 = vld [vmem:[%s546_s17 + $0x20] sm:$0xff]  ;;  %v484_v35 = vld [vmem:[%s546_s17 + $0x28] sm:$0xff] }
  0x12   : > { %v191_v10 = vunpack.c.l.bf16 %v174_v3  ;;  %v243_v11 = vrot.slane %v174_v3, 4  ;;  %v299_v12 = vunpack.c.l.bf16 %v483_v8  ;;  %v347_v13 = vrot.slane %v483_v8, 4  ;;  %v176_v44 = vld [vmem:[%s546_s17 + $0x30] sm:$0xff]  ;;  %v485_v1 = vld [vmem:[%s546_s17 + $0x38] sm:$0xff] }
  0x13   : > { %v204_v14 = vmul.f32 %v551_v0, %v190_v4  ;;  %v258_v15 = vunpack.c.l.bf16 %v242_v5  ;;  %v306_v16 = vmul.f32 %v551_v0, %v298_v6  ;;  %v362_v17 = vunpack.c.l.bf16 %v346_v7 }
  0x14   : > { %v205_v18 = vmul.f32 %v551_v0, %v191_v10  ;;  %v259_v19 = vunpack.c.l.bf16 %v243_v11  ;;  %v307_v20 = vmul.f32 %v551_v0, %v299_v12  ;;  %v363_v21 = vunpack.c.l.bf16 %v347_v13  ;;  %v177_v12 = vld [vmem:[%s546_s17 + $0x40] sm:$0xff] }
  0x15   : > { %v218_v22 = vadd.f32 %v560_v9, %v204_v14  ;;  %v266_v23 = vmul.f32 %v551_v0, %v258_v15  ;;  %v314_v24 = vadd.f32 %v560_v9, %v306_v16  ;;  %v370_v25 = vmul.f32 %v551_v0, %v362_v17  ;;  %v486_v17 = vld [vmem:[%s546_s17 + $0x48] sm:$0xff] }
  0x16   : > { %v219_v26 = vadd.f32 %v560_v9, %v205_v18  ;;  %v267_v27 = vmul.f32 %v551_v0, %v259_v19  ;;  %v315_v28 = vadd.f32 %v560_v9, %v307_v20  ;;  %v371_v29 = vmul.f32 %v551_v0, %v363_v21 }
  0x17   : > { %v226_v31 = vmax.f32 %v218_v22, 0.0  ;;  %v274_v32 = vadd.f32 %v560_v9, %v266_v23  ;;  %v322_v33 = vmax.f32 %v314_v24, 0.0  ;;  %v378_v34 = vadd.f32 %v560_v9, %v370_v25 }
  0x18   : > { %v227_v36 = vmax.f32 %v219_v26, 0.0  ;;  %v275_v37 = vadd.f32 %v560_v9, %v267_v27  ;;  %v323_v38 = vmax.f32 %v315_v28, 0.0  ;;  %v379_v39 = vadd.f32 %v560_v9, %v371_v29 }
  0x19   : > { %v282_v40 = vmax.f32 %v274_v32, 0.0  ;;  %v386_v41 = vmax.f32 %v378_v34, 0.0  ;;  %v192_v42 = vunpack.c.l.bf16 %v175_v30  ;;  %v244_v43 = vrot.slane %v175_v30, 4 }
  0x1a   : > { %v283_v45 = vmax.f32 %v275_v37, 0.0  ;;  %v387_v46 = vmax.f32 %v379_v39, 0.0  ;;  %v300_v47 = vunpack.c.l.bf16 %v484_v35  ;;  %v348_v48 = vrot.slane %v484_v35, 4 }
  0x1b   : > { %v290_v49 = vadd.f32 %v282_v40, %v226_v31  ;;  %v206_v50 = vmul.f32 %v551_v0, %v192_v42  ;;  %v260_v51 = vunpack.c.l.bf16 %v244_v43  ;;  %v193_v52 = vunpack.c.l.bf16 %v176_v44  ;;  %v178_v42 = vld [vmem:[%s546_s17 + $0x50] sm:$0xff] }
  0x1c   : > { %v291_v53 = vadd.f32 %v283_v45, %v227_v36  ;;  %v308_v54 = vmul.f32 %v551_v0, %v300_v47  ;;  %v364_v55 = vunpack.c.l.bf16 %v348_v48  ;;  %v245_v56 = vrot.slane %v176_v44, 4 }
  0x1d   : > { %v330_v57 = vadd.f32 %v322_v33, %v290_v49  ;;  %v220_v58 = vadd.f32 %v560_v9, %v206_v50  ;;  %v268_v59 = vmul.f32 %v551_v0, %v260_v51  ;;  %v207_v60 = vmul.f32 %v551_v0, %v193_v52 }
  0x1e   : > { %v331_v61 = vadd.f32 %v323_v38, %v291_v53  ;;  %v316_v62 = vadd.f32 %v560_v9, %v308_v54  ;;  %v372_v63 = vmul.f32 %v551_v0, %v364_v55  ;;  %v261_v2 = vunpack.c.l.bf16 %v245_v56 }
  0x1f   : > { %v394_v3 = vadd.f32 %v386_v41, %v330_v57  ;;  %v228_v4 = vmax.f32 %v220_v58, 0.0  ;;  %v276_v5 = vadd.f32 %v560_v9, %v268_v59  ;;  %v221_v6 = vadd.f32 %v560_v9, %v207_v60  ;;  %v179_v60 = vld [vmem:[%s546_s17 + $0x60] sm:$0xff] }
  0x20   : > { %v395_v7 = vadd.f32 %v387_v46, %v331_v61  ;;  %v324_v8 = vmax.f32 %v316_v62, 0.0  ;;  %v380_v10 = vadd.f32 %v560_v9, %v372_v63  ;;  %v269_v11 = vmul.f32 %v551_v0, %v261_v2  ;;  %v487_v46 = vld [vmem:[%s546_s17 + $0x58] sm:$0xff] }
  0x21   : > { %v402_v13 = vmul.f32 0.25, %v394_v3  ;;  %v284_v14 = vmax.f32 %v276_v5, 0.0  ;;  %v229_v15 = vmax.f32 %v221_v6, 0.0  ;;  %v301_v16 = vunpack.c.l.bf16 %v485_v1  ;;  %v488_v6 = vld [vmem:[%s546_s17 + $0x68] sm:$0xff] }
  0x22   : > { %v403_v18 = vmul.f32 0.25, %v395_v7  ;;  %v388_v19 = vmax.f32 %v380_v10, 0.0  ;;  %v277_v20 = vadd.f32 %v560_v9, %v269_v11  ;;  %v349_v21 = vrot.slane %v485_v1, 4 }
  0x23   : > { %410 = vst [vmem:[%s595_s25] sm:$0xff] %v402_v13  ;;  %v292_v22 = vadd.f32 %v284_v14, %v228_v4  ;;  %v309_v23 = vmul.f32 %v551_v0, %v301_v16  ;;  %v194_v24 = vunpack.c.l.bf16 %v177_v12  ;;  %v246_v25 = vrot.slane %v177_v12, 4 }
  0x24   : > { %411 = vst [vmem:[%s595_s25 + $0x8] sm:$0xff] %v403_v18  ;;  %v285_v26 = vmax.f32 %v277_v20, 0.0  ;;  %v365_v27 = vunpack.c.l.bf16 %v349_v21  ;;  %v302_v28 = vunpack.c.l.bf16 %v486_v17  ;;  %v350_v29 = vrot.slane %v486_v17, 4 }
  0x25   : > { %v332_v30 = vadd.f32 %v324_v8, %v292_v22  ;;  %v317_v31 = vadd.f32 %v560_v9, %v309_v23  ;;  %v208_v32 = vmul.f32 %v551_v0, %v194_v24  ;;  %v262_v33 = vunpack.c.l.bf16 %v246_v25  ;;  %v180_v24 = vld [vmem:[%s546_s17 + $0x70] sm:$0xff] }
  0x26   : > { %v293_v34 = vadd.f32 %v285_v26, %v229_v15  ;;  %v373_v35 = vmul.f32 %v551_v0, %v365_v27  ;;  %v310_v36 = vmul.f32 %v551_v0, %v302_v28  ;;  %v366_v37 = vunpack.c.l.bf16 %v350_v29  ;;  %v489_v29 = vld [vmem:[%s546_s17 + $0x78] sm:$0xff] }
  0x27   : > { %v396_v38 = vadd.f32 %v388_v19, %v332_v30  ;;  %v325_v39 = vmax.f32 %v317_v31, 0.0  ;;  %v222_v40 = vadd.f32 %v560_v9, %v208_v32  ;;  %v270_v41 = vmul.f32 %v551_v0, %v262_v33 }
  0x28   : > { %v381_v43 = vadd.f32 %v560_v9, %v373_v35  ;;  %v318_v44 = vadd.f32 %v560_v9, %v310_v36  ;;  %v374_v45 = vmul.f32 %v551_v0, %v366_v37  ;;  %v195_v47 = vunpack.c.l.bf16 %v178_v42 }
  0x29   : > { %v404_v48 = vmul.f32 0.25, %v396_v38  ;;  %v333_v49 = vadd.f32 %v325_v39, %v293_v34  ;;  %v230_v50 = vmax.f32 %v222_v40, 0.0  ;;  %v278_v51 = vadd.f32 %v560_v9, %v270_v41 }
  0x2a   : > { %v389_v52 = vmax.f32 %v381_v43, 0.0  ;;  %v326_v53 = vmax.f32 %v318_v44, 0.0  ;;  %v382_v54 = vadd.f32 %v560_v9, %v374_v45  ;;  %v209_v55 = vmul.f32 %v551_v0, %v195_v47 }
  0x2b   : > { %412 = vst [vmem:[%s595_s25 + $0x10] sm:$0xff] %v404_v48  ;;  %v286_v56 = vmax.f32 %v278_v51, 0.0  ;;  %v247_v57 = vrot.slane %v178_v42, 4  ;;  %v303_v58 = vunpack.c.l.bf16 %v487_v46  ;;  %v351_v59 = vrot.slane %v487_v46, 4 }
  0x2c   : > { %v397_v61 = vadd.f32 %v389_v52, %v333_v49  ;;  %v390_v62 = vmax.f32 %v382_v54, 0.0  ;;  %v223_v63 = vadd.f32 %v560_v9, %v209_v55  ;;  %v196_v1 = vunpack.c.l.bf16 %v179_v60 }
  0x2d   : > { %v294_v2 = vadd.f32 %v286_v56, %v230_v50  ;;  %v263_v3 = vunpack.c.l.bf16 %v247_v57  ;;  %v311_v4 = vmul.f32 %v551_v0, %v303_v58  ;;  %v367_v5 = vunpack.c.l.bf16 %v351_v59 }
  0x2e   : > { %v405_v7 = vmul.f32 0.25, %v397_v61  ;;  %v231_v8 = vmax.f32 %v223_v63, 0.0  ;;  %v210_v10 = vmul.f32 %v551_v0, %v196_v1  ;;  %v248_v11 = vrot.slane %v179_v60, 4 }
  0x2f   : > { %v334_v12 = vadd.f32 %v326_v53, %v294_v2  ;;  %v271_v13 = vmul.f32 %v551_v0, %v263_v3  ;;  %v319_v14 = vadd.f32 %v560_v9, %v311_v4  ;;  %v375_v15 = vmul.f32 %v551_v0, %v367_v5 }
  0x30   : > { %413 = vst [vmem:[%s595_s25 + $0x18] sm:$0xff] %v405_v7  ;;  %v224_v16 = vadd.f32 %v560_v9, %v210_v10  ;;  %v264_v17 = vunpack.c.l.bf16 %v248_v11  ;;  %v304_v18 = vunpack.c.l.bf16 %v488_v6  ;;  %v352_v19 = vrot.slane %v488_v6, 4 }
  0x31   : > { %v398_v20 = vadd.f32 %v390_v62, %v334_v12  ;;  %v279_v21 = vadd.f32 %v560_v9, %v271_v13  ;;  %v327_v22 = vmax.f32 %v319_v14, 0.0  ;;  %v383_v23 = vadd.f32 %v560_v9, %v375_v15 }
  0x32   : > { %v232_v25 = vmax.f32 %v224_v16, 0.0  ;;  %v272_v26 = vmul.f32 %v551_v0, %v264_v17  ;;  %v312_v27 = vmul.f32 %v551_v0, %v304_v18  ;;  %v368_v28 = vunpack.c.l.bf16 %v352_v19 }
  0x33   : > { %v406_v30 = vmul.f32 0.25, %v398_v20  ;;  %v287_v31 = vmax.f32 %v279_v21, 0.0  ;;  %v391_v32 = vmax.f32 %v383_v23, 0.0  ;;  %v197_v33 = vunpack.c.l.bf16 %v180_v24 }
  0x34   : > { %v280_v34 = vadd.f32 %v560_v9, %v272_v26  ;;  %v320_v35 = vadd.f32 %v560_v9, %v312_v27  ;;  %v376_v36 = vmul.f32 %v551_v0, %v368_v28  ;;  %v249_v37 = vrot.slane %v180_v24, 4 }
  0x35   : > { %414 = vst [vmem:[%s595_s25 + $0x20] sm:$0xff] %v406_v30  ;;  %v295_v38 = vadd.f32 %v287_v31, %v231_v8  ;;  %v211_v39 = vmul.f32 %v551_v0, %v197_v33  ;;  %v305_v40 = vunpack.c.l.bf16 %v489_v29  ;;  %v353_v41 = vrot.slane %v489_v29, 4 }
  0x36   : > { %v288_v42 = vmax.f32 %v280_v34, 0.0  ;;  %v328_v43 = vmax.f32 %v320_v35, 0.0  ;;  %v384_v44 = vadd.f32 %v560_v9, %v376_v36  ;;  %v265_v45 = vunpack.c.l.bf16 %v249_v37 }
  0x37   : > { %v335_v46 = vadd.f32 %v327_v22, %v295_v38  ;;  %v225_v47 = vadd.f32 %v560_v9, %v211_v39  ;;  %v313_v48 = vmul.f32 %v551_v0, %v305_v40  ;;  %v369_v49 = vunpack.c.l.bf16 %v353_v41 }
  0x38   : > { %v296_v50 = vadd.f32 %v288_v42, %v232_v25  ;;  %v392_v51 = vmax.f32 %v384_v44, 0.0  ;;  %v273_v52 = vmul.f32 %v551_v0, %v265_v45 }
  0x39   : > { %v399_v53 = vadd.f32 %v391_v32, %v335_v46  ;;  %v321_v54 = vadd.f32 %v560_v9, %v313_v48  ;;  %v377_v55 = vmul.f32 %v551_v0, %v369_v49  ;;  %v233_v57 = vmax.f32 %v225_v47, 0.0 }
  0x3a   : > { %v336_v56 = vadd.f32 %v328_v43, %v296_v50  ;;  %v281_v58 = vadd.f32 %v560_v9, %v273_v52 }
  0x3b   : > { %v407_v59 = vmul.f32 0.25, %v399_v53  ;;  %v385_v60 = vadd.f32 %v560_v9, %v377_v55  ;;  %v329_v63 = vmax.f32 %v321_v54, 0.0 }
  0x3c   : > { %v400_v61 = vadd.f32 %v392_v51, %v336_v56  ;;  %v289_v62 = vmax.f32 %v281_v58, 0.0 }
  0x3d   : > { %415 = vst [vmem:[%s595_s25 + $0x28] sm:$0xff] %v407_v59  ;;  %v393_v3 = vmax.f32 %v385_v60, 0.0 }
  0x3e   : > { %v408_v1 = vmul.f32 0.25, %v400_v61  ;;  %v297_v2 = vadd.f32 %v289_v62, %v233_v57 }
  0x40   : > { %416 = vst [vmem:[%s595_s25 + $0x30] sm:$0xff] %v408_v1  ;;  %v337_v4 = vadd.f32 %v329_v63, %v297_v2 }
  0x42   : > { %v401_v5 = vadd.f32 %v393_v3, %v337_v4 }
  0x44   : > { %v409_v6 = vmul.f32 0.25, %v401_v5 }
  0x46   : > { %417 = vst [vmem:[%s595_s25 + $0x38] sm:$0xff] %v409_v6 }
  0x47 PF: > { %s13_s12 = sadd.s32 1, %s510_s12  }
  0x48   : > { %p10_p4 = scmp.ge.s32.totalorder %s13_s12, 4  }
  0x4a   :  { %12 = sbr.rel (!%p10_p4) target bundleno = 1 (0x1), region = 63 }

// kernel: conv_block_forward.3
= control target key start
LH: loop header
LB: loop body
LE: loop exit
PB: predicated region body
PF: predicated region fallthrough
CT: control target
= control target key end

     0   :  { %s5120_s21 = smov 0   ;;  %s6001_s0 = inlined_call_operand.vmem [shape: f32[2,16,16,4], index: 0, kind: input, shape index: {}]   ;;  %s6002_s1 = inlined_call_operand.vmem [shape: bf16[36,128], index: 1, kind: input, shape index: {}]   ;;  %s6003_s2 = inlined_call_operand.vmem [shape: f32[1,4], index: 2, kind: input, shape index: {}, may-alias: {2,3}]   ;;  %s6004_s3 = inlined_call_operand.vmem [shape: f32[1,4], index: 3, kind: input, shape index: {}, may-alias: {2,3}]   ;;  %s6005_s4 = inlined_call_operand.vmem [shape: bf16[2,16,16,128], index: 4, kind: output, shape index: {0}]   ;;  %s6006_s5 = inlined_call_operand.vmem [shape: f32[2,1,128], index: 5, kind: output, shape index: {1}]   ;;  %s6007_s6 = inlined_call_operand.vmem [shape: f32[2,1,128], index: 6, kind: output, shape index: {2}]  }
   0x1 LB: > { %s4248_s2 = sadd.s32 4294967295, %s5074_s21   ;;  %p4252_p0 = scmp.ge.s32.totalorder %s5074_s21, 1  ;;  %s5074_s21 = sphi %s5120_s21, %s17_s21  }
   0x2   : > { %p217_p1 = scmp.lt.s32.totalorder %s5074_s21, 3 }
   0x4   : > { %p218_p2 = pnand %p4252_p0, %p217_p1 }
   0x5   : > { %p253_p3 = scmp.lt.s32.totalorder (!%p218_p2), %s4248_s2, 1  ;;  %vm318_vm0 = vcmask (!%p218_p2), 27648   ;;  %vm321_vm1 = vcmask (!%p218_p2), 24576   ;;  %vm328_vm2 = vsmask.f32 (!%p218_p2), 256  ;;  %v5076_v4 = vmov (!%p218_p2), 0  }
   0x6   : > { %221 = sbr.rel (%p218_p2) target bundleno = 685 (0x2ad), region = 36  ;;  %vm5130_vm3 = vmand (!%p218_p2), %vm321_vm1, %vm328_vm2  ;;  %v333_v1 = vld [vmem:[#allocation2 + $0xc] sm:$0x1] (!%p218_p2)  ;;  %vm384_vm4 = vsmask.f32 (!%p218_p2), 7938  ;;  %vm1712_vm9 = vcmask (!%p218_p2), 1046528  }
   0x7   : > { %v334_v2 = vsel (!%p218_p2), %vm5130_vm3, 0, %v333_v1  ;;  %v336_v3 = vld [vmem:[#allocation2 + $0x18] sm:$0x1] (!%p218_p2)  ;;  %319 = vst.msk [vmem:[#allocation2] sm:$0xf] (!%p218_p2), %vm318_vm0, %v5076_v4  ;;  %vm5149_vm5 = vmand (!%p218_p2), %vm321_vm1, %vm384_vm4  ;;  %s5077_s25 = smov (!%p218_p2), 8  }
   0x8   : > { %335 = vst [vmem:[#allocation2 + $0xc] sm:$0x1] (!%p218_p2), %v334_v2  ;;  %320 = vst.msk [vmem:[#allocation2 + $0x4] sm:$0xf] (!%p218_p2), %vm318_vm0, %v5076_v4  ;;  %v337_v5 = vsel (!%p218_p2), %vm5130_vm3, 0, %v336_v3  ;;  %s5078_s26 = smov (!%p218_p2), 12  }
   0x9   : > { %322 = vst.msk [vmem:[#allocation2 + $0x8] sm:$0x1] (!%p218_p2), %vm321_vm1, %v5076_v4  ;;  %326 = vst.msk [vmem:[#allocation2 + $0xd4] sm:$0x1] (!%p218_p2), %vm321_vm1, %v5076_v4  ;;  %v339_v7 = vld [vmem:[#allocation2 + $0x24] sm:$0x1] (!%p218_p2) }
   0xa   : > { %324 = vst.msk [vmem:[#allocation2 + $0xcc] sm:$0xf] (!%p218_p2), %vm318_vm0, %v5076_v4  ;;  %325 = vst.msk [vmem:[#allocation2 + $0xd0] sm:$0xf] (!%p218_p2), %vm318_vm0, %v5076_v4  ;;  %v389_v8 = vld [vmem:[#allocation2 + $0x14] sm:$0x1] (!%p218_p2) }
   0xb   : > { %338 = vst [vmem:[#allocation2 + $0x18] sm:$0x1] (!%p218_p2), %v337_v5  ;;  %v340_v9 = vsel (!%p218_p2), %vm5130_vm3, 0, %v339_v7  ;;  %v390_v10 = vsel (!%p218_p2), %vm5149_vm5, 0, %v389_v8  ;;  %v392_v11 = vld [vmem:[#allocation2 + $0x20] sm:$0x1] (!%p218_p2)  ;;  %vm5181_vm8 = vmand (!%p218_p2), %vm318_vm0, %vm384_vm4 }
   0xc   : > { %341 = vst [vmem:[#allocation2 + $0x24] sm:$0x1] (!%p218_p2), %v340_v9  ;;  %391 = vst [vmem:[#allocation2 + $0x14] sm:$0x1] (!%p218_p2), %v390_v10  ;;  %v393_v15 = vsel (!%p218_p2), %vm5149_vm5, 0, %v392_v11  ;;  %s5079_s27 = smov (!%p218_p2), 24  }
   0xd   : > { %s6052_s2 = smov (!%p253_p3, %s4248_s2), 1  ;;  %394 = vst [vmem:[#allocation2 + $0x20] sm:$0x1] %v393_v15  ;;  %vm520_vm6 = vsmask.f32 4368  ;;  %s5080_s28 = smov 4  }
   0xe   : > { %s4582_s3 = sshll.u32 %s6052_s2, 8  ;;  %vm5173_vm7 = vmor %vm328_vm2, %vm520_vm6  ;;  %v330_v46 = vld [vmem:[#allocation2] sm:$0x1]  ;;  %v395_v5 = vld [vmem:[#allocation2 + $0x2c] sm:$0x1]  ;;  %s5081_s29 = smov 20  }
   0xf   : > { %s5156_s24 = scalar_lea.vmem %s6001_s0, %s4582_s3  ;;  %v845_v28 = vld [vmem:[#allocation2 + $0xc] sm:$0xf]  ;;  %v5185_v37 = vld [vmem:[#allocation2] sm:$0xfe]   ;;  %v331_v50 = vsel %vm5130_vm3, 0, %v330_v46  ;;  %s5082_s30 = smov 32  }
  0x10   : > { %v270_v12 = vld [vmem:[%s5156_s24] sm:$0xff]  ;;  %v271_v13 = vld [vmem:[%s5156_s24 + $0x8] sm:$0xff]  ;;  %v272_v14 = vld [vmem:[%s5156_s24 + $0x10] sm:$0xff]  ;;  %v1713_v47 = vrot.slane %v5185_v37, 1  ;;  %332 = vst [vmem:[#allocation2] sm:$0x1] %v331_v50  ;;  %s265_s3 = scalar_lea.vmem %s6006_s5, %s6052_s2 }
  0x11   : > { %v4584_v16 = vpack.c.bf16 %v270_v12, %v270_v12  ;;  %v4585_v17 = vpack.c.bf16 %v271_v13, %v271_v13  ;;  %v273_v18 = vld [vmem:[%s5156_s24 + $0x18] sm:$0xff]  ;;  %v4586_v19 = vpack.c.bf16 %v272_v14, %v272_v14  ;;  %v274_v20 = vld [vmem:[%s5156_s24 + $0x20] sm:$0xff]  ;;  %v275_v21 = vld [vmem:[%s5156_s24 + $0x28] sm:$0xff]  ;;  %vm1278_vm10 = vsmask.f32 7424  ;;  %s5083_s7 = smov 16  }
  0x12   : > { %v4587_v22 = vpack.c.bf16 %v273_v18, %v273_v18  ;;  %v4588_v23 = vpack.c.bf16 %v274_v20, %v274_v20  ;;  %v386_v29 = vld [vmem:[#allocation2 + $0x8] sm:$0x1]  ;;  %v5170_v30 = vpack.c.bf16 %v275_v21, %v275_v21  ;;  %v276_v51 = vld [vmem:[%s5156_s24 + $0x30] sm:$0xff]  ;;  %v852_v54 = vld [vmem:[#allocation2 + $0x18] sm:$0xf]  ;;  %s5084_s8 = smov 28  }
  0x13   : > { %v523_v24 = vshrl.u32 %v4584_v16, 16  ;;  %v526_v25 = vshll.u32 %v4584_v16, 16  ;;  %v531_v26 = vshrl.u32 %v4585_v17, 16  ;;  %v534_v27 = vshll.u32 %v4585_v17, 16  ;;  %v849_v57 = vld [vmem:[#allocation2 + $0x14] sm:$0x1] }
  0x14   : > { %v387_v34 = vsel %vm5149_vm5, 0, %v386_v29  ;;  %v540_v35 = vshrl.u32 %v4586_v19, 16  ;;  %v543_v38 = vshll.u32 %v4586_v19, 16  ;;  %v548_v39 = vshrl.u32 %v4587_v22, 16  ;;  %v859_v62 = vld [vmem:[#allocation2 + $0x24] sm:$0xf] }
  0x15   : > { %v525_v32 = vrot.slane %v523_v24, 7  ;;  %v533_v33 = vrot.slane %v531_v26, 7  ;;  %388 = vst [vmem:[#allocation2 + $0x8] sm:$0x1] %v387_v34  ;;  %v551_v40 = vshll.u32 %v4587_v22, 16  ;;  %v557_v41 = vshrl.u32 %v4588_v23, 16 }
  0x16   : > { %v542_v48 = vrot.slane %v540_v35, 7  ;;  %v550_v49 = vrot.slane %v548_v39, 7  ;;  %v560_v56 = vshll.u32 %v4588_v23, 16  ;;  %v856_v63 = vld [vmem:[#allocation2 + $0x20] sm:$0x1]  ;;  %v565_v3 = vshrl.u32 %v5170_v30, 16 }
  0x17   : > { %v528_v42 = vor.u32 %v526_v25, %v525_v32  ;;  %v529_v43 = vrot.slane %v525_v32, 4  ;;  %v536_v44 = vor.u32 %v534_v27, %v533_v33  ;;  %v538_v45 = vrot.slane %v533_v33, 4  ;;  %v342_v11 = vld [vmem:[#allocation2 + $0x30] sm:$0x1]  ;;  %v4830_v21 = vld [vmem:[#allocation2] sm:$0xff]   ;;  %s4583_s15 = sshll.u32 %s6052_s2, 7 }
  0x18   : > { %v559_v55 = vrot.slane %v557_v41, 7  ;;  %v545_v58 = vor.u32 %v543_v38, %v542_v48  ;;  %v546_v59 = vrot.slane %v542_v48, 4  ;;  %v553_v60 = vor.u32 %v551_v40, %v550_v49  ;;  %s5951_s18 = scalar_lea.vmem %s6005_s4, %s4583_s15 }
  0x19   : > { %v537_v52 = vsel %vm5173_vm7, %v529_v43, %v536_v44  ;;  %v846_v53 = vsel %vm5181_vm8, %v528_v42, %v845_v28  ;;  %v555_v61 = vrot.slane %v550_v49, 4  ;;  %v568_v4 = vshll.u32 %v5170_v30, 16 }
  0x1a   : > { %847 = vst [vmem:[#allocation2 + $0xc] sm:$0xf] %v846_v53  ;;  %848 = vst.msk [vmem:[#allocation2 + $0x10] sm:$0xf] %vm318_vm0, %v537_v52  ;;  %v562_v1 = vor.u32 %v560_v56, %v559_v55  ;;  %v563_v2 = vrot.slane %v559_v55, 4  ;;  %v554_v7 = vsel %vm5173_vm7, %v546_v59, %v553_v60  ;;  %v853_v8 = vsel %vm5181_vm8, %v545_v58, %v852_v54 }
  0x1b   : > { %v850_v9 = vsel %vm5130_vm3, %v538_v45, %v849_v57  ;;  %v857_v10 = vsel %vm5130_vm3, %v555_v61, %v856_v63  ;;  %854 = vst [vmem:[#allocation2 + $0x18] sm:$0xf] %v853_v8  ;;  %855 = vst.msk [vmem:[#allocation2 + $0x1c] sm:$0xf] %vm318_vm0, %v554_v7  ;;  %v5207_v13 = vrot.slane %v565_v3, 7  ;;  %v5211_v15 = vpack.c.bf16 %v276_v51, %v276_v51 }
  0x1c   : > { %v4827_v12 = vld [vmem:[#allocation2 + $0x8] ss:$0 sps:$4 sm:$0x11]   ;;  %v860_v14 = vsel %vm5181_vm8, %v562_v1, %v859_v62  ;;  %851 = vst [vmem:[#allocation2 + $0x14] sm:$0x1] %v850_v9  ;;  %v396_v17 = vsel %vm5149_vm5, 0, %v395_v5 }
  0x1d   : > { %858 = vst [vmem:[#allocation2 + $0x20] sm:$0x1] %v857_v10  ;;  %v4831_v16 = vld [vmem:[#allocation2 + $0x8] ss:$0 sps:$4 sm:$0x11]   ;;  %v1714_v18 = vrot.slane %v4827_v12, 1  ;;  %v570_v19 = vor.u32 %v568_v4, %v5207_v13 }
  0x1e   : > { %861 = vst [vmem:[#allocation2 + $0x24] sm:$0xf] %v860_v14  ;;  %397 = vst [vmem:[#allocation2 + $0x2c] sm:$0x1] %v396_v17  ;;  %v343_v20 = vsel %vm5130_vm3, 0, %v342_v11  ;;  %v1287_v22 = vshll.u32 %v4831_v16, 16 }
  0x1f   : > { %v572_v23 = vrot.slane %v5207_v13, 4  ;;  %344 = vst [vmem:[#allocation2 + $0x30] sm:$0x1] %v343_v20  ;;  %v1715_v25 = vsel %vm1712_vm9, %v1713_v47, %v1714_v18  ;;  %v571_v26 = vsel %vm5173_vm7, %v563_v2, %v570_v19  ;;  %v574_v27 = vshrl.u32 %v5211_v15, 16  ;;  %v277_v16 = vld [vmem:[%s5156_s24 + $0x38] sm:$0xff] }
  0x20   : > { %1761 = vrot.lane.b32.xlu1 %v1715_v25, %s5077_s25  ;;  %v1280_v28 = vshrl.u32 %v4830_v21, 16  ;;  %v1282_v29 = vshll.u32 %v4830_v21, 16  ;;  %v1289_v30 = vrot.slane %v1287_v22, 1  ;;  %862 = vst.msk [vmem:[#allocation2 + $0x28] sm:$0xf] %vm318_vm0, %v571_v26  ;;  %v577_v32 = vshll.u32 %v5211_v15, 16 }
  0x21   : > { %v4825_v24 = vld [vmem:[#allocation2 + $0xc] sm:$0xff]   ;;  %vm1085_vm11 = vcmask 31744   ;;  %vm1519_vm12 = vcmask 64544   ;;  %vm6009_vm13 = vcmask 97344   ;;  %vm6008_vm14 = vcmask 130144  }
  0x22   : > { %1938 = vrot.lane.b32.xlu0 %v4825_v24, %s5078_s26  ;;  %v4833_v33 = vld [vmem:[#allocation2 + $0xc] sm:$0xfe]   ;;  %v4828_v34 = vld [vmem:[#allocation2 + $0x18] sm:$0xff]   ;;  %v1284_v35 = vrot.slane %v1282_v29, 1  ;;  %vm2419_vm15 = vcmask 162944   ;;  %vm2708_vm1 = vcmask 195744  }
  0x23   : > { %v4845_v37 = vld [vmem:[#allocation2 + $0xc] sm:$0xff]   ;;  %v4829_v38 = vld [vmem:[#allocation2 + $0x18] sm:$0xff]   ;;  %v2612_v39 = vrot.slane %v4833_v33, 1  ;;  %v4834_v41 = vld [vmem:[#allocation2 + $0x14] ss:$0 sps:$4 sm:$0x11]  }
  0x24   : > { %v1285_v40 = vor.u32 %v1284_v35, %v1280_v28  ;;  %1940 = vrot.lane.b32.xlu1 %v4829_v38, %s5078_s26  ;;  %v4843_v42 = vld [vmem:[#allocation2 + $0x18] sm:$0xff]   ;;  %v4835_v44 = vld [vmem:[#allocation2 + $0xc] sm:$0xfe]   ;;  %v4836_v45 = vld [vmem:[#allocation2 + $0x14] ss:$0 sps:$4 sm:$0x11]  }
  0x25   : > { %v1292_v46 = vshrl.u32 %v4845_v37, 16  ;;  %v2613_v48 = vrot.slane %v4834_v41, 1  ;;  %v1716_v49 = vrot.slane %v4835_v44, 1  ;;  %v1717_v50 = vrot.slane %v4836_v45, 1  ;;  %v4837_v51 = vld [vmem:[#allocation2 + $0x18] sm:$0xfe]  }
  0x26   : > { %2838 = vrot.lane.b32.xlu0 %v4828_v34, %s5079_s27  ;;  %v1290_v43 = vsel %vm1278_vm10, %v1285_v40, %v1289_v30  ;;  %v4838_v52 = vld [vmem:[#allocation2 + $0x20] ss:$0 sps:$4 sm:$0x11]   ;;  %v2192_v53 = vshrl.u32 %v4843_v42, 16  ;;  %v3512_v56 = vrot.slane %v4837_v51, 1  ;;  %v2194_v62 = vshll.u32 %v4843_v42, 16 }
  0x27   : > { %v4832_v47 = vld [vmem:[#allocation2 + $0x24] sm:$0xff]   ;;  %v2614_v54 = vsel %vm1712_vm9, %v2612_v39, %v2613_v48  ;;  %v1718_v55 = vsel %vm1712_vm9, %v1716_v49, %v1717_v50  ;;  %v3513_v57 = vrot.slane %v4838_v52, 1  ;;  %v4839_v58 = vld [vmem:[#allocation2 + $0x18] sm:$0xfe]   ;;  %v863_v59 = vld [vmem:[#allocation2 + $0x2c] sm:$0x1] }
  0x28   : > { %2840 = vrot.lane.b32.xlu1 %v4832_v47, %s5079_s27  ;;  %v4840_v60 = vld [vmem:[#allocation2 + $0x20] ss:$0 sps:$4 sm:$0x11]   ;;  %v864_v61 = vsel %vm5130_vm3, %v572_v23, %v863_v59  ;;  %v2615_v63 = vrot.slane %v4839_v58, 1  ;;  %v4841_v1 = vld [vmem:[#allocation2 + $0x24] sm:$0xfe]  }
  0x29   : > { %865 = vst [vmem:[#allocation2 + $0x2c] sm:$0x1] %v864_v61  ;;  %v1294_v2 = vshll.u32 %v4845_v37, 16  ;;  %v3514_v3 = vsel %vm1712_vm9, %v3512_v56, %v3513_v57  ;;  %v2616_v4 = vrot.slane %v4840_v60, 1  ;;  %v2196_v5 = vrot.slane %v2194_v62, 1  ;;  %v4847_v14 = vld [vmem:[#allocation2 + $0x24] sm:$0xff]  }
  0x2a   : > { %1471 = vrot.lane.b32.xlu0 %v1290_v43, %s5080_s28  ;;  %v3515_v7 = vrot.slane %v4841_v1, 1  ;;  %v4844_v8 = vld [vmem:[#allocation2 + $0x20] ss:$0 sps:$4 sm:$0x11]   ;;  %v3092_v19 = vshrl.u32 %v4847_v14, 16  ;;  %v4849_v20 = vld [vmem:[#allocation2 + $0xc] sm:$0xff]   ;;  %v5245_v37 = vpack.c.bf16 %v277_v16, %v277_v16 }
  0x2b   : > { %v2617_v9 = vsel %vm1712_vm9, %v2615_v63, %v2616_v4  ;;  %v2197_v10 = vor.u32 %v2196_v5, %v2192_v53  ;;  %v2199_v11 = vshll.u32 %v4844_v8, 16  ;;  %v4846_v12 = vld [vmem:[#allocation2 + $0x14] ss:$0 sps:$4 sm:$0x11]   ;;  %v1296_v13 = vrot.slane %v1294_v2, 1  ;;  %v4851_v41 = vld [vmem:[#allocation2 + $0x18] sm:$0xff]  }
  0x2c   : > { %1763 = vrot.lane.b32.xlu1 %v1718_v55, %s5077_s25  ;;  %v1299_v18 = vshll.u32 %v4846_v12, 16  ;;  %v3094_v22 = vshll.u32 %v4847_v14, 16  ;;  %v2180_v30 = vshrl.u32 %v4849_v20, 16  ;;  %v2182_v33 = vshll.u32 %v4849_v20, 16  ;;  %v4853_v45 = vld [vmem:[#allocation2 + $0x18] sm:$0xff]   ;;  %v4855_v53 = vld [vmem:[#allocation2 + $0x24] sm:$0xff]  }
  0x2d   : > { %v2201_v17 = vrot.slane %v2199_v11, 1  ;;  %v1297_v24 = vor.u32 %v1296_v13, %v1292_v46  ;;  %v4850_v35 = vld [vmem:[#allocation2 + $0x14] ss:$0 sps:$4 sm:$0x11]   ;;  %v1304_v48 = vshrl.u32 %v4851_v41, 16  ;;  %v1306_v49 = vshll.u32 %v4851_v41, 16 }
  0x2e   : > { %2660 = vrot.lane.b32.xlu0 %v2614_v54, %s5081_s29  ;;  %v1301_v25 = vrot.slane %v1299_v18, 1  ;;  %v3096_v29 = vrot.slane %v3094_v22, 1  ;;  %v2184_v40 = vrot.slane %v2182_v33, 1  ;;  %v2187_v43 = vshll.u32 %v4850_v35, 16  ;;  %v4857_v11 = vld [vmem:[#allocation2 + $0x18] sm:$0xfe]  }
  0x2f   : > { %v2202_v23 = vsel %vm1278_vm10, %v2197_v10, %v2201_v17  ;;  %v4852_v44 = vld [vmem:[#allocation2 + $0x20] ss:$0 sps:$4 sm:$0x11]   ;;  %v582_v54 = vshrl.u32 %v5245_v37, 16  ;;  %v1308_v55 = vrot.slane %v1306_v49, 1  ;;  %v3080_v57 = vshrl.u32 %v4853_v45, 16 }
  0x30   : > { %2662 = vrot.lane.b32.xlu1 %v2617_v9, %s5081_s29  ;;  %v4842_v21 = vld [vmem:[#allocation2 + $0x2c] ss:$0 sps:$4 sm:$0x11]   ;;  %v3097_v39 = vor.u32 %v3096_v29, %v3092_v19  ;;  %v1302_v46 = vsel %vm1278_vm10, %v1297_v24, %v1301_v25  ;;  %v2185_v47 = vor.u32 %v2184_v40, %v2180_v30  ;;  %v2189_v51 = vrot.slane %v2187_v43, 1  ;;  %v278_v13 = vld [vmem:[%s5156_s24 + $0x40] sm:$0xff] }
  0x31   : > { %v4848_v26 = vld [vmem:[#allocation2 + $0x2c] ss:$0 sps:$4 sm:$0x11]   ;;  %v3516_v28 = vrot.slane %v4842_v21, 1  ;;  %v1311_v52 = vshll.u32 %v4852_v44, 16  ;;  %v3082_v58 = vshll.u32 %v4853_v45, 16  ;;  %v1309_v62 = vor.u32 %v1308_v55, %v1304_v48 }
  0x32   : > { %3560 = vrot.lane.b32.xlu0 %v3514_v3, %s5082_s30  ;;  %v3099_v34 = vshll.u32 %v4848_v26, 16  ;;  %v4854_v56 = vld [vmem:[#allocation2 + $0x20] ss:$0 sps:$4 sm:$0x11]   ;;  %v2190_v59 = vsel %vm1278_vm10, %v2185_v47, %v2189_v51  ;;  %v1316_v61 = vshrl.u32 %v4855_v53, 16  ;;  %v1318_v2 = vshll.u32 %v4855_v53, 16 }
  0x33   : > { %v3517_v38 = vsel %vm1712_vm9, %v3515_v7, %v3516_v28  ;;  %v1313_v60 = vrot.slane %v1311_v52, 1  ;;  %v3084_v63 = vrot.slane %v3082_v58, 1  ;;  %v3087_v1 = vshll.u32 %v4854_v56, 16  ;;  %v4856_v3 = vld [vmem:[#allocation2 + $0x2c] ss:$0 sps:$4 sm:$0x11]  }
  0x34   : > { %2373 = vrot.lane.b32.xlu1 %v2202_v23, %s5083_s7  ;;  %v3101_v42 = vrot.slane %v3099_v34, 1  ;;  %v576_v4 = vrot.slane %v574_v27, 7  ;;  %v1320_v9 = vrot.slane %v1318_v2, 1  ;;  %v1323_v10 = vshll.u32 %v4856_v3, 16  ;;  %v4863_v27 = vld [vmem:[#allocation2 + $0x24] sm:$0xff]   ;;  %v281_v3 = vld [vmem:[%s5156_s24 + $0x58] sm:$0xff] }
  0x35   : > { %v1314_v5 = vsel %vm1278_vm10, %v1309_v62, %v1313_v60  ;;  %v3085_v7 = vor.u32 %v3084_v63, %v3080_v57  ;;  %v3089_v8 = vrot.slane %v3087_v1, 1  ;;  %v4858_v12 = vld [vmem:[#allocation2 + $0x20] ss:$0 sps:$4 sm:$0x11]   ;;  %v279_v18 = vld [vmem:[%s5156_s24 + $0x48] sm:$0xff]  ;;  %v1719_v20 = vrot.slane %v4857_v11, 1 }
  0x36   : > { %3562 = vrot.lane.b32.xlu0 %v3517_v38, %s5082_s30  ;;  %v3102_v50 = vsel %vm1278_vm10, %v3097_v39, %v3101_v42  ;;  %v1321_v16 = vor.u32 %v1320_v9, %v1316_v61  ;;  %v579_v17 = vor.u32 %v577_v32, %v576_v4  ;;  %v1325_v19 = vrot.slane %v1323_v10, 1  ;;  %v4859_v22 = vld [vmem:[#allocation2 + $0x24] sm:$0xfe]   ;;  %v398_v24 = vld [vmem:[#allocation2 + $0x38] sm:$0x1]  ;;  %v280_v39 = vld [vmem:[%s5156_s24 + $0x50] sm:$0xff] }
  0x37   : > { %v3090_v14 = vsel %vm1278_vm10, %v3085_v7, %v3089_v8  ;;  %v1720_v21 = vrot.slane %v4858_v12, 1  ;;  %v580_v23 = vrot.slane %v576_v4, 4  ;;  %v4860_v25 = vld [vmem:[#allocation2 + $0x2c] ss:$0 sps:$4 sm:$0x11]   ;;  %v5265_v26 = vrot.slane %v582_v54, 7 }
  0x38   : > { %3273 = vrot.lane.b32.xlu1 %v3102_v50, %s5084_s8  ;;  %v345_v28 = vld [vmem:[#allocation2 + $0x3c] sm:$0x1]  ;;  %v1326_v29 = vsel %vm1278_vm10, %v1321_v16, %v1325_v19  ;;  %v1722_v30 = vrot.slane %v4859_v22, 1  ;;  %v585_v15 = vshll.u32 %v5245_v37, 16  ;;  %v866_v32 = vld [vmem:[#allocation2 + $0x30] sm:$0xf]  ;;  %v4592_v38 = vpack.c.bf16 %v278_v13, %v278_v13 }
  0x39   : > { %v1721_v33 = vsel %vm1712_vm9, %v1719_v20, %v1720_v21  ;;  %v1723_v34 = vrot.slane %v4860_v25, 1  ;;  %v867_v35 = vsel %vm5181_vm8, %v579_v17, %v866_v32  ;;  %v4861_v40 = vld [vmem:[#allocation2 + $0x24] sm:$0xff]   ;;  %v4864_v42 = vld [vmem:[#allocation2 + $0x2c] ss:$0 sps:$4 sm:$0x11]   ;;  %v2204_v43 = vshrl.u32 %v4863_v27, 16 }
  0x3a   : > { %1473 = vrot.lane.b32.xlu0 %v1302_v46, %s5080_s28  ;;  %v587_v41 = vor.u32 %v585_v15, %v5265_v26  ;;  %868 = vst [vmem:[#allocation2 + $0x30] sm:$0xf] %v867_v35  ;;  %v4593_v44 = vpack.c.bf16 %v279_v18, %v279_v18  ;;  %v401_v45 = vld [vmem:[#allocation2 + $0x44] sm:$0x1]  ;;  %v2206_v46 = vshll.u32 %v4863_v27, 16  ;;  %v399_v47 = vsel %vm5149_vm5, 0, %v398_v24 }
  0x3b   : > { %v1724_v37 = vsel %vm1712_vm9, %v1722_v30, %v1723_v34  ;;  %v348_v48 = vld [vmem:[#allocation2 + $0x48] sm:$0x1]  ;;  %v2211_v50 = vshll.u32 %v4864_v42, 16  ;;  %400 = vst [vmem:[#allocation2 + $0x38] sm:$0x1] %v399_v47  ;;  %v346_v52 = vsel %vm5130_vm3, 0, %v345_v28  ;;  %v5284_v53 = vpack.c.bf16 %v280_v39, %v280_v39 }
  0x3c   : > { %1475 = vrot.lane.b32.xlu1 %v1314_v5, %s5080_s28  ;;  %v588_v49 = vsel %vm5173_vm7, %v580_v23, %v587_v41  ;;  %v4867_v51 = vld [vmem:[#allocation2 + $0x24] sm:$0xfe]   ;;  %v589_v54 = vrot.slane %v5265_v26, 4  ;;  %v2208_v55 = vrot.slane %v2206_v46, 1  ;;  %347 = vst [vmem:[#allocation2 + $0x3c] sm:$0x1] %v346_v52  ;;  %v4595_v12 = vpack.c.bf16 %v281_v3, %v281_v3 }
  0x3d   : > { %869 = vst.msk [vmem:[#allocation2 + $0x34] sm:$0xf] %vm318_vm0, %v588_v49  ;;  %v4868_v56 = vld [vmem:[#allocation2 + $0x2c] ss:$0 sps:$4 sm:$0x11]   ;;  %v591_v57 = vshrl.u32 %v4592_v38, 16 }
  0x3e   : > { %2371 = vrot.lane.b32.xlu0 %v2190_v59, %s5083_s7  ;;  %v2213_v58 = vrot.slane %v2211_v50, 1  ;;  %v594_v59 = vshll.u32 %v4592_v38, 16  ;;  %v599_v60 = vshrl.u32 %v4593_v44, 16  ;;  %v602_v61 = vshll.u32 %v4593_v44, 16 }
  0x3f   : > { %v2209_v62 = vor.u32 %v2208_v55, %v2204_v43  ;;  %v2618_v63 = vrot.slane %v4867_v51, 1  ;;  %v593_v1 = vrot.slane %v591_v57, 7  ;;  %v402_v2 = vsel %vm5149_vm5, 0, %v401_v45 }
  0x40   : > { %1477 = vrot.lane.b32.xlu1 %v1326_v29, %s5080_s28  ;;  %v2619_v4 = vrot.slane %v4868_v56, 1  ;;  %v601_v5 = vrot.slane %v599_v60, 7  ;;  %403 = vst [vmem:[#allocation2 + $0x44] sm:$0x1] %v402_v2  ;;  %v349_v7 = vsel %vm5130_vm3, 0, %v348_v48  ;;  %v608_v8 = vshrl.u32 %v5284_v53, 16 }
  0x41   : > { %v2214_v9 = vsel %vm1278_vm10, %v2209_v62, %v2213_v58  ;;  %350 = vst [vmem:[#allocation2 + $0x48] sm:$0x1] %v349_v7  ;;  %v597_v10 = vrot.slane %v593_v1, 4  ;;  %v616_v24 = vshrl.u32 %v4595_v12, 16  ;;  %v611_v30 = vshll.u32 %v5284_v53, 16 }
  0x42   : > { %3271 = vrot.lane.b32.xlu0 %v3090_v14, %s5084_s8  ;;  %v604_v11 = vor.u32 %v602_v61, %v601_v5  ;;  %v870_v13 = vld [vmem:[#allocation2 + $0x38] sm:$0x1]  ;;  %v596_v14 = vor.u32 %v594_v59, %v593_v1  ;;  %v606_v18 = vrot.slane %v601_v5, 4  ;;  %v2620_v20 = vsel %vm1712_vm9, %v2618_v63, %v2619_v4 }
  0x43   : > { %v871_v17 = vsel %vm5130_vm3, %v589_v54, %v870_v13  ;;  %v5304_v22 = vrot.slane %v608_v8, 7  ;;  %v873_v23 = vld [vmem:[#allocation2 + $0x3c] sm:$0xf]  ;;  %v5316_v41 = vrot.slane %v616_v24, 7  ;;  %v619_v46 = vshll.u32 %v4595_v12, 16 }
  0x44   : > { %1767 = vrot.lane.b32.xlu1 %v1724_v37, %s5077_s25  ;;  %v4862_v16 = vld [vmem:[#allocation2 + $0x30] sm:$0xff]   ;;  %v605_v27 = vsel %vm5173_vm7, %v597_v10, %v604_v11  ;;  %872 = vst [vmem:[#allocation2 + $0x38] sm:$0x1] %v871_v17  ;;  %v874_v28 = vsel %vm5181_vm8, %v596_v14, %v873_v23  ;;  %v282_v17 = vld [vmem:[%s5156_s24 + $0x60] sm:$0xff]  ;;  %vm2886_vm2 = vcmask 228544   ;;  %vm3319_vm4 = vcmask 261344  }
  0x45   : > { %v4865_v19 = vld [vmem:[#allocation2 + $0x30] sm:$0xff]   ;;  %876 = vst.msk [vmem:[#allocation2 + $0x40] sm:$0xf] %vm318_vm0, %v605_v27  ;;  %875 = vst [vmem:[#allocation2 + $0x3c] sm:$0xf] %v874_v28  ;;  %v614_v39 = vrot.slane %v5304_v22, 4  ;;  %v621_v54 = vor.u32 %v619_v46, %v5316_v41 }
  0x46   : > { %1765 = vrot.lane.b32.xlu0 %v1721_v33, %s5077_s25  ;;  %v4869_v21 = vld [vmem:[#allocation2 + $0x30] sm:$0xfe]   ;;  %v2218_v25 = vshll.u32 %v4865_v19, 16  ;;  %v2216_v33 = vshrl.u32 %v4865_v19, 16  ;;  %vm6010_vm6 = vcmask 294144  }
  0x47   : > { %v4871_v26 = vld [vmem:[#allocation2 + $0x30] sm:$0xff]   ;;  %v877_v15 = vld [vmem:[#allocation2 + $0x44] sm:$0x1]  ;;  %v2621_v42 = vrot.slane %v4869_v21, 1  ;;  %v622_v59 = vsel %vm5173_vm7, %v614_v39, %v621_v54 }
  0x48   : > { %1944 = vrot.lane.b32.xlu1 %v4862_v16, %s5078_s26  ;;  %v4873_v29 = vld [vmem:[#allocation2 + $0x30] sm:$0xff]   ;;  %v878_v35 = vsel %vm5130_vm3, %v606_v18, %v877_v15  ;;  %883 = vst.msk [vmem:[#allocation2 + $0x4c] sm:$0xf] %vm318_vm0, %v622_v59 }
  0x49   : > { %v4877_v32 = vld [vmem:[#allocation2 + $0x30] sm:$0xfe]   ;;  %v3106_v34 = vshll.u32 %v4873_v29, 16  ;;  %879 = vst [vmem:[#allocation2 + $0x44] sm:$0x1] %v878_v35  ;;  %v3104_v43 = vshrl.u32 %v4873_v29, 16 }
  0x4a   : > { %1942 = vrot.lane.b32.xlu0 %v4861_v40, %s5078_s26  ;;  %v5313_v38 = vld [vmem:[#allocation2 + $0x30] sm:$0xff]   ;;  %v2220_v40 = vrot.slane %v2218_v25, 1  ;;  %v3518_v44 = vrot.slane %v4877_v32, 1  ;;  %v283_v35 = vld [vmem:[%s5156_s24 + $0x68] sm:$0xff] }
  0x4b   : > { %v1330_v45 = vshll.u32 %v5313_v38, 16  ;;  %v4866_v37 = vld [vmem:[#allocation2 + $0x38] ss:$0 sps:$4 sm:$0x11]   ;;  %v3108_v48 = vrot.slane %v3106_v34, 1  ;;  %v1328_v52 = vshrl.u32 %v5313_v38, 16 }
  0x4c   : > { %v4870_v47 = vld [vmem:[#allocation2 + $0x38] ss:$0 sps:$4 sm:$0x11]   ;;  %v5320_v49 = vld [vmem:[#allocation2 + $0x30] sm:$0xfe]   ;;  %v2221_v50 = vor.u32 %v2220_v40, %v2216_v33  ;;  %v2223_v51 = vshll.u32 %v4866_v37, 16 }
  0x4d   : > { %v2622_v55 = vrot.slane %v4870_v47, 1  ;;  %v1332_v56 = vrot.slane %v1330_v45, 1  ;;  %v4874_v58 = vld [vmem:[#allocation2 + $0x38] ss:$0 sps:$4 sm:$0x11]   ;;  %v4875_v60 = vld [vmem:[#allocation2 + $0x3c] sm:$0xff]   ;;  %v3109_v63 = vor.u32 %v3108_v48, %v3104_v43 }
  0x4e   : > { %2375 = vrot.lane.b32.xlu0 %v2214_v9, %s5083_s7  ;;  %v2225_v57 = vrot.slane %v2223_v51, 1  ;;  %v3111_v1 = vshll.u32 %v4874_v58, 16  ;;  %v4878_v2 = vld [vmem:[#allocation2 + $0x38] ss:$0 sps:$4 sm:$0x11]   ;;  %v3118_v3 = vshll.u32 %v4875_v60, 16 }
  0x4f   : > { %v4883_v5 = vld [vmem:[#allocation2 + $0x3c] sm:$0xff]   ;;  %v1725_v7 = vrot.slane %v5320_v49, 1  ;;  %v2623_v8 = vsel %vm1712_vm9, %v2621_v42, %v2622_v55  ;;  %v3116_v10 = vshrl.u32 %v4875_v60, 16  ;;  %v3519_v11 = vrot.slane %v4878_v2, 1  ;;  %v404_v21 = vld [vmem:[#allocation2 + $0x50] sm:$0x1] }
  0x50   : > { %v4876_v61 = vld [vmem:[#allocation2 + $0x44] ss:$0 sps:$4 sm:$0x11]   ;;  %v2226_v62 = vsel %vm1278_vm10, %v2221_v50, %v2225_v57  ;;  %v3113_v9 = vrot.slane %v3111_v1, 1  ;;  %v4872_v13 = vld [vmem:[#allocation2 + $0x3c] sm:$0xff]   ;;  %v3120_v14 = vrot.slane %v3118_v3, 1  ;;  %v4596_v42 = vpack.c.bf16 %v282_v17, %v282_v17 }
  0x51   : > { %2377 = vrot.lane.b32.xlu1 %v2226_v62, %s5083_s7  ;;  %v3123_v4 = vshll.u32 %v4876_v61, 16  ;;  %v4880_v12 = vld [vmem:[#allocation2 + $0x38] ss:$0 sps:$4 sm:$0x11]   ;;  %v4881_v19 = vld [vmem:[#allocation2 + $0x3c] sm:$0xfe]   ;;  %v1333_v43 = vor.u32 %v1332_v56, %v1328_v52  ;;  %v4597_v56 = vpack.c.bf16 %v283_v35, %v283_v35 }
  0x52   : > { %2664 = vrot.lane.b32.xlu0 %v2620_v20, %s5081_s29  ;;  %v3114_v27 = vsel %vm1278_vm10, %v3109_v63, %v3113_v9  ;;  %v1335_v18 = vshll.u32 %v4880_v12, 16  ;;  %v1340_v20 = vshrl.u32 %v4883_v5, 16  ;;  %v4882_v23 = vld [vmem:[#allocation2 + $0x44] ss:$0 sps:$4 sm:$0x11]   ;;  %v1342_v24 = vshll.u32 %v4883_v5, 16 }
  0x53   : > { %v3125_v16 = vrot.slane %v3123_v4, 1  ;;  %v3121_v25 = vor.u32 %v3120_v14, %v3116_v10  ;;  %v3521_v29 = vrot.slane %v4881_v19, 1  ;;  %v3522_v15 = vrot.slane %v4882_v23, 1  ;;  %v4884_v32 = vld [vmem:[#allocation2 + $0x44] ss:$0 sps:$4 sm:$0x11]  }
  0x54   : > { %v1337_v28 = vrot.slane %v1335_v18, 1  ;;  %v1344_v33 = vrot.slane %v1342_v24, 1  ;;  %v623_v34 = vrot.slane %v5316_v41, 4  ;;  %v4886_v38 = vld [vmem:[#allocation2 + $0x38] ss:$0 sps:$4 sm:$0x11]  }
  0x55   : > { %2666 = vrot.lane.b32.xlu1 %v2623_v8, %s5081_s29  ;;  %v4891_v39 = vld [vmem:[#allocation2 + $0x3c] sm:$0xff]   ;;  %v351_v40 = vld [vmem:[#allocation2 + $0x54] sm:$0x1]  ;;  %v1347_v45 = vshll.u32 %v4884_v32, 16  ;;  %v405_v37 = vsel %vm5149_vm5, 0, %v404_v21  ;;  %v3126_v41 = vsel %vm1278_vm10, %v3121_v25, %v3125_v16  ;;  %v3523_v46 = vsel %vm1712_vm9, %v3521_v29, %v3522_v15 }
  0x56   : > { %2842 = vrot.lane.b32.xlu0 %v4871_v26, %s5079_s27  ;;  %v3520_v26 = vsel %vm1712_vm9, %v3518_v44, %v3519_v11  ;;  %v613_v44 = vor.u32 %v611_v30, %v5304_v22  ;;  %v1726_v47 = vrot.slane %v4886_v38, 1  ;;  %v4887_v48 = vld [vmem:[#allocation2 + $0x3c] sm:$0xfe]   ;;  %v2228_v49 = vshrl.u32 %v4891_v39, 16  ;;  %406 = vst [vmem:[#allocation2 + $0x50] sm:$0x1] %v405_v37 }
  0x57   : > { %v1349_v50 = vrot.slane %v1347_v45, 1  ;;  %v4888_v51 = vld [vmem:[#allocation2 + $0x44] ss:$0 sps:$4 sm:$0x11]   ;;  %v1728_v54 = vrot.slane %v4887_v48, 1  ;;  %v2230_v55 = vshll.u32 %v4891_v39, 16  ;;  %v1338_v53 = vsel %vm1278_vm10, %v1333_v43, %v1337_v28 }
  0x58   : > { %v880_v52 = vld [vmem:[#allocation2 + $0x48] sm:$0xf]  ;;  %v1729_v22 = vrot.slane %v4888_v51, 1  ;;  %v352_v57 = vsel %vm5130_vm3, 0, %v351_v40  ;;  %v1345_v58 = vor.u32 %v1344_v33, %v1340_v20  ;;  %v1727_v59 = vsel %vm1712_vm9, %v1725_v7, %v1726_v47  ;;  %v284_v62 = vld [vmem:[%s5156_s24 + $0x70] sm:$0xff]  ;;  %v4889_v63 = vld [vmem:[#allocation2 + $0x3c] sm:$0xff]  }
  0x59   : > { %2844 = vrot.lane.b32.xlu1 %v4872_v13, %s5079_s27  ;;  %v881_v30 = vsel %vm5181_vm8, %v613_v44, %v880_v52  ;;  %v2232_v60 = vrot.slane %v2230_v55, 1  ;;  %353 = vst [vmem:[#allocation2 + $0x54] sm:$0x1] %v352_v57  ;;  %v625_v61 = vshrl.u32 %v4596_v42, 16  ;;  %v628_v2 = vshll.u32 %v4596_v42, 16 }
  0x5a   : > { %3275 = vrot.lane.b32.xlu0 %v3114_v27, %s5084_s8  ;;  %882 = vst [vmem:[#allocation2 + $0x48] sm:$0xf] %v881_v30  ;;  %v4892_v1 = vld [vmem:[#allocation2 + $0x44] ss:$0 sps:$4 sm:$0x11]   ;;  %v1350_v10 = vsel %vm1278_vm10, %v1345_v58, %v1349_v50  ;;  %v633_v13 = vshrl.u32 %v4597_v56, 16  ;;  %v5361_v16 = vpack.c.bf16 %v284_v62, %v284_v62  ;;  %v1730_v20 = vsel %vm1712_vm9, %v1728_v54, %v1729_v22 }
  0x5b   : > { %v407_v3 = vld [vmem:[#allocation2 + $0x5c] sm:$0x1]  ;;  %v2235_v4 = vshll.u32 %v4892_v1, 16  ;;  %v4895_v8 = vld [vmem:[#allocation2 + $0x3c] sm:$0xfe]   ;;  %v627_v9 = vrot.slane %v625_v61, 7  ;;  %v2233_v7 = vor.u32 %v2232_v60, %v2228_v49 }
  0x5c   : > { %v4896_v12 = vld [vmem:[#allocation2 + $0x44] ss:$0 sps:$4 sm:$0x11]   ;;  %v635_v27 = vrot.slane %v633_v13, 7  ;;  %v636_v18 = vshll.u32 %v4597_v56, 16  ;;  %v408_v19 = vsel %vm5149_vm5, 0, %v407_v3 }
  0x5d   : > { %3277 = vrot.lane.b32.xlu1 %v3126_v41, %s5084_s8  ;;  %v884_v5 = vld [vmem:[#allocation2 + $0x50] sm:$0x1]  ;;  %v2237_v14 = vrot.slane %v2235_v4, 1  ;;  %v631_v17 = vrot.slane %v627_v9, 4  ;;  %v630_v21 = vor.u32 %v628_v2, %v627_v9  ;;  %409 = vst [vmem:[#allocation2 + $0x5c] sm:$0x1] %v408_v19 }
  0x5e   : > { %3564 = vrot.lane.b32.xlu0 %v3520_v26, %s5082_s30  ;;  %v885_v11 = vsel %vm5130_vm3, %v623_v34, %v884_v5  ;;  %v2624_v25 = vrot.slane %v4895_v8, 1  ;;  %v2625_v26 = vrot.slane %v4896_v12, 1  ;;  %v638_v28 = vor.u32 %v636_v18, %v635_v27 }
  0x5f   : > { %886 = vst [vmem:[#allocation2 + $0x50] sm:$0x1] %v885_v11  ;;  %v2238_v23 = vsel %vm1278_vm10, %v2233_v7, %v2237_v14  ;;  %v642_v38 = vshrl.u32 %v5361_v16, 16  ;;  %v640_v39 = vrot.slane %v635_v27, 4 }
  0x60   : > { %v887_v15 = vld [vmem:[#allocation2 + $0x54] sm:$0xf]  ;;  %v639_v35 = vsel %vm5173_vm7, %v631_v17, %v638_v28  ;;  %v2626_v44 = vsel %vm1712_vm9, %v2624_v25, %v2625_v26 }
  0x61   : > { %1479 = vrot.lane.b32.xlu1 %v1338_v53, %s5080_s28  ;;  %v4893_v24 = vld [vmem:[#allocation2 + $0x48] sm:$0xff]   ;;  %v888_v40 = vsel %vm5181_vm8, %v630_v21, %v887_v15  ;;  %890 = vst.msk [vmem:[#allocation2 + $0x58] sm:$0xf] %vm318_vm0, %v639_v35  ;;  %v5383_v61 = vrot.slane %v642_v38, 7 }
  0x62   : > { %3566 = vrot.lane.b32.xlu0 %v3523_v46, %s5082_s30  ;;  %v4897_v29 = vld [vmem:[#allocation2 + $0x48] sm:$0xfe]   ;;  %v2240_v33 = vshrl.u32 %v4893_v24, 16  ;;  %v2242_v34 = vshll.u32 %v4893_v24, 16  ;;  %889 = vst [vmem:[#allocation2 + $0x54] sm:$0xf] %v888_v40 }
  0x63   : > { %v4890_v32 = vld [vmem:[#allocation2 + $0x48] sm:$0xff]   ;;  %v2627_v41 = vrot.slane %v4897_v29, 1  ;;  %v285_v29 = vld [vmem:[%s5156_s24 + $0x78] sm:$0xff] }
  0x64   : > { %v4901_v42 = vld [vmem:[#allocation2 + $0x48] sm:$0xff]   ;;  %v2244_v45 = vrot.slane %v2242_v34, 1  ;;  %v891_v52 = vld [vmem:[#allocation2 + $0x5c] sm:$0x1] }
  0x65   : > { %1481 = vrot.lane.b32.xlu1 %v1350_v10, %s5080_s28  ;;  %v4899_v46 = vld [vmem:[#allocation2 + $0x48] sm:$0xff]   ;;  %v3128_v51 = vshrl.u32 %v4901_v42, 16  ;;  %v3130_v54 = vshll.u32 %v4901_v42, 16  ;;  %v892_v22 = vsel %vm5130_vm3, %v640_v39, %v891_v52 }
  0x66   : > { %1769 = vrot.lane.b32.xlu0 %v1727_v59, %s5077_s25  ;;  %v4894_v43 = vld [vmem:[#allocation2 + $0x50] ss:$0 sps:$4 sm:$0x11]   ;;  %v4905_v47 = vld [vmem:[#allocation2 + $0x48] sm:$0xfe]   ;;  %v2245_v48 = vor.u32 %v2244_v45, %v2240_v33 }
  0x67   : > { %v4898_v37 = vld [vmem:[#allocation2 + $0x50] ss:$0 sps:$4 sm:$0x11]   ;;  %v2247_v49 = vshll.u32 %v4894_v43, 16  ;;  %v3132_v57 = vrot.slane %v3130_v54, 1  ;;  %v4907_v58 = vld [vmem:[#allocation2 + $0x48] sm:$0xff]  }
  0x68   : > { %v4902_v50 = vld [vmem:[#allocation2 + $0x50] ss:$0 sps:$4 sm:$0x11]   ;;  %v2628_v56 = vrot.slane %v4898_v37, 1  ;;  %893 = vst [vmem:[#allocation2 + $0x5c] sm:$0x1] %v892_v22 }
  0x69   : > { %1771 = vrot.lane.b32.xlu1 %v1730_v20, %s5077_s25  ;;  %v2249_v55 = vrot.slane %v2247_v49, 1  ;;  %v3135_v53 = vshll.u32 %v4902_v50, 16  ;;  %v4906_v30 = vld [vmem:[#allocation2 + $0x50] ss:$0 sps:$4 sm:$0x11]   ;;  %v3133_v62 = vor.u32 %v3132_v57, %v3128_v51  ;;  %v4903_v3 = vld [vmem:[#allocation2 + $0x54] sm:$0xff]  }
  0x6a   : > { %1946 = vrot.lane.b32.xlu0 %v4889_v63, %s5078_s26  ;;  %v3524_v63 = vrot.slane %v4905_v47, 1  ;;  %v3525_v1 = vrot.slane %v4906_v30, 1  ;;  %v2629_v2 = vsel %vm1712_vm9, %v2627_v41, %v2628_v56  ;;  %v4908_v4 = vld [vmem:[#allocation2 + $0x50] ss:$0 sps:$4 sm:$0x11]   ;;  %v4900_v5 = vld [vmem:[#allocation2 + $0x54] sm:$0xff]  }
  0x6b   : > { %v2250_v59 = vsel %vm1278_vm10, %v2245_v48, %v2249_v55  ;;  %v3137_v60 = vrot.slane %v3135_v53, 1  ;;  %v1354_v9 = vshll.u32 %v4907_v58, 16  ;;  %v4911_v10 = vld [vmem:[#allocation2 + $0x54] sm:$0xff]   ;;  %v3140_v7 = vshrl.u32 %v4903_v3, 16  ;;  %v4913_v40 = vld [vmem:[#allocation2 + $0x48] sm:$0xfe]  }
  0x6c   : > { %v3142_v11 = vshll.u32 %v4903_v3, 16  ;;  %v1352_v12 = vshrl.u32 %v4907_v58, 16  ;;  %v1359_v13 = vshll.u32 %v4908_v4, 16  ;;  %v4909_v14 = vld [vmem:[#allocation2 + $0x54] sm:$0xfe]   ;;  %v1364_v27 = vshrl.u32 %v4911_v10, 16 }
  0x6d   : > { %1948 = vrot.lane.b32.xlu1 %v4890_v32, %s5078_s26  ;;  %v3138_v8 = vsel %vm1278_vm10, %v3133_v62, %v3137_v60  ;;  %v1356_v17 = vrot.slane %v1354_v9, 1  ;;  %v3526_v20 = vsel %vm1712_vm9, %v3524_v63, %v3525_v1  ;;  %v3527_v26 = vrot.slane %v4909_v14, 1  ;;  %v4914_v42 = vld [vmem:[#allocation2 + $0x50] ss:$0 sps:$4 sm:$0x11]   ;;  %v4919_v43 = vld [vmem:[#allocation2 + $0x54] sm:$0xff]  }
  0x6e   : > { %2379 = vrot.lane.b32.xlu0 %v2238_v23, %s5083_s7  ;;  %v3144_v19 = vrot.slane %v3142_v11, 1  ;;  %v1361_v21 = vrot.slane %v1359_v13, 1  ;;  %v1366_v28 = vshll.u32 %v4911_v10, 16  ;;  %v1731_v41 = vrot.slane %v4913_v40, 1  ;;  %v4915_v47 = vld [vmem:[#allocation2 + $0x54] sm:$0xfe]  }
  0x6f   : > { %v4904_v18 = vld [vmem:[#allocation2 + $0x5c] ss:$0 sps:$4 sm:$0x11]   ;;  %v1357_v34 = vor.u32 %v1356_v17, %v1352_v12  ;;  %v645_v48 = vshll.u32 %v5361_v16, 16  ;;  %v648_v54 = vrot.slane %v5383_v61, 4  ;;  %v1734_v55 = vrot.slane %v4915_v47, 1 }
  0x70   : > { %v4910_v23 = vld [vmem:[#allocation2 + $0x5c] ss:$0 sps:$4 sm:$0x11]   ;;  %v3145_v24 = vor.u32 %v3144_v19, %v3140_v7  ;;  %v3147_v25 = vshll.u32 %v4904_v18, 16  ;;  %v1368_v35 = vrot.slane %v1366_v28, 1  ;;  %v4917_v56 = vld [vmem:[#allocation2 + $0x54] sm:$0xff]  }
  0x71   : > { %2381 = vrot.lane.b32.xlu1 %v2250_v59, %s5083_s7  ;;  %v3528_v15 = vrot.slane %v4910_v23, 1  ;;  %v4912_v32 = vld [vmem:[#allocation2 + $0x5c] ss:$0 sps:$4 sm:$0x11]   ;;  %v1362_v49 = vsel %vm1278_vm10, %v1357_v34, %v1361_v21  ;;  %v354_v53 = vld [vmem:[#allocation2 + $0x60] sm:$0x1]  ;;  %v647_v14 = vor.u32 %v645_v48, %v5383_v61 }
  0x72   : > { %2668 = vrot.lane.b32.xlu0 %v2626_v44, %s5081_s29  ;;  %v3149_v33 = vrot.slane %v3147_v25, 1  ;;  %v1371_v39 = vshll.u32 %v4912_v32, 16  ;;  %v4599_v44 = vpack.c.bf16 %v285_v29, %v285_v29  ;;  %v1369_v50 = vor.u32 %v1368_v35, %v1364_v27  ;;  %v4916_v51 = vld [vmem:[#allocation2 + $0x5c] ss:$0 sps:$4 sm:$0x11]   ;;  %v286_v22 = vld [vmem:[%s5156_s24 + $0x80] sm:$0xff] }
  0x73   : > { %v3529_v38 = vsel %vm1712_vm9, %v3527_v26, %v3528_v15  ;;  %v1735_v30 = vrot.slane %v4916_v51, 1  ;;  %v355_v57 = vsel %vm5130_vm3, 0, %v354_v53  ;;  %v2252_v16 = vshrl.u32 %v4919_v43, 16  ;;  %v4920_v1 = vld [vmem:[#allocation2 + $0x5c] ss:$0 sps:$4 sm:$0x11]  }
  0x74   : > { %v3150_v45 = vsel %vm1278_vm10, %v3145_v24, %v3149_v33  ;;  %v1373_v37 = vrot.slane %v1371_v39, 1  ;;  %v650_v58 = vshrl.u32 %v4599_v44, 16  ;;  %v653_v59 = vshll.u32 %v4599_v44, 16  ;;  %356 = vst [vmem:[#allocation2 + $0x60] sm:$0x1] %v355_v57  ;;  %v287_v18 = vld [vmem:[%s5156_s24 + $0x88] sm:$0xff] }
  0x75   : > { %2670 = vrot.lane.b32.xlu1 %v2629_v2, %s5081_s29  ;;  %v2254_v60 = vshll.u32 %v4919_v43, 16  ;;  %v410_v2 = vld [vmem:[#allocation2 + $0x68] sm:$0x1]  ;;  %v2259_v7 = vshll.u32 %v4920_v1, 16  ;;  %v4923_v11 = vld [vmem:[#allocation2 + $0x54] sm:$0xfe]   ;;  %v1736_v13 = vsel %vm1712_vm9, %v1734_v55, %v1735_v30  ;;  %v4601_v61 = vpack.c.bf16 %v287_v18, %v287_v18 }
  0x76   : > { %2846 = vrot.lane.b32.xlu0 %v4899_v46, %s5079_s27  ;;  %v1732_v46 = vrot.slane %v4914_v42, 1  ;;  %v1374_v62 = vsel %vm1278_vm10, %v1369_v50, %v1373_v37  ;;  %v5409_v63 = vrot.slane %v650_v58, 7  ;;  %v411_v4 = vsel %vm5149_vm5, 0, %v410_v2  ;;  %v4924_v27 = vld [vmem:[#allocation2 + $0x5c] ss:$0 sps:$4 sm:$0x11]  }
  0x77   : > { %v2256_v3 = vrot.slane %v2254_v60, 1  ;;  %412 = vst [vmem:[#allocation2 + $0x68] sm:$0x1] %v411_v4  ;;  %v357_v19 = vld [vmem:[#allocation2 + $0x6c] sm:$0x1]  ;;  %v2261_v21 = vrot.slane %v2259_v7, 1 }
  0x78   : > { %v1733_v52 = vsel %vm1712_vm9, %v1731_v41, %v1732_v46  ;;  %v655_v9 = vor.u32 %v653_v59, %v5409_v63  ;;  %v657_v10 = vrot.slane %v5409_v63, 4  ;;  %v2630_v23 = vrot.slane %v4923_v11, 1  ;;  %v413_v25 = vld [vmem:[#allocation2 + $0x74] sm:$0x1]  ;;  %v4933_v26 = vld [vmem:[#allocation2] sm:$0xff]   ;;  %v289_v37 = vld [vmem:[%s5156_s24 + $0x98] sm:$0xff] }
  0x79   : > { %2848 = vrot.lane.b32.xlu1 %v4900_v5, %s5079_s27  ;;  %v2257_v17 = vor.u32 %v2256_v3, %v2252_v16  ;;  %v358_v24 = vsel %vm5130_vm3, 0, %v357_v19  ;;  %v2631_v28 = vrot.slane %v4924_v27, 1  ;;  %v288_v32 = vld [vmem:[%s5156_s24 + $0x90] sm:$0xff]  ;;  %v414_v39 = vsel %vm5149_vm5, 0, %v413_v25  ;;  %1086 = vst.msk [vmem:[#allocation3] sm:$0xff] %vm1085_vm11, %v4933_v26  ;;  %v4953_v30 = vld [vmem:[#allocation2 + $0x18] sm:$0xff]  }
  0x7a   : > { %3279 = vrot.lane.b32.xlu0 %v3138_v8, %s5084_s8  ;;  %v4600_v8 = vpack.c.bf16 %v286_v22, %v286_v22  ;;  %359 = vst [vmem:[#allocation2 + $0x6c] sm:$0x1] %v358_v24  ;;  %v5437_v40 = vpack.c.bf16 %v288_v32, %v288_v32  ;;  %v667_v44 = vshrl.u32 %v4601_v61, 16  ;;  %415 = vst [vmem:[#allocation2 + $0x74] sm:$0x1] %v414_v39  ;;  %v4948_v46 = vld [vmem:[#allocation2 + $0xc] sm:$0xff]  }
  0x7b   : > { %v894_v33 = vld [vmem:[#allocation2 + $0x60] sm:$0xf]  ;;  %v2262_v34 = vsel %vm1278_vm10, %v2257_v17, %v2261_v21  ;;  %v2632_v43 = vsel %vm1712_vm9, %v2630_v23, %v2631_v28  ;;  %v360_v41 = vld [vmem:[#allocation2 + $0x78] sm:$0x1]  ;;  %v670_v47 = vshll.u32 %v4601_v61, 16  ;;  %1087 = vst.msk [vmem:[#allocation3 + $0x8] sm:$0xff] %vm1085_vm11, %v4948_v46 }
  0x7c   : > { %v659_v29 = vshrl.u32 %v4600_v8, 16  ;;  %v662_v15 = vshll.u32 %v4600_v8, 16  ;;  %v895_v42 = vsel %vm5181_vm8, %v647_v14, %v894_v33  ;;  %v361_v48 = vsel %vm5130_vm3, 0, %v360_v41  ;;  %v4956_v60 = vld [vmem:[%s6002_s1] sm:$0xff]   ;;  %1088 = vst.msk [vmem:[#allocation3 + $0x10] sm:$0xff] %vm1085_vm11, %v4953_v30 }
  0x7d   : > { %3281 = vrot.lane.b32.xlu1 %v3150_v45, %s5084_s8  ;;  %896 = vst [vmem:[#allocation2 + $0x60] sm:$0xf] %v895_v42  ;;  %v669_v51 = vrot.slane %v667_v44, 7  ;;  %362 = vst [vmem:[#allocation2 + $0x78] sm:$0x1] %v361_v48  ;;  %v676_v22 = vshrl.u32 %v5437_v40, 16  ;;  %4762 = vmatprep.subr.bf16.mxu0 %v4956_v60 }
  0x7e   : > { %3568 = vrot.lane.b32.xlu0 %v3526_v20, %s5082_s30  ;;  %v656_v20 = vsel %vm5173_vm7, %v648_v54, %v655_v9  ;;  %v661_v45 = vrot.slane %v659_v29, 7  ;;  %v4603_v54 = vpack.c.bf16 %v289_v37, %v289_v37  ;;  %4800 = vmatprep.subr.bf16.mxu1 %v4956_v60 }
  0x7f   : > { %897 = vst.msk [vmem:[#allocation2 + $0x64] sm:$0xf] %vm318_vm0, %v656_v20  ;;  %v672_v57 = vor.u32 %v670_v47, %v669_v51  ;;  %v674_v58 = vrot.slane %v669_v51, 4  ;;  %4763 = vmatpush3.bf16.msra.mxu0 %v4956_v60  ;;  %4803 = vmatpush3.bf16.msra.mxu1 %v4956_v60  ;;  %v5475_v9 = vrot.slane %v676_v22, 7  ;;  %v679_v47 = vshll.u32 %v5437_v40, 16 }
  0x80   : > { %v665_v50 = vrot.slane %v661_v45, 4  ;;  %v664_v55 = vor.u32 %v662_v15, %v661_v45  ;;  %v684_v59 = vshrl.u32 %v4603_v54, 16  ;;  %v687_v16 = vshll.u32 %v4603_v54, 16 }
  0x81   : > { %1483 = vrot.lane.b32.xlu1 %v1362_v49, %s5080_s28  ;;  %v898_v49 = vld [vmem:[#allocation2 + $0x68] sm:$0x1]  ;;  %v901_v63 = vld [vmem:[#allocation2 + $0x6c] sm:$0xf]  ;;  %v905_v2 = vld [vmem:[#allocation2 + $0x74] sm:$0x1] }
  0x82   : > { %3570 = vrot.lane.b32.xlu0 %v3529_v38, %s5082_s30  ;;  %v902_v1 = vsel %vm5181_vm8, %v664_v55, %v901_v63  ;;  %v906_v8 = vsel %vm5130_vm3, %v674_v58, %v905_v2  ;;  %v5477_v11 = vrot.slane %v684_v59, 7 }
  0x83   : > { %903 = vst [vmem:[#allocation2 + $0x6c] sm:$0xf] %v902_v1  ;;  %907 = vst [vmem:[#allocation2 + $0x74] sm:$0x1] %v906_v8 }
  0x84   : > { %v689_v18 = vor.u32 %v687_v16, %v5477_v11 }
  0x85   : > { %1485 = vrot.lane.b32.xlu1 %v1374_v62, %s5080_s28  ;;  %v673_v62 = vsel %vm5173_vm7, %v665_v50, %v672_v57 }
  0x86   : > { %1773 = vrot.lane.b32.xlu0 %v1733_v52, %s5077_s25  ;;  %v899_v52 = vsel %vm5130_vm3, %v657_v10, %v898_v49  ;;  %904 = vst.msk [vmem:[#allocation2 + $0x70] sm:$0xf] %vm318_vm0, %v673_v62  ;;  %v4921_v10 = vld [vmem:[#allocation2 + $0x60] sm:$0xff]  }
  0x87   : > { %900 = vst [vmem:[#allocation2 + $0x68] sm:$0x1] %v899_v52  ;;  %v4925_v7 = vld [vmem:[#allocation2 + $0x60] sm:$0xfe]   ;;  %v2264_v17 = vshrl.u32 %v4921_v10, 16  ;;  %v2266_v19 = vshll.u32 %v4921_v10, 16 }
  0x88   : > { %v2633_v23 = vrot.slane %v4925_v7, 1  ;;  %v4929_v24 = vld [vmem:[#allocation2 + $0x60] sm:$0xff]  }
  0x89   : > { %1775 = vrot.lane.b32.xlu1 %v1736_v13, %s5077_s25  ;;  %v682_v13 = vrot.slane %v5475_v9, 4  ;;  %v2268_v28 = vrot.slane %v2266_v19, 1  ;;  %v4936_v61 = vld [vmem:[#allocation2 + $0x60] sm:$0xff]   ;;  %v3152_v32 = vshrl.u32 %v4929_v24, 16  ;;  %v3154_v33 = vshll.u32 %v4929_v24, 16 }
  0x8a   : > { %1950 = vrot.lane.b32.xlu0 %v4917_v56, %s5078_s26  ;;  %v4932_v44 = vld [vmem:[#allocation2 + $0x74] ss:$0 sps:$4 sm:$0x11]   ;;  %v4934_v51 = vld [vmem:[#allocation2 + $0x60] sm:$0xfe]   ;;  %v1378_v30 = vshll.u32 %v4936_v61, 16 }
  0x8b   : > { %v690_v26 = vsel %vm5173_vm7, %v682_v13, %v689_v18  ;;  %v3156_v45 = vrot.slane %v3154_v33, 1  ;;  %v3171_v50 = vshll.u32 %v4932_v44, 16  ;;  %v3530_v58 = vrot.slane %v4934_v51, 1  ;;  %v4939_v13 = vld [vmem:[#allocation2 + $0x74] ss:$0 sps:$4 sm:$0x11]  }
  0x8c   : > { %911 = vst.msk [vmem:[#allocation2 + $0x7c] sm:$0xf] %vm318_vm0, %v690_v26  ;;  %v1376_v59 = vshrl.u32 %v4936_v61, 16  ;;  %v1380_v1 = vrot.slane %v1378_v30, 1  ;;  %v3534_v18 = vrot.slane %v4939_v13, 1  ;;  %v4959_v30 = vld [vmem:[#allocation2 + $0x24] sm:$0xff]  }
  0x8d   : > { %v4931_v42 = vld [vmem:[#allocation2 + $0x6c] sm:$0xff]   ;;  %v3157_v48 = vor.u32 %v3156_v45, %v3152_v32  ;;  %v3173_v60 = vrot.slane %v3171_v50, 1  ;;  %v4941_v19 = vld [vmem:[#allocation2 + $0x74] ss:$0 sps:$4 sm:$0x11]   ;;  %1089 = vst.msk [vmem:[#allocation3 + $0x18] sm:$0xff] %vm1085_vm11, %v4959_v30 }
  0x8e   : > { %2383 = vrot.lane.b32.xlu0 %v2262_v34, %s5083_s7  ;;  %v4922_v14 = vld [vmem:[#allocation2 + $0x68] ss:$0 sps:$4 sm:$0x11]   ;;  %v2269_v34 = vor.u32 %v2268_v28, %v2264_v17  ;;  %v3166_v46 = vshll.u32 %v4931_v42, 16  ;;  %v3164_v49 = vshrl.u32 %v4931_v42, 16  ;;  %v4928_v57 = vld [vmem:[#allocation2 + $0x6c] sm:$0xff]   ;;  %v1381_v28 = vor.u32 %v1380_v1, %v1376_v59 }
  0x8f   : > { %v4926_v20 = vld [vmem:[#allocation2 + $0x68] ss:$0 sps:$4 sm:$0x11]   ;;  %v2271_v21 = vshll.u32 %v4922_v14, 16  ;;  %v4940_v16 = vld [vmem:[#allocation2 + $0x6c] sm:$0xff]   ;;  %v1395_v61 = vshll.u32 %v4941_v19, 16 }
  0x90   : > { %v2634_v15 = vrot.slane %v4926_v20, 1  ;;  %v4930_v39 = vld [vmem:[#allocation2 + $0x68] ss:$0 sps:$4 sm:$0x11]   ;;  %v416_v42 = vld [vmem:[#allocation2 + $0x80] sm:$0x1] }
  0x91   : > { %v2273_v29 = vrot.slane %v2271_v21, 1  ;;  %v3159_v41 = vshll.u32 %v4930_v39, 16  ;;  %v4935_v22 = vld [vmem:[#allocation2 + $0x68] ss:$0 sps:$4 sm:$0x11]   ;;  %v1388_v21 = vshrl.u32 %v4940_v16, 16  ;;  %v681_v39 = vor.u32 %v679_v47, %v5475_v9 }
  0x92   : > { %v5413_v5 = vpop.permute.xlu1 %1761  ;;  %2672 = vrot.lane.b32.xlu0 %v2632_v43, %s5081_s29  ;;  %v2635_v52 = vsel %vm1712_vm9, %v2633_v23, %v2634_v15  ;;  %v3531_v62 = vrot.slane %v4935_v22, 1  ;;  %v4937_v63 = vld [vmem:[#allocation2 + $0x68] ss:$0 sps:$4 sm:$0x11]   ;;  %v1390_v23 = vshll.u32 %v4940_v16, 16  ;;  %v691_v15 = vrot.slane %v5477_v11, 4 }
  0x93   : > { %v2274_v37 = vsel %vm1278_vm10, %v2269_v34, %v2273_v29  ;;  %v3161_v55 = vrot.slane %v3159_v41, 1  ;;  %v1383_v7 = vshll.u32 %v4937_v63, 16  ;;  %v4942_v29 = vld [vmem:[#allocation2 + $0x60] sm:$0xfe]   ;;  %v1397_v33 = vrot.slane %v1395_v61, 1  ;;  %v4949_v47 = vld [vmem:[#allocation2 + $0x6c] sm:$0xff]  }
  0x94   : > { %v5417_v12 = vpop.permute.xlu0 %1938  ;;  %v3532_v10 = vsel %vm1712_vm9, %v3530_v58, %v3531_v62  ;;  %v4943_v32 = vld [vmem:[#allocation2 + $0x68] ss:$0 sps:$4 sm:$0x11]   ;;  %v1737_v34 = vrot.slane %v4942_v29, 1  ;;  %v4944_v44 = vld [vmem:[#allocation2 + $0x6c] sm:$0xfe]  }
  0x95   : > { %v3162_v40 = vsel %vm1278_vm10, %v3157_v48, %v3161_v55  ;;  %v1385_v14 = vrot.slane %v1383_v7, 1  ;;  %v1738_v45 = vrot.slane %v4943_v32, 1  ;;  %v417_v22 = vsel %vm5149_vm5, 0, %v416_v42  ;;  %v4950_v59 = vld [vmem:[#allocation2 + $0x74] ss:$0 sps:$4 sm:$0x11]  }
  0x96   : > { %v5433_v38 = vpop.permute.xlu1 %1940  ;;  %v2276_v16 = vshrl.u32 %v4949_v47, 16  ;;  %418 = vst [vmem:[#allocation2 + $0x80] sm:$0x1] %v417_v22  ;;  %v290_v62 = vld [vmem:[%s5156_s24 + $0xa0] sm:$0xff] }
  0x97   : > { %v1739_v51 = vsel %vm1712_vm9, %v1737_v34, %v1738_v45 }
  0x98   : > { %v5431_v35 = vpop.permute.xlu0 %2838 }
  0x9a   : > { %v5451_v53 = vpop.permute.xlu1 %2840 }
  0x9c   : > { %v1472_v56 = vpop.permute.xlu0 %1471 }
  0x9d   : > { %1520 = vst.msk [vmem:[#allocation3] sm:$0xff] %vm1519_vm12, %v1472_v56  ;;  %v3168_v56 = vrot.slane %v3166_v46, 1  ;;  %v1386_v46 = vsel %vm1278_vm10, %v1381_v28, %v1385_v14 }
  0x9e   : > { %1810 = vst.msk [vmem:[#allocation3] sm:$0xff] %vm6009_vm13, %v5413_v5  ;;  %v5471_v4 = vpop.permute.xlu1 %1763  ;;  %v4918_v5 = vld [vmem:[#allocation2 + $0x60] sm:$0xff]  }
  0x9f   : > { %1987 = vst.msk [vmem:[#allocation3] sm:$0xff] %vm6008_vm14, %v5417_v12  ;;  %1952 = vrot.lane.b32.xlu1 %v4918_v5, %s5078_s26  ;;  %v4927_v12 = vld [vmem:[#allocation2 + $0x60] sm:$0xff]   ;;  %v3169_v5 = vor.u32 %v3168_v56, %v3164_v49  ;;  %v908_v49 = vld [vmem:[#allocation2 + $0x78] sm:$0xf]  ;;  %v4946_v56 = vld [vmem:[#allocation2 + $0x6c] sm:$0xff]  }
  0xa0   : > { %v5469_v3 = vpop.permute.xlu0 %2660  ;;  %2850 = vrot.lane.b32.xlu0 %v4927_v12, %s5079_s27  ;;  %v4938_v12 = vld [vmem:[#allocation2 + $0x6c] sm:$0xfe]   ;;  %v909_v9 = vsel %vm5181_vm8, %v681_v39, %v908_v49 }
  0xa1   : > { %v3533_v17 = vrot.slane %v4938_v12, 1  ;;  %v3174_v20 = vsel %vm1278_vm10, %v3169_v5, %v3173_v60  ;;  %910 = vst [vmem:[#allocation2 + $0x78] sm:$0xf] %v909_v9 }
  0xa2   : > { %v5481_v27 = vpop.permute.xlu1 %2662 }
  0xa3   : > { %2385 = vrot.lane.b32.xlu1 %v2274_v37, %s5083_s7  ;;  %v4945_v37 = vld [vmem:[#allocation2 + $0x74] ss:$0 sps:$4 sm:$0x11]  }
  0xa4   : > { %v5485_v25 = vpop.permute.xlu0 %3560  ;;  %3283 = vrot.lane.b32.xlu0 %v3162_v40, %s5084_s8  ;;  %v1741_v55 = vrot.slane %v4945_v37, 1  ;;  %v2278_v40 = vshll.u32 %v4949_v47, 16 }
  0xa6   : > { %v5490_v43 = vpop.permute.xlu1 %2373 }
  0xa7   : > { %2674 = vrot.lane.b32.xlu1 %v2635_v52, %s5081_s29  ;;  %v1740_v52 = vrot.slane %v4944_v44, 1 }
  0xa8   : > { %v5495_v54 = vpop.permute.xlu0 %3562  ;;  %3572 = vrot.lane.b32.xlu0 %v3532_v10, %s5082_s30  ;;  %v4604_v10 = vpack.c.bf16 %v290_v62, %v290_v62  ;;  %v4947_v12 = vld [vmem:[#allocation2 + $0x78] sm:$0xff]  }
  0xa9   : > { %v1742_v1 = vsel %vm1712_vm9, %v1740_v52, %v1741_v55  ;;  %v4963_v39 = vld [vmem:[#allocation2 + $0x78] sm:$0xff]  }
  0xaa   : > { %v5499_v2 = vpop.permute.xlu1 %3273  ;;  %v693_v14 = vshrl.u32 %v4604_v10, 16  ;;  %v696_v19 = vshll.u32 %v4604_v10, 16  ;;  %v3176_v37 = vshrl.u32 %v4963_v39, 16 }
  0xab   : > { %2852 = vrot.lane.b32.xlu1 %v4928_v57, %s5079_s27 }
  0xac   : > { %v1474_v8 = vpop.permute.xlu0 %1473  ;;  %v695_v61 = vrot.slane %v693_v14, 7 }
  0xad   : > { %1521 = vst.msk [vmem:[#allocation3 + $0x8] sm:$0xff] %vm1519_vm12, %v1474_v8  ;;  %v291_v8 = vld [vmem:[%s5156_s24 + $0xa8] sm:$0xff] }
  0xae   : > { %1811 = vst.msk [vmem:[#allocation3 + $0x8] sm:$0xff] %vm6009_vm13, %v5471_v4  ;;  %v1476_v26 = vpop.permute.xlu1 %1475  ;;  %v3535_v4 = vsel %vm1712_vm9, %v3533_v17, %v3534_v18  ;;  %v912_v17 = vld [vmem:[#allocation2 + $0x80] sm:$0x1]  ;;  %v4951_v18 = vld [vmem:[#allocation2 + $0x78] sm:$0xff]  }
  0xaf   : > { %1988 = vst.msk [vmem:[#allocation3 + $0x8] sm:$0xff] %vm6008_vm14, %v5433_v38  ;;  %v1392_v38 = vrot.slane %v1390_v23, 1  ;;  %3285 = vrot.lane.b32.xlu1 %v3174_v20, %s5084_s8  ;;  %3574 = vrot.lane.b32.xlu0 %v3535_v4, %s5082_s30  ;;  %v2290_v28 = vshll.u32 %v4951_v18, 16  ;;  %v4960_v4 = vld [vmem:[#allocation2 + $0x78] sm:$0xff]  }
  0xb0   : > { %v2372_v24 = vpop.permute.xlu0 %2371  ;;  %1522 = vst.msk [vmem:[#allocation3 + $0x10] sm:$0xff] %vm1519_vm12, %v1476_v26  ;;  %v2288_v26 = vshrl.u32 %v4951_v18, 16  ;;  %v292_v18 = vld [vmem:[%s5156_s24 + $0xb0] sm:$0xff] }
  0xb1   : > { %v1393_v48 = vor.u32 %v1392_v38, %v1388_v21  ;;  %2421 = vst.msk [vmem:[#allocation3 + $0x8] sm:$0xff] %vm2419_vm15, %v5490_v43  ;;  %2420 = vst.msk [vmem:[#allocation3] sm:$0xff] %vm2419_vm15, %v2372_v24  ;;  %v4961_v43 = vld [vmem:[%s6002_s1 + $0x8] sm:$0xff]   ;;  %v913_v21 = vsel %vm5130_vm3, %v691_v15, %v912_v17  ;;  %v5566_v24 = vld [vmem:[#allocation2 + $0x78] sm:$0xfe]   ;;  %v2292_v11 = vrot.slane %v2290_v28, 1 }
  0xb2   : > { %v1478_v50 = vpop.permute.xlu1 %1477  ;;  %2710 = vst.msk [vmem:[#allocation3 + $0x8] sm:$0xff] %vm2708_vm1, %v5481_v27  ;;  %2709 = vst.msk [vmem:[#allocation3] sm:$0xff] %vm2708_vm1, %v5469_v3  ;;  %v2280_v3 = vrot.slane %v2278_v40, 1  ;;  %v2283_v27 = vshll.u32 %v4950_v59, 16  ;;  %4764 = vmatprep.subr.bf16.mxu0 %v4961_v43  ;;  %4801 = vmatprep.subr.bf16.mxu1 %v4961_v43  ;;  %v2639_v38 = vrot.slane %v5566_v24, 1  ;;  %v5609_v24 = vpack.c.bf16 %v292_v18, %v292_v18  ;;  %v4986_v28 = vld [vmem:[#allocation2 + $0x30] sm:$0xff]  }
  0xb3   : > { %1487 = vrot.lane.b32.xlu1 %v1386_v46, %s5080_s28  ;;  %1777 = vrot.lane.b32.xlu0 %v1739_v51, %s5077_s25  ;;  %v1398_v58 = vsel %vm1278_vm10, %v1393_v48, %v1397_v33  ;;  %2888 = vst.msk [vmem:[#allocation3 + $0x8] sm:$0xff] %vm2886_vm2, %v5451_v53  ;;  %2887 = vst.msk [vmem:[#allocation3] sm:$0xff] %vm2886_vm2, %v5431_v35  ;;  %v4954_v35 = vld [vmem:[#allocation2 + $0x6c] sm:$0xfe]   ;;  %v363_v15 = vld [vmem:[#allocation2 + $0x84] sm:$0x1] }
  0xb4   : > { %v3272_v41 = vpop.permute.xlu0 %3271  ;;  %3321 = vst.msk [vmem:[#allocation3 + $0x8] sm:$0xff] %vm3319_vm4, %v5499_v2  ;;  %v4955_v53 = vld [vmem:[#allocation2 + $0x74] ss:$0 sps:$4 sm:$0x11]   ;;  %v2281_v2 = vor.u32 %v2280_v3, %v2276_v16  ;;  %v2285_v5 = vrot.slane %v2283_v27, 1  ;;  %4765 = vmatpush3.bf16.msra.mxu0 %v4961_v43  ;;  %4804 = vmatpush3.bf16.msra.mxu1 %v4961_v43  ;;  %v699_v33 = vrot.slane %v695_v61, 4 }
  0xb5   : > { %3320 = vst.msk [vmem:[#allocation3] sm:$0xff] %vm3319_vm4, %v3272_v41  ;;  %v2637_v7 = vrot.slane %v4955_v53, 1  ;;  %914 = vst [vmem:[#allocation2 + $0x80] sm:$0x1] %v913_v21  ;;  %v364_v45 = vsel %vm5130_vm3, 0, %v363_v15  ;;  %v3178_v41 = vshll.u32 %v4963_v39, 16 }
  0xb6   : > { %v1768_v60 = vpop.permute.xlu1 %1767  ;;  %1523 = vst.msk [vmem:[#allocation3 + $0x18] sm:$0xff] %vm1519_vm12, %v1478_v50  ;;  %v2286_v13 = vsel %vm1278_vm10, %v2281_v2, %v2285_v5  ;;  %365 = vst [vmem:[#allocation2 + $0x84] sm:$0x1] %v364_v45  ;;  %v4965_v50 = vld [vmem:[%s6002_s1 + $0x10] ss:$0 sps:$4 sm:$0x33]  }
  0xb7   : > { %1489 = vrot.lane.b32.xlu1 %v1398_v58, %s5080_s28  ;;  %1954 = vrot.lane.b32.xlu0 %v4946_v56, %s5078_s26  ;;  %3610 = vst.msk [vmem:[#allocation3 + $0x8] sm:$0xff] %vm6010_vm6, %v5495_v54  ;;  %3609 = vst.msk [vmem:[#allocation3] sm:$0xff] %vm6010_vm6, %v5485_v25  ;;  %v2636_v54 = vrot.slane %v4954_v35, 1  ;;  %v4605_v25 = vpack.c.bf16 %v291_v8, %v291_v8  ;;  %v419_v51 = vld [vmem:[#allocation2 + $0x8c] sm:$0x1]  ;;  %v3180_v52 = vrot.slane %v3178_v41, 1 }
  0xb8   : > { %v1766_v57 = vpop.permute.xlu0 %1765  ;;  %1813 = vst.msk [vmem:[#allocation3 + $0x18] sm:$0xff] %vm6009_vm13, %v1768_v60  ;;  %v420_v55 = vsel %vm5149_vm5, 0, %v419_v51  ;;  %v2293_v58 = vor.u32 %v2292_v11, %v2288_v26  ;;  %v4968_v43 = vld [vmem:[#allocation2 + $0x78] sm:$0xfe]  }
  0xb9   : > { %1812 = vst.msk [vmem:[#allocation3 + $0x10] sm:$0xff] %vm6009_vm13, %v1766_v57  ;;  %v2638_v23 = vsel %vm1712_vm9, %v2636_v54, %v2637_v7  ;;  %v701_v32 = vshrl.u32 %v4605_v25, 16  ;;  %v704_v34 = vshll.u32 %v4605_v25, 16  ;;  %421 = vst [vmem:[#allocation2 + $0x8c] sm:$0x1] %v420_v55  ;;  %v698_v57 = vor.u32 %v696_v19, %v695_v61  ;;  %v5590_v60 = vld [vmem:[#allocation2 + $0x78] sm:$0xff]  }
  0xba   : > { %v1945_v29 = vpop.permute.xlu1 %1944  ;;  %vm3661_vm13 = vcmask 293888   ;;  %v3181_v35 = vor.u32 %v3180_v52, %v3176_v37  ;;  %v1402_v17 = vshll.u32 %v5590_v60, 16  ;;  %v1400_v21 = vshrl.u32 %v5590_v60, 16  ;;  %1090 = vst.msk [vmem:[#allocation3 + $0x20] sm:$0xff] %vm1085_vm11, %v4986_v28  ;;  %v422_v28 = vld [vmem:[#allocation2 + $0x98] sm:$0x1] }
  0xbb   : > { %1779 = vrot.lane.b32.xlu1 %v1742_v1, %s5077_s25  ;;  %2387 = vrot.lane.b32.xlu0 %v2286_v13, %s5083_s7  ;;  %1990 = vst.msk [vmem:[#allocation3 + $0x18] sm:$0xff] %vm6008_vm14, %v1945_v29  ;;  %v703_v44 = vrot.slane %v701_v32, 7  ;;  %v3536_v1 = vrot.slane %v4968_v43, 1 }
  0xbc   : > { %v1943_v63 = vpop.permute.xlu0 %1942  ;;  %v4952_v9 = vld [vmem:[#allocation2 + $0x80] ss:$0 sps:$4 sm:$0x11]   ;;  %v1404_v61 = vrot.slane %v1402_v17, 1 }
  0xbd   : > { %1989 = vst.msk [vmem:[#allocation3 + $0x10] sm:$0xff] %vm6008_vm14, %v1943_v63  ;;  %vm3710_vm14 = vcmask 1041408   ;;  %v706_v48 = vor.u32 %v704_v34, %v703_v44  ;;  %v708_v49 = vrot.slane %v703_v44, 4  ;;  %v4958_v30 = vld [vmem:[#allocation2 + $0x80] ss:$0 sps:$4 sm:$0x11]  }
  0xbe   : > { %v3625_v46 = vld [vmem:[#allocation3] sm:$0xff]  ;;  %4806 = vmatprep.subr.msk.bf16.mxu0 %vm3710_vm14, %v4965_v50  ;;  %v3712_v22 = vsel %vm3710_vm14, %v4965_v50, 0  ;;  %4807 = vmatprep.subr.msk.bf16.mxu1 %vm3710_vm14, %v4965_v50  ;;  %v2295_v59 = vshll.u32 %v4952_v9, 16  ;;  %v4964_v16 = vld [vmem:[#allocation2 + $0x80] ss:$0 sps:$4 sm:$0x11]  }
  0xbf   : > { %1956 = vrot.lane.b32.xlu1 %v4947_v12, %s5078_s26  ;;  %2676 = vrot.lane.b32.xlu0 %v2638_v23, %s5081_s29  ;;  %v707_v47 = vsel %vm5173_vm7, %v699_v33, %v706_v48  ;;  %v2640_v40 = vrot.slane %v4958_v30, 1  ;;  %v915_v27 = vld [vmem:[#allocation2 + $0x84] sm:$0xf]  ;;  %v3183_v53 = vshll.u32 %v4964_v16, 16  ;;  %v710_v34 = vshrl.u32 %v5609_v24, 16  ;;  %v293_v44 = vld [vmem:[%s5156_s24 + $0xb8] sm:$0xff] }
  0xc0   : > { %v2376_v20 = vpop.permute.xlu0 %2375  ;;  %918 = vst.msk [vmem:[#allocation2 + $0x88] sm:$0xf] %vm318_vm0, %v707_v47  ;;  %4767 = vmatpush3.bf16.msra.mxu0 %v3712_v22  ;;  %4805 = vmatpush3.bf16.msra.mxu1 %v3712_v22  ;;  %v2297_v3 = vrot.slane %v2295_v59, 1  ;;  %v916_v62 = vsel %vm5181_vm8, %v698_v57, %v915_v27  ;;  %v4969_v63 = vld [vmem:[#allocation2 + $0x80] ss:$0 sps:$4 sm:$0x11]  }
  0xc1   : > { %2422 = vst.msk [vmem:[#allocation3 + $0x10] sm:$0xff] %vm2419_vm15, %v2376_v20  ;;  %4768 = vmatprep.mubr.msk.bf16.mxu0 %vm3661_vm13, %v3625_v46  ;;  %917 = vst [vmem:[#allocation2 + $0x84] sm:$0xf] %v916_v62  ;;  %v3185_v5 = vrot.slane %v3183_v53, 1  ;;  %v919_v54 = vld [vmem:[#allocation2 + $0x8c] sm:$0x1]  ;;  %v2641_v13 = vsel %vm1712_vm9, %v2639_v38, %v2640_v40  ;;  %v4607_v40 = vpack.c.bf16 %v293_v44, %v293_v44 }
  0xc2   : > { %v2298_v2 = vsel %vm1278_vm10, %v2293_v58, %v2297_v3  ;;  %v4971_v8 = vld [vmem:[#allocation2 + $0x80] ss:$0 sps:$4 sm:$0x11]   ;;  %v3537_v7 = vrot.slane %v4969_v63, 1  ;;  %v920_v14 = vsel %vm5130_vm3, %v708_v49, %v919_v54  ;;  %v5621_v30 = vrot.slane %v710_v34, 7 }
  0xc3   : > { %2854 = vrot.lane.b32.xlu0 %v4960_v4, %s5079_s27  ;;  %v2378_v10 = vpop.permute.xlu1 %2377  ;;  %2389 = vrot.lane.b32.xlu1 %v2298_v2, %s5083_s7  ;;  %v3626_v12 = vld [vmem:[#allocation3 + $0x8] sm:$0xff]  ;;  %v3186_v25 = vsel %vm1278_vm10, %v3181_v35, %v3185_v5  ;;  %921 = vst [vmem:[#allocation2 + $0x8c] sm:$0x1] %v920_v14  ;;  %v1407_v19 = vshll.u32 %v4971_v8, 16  ;;  %v4976_v4 = vld [vmem:[#allocation2 + $0x78] sm:$0xfe]   ;;  %v1405_v58 = vor.u32 %v1404_v61, %v1400_v21 }
  0xc4   : > { %v2665_v42 = vpop.permute.xlu0 %2664  ;;  %2423 = vst.msk [vmem:[#allocation3 + $0x18] sm:$0xff] %vm2419_vm15, %v2378_v10  ;;  %4769 = vmatmul.mubr.msk.bf16.vlgmr.msra.gmra.mrb[0].mxu0 %vm3661_vm13, %v3626_v12  ;;  %v3538_v20 = vsel %vm1712_vm9, %v3536_v1, %v3537_v7  ;;  %v4977_v29 = vld [vmem:[#allocation2 + $0x80] ss:$0 sps:$4 sm:$0x11]   ;;  %v1743_v45 = vrot.slane %v4976_v4, 1  ;;  %v713_v1 = vshll.u32 %v5609_v24, 16 }
  0xc5   : > { %2711 = vst.msk [vmem:[#allocation3 + $0x10] sm:$0xff] %vm2708_vm1, %v2665_v42  ;;  %v1409_v32 = vrot.slane %v1407_v19, 1  ;;  %v1744_v52 = vrot.slane %v4977_v29, 1  ;;  %v366_v63 = vld [vmem:[#allocation2 + $0x90] sm:$0x1]  ;;  %v716_v12 = vrot.slane %v5621_v30, 4 }
  0xc6   : > { %v367_v7 = vsel %vm5130_vm3, 0, %v366_v63  ;;  %v718_v14 = vshrl.u32 %v4607_v40, 16  ;;  %v721_v17 = vshll.u32 %v4607_v40, 16  ;;  %vm6019_vm14 = vcmask 97344   ;;  %v294_v24 = vld [vmem:[%s5156_s24 + $0xc0] sm:$0xff]  ;;  %v295_v61 = vld [vmem:[%s5156_s24 + $0xc8] sm:$0xff] }
  0xc7   : > { %3287 = vrot.lane.b32.xlu0 %v3186_v25, %s5084_s8  ;;  %v2667_v23 = vpop.permute.xlu1 %2666  ;;  %2678 = vrot.lane.b32.xlu1 %v2641_v13, %s5081_s29  ;;  %v1745_v35 = vsel %vm1712_vm9, %v1743_v45, %v1744_v52  ;;  %v4991_v13 = vld [vmem:[#allocation2 + $0x3c] sm:$0xff]   ;;  %368 = vst [vmem:[#allocation2 + $0x90] sm:$0x1] %v367_v7  ;;  %v1410_v18 = vsel %vm1278_vm10, %v1405_v58, %v1409_v32  ;;  %v423_v32 = vsel %vm5149_vm5, 0, %v422_v28 }
  0xc8   : > { %v2843_v56 = vpop.permute.xlu0 %2842  ;;  %2712 = vst.msk [vmem:[#allocation3 + $0x18] sm:$0xff] %vm2708_vm1, %v2667_v23  ;;  %v4962_v38 = vld [vmem:[#allocation2 + $0x84] sm:$0xff]   ;;  %v5648_v29 = vpack.c.bf16 %v294_v24, %v294_v24  ;;  %424 = vst [vmem:[#allocation2 + $0x98] sm:$0x1] %v423_v32  ;;  %v369_v40 = vld [vmem:[#allocation2 + $0x9c] sm:$0x1] }
  0xc9   : > { %2889 = vst.msk [vmem:[#allocation3 + $0x10] sm:$0xff] %vm2886_vm2, %v2843_v56  ;;  %v4966_v11 = vld [vmem:[#allocation2 + $0x84] sm:$0xff]  }
  0xca   : > { %v4972_v15 = vld [vmem:[#allocation2 + $0x84] sm:$0xfe]   ;;  %v4967_v37 = vld [vmem:[#allocation2 + $0x8c] ss:$0 sps:$4 sm:$0x11]   ;;  %v3188_v41 = vshrl.u32 %v4966_v11, 16 }
  0xcb   : > { %3576 = vrot.lane.b32.xlu0 %v3538_v20, %s5082_s30  ;;  %v2845_v33 = vpop.permute.xlu1 %2844  ;;  %2856 = vrot.lane.b32.xlu1 %v4962_v38, %s5079_s27  ;;  %v4974_v42 = vld [vmem:[#allocation2 + $0x84] sm:$0xff]   ;;  %v3190_v46 = vshll.u32 %v4966_v11, 16  ;;  %v4973_v48 = vld [vmem:[#allocation2 + $0x8c] ss:$0 sps:$4 sm:$0x11]   ;;  %v3195_v49 = vshll.u32 %v4967_v37, 16 }
  0xcc   : > { %v3276_v26 = vpop.permute.xlu0 %3275  ;;  %2890 = vst.msk [vmem:[#allocation3 + $0x18] sm:$0xff] %vm2886_vm2, %v2845_v33  ;;  %v3539_v50 = vrot.slane %v4972_v15, 1  ;;  %v1414_v51 = vshll.u32 %v4974_v42, 16  ;;  %v3540_v47 = vrot.slane %v4973_v48, 1  ;;  %v1412_v59 = vshrl.u32 %v4974_v42, 16  ;;  %v4982_v2 = vld [vmem:[#allocation2 + $0x84] sm:$0xff]  }
  0xcd   : > { %3322 = vst.msk [vmem:[#allocation3 + $0x10] sm:$0xff] %vm3319_vm4, %v3276_v26  ;;  %v3192_v9 = vrot.slane %v3190_v46, 1  ;;  %v4975_v22 = vld [vmem:[#allocation2 + $0x8c] ss:$0 sps:$4 sm:$0x11]   ;;  %v3197_v57 = vrot.slane %v3195_v49, 1  ;;  %v4609_v33 = vpack.c.bf16 %v295_v61, %v295_v61  ;;  %v715_v42 = vor.u32 %v713_v1, %v5621_v30 }
  0xce   : > { %v5624_v16 = vld [vmem:[#allocation2 + $0x84] sm:$0xfe]   ;;  %v3541_v60 = vsel %vm1712_vm9, %v3539_v50, %v3540_v47  ;;  %v1416_v3 = vrot.slane %v1414_v51, 1  ;;  %v1419_v27 = vshll.u32 %v4975_v22, 16  ;;  %v2300_v21 = vshrl.u32 %v4982_v2, 16  ;;  %1091 = vst.msk [vmem:[#allocation3 + $0x28] sm:$0xff] %vm1085_vm11, %v4991_v13 }
  0xcf   : > { %v3278_v55 = vpop.permute.xlu1 %3277  ;;  %v3193_v43 = vor.u32 %v3192_v9, %v3188_v41  ;;  %3578 = vrot.lane.b32.xlu0 %v3541_v60, %s5082_s30  ;;  %v5630_v53 = vld [vmem:[#allocation2 + $0x8c] ss:$0 sps:$4 sm:$0x11]   ;;  %v1746_v62 = vrot.slane %v5624_v16, 1  ;;  %v4980_v25 = vld [vmem:[#allocation2 + $0x84] sm:$0xff]   ;;  %v2302_v23 = vshll.u32 %v4982_v2, 16 }
  0xd0   : > { %v3565_v39 = vpop.permute.xlu0 %3564  ;;  %3323 = vst.msk [vmem:[#allocation3 + $0x18] sm:$0xff] %vm3319_vm4, %v3278_v55  ;;  %v1421_v54 = vrot.slane %v1419_v27, 1  ;;  %v1417_v19 = vor.u32 %v1416_v3, %v1412_v59  ;;  %v4983_v20 = vld [vmem:[#allocation2 + $0x8c] ss:$0 sps:$4 sm:$0x11]   ;;  %v5645_v26 = vrot.slane %v718_v14, 7 }
  0xd1   : > { %3611 = vst.msk [vmem:[#allocation3 + $0x10] sm:$0xff] %vm6010_vm6, %v3565_v39  ;;  %v3198_v10 = vsel %vm1278_vm10, %v3193_v43, %v3197_v57  ;;  %v2304_v11 = vrot.slane %v2302_v23, 1  ;;  %v2307_v15 = vshll.u32 %v4983_v20, 16  ;;  %v1747_v39 = vrot.slane %v5630_v53, 1  ;;  %v4987_v49 = vld [vmem:[#allocation2 + $0x84] sm:$0xfe]  }
  0xd2   : > { %3289 = vrot.lane.b32.xlu1 %v3198_v10, %s5084_s8  ;;  %v723_v45 = vor.u32 %v721_v17, %v5645_v26  ;;  %v727_v44 = vshrl.u32 %v5648_v29, 16  ;;  %v1422_v37 = vsel %vm1278_vm10, %v1417_v19, %v1421_v54  ;;  %v725_v41 = vrot.slane %v5645_v26, 4  ;;  %v4988_v51 = vld [vmem:[#allocation2 + $0x8c] ss:$0 sps:$4 sm:$0x11]  }
  0xd3   : > { %v1480_v5 = vpop.permute.xlu1 %1479  ;;  %1781 = vrot.lane.b32.xlu0 %v1745_v35, %s5077_s25  ;;  %v2305_v46 = vor.u32 %v2304_v11, %v2300_v21  ;;  %v2309_v48 = vrot.slane %v2307_v15, 1  ;;  %v922_v9 = vld [vmem:[#allocation2 + $0x90] sm:$0xf]  ;;  %v2642_v22 = vrot.slane %v4987_v49, 1  ;;  %v735_v30 = vshrl.u32 %v4609_v33, 16  ;;  %v5016_v21 = vld [vmem:[#allocation2 + $0x48] sm:$0xff]  }
  0xd4   : > { %v3567_v56 = vpop.permute.xlu0 %3566  ;;  %1524 = vst.msk [vmem:[#allocation3 + $0x20] sm:$0xff] %vm1519_vm12, %v1480_v5  ;;  %v724_v50 = vsel %vm5173_vm7, %v716_v12, %v723_v45  ;;  %v729_v52 = vrot.slane %v727_v44, 7  ;;  %v1748_v57 = vsel %vm1712_vm9, %v1746_v62, %v1747_v39  ;;  %v923_v58 = vsel %vm5181_vm8, %v715_v42, %v922_v9  ;;  %v425_v60 = vld [vmem:[#allocation2 + $0xa4] sm:$0x1]  ;;  %v296_v62 = vld [vmem:[%s5156_s24 + $0xd0] sm:$0xff]  ;;  %v297_v5 = vld [vmem:[%s5156_s24 + $0xd8] sm:$0xff] }
  0xd5   : > { %3612 = vst.msk [vmem:[#allocation3 + $0x18] sm:$0xff] %vm6010_vm6, %v3567_v56  ;;  %v2310_v47 = vsel %vm1278_vm10, %v2305_v46, %v2309_v48  ;;  %v2643_v59 = vrot.slane %v4988_v51, 1  ;;  %924 = vst [vmem:[#allocation2 + $0x90] sm:$0xf] %v923_v58  ;;  %v370_v3 = vsel %vm5130_vm3, 0, %v369_v40  ;;  %v5677_v27 = vrot.slane %v735_v30, 7 }
  0xd6   : > { %1491 = vrot.lane.b32.xlu1 %v1410_v18, %s5080_s28  ;;  %925 = vst.msk [vmem:[#allocation2 + $0x94] sm:$0xf] %vm318_vm0, %v724_v50  ;;  %v733_v43 = vrot.slane %v729_v52, 4  ;;  %v738_v35 = vshll.u32 %v4609_v33, 16  ;;  %v426_v16 = vsel %vm5149_vm5, 0, %v425_v60  ;;  %v730_v63 = vshll.u32 %v5648_v29, 16 }
  0xd7   : > { %v1482_v4 = vpop.permute.xlu1 %1481  ;;  %1958 = vrot.lane.b32.xlu0 %v4980_v25, %s5078_s26  ;;  %371 = vst [vmem:[#allocation2 + $0x9c] sm:$0x1] %v370_v3  ;;  %427 = vst [vmem:[#allocation2 + $0xa4] sm:$0x1] %v426_v16  ;;  %v5686_v10 = vpack.c.bf16 %v296_v62, %v296_v62  ;;  %v428_v54 = vld [vmem:[#allocation2 + $0xb0] sm:$0x1]  ;;  %v2644_v12 = vsel %vm1712_vm9, %v2642_v22, %v2643_v59  ;;  %v4611_v14 = vpack.c.bf16 %v297_v5, %v297_v5 }
  0xd8   : > { %v1770_v8 = vpop.permute.xlu0 %1769  ;;  %1525 = vst.msk [vmem:[#allocation3 + $0x28] sm:$0xff] %vm1519_vm12, %v1482_v4  ;;  %v3627_v34 = vld [vmem:[#allocation3 + $0x10] sm:$0xff]  ;;  %v926_v7 = vld [vmem:[#allocation2 + $0x98] sm:$0x1]  ;;  %v740_v13 = vor.u32 %v738_v35, %v5677_v27  ;;  %v742_v18 = vrot.slane %v5677_v27, 4  ;;  %v429_v20 = vsel %vm5149_vm5, 0, %v428_v54  ;;  %v732_v61 = vor.u32 %v730_v63, %v729_v52 }
  0xd9   : > { %1814 = vst.msk [vmem:[#allocation3 + $0x20] sm:$0xff] %vm6019_vm14, %v1770_v8  ;;  %vm6020_vm14 = vcmask 130144   ;;  %4772 = vmatprep.mubr.msk.bf16.mxu0 %vm3661_vm13, %v3627_v34  ;;  %v372_v8 = vld [vmem:[#allocation2 + $0xa8] sm:$0x1]  ;;  %v927_v17 = vsel %vm5130_vm3, %v725_v41, %v926_v7  ;;  %v744_v19 = vshrl.u32 %v5686_v10, 16  ;;  %v752_v24 = vshrl.u32 %v4611_v14, 16 }
  0xda   : > { %1493 = vrot.lane.b32.xlu1 %v1422_v37, %s5080_s28  ;;  %v373_v25 = vsel %vm5130_vm3, 0, %v372_v8  ;;  %928 = vst [vmem:[#allocation2 + $0x98] sm:$0x1] %v927_v17  ;;  %v741_v23 = vsel %vm5173_vm7, %v733_v43, %v740_v13  ;;  %v755_v26 = vshll.u32 %v4611_v14, 16  ;;  %430 = vst [vmem:[#allocation2 + $0xb0] sm:$0x1] %v429_v20 }
  0xdb   : > { %v1772_v55 = vpop.permute.xlu1 %1771  ;;  %2391 = vrot.lane.b32.xlu0 %v2310_v47, %s5083_s7  ;;  %374 = vst [vmem:[#allocation2 + $0xa8] sm:$0x1] %v373_v25  ;;  %932 = vst.msk [vmem:[#allocation2 + $0xa0] sm:$0xf] %vm318_vm0, %v741_v23  ;;  %v5710_v32 = vrot.slane %v752_v24, 7  ;;  %v747_v48 = vshll.u32 %v5686_v10, 16 }
  0xdc   : > { %v1947_v38 = vpop.permute.xlu0 %1946  ;;  %v3628_v53 = vld [vmem:[#allocation3 + $0x18] sm:$0xff]  ;;  %1092 = vst.msk [vmem:[#allocation3 + $0x30] sm:$0xff] %vm1085_vm11, %v5016_v21 }
  0xdd   : > { %1991 = vst.msk [vmem:[#allocation3 + $0x20] sm:$0xff] %vm6020_vm14, %v1947_v38  ;;  %vm6021_vm14 = vcmask 97344   ;;  %4773 = vmatmul.mubr.msk.bf16.gmra.mrb[4].mxu0 %vm3661_vm13, %v3628_v53  ;;  %v4981_v29 = vld [vmem:[#allocation2 + $0x90] sm:$0xff]   ;;  %v5708_v38 = vrot.slane %v744_v19, 7  ;;  %v757_v51 = vor.u32 %v755_v26, %v5710_v32 }
  0xde   : > { %1815 = vst.msk [vmem:[#allocation3 + $0x28] sm:$0xff] %vm6021_vm14, %v1772_v55  ;;  %vm6022_vm14 = vcmask 130144   ;;  %1783 = vrot.lane.b32.xlu1 %v1748_v57, %s5077_s25  ;;  %v4984_v11 = vld [vmem:[#allocation2 + $0x90] sm:$0xff]   ;;  %v929_v34 = vld [vmem:[#allocation2 + $0x9c] sm:$0xf] }
  0xdf   : > { %v1949_v1 = vpop.permute.xlu1 %1948  ;;  %2680 = vrot.lane.b32.xlu0 %v2644_v12, %s5081_s29  ;;  %v4989_v15 = vld [vmem:[#allocation2 + $0x90] sm:$0xfe]   ;;  %v750_v42 = vrot.slane %v5708_v38, 4  ;;  %v2312_v44 = vshrl.u32 %v4984_v11, 16  ;;  %v2314_v37 = vshll.u32 %v4984_v11, 16  ;;  %v930_v41 = vsel %vm5181_vm8, %v732_v61, %v929_v34 }
  0xe0   : > { %v2380_v56 = vpop.permute.xlu0 %2379  ;;  %1992 = vst.msk [vmem:[#allocation3 + $0x28] sm:$0xff] %vm6022_vm14, %v1949_v1  ;;  %v4992_v33 = vld [vmem:[#allocation2 + $0x90] sm:$0xff]   ;;  %931 = vst [vmem:[#allocation2 + $0x9c] sm:$0xf] %v930_v41  ;;  %v2645_v9 = vrot.slane %v4989_v15, 1  ;;  %vm6023_vm14 = vcmask 97344  }
  0xe1   : > { %2424 = vst.msk [vmem:[#allocation3 + $0x20] sm:$0xff] %vm2419_vm15, %v2380_v56  ;;  %v4994_v46 = vld [vmem:[#allocation2 + $0x90] sm:$0xff]   ;;  %v4985_v49 = vld [vmem:[#allocation2 + $0x98] ss:$0 sps:$4 sm:$0x11]   ;;  %v2316_v52 = vrot.slane %v2314_v37, 1  ;;  %v758_v22 = vsel %vm5173_vm7, %v750_v42, %v757_v51 }
  0xe2   : > { %1960 = vrot.lane.b32.xlu1 %v4981_v29, %s5078_s26  ;;  %v5720_v50 = vld [vmem:[#allocation2 + $0x90] sm:$0xff]   ;;  %v4990_v55 = vld [vmem:[#allocation2 + $0x98] ss:$0 sps:$4 sm:$0x11]   ;;  %v2319_v56 = vshll.u32 %v4985_v49, 16  ;;  %v3200_v40 = vshrl.u32 %v4994_v46, 16 }
  0xe3   : > { %v2382_v28 = vpop.permute.xlu1 %2381  ;;  %2858 = vrot.lane.b32.xlu0 %v4992_v33, %s5079_s27  ;;  %v2317_v57 = vor.u32 %v2316_v52, %v2312_v44  ;;  %v2646_v58 = vrot.slane %v4990_v55, 1  ;;  %v4995_v59 = vld [vmem:[#allocation2 + $0x98] ss:$0 sps:$4 sm:$0x11]   ;;  %v3202_v43 = vshll.u32 %v4994_v46, 16  ;;  %v1426_v27 = vshll.u32 %v5720_v50, 16 }
  0xe4   : > { %v2669_v2 = vpop.permute.xlu0 %2668  ;;  %2425 = vst.msk [vmem:[#allocation3 + $0x28] sm:$0xff] %vm2419_vm15, %v2382_v28  ;;  %v2321_v60 = vrot.slane %v2319_v56, 1  ;;  %v933_v3 = vld [vmem:[#allocation2 + $0xa4] sm:$0x1]  ;;  %v3207_v16 = vshll.u32 %v4995_v59, 16 }
  0xe5   : > { %2713 = vst.msk [vmem:[#allocation3 + $0x20] sm:$0xff] %vm2708_vm1, %v2669_v2  ;;  %v3204_v35 = vrot.slane %v3202_v43, 1  ;;  %v934_v53 = vsel %vm5130_vm3, %v742_v18, %v933_v3  ;;  %v4998_v63 = vld [vmem:[#allocation2 + $0x90] sm:$0xfe]   ;;  %v1424_v2 = vshrl.u32 %v5720_v50, 16  ;;  %v1428_v12 = vrot.slane %v1426_v27, 1 }
  0xe6   : > { %939 = vst.msk [vmem:[#allocation2 + $0xac] sm:$0xf] %vm318_vm0, %v758_v22  ;;  %v2322_v62 = vsel %vm1278_vm10, %v2317_v57, %v2321_v60  ;;  %935 = vst [vmem:[#allocation2 + $0xa4] sm:$0x1] %v934_v53  ;;  %v3209_v7 = vrot.slane %v3207_v16, 1  ;;  %v2647_v13 = vsel %vm1712_vm9, %v2645_v9, %v2646_v58  ;;  %v3542_v14 = vrot.slane %v4998_v63, 1 }
  0xe7   : > { %v2671_v39 = vpop.permute.xlu1 %2670  ;;  %v4999_v1 = vld [vmem:[#allocation2 + $0x98] ss:$0 sps:$4 sm:$0x11]   ;;  %2393 = vrot.lane.b32.xlu1 %v2322_v62, %s5083_s7  ;;  %v3205_v54 = vor.u32 %v3204_v35, %v3200_v40  ;;  %v4996_v25 = vld [vmem:[#allocation2 + $0x9c] sm:$0xff]   ;;  %v1429_v55 = vor.u32 %v1428_v12, %v1424_v2  ;;  %v5006_v9 = vld [vmem:[#allocation2 + $0x90] sm:$0xfe]  }
  0xe8   : > { %v2847_v4 = vpop.permute.xlu0 %2846  ;;  %2714 = vst.msk [vmem:[#allocation3 + $0x28] sm:$0xff] %vm2708_vm1, %v2671_v39  ;;  %v3543_v17 = vrot.slane %v4999_v1, 1  ;;  %v5004_v18 = vld [vmem:[#allocation2 + $0x9c] sm:$0xff]   ;;  %v3212_v21 = vshrl.u32 %v4996_v25, 16  ;;  %v3214_v23 = vshll.u32 %v4996_v25, 16  ;;  %v1749_v43 = vrot.slane %v5006_v9, 1 }
  0xe9   : > { %2891 = vst.msk [vmem:[#allocation3 + $0x20] sm:$0xff] %vm2886_vm2, %v2847_v4  ;;  %v3210_v19 = vsel %vm1278_vm10, %v3205_v54, %v3209_v7  ;;  %v4993_v20 = vld [vmem:[#allocation2 + $0x9c] sm:$0xff]   ;;  %v5001_v24 = vld [vmem:[#allocation2 + $0x98] ss:$0 sps:$4 sm:$0x11]   ;;  %v1436_v15 = vshrl.u32 %v5004_v18, 16 }
  0xea   : > { %3291 = vrot.lane.b32.xlu0 %v3210_v19, %s5084_s8  ;;  %v3544_v4 = vsel %vm1712_vm9, %v3542_v14, %v3543_v17  ;;  %v5002_v61 = vld [vmem:[#allocation2 + $0x9c] sm:$0xfe]   ;;  %v3216_v29 = vrot.slane %v3214_v23, 1  ;;  %v1431_v11 = vshll.u32 %v5001_v24, 16  ;;  %v1438_v33 = vshll.u32 %v5004_v18, 16  ;;  %v5021_v14 = vld [vmem:[#allocation2 + $0x54] sm:$0xff]  }
  0xeb   : > { %v2849_v47 = vpop.permute.xlu1 %2848  ;;  %2682 = vrot.lane.b32.xlu1 %v2647_v13, %s5081_s29  ;;  %v3545_v39 = vrot.slane %v5002_v61, 1  ;;  %v5007_v22 = vld [vmem:[#allocation2 + $0x98] ss:$0 sps:$4 sm:$0x11]   ;;  %v5012_v57 = vld [vmem:[#allocation2 + $0x9c] sm:$0xff]   ;;  %v759_v7 = vrot.slane %v5710_v32, 4 }
  0xec   : > { %v3280_v45 = vpop.permute.xlu0 %3279  ;;  %2892 = vst.msk [vmem:[#allocation3 + $0x28] sm:$0xff] %vm2886_vm2, %v2849_v47  ;;  %v1433_v42 = vrot.slane %v1431_v11, 1  ;;  %v3217_v37 = vor.u32 %v3216_v29, %v3212_v21  ;;  %v1440_v50 = vrot.slane %v1438_v33, 1  ;;  %v1750_v60 = vrot.slane %v5007_v22, 1  ;;  %v5008_v3 = vld [vmem:[#allocation2 + $0x9c] sm:$0xfe]  }
  0xed   : > { %3324 = vst.msk [vmem:[#allocation3 + $0x20] sm:$0xff] %vm3319_vm4, %v3280_v45  ;;  %v4997_v34 = vld [vmem:[#allocation2 + $0xa4] ss:$0 sps:$4 sm:$0x11]   ;;  %v5010_v10 = vld [vmem:[#allocation2 + $0x9c] sm:$0xff]   ;;  %v1752_v53 = vrot.slane %v5008_v3, 1 }
  0xee   : > { %3580 = vrot.lane.b32.xlu0 %v3544_v4, %s5082_s30  ;;  %v5003_v45 = vld [vmem:[#allocation2 + $0xa4] ss:$0 sps:$4 sm:$0x11]   ;;  %v3219_v41 = vshll.u32 %v4997_v34, 16  ;;  %v1434_v35 = vsel %vm1278_vm10, %v1429_v55, %v1433_v42  ;;  %v1441_v16 = vor.u32 %v1440_v50, %v1436_v15  ;;  %v940_v12 = vld [vmem:[#allocation2 + $0xb0] sm:$0x1] }
  0xef   : > { %v3282_v5 = vpop.permute.xlu1 %3281  ;;  %2860 = vrot.lane.b32.xlu1 %v4993_v20, %s5079_s27  ;;  %v5005_v46 = vld [vmem:[#allocation2 + $0xa4] ss:$0 sps:$4 sm:$0x11]   ;;  %v3546_v49 = vrot.slane %v5003_v45, 1  ;;  %v941_v18 = vsel %vm5130_vm3, %v759_v7, %v940_v12  ;;  %v5017_v21 = vld [vmem:[#allocation2 + $0x9c] sm:$0xfe]  }
  0xf0   : > { %v3569_v30 = vpop.permute.xlu0 %3568  ;;  %3325 = vst.msk [vmem:[#allocation3 + $0x28] sm:$0xff] %vm3319_vm4, %v3282_v5  ;;  %v3221_v52 = vrot.slane %v3219_v41, 1  ;;  %v1443_v56 = vshll.u32 %v5005_v46, 16  ;;  %v5009_v27 = vld [vmem:[#allocation2 + $0xa4] ss:$0 sps:$4 sm:$0x11]  }
  0xf1   : > { %3613 = vst.msk [vmem:[#allocation3 + $0x20] sm:$0xff] %vm6010_vm6, %v3569_v30  ;;  %v3547_v47 = vsel %vm1712_vm9, %v3545_v39, %v3546_v49  ;;  %v749_v30 = vor.u32 %v747_v48, %v5708_v38  ;;  %v936_v38 = vld [vmem:[#allocation2 + $0xa8] sm:$0xf]  ;;  %v1751_v48 = vsel %vm1712_vm9, %v1749_v43, %v1750_v60  ;;  %v1753_v62 = vrot.slane %v5009_v27, 1  ;;  %v298_v19 = vld [vmem:[%s5156_s24 + $0xe0] sm:$0xff] }
  0xf2   : > { %v3222_v59 = vsel %vm1278_vm10, %v3217_v37, %v3221_v52  ;;  %3582 = vrot.lane.b32.xlu0 %v3547_v47, %s5082_s30  ;;  %v1445_v40 = vrot.slane %v1443_v56, 1  ;;  %v2324_v5 = vshrl.u32 %v5012_v57, 16  ;;  %v5013_v54 = vld [vmem:[#allocation2 + $0xa4] ss:$0 sps:$4 sm:$0x11]   ;;  %1093 = vst.msk [vmem:[#allocation3 + $0x38] sm:$0xff] %vm1085_vm11, %v5021_v14  ;;  %v4612_v32 = vpack.c.bf16 %v298_v19, %v298_v19 }
  0xf3   : > { %v1484_v26 = vpop.permute.xlu1 %1483  ;;  %3293 = vrot.lane.b32.xlu1 %v3222_v59, %s5084_s8  ;;  %v937_v63 = vsel %vm5181_vm8, %v749_v30, %v936_v38  ;;  %v2331_v17 = vshll.u32 %v5013_v54, 16  ;;  %942 = vst [vmem:[#allocation2 + $0xb0] sm:$0x1] %v941_v18  ;;  %v5018_v23 = vld [vmem:[#allocation2 + $0xa4] ss:$0 sps:$4 sm:$0x11]   ;;  %v1754_v29 = vsel %vm1712_vm9, %v1752_v53, %v1753_v62 }
  0xf4   : > { %v3571_v8 = vpop.permute.xlu0 %3570  ;;  %1526 = vst.msk [vmem:[#allocation3 + $0x30] sm:$0xff] %vm1519_vm12, %v1484_v26  ;;  %938 = vst [vmem:[#allocation2 + $0xa8] sm:$0xf] %v937_v63  ;;  %v1446_v13 = vsel %vm1278_vm10, %v1441_v16, %v1445_v40  ;;  %v299_v24 = vld [vmem:[%s5156_s24 + $0xe8] sm:$0xff]  ;;  %v2648_v11 = vrot.slane %v5017_v21, 1  ;;  %v2649_v15 = vrot.slane %v5018_v23, 1 }
  0xf5   : > { %3614 = vst.msk [vmem:[#allocation3 + $0x28] sm:$0xff] %vm6010_vm6, %v3571_v8  ;;  %vm6024_vm6 = vcmask 130144   ;;  %v2326_v8 = vshll.u32 %v5012_v57, 16  ;;  %v2333_v26 = vrot.slane %v2331_v17, 1  ;;  %v375_v33 = vld [vmem:[#allocation2 + $0xb4] sm:$0x1] }
  0xf6   : > { %1785 = vrot.lane.b32.xlu0 %v1751_v48, %s5077_s25  ;;  %v761_v34 = vshrl.u32 %v4612_v32, 16  ;;  %v376_v42 = vsel %vm5130_vm3, 0, %v375_v33  ;;  %v764_v46 = vshll.u32 %v4612_v32, 16  ;;  %v2650_v49 = vsel %vm1712_vm9, %v2648_v11, %v2649_v15  ;;  %v5046_v33 = vld [vmem:[#allocation2 + $0x60] sm:$0xff]  }
  0xf7   : > { %v1486_v51 = vpop.permute.xlu1 %1485  ;;  %1495 = vrot.lane.b32.xlu1 %v1434_v35, %s5080_s28  ;;  %v2328_v25 = vrot.slane %v2326_v8, 1  ;;  %377 = vst [vmem:[#allocation2 + $0xb4] sm:$0x1] %v376_v42  ;;  %1094 = vst.msk [vmem:[#allocation3 + $0x40] sm:$0xff] %vm1085_vm11, %v5046_v33 }
  0xf8   : > { %v1774_v28 = vpop.permute.xlu0 %1773  ;;  %1527 = vst.msk [vmem:[#allocation3 + $0x38] sm:$0xff] %vm1519_vm12, %v1486_v51  ;;  %v3629_v4 = vld [vmem:[#allocation3 + $0x20] sm:$0xff]  ;;  %v763_v41 = vrot.slane %v761_v34, 7 }
  0xf9   : > { %1816 = vst.msk [vmem:[#allocation3 + $0x30] sm:$0xff] %vm6023_vm14, %v1774_v28  ;;  %v2329_v20 = vor.u32 %v2328_v25, %v2324_v5  ;;  %v4613_v28 = vpack.c.bf16 %v299_v24, %v299_v24  ;;  %4776 = vmatprep.mubr.msk.bf16.mxu0 %vm3661_vm13, %v3629_v4 }
  0xfa   : > { %1962 = vrot.lane.b32.xlu0 %v5010_v10, %s5078_s26  ;;  %v5015_v30 = vld [vmem:[#allocation2 + $0xb0] ss:$0 sps:$4 sm:$0x11]   ;;  %v767_v57 = vrot.slane %v763_v41, 4  ;;  %v766_v40 = vor.u32 %v764_v46, %v763_v41  ;;  %v301_v41 = vld [vmem:[%s5156_s24 + $0xf8] sm:$0xff] }
  0xfb   : > { %v1776_v1 = vpop.permute.xlu1 %1775  ;;  %1497 = vrot.lane.b32.xlu1 %v1446_v13, %s5080_s28  ;;  %v2334_v39 = vsel %vm1278_vm10, %v2329_v20, %v2333_v26  ;;  %v5014_v37 = vld [vmem:[#allocation2 + $0xa8] sm:$0xff]   ;;  %v769_v51 = vshrl.u32 %v4613_v28, 16  ;;  %v772_v52 = vshll.u32 %v4613_v28, 16  ;;  %v5020_v59 = vld [vmem:[#allocation2 + $0xb0] ss:$0 sps:$4 sm:$0x11]  }
  0xfc   : > { %v1951_v44 = vpop.permute.xlu0 %1950  ;;  %v5019_v50 = vld [vmem:[#allocation2 + $0xa8] sm:$0xfe]   ;;  %v2336_v55 = vshrl.u32 %v5014_v37, 16  ;;  %v2338_v56 = vshll.u32 %v5014_v37, 16  ;;  %v3630_v22 = vld [vmem:[#allocation3 + $0x28] sm:$0xff]  ;;  %v2343_v43 = vshll.u32 %v5015_v30, 16 }
  0xfd   : > { %1993 = vst.msk [vmem:[#allocation3 + $0x30] sm:$0xff] %vm6024_vm6, %v1951_v44  ;;  %vm6025_vm6 = vmmov %vm6023_vm14  ;;  %vm6026_vm14 = vcmask 130144   ;;  %v5011_v44 = vld [vmem:[#allocation2 + $0xa8] sm:$0xff]   ;;  %4777 = vmatmul.mubr.msk.bf16.gmra.mrb[8].mxu0 %vm3661_vm13, %v3630_v22  ;;  %v5785_v60 = vrot.slane %v769_v51, 7  ;;  %v2651_v27 = vrot.slane %v5019_v50, 1  ;;  %v2652_v53 = vrot.slane %v5020_v59, 1 }
  0xfe   : > { %1817 = vst.msk [vmem:[#allocation3 + $0x38] sm:$0xff] %vm6025_vm6, %v1776_v1  ;;  %2395 = vrot.lane.b32.xlu0 %v2334_v39, %s5083_s7  ;;  %v5022_v9 = vld [vmem:[#allocation2 + $0xa8] sm:$0xff]   ;;  %v5025_v35 = vld [vmem:[#allocation2 + $0xb0] ss:$0 sps:$4 sm:$0x11]   ;;  %v2345_v48 = vrot.slane %v2343_v43, 1  ;;  %v4615_v22 = vpack.c.bf16 %v301_v41, %v301_v41 }
  0xff   : > { %1787 = vrot.lane.b32.xlu1 %v1754_v29, %s5077_s25  ;;  %v5024_v47 = vld [vmem:[#allocation2 + $0xa8] sm:$0xff]   ;;  %v774_v62 = vor.u32 %v772_v52, %v5785_v60  ;;  %v943_v63 = vld [vmem:[#allocation2 + $0xb4] sm:$0xf]  ;;  %v431_v1 = vld [vmem:[#allocation2 + $0xbc] sm:$0x1]  ;;  %v3231_v8 = vshll.u32 %v5025_v35, 16  ;;  %v2653_v20 = vsel %vm1712_vm9, %v2651_v27, %v2652_v53 }
 0x100   : > { %v2384_v58 = vpop.permute.xlu0 %2383  ;;  %v3224_v16 = vshrl.u32 %v5024_v47, 16  ;;  %v3226_v10 = vshll.u32 %v5024_v47, 16  ;;  %v432_v12 = vsel %vm5149_vm5, 0, %v431_v1  ;;  %v5028_v13 = vld [vmem:[#allocation2 + $0xa8] sm:$0xfe]   ;;  %v300_v28 = vld [vmem:[%s5156_s24 + $0xf0] sm:$0xff]  ;;  %s268_s24 = scalar_lea.vmem %s6007_s6, %s6052_s2 }
 0x101   : > { %2426 = vst.msk [vmem:[#allocation3 + $0x30] sm:$0xff] %vm2419_vm15, %v2384_v58  ;;  %v2340_v58 = vrot.slane %v2338_v56, 1  ;;  %v775_v7 = vsel %vm5173_vm7, %v767_v57, %v774_v62  ;;  %v3233_v14 = vrot.slane %v3231_v8, 1  ;;  %433 = vst [vmem:[#allocation2 + $0xbc] sm:$0x1] %v432_v12  ;;  %v3548_v21 = vrot.slane %v5028_v13, 1 }
 0x102   : > { %2684 = vrot.lane.b32.xlu0 %v2650_v49, %s5081_s29  ;;  %v3228_v5 = vrot.slane %v3226_v10, 1  ;;  %946 = vst.msk [vmem:[#allocation2 + $0xb8] sm:$0xf] %vm318_vm0, %v775_v7  ;;  %v5029_v17 = vld [vmem:[#allocation2 + $0xb0] ss:$0 sps:$4 sm:$0x11]   ;;  %v4614_v4 = vpack.c.bf16 %v300_v28, %v300_v28 }
 0x103   : > { %1964 = vrot.lane.b32.xlu1 %v5011_v44, %s5078_s26  ;;  %v2341_v3 = vor.u32 %v2340_v58, %v2336_v55  ;;  %v5800_v23 = vld [vmem:[#allocation2 + $0xa8] sm:$0xff]   ;;  %v3549_v32 = vrot.slane %v5029_v17, 1  ;;  %v5031_v26 = vld [vmem:[#allocation2 + $0xb0] ss:$0 sps:$4 sm:$0x11]   ;;  %vm6027_vm6 = vcmask 294144  }
 0x104   : > { %v2673_v2 = vpop.permute.xlu0 %2672  ;;  %v3229_v25 = vor.u32 %v3228_v5, %v3224_v16  ;;  %v1448_v34 = vshrl.u32 %v5800_v23, 16  ;;  %v1450_v39 = vshll.u32 %v5800_v23, 16  ;;  %v5812_v42 = vld [vmem:[#allocation2 + $0xa8] sm:$0xfe]   ;;  %v1455_v44 = vshll.u32 %v5031_v26, 16 }
 0x105   : > { %2715 = vst.msk [vmem:[#allocation3 + $0x30] sm:$0xff] %vm2708_vm1, %v2673_v2  ;;  %v944_v2 = vsel %vm5181_vm8, %v766_v40, %v943_v63  ;;  %v2346_v54 = vsel %vm1278_vm10, %v2341_v3, %v2345_v48  ;;  %v3550_v29 = vsel %vm1712_vm9, %v3548_v21, %v3549_v32  ;;  %v5816_v37 = vld [vmem:[#allocation2 + $0xb0] ss:$0 sps:$4 sm:$0x11]   ;;  %v778_v50 = vshrl.u32 %v4614_v4, 16 }
 0x106   : > { %2862 = vrot.lane.b32.xlu0 %v5022_v9, %s5079_s27  ;;  %945 = vst [vmem:[#allocation2 + $0xb4] sm:$0xf] %v944_v2  ;;  %v3234_v24 = vsel %vm1278_vm10, %v3229_v25, %v3233_v14  ;;  %v1452_v57 = vrot.slane %v1450_v39, 1  ;;  %v5827_v58 = vrot.slane %v1455_v44, 1  ;;  %v1755_v40 = vrot.slane %v5812_v42, 1  ;;  %v5051_v8 = vld [vmem:[#allocation2 + $0x6c] sm:$0xff]  }
 0x107   : > { %2397 = vrot.lane.b32.xlu1 %v2346_v54, %s5083_s7  ;;  %v780_v43 = vrot.slane %v778_v50, 7  ;;  %v1756_v35 = vrot.slane %v5816_v37, 1  ;;  %v786_v48 = vshrl.u32 %v4615_v22, 16  ;;  %v789_v2 = vshll.u32 %v4615_v22, 16  ;;  %v434_v5 = vld [vmem:[#allocation2 + $0xc8] sm:$0x1] }
 0x108   : > { %v947_v49 = vld [vmem:[#allocation2 + $0xbc] sm:$0x1]  ;;  %v435_v7 = vsel %vm5149_vm5, 0, %v434_v5  ;;  %1095 = vst.msk [vmem:[#allocation3 + $0x48] sm:$0xff] %vm1085_vm11, %v5051_v8 }
 0x109   : > { %v784_v63 = vrot.slane %v780_v43, 4  ;;  %v788_v1 = vrot.slane %v786_v48, 7  ;;  %436 = vst [vmem:[#allocation2 + $0xc8] sm:$0x1] %v435_v7  ;;  %v1757_v36 = vsel %vm1712_vm9, %v1755_v40, %v1756_v35  ;;  %v5062_v8 = vld [vmem:[#allocation2 + $0x78] sm:$0xff]  }
 0x10a   : > { %3295 = vrot.lane.b32.xlu0 %v3234_v24, %s5084_s8  ;;  %1096 = vst.msk [vmem:[#allocation3 + $0x50] sm:$0xff] %vm1085_vm11, %v5062_v8 }
 0x10b   : > { %2686 = vrot.lane.b32.xlu1 %v2653_v20, %s5081_s29  ;;  %v791_v17 = vor.u32 %v789_v2, %v788_v1 }
 0x10d   : > { %v5023_v46 = vld [vmem:[#allocation2 + $0xb4] sm:$0xff]   ;;  %v792_v28 = vsel %vm5173_vm7, %v784_v63, %v791_v17 }
 0x10e   : > { %3584 = vrot.lane.b32.xlu0 %v3550_v29, %s5082_s30  ;;  %v5026_v52 = vld [vmem:[#allocation2 + $0xb4] sm:$0xff]   ;;  %953 = vst.msk [vmem:[#allocation2 + $0xc4] sm:$0xf] %vm318_vm0, %v792_v28 }
 0x10f   : > { %2864 = vrot.lane.b32.xlu1 %v5023_v46, %s5079_s27  ;;  %v5032_v47 = vld [vmem:[#allocation2 + $0xb4] sm:$0xfe]   ;;  %v3238_v30 = vshll.u32 %v5026_v52, 16  ;;  %v793_v46 = vrot.slane %v788_v1, 4 }
 0x110   : > { %v5829_v59 = vld [vmem:[#allocation2 + $0xb4] sm:$0xff]   ;;  %v3551_v27 = vrot.slane %v5032_v47, 1 }
 0x111   : > { %v1953_v61 = vpop.permute.xlu1 %1952  ;;  %v3240_v3 = vrot.slane %v3238_v30, 1  ;;  %v1460_v53 = vshrl.u32 %v5829_v59, 16  ;;  %v1462_v62 = vshll.u32 %v5829_v59, 16  ;;  %v5843_v26 = vld [vmem:[#allocation2 + $0xb4] sm:$0xfe]  }
 0x112   : > { %1994 = vst.msk [vmem:[#allocation3 + $0x38] sm:$0xff] %vm6026_vm14, %v1953_v61  ;;  %v2851_v45 = vpop.permute.xlu0 %2850  ;;  %v776_v61 = vrot.slane %v5785_v60, 4  ;;  %vm6028_vm14 = vmmov %vm6027_vm6  ;;  %v3236_v60 = vshrl.u32 %v5026_v52, 16  ;;  %v1758_v30 = vrot.slane %v5843_v26, 1  ;;  %v437_v26 = vld [vmem:[#allocation2 + $0xd4] sm:$0x1] }
 0x113   : > { %2893 = vst.msk [vmem:[#allocation3 + $0x30] sm:$0xff] %vm2886_vm2, %v2851_v45  ;;  %v378_v45 = vld [vmem:[#allocation2 + $0xc0] sm:$0x1]  ;;  %v1464_v32 = vrot.slane %v1462_v62, 1 }
 0x114   : > { %v948_v51 = vsel %vm5130_vm3, %v776_v61, %v947_v49  ;;  %v379_v55 = vsel %vm5130_vm3, 0, %v378_v45  ;;  %v1453_v61 = vor.u32 %v1452_v57, %v1448_v34 }
 0x115   : > { %v2386_v38 = vpop.permute.xlu1 %2385  ;;  %949 = vst [vmem:[#allocation2 + $0xbc] sm:$0x1] %v948_v51  ;;  %380 = vst [vmem:[#allocation2 + $0xc0] sm:$0x1] %v379_v55  ;;  %v1465_v52 = vor.u32 %v1464_v32, %v1460_v53  ;;  %v5040_v55 = vld [vmem:[#allocation2 + $0xb4] sm:$0xff]  }
 0x116   : > { %2427 = vst.msk [vmem:[#allocation3 + $0x38] sm:$0xff] %vm2419_vm15, %v2386_v38  ;;  %v3284_v19 = vpop.permute.xlu0 %3283  ;;  %v781_v38 = vshll.u32 %v4614_v4, 16  ;;  %v1458_v51 = vsel %vm1278_vm10, %v1453_v61, %v5827_v58  ;;  %v381_v58 = vld [vmem:[#allocation2 + $0xcc] sm:$0x1] }
 0x117   : > { %3326 = vst.msk [vmem:[#allocation3 + $0x30] sm:$0xff] %vm3319_vm4, %v3284_v19  ;;  %v3241_v19 = vor.u32 %v3240_v3, %v3236_v60 }
 0x118   : > { %v783_v14 = vor.u32 %v781_v38, %v780_v43 }
 0x119   : > { %v2675_v18 = vpop.permute.xlu1 %2674 }
 0x11a   : > { %2716 = vst.msk [vmem:[#allocation3 + $0x38] sm:$0xff] %vm2708_vm1, %v2675_v18  ;;  %v3573_v15 = vpop.permute.xlu0 %3572  ;;  %v5042_v18 = vld [vmem:[#allocation2 + $0xb4] sm:$0xff]  }
 0x11b   : > { %3615 = vst.msk [vmem:[#allocation3 + $0x30] sm:$0xff] %vm6027_vm6, %v3573_v15  ;;  %vm6029_vm6 = vcmask 97344   ;;  %v2348_v37 = vshrl.u32 %v5042_v18, 16  ;;  %v2350_v31 = vshll.u32 %v5042_v18, 16 }
 0x11c   : > { %v5027_v54 = vld [vmem:[#allocation2 + $0xbc] ss:$0 sps:$4 sm:$0x11]   ;;  %v950_v15 = vld [vmem:[#allocation2 + $0xc0] sm:$0xf]  ;;  %vm6031_vm7 = vmmov %vm6029_vm6 }
 0x11d   : > { %v2853_v11 = vpop.permute.xlu1 %2852  ;;  %v5033_v25 = vld [vmem:[#allocation2 + $0xbc] ss:$0 sps:$4 sm:$0x11]   ;;  %v3243_v20 = vshll.u32 %v5027_v54, 16  ;;  %v951_v45 = vsel %vm5181_vm8, %v783_v14, %v950_v15  ;;  %v2352_v49 = vrot.slane %v2350_v31, 1  ;;  %v5063_v15 = vld [vmem:[#allocation2 + $0x84] sm:$0xff]   ;;  %vm6035_vm8 = vmmov %vm6029_vm6 }
 0x11e   : > { %2894 = vst.msk [vmem:[#allocation3 + $0x38] sm:$0xff] %vm2886_vm2, %v2853_v11  ;;  %v5035_v21 = vld [vmem:[#allocation2 + $0xbc] ss:$0 sps:$4 sm:$0x11]   ;;  %v3552_v24 = vrot.slane %v5033_v25, 1 }
 0x11f   : > { %v3245_v4 = vrot.slane %v3243_v20, 1  ;;  %v1467_v29 = vshll.u32 %v5035_v21, 16  ;;  %v5039_v11 = vld [vmem:[#allocation2 + $0xbc] ss:$0 sps:$4 sm:$0x11]   ;;  %v2353_v60 = vor.u32 %v2352_v49, %v2348_v37  ;;  %1097 = vst.msk [vmem:[#allocation3 + $0x58] sm:$0xff] %vm1085_vm11, %v5063_v15 }
 0x120   : > { %v3553_v42 = vsel %vm1712_vm9, %v3551_v27, %v3552_v24  ;;  %v5043_v44 = vld [vmem:[#allocation2 + $0xbc] ss:$0 sps:$4 sm:$0x11]   ;;  %952 = vst [vmem:[#allocation2 + $0xc0] sm:$0xf] %v951_v45  ;;  %v1759_v40 = vrot.slane %v5039_v11, 1 }
 0x121   : > { %v3286_v56 = vpop.permute.xlu1 %3285  ;;  %v3575_v9 = vpop.permute.xlu0 %3574  ;;  %v3246_v23 = vsel %vm1278_vm10, %v3241_v19, %v3245_v4  ;;  %3586 = vrot.lane.b32.xlu0 %v3553_v42, %s5082_s30  ;;  %v1469_v34 = vrot.slane %v1467_v29, 1  ;;  %v2355_v50 = vshll.u32 %v5043_v44, 16  ;;  %v5048_v59 = vld [vmem:[#allocation2 + $0xbc] ss:$0 sps:$4 sm:$0x11]   ;;  %v382_v27 = vsel %vm5130_vm3, 0, %v381_v58 }
 0x122   : > { %3327 = vst.msk [vmem:[#allocation3 + $0x38] sm:$0xff] %vm3319_vm4, %v3286_v56  ;;  %v3631_v41 = vld [vmem:[#allocation3 + $0x30] sm:$0xff]  ;;  %3297 = vrot.lane.b32.xlu1 %v3246_v23, %s5084_s8  ;;  %383 = vst [vmem:[#allocation2 + $0xcc] sm:$0x1] %v382_v27  ;;  %v2655_v48 = vrot.slane %v5048_v59, 1  ;;  %v1760_v0 = vsel %vm1712_vm9, %v1758_v30, %v1759_v40  ;;  %v438_v29 = vsel %vm5149_vm5, 0, %v437_v26 }
 0x123   : > { %3616 = vst.msk [vmem:[#allocation3 + $0x38] sm:$0xff] %vm6028_vm14, %v3575_v9  ;;  %vm6030_vm14 = vcmask 130144   ;;  %4780 = vmatprep.mubr.msk.bf16.mxu0 %vm3661_vm13, %v3631_v41  ;;  %v954_v56 = vld [vmem:[#allocation2 + $0xc8] sm:$0x1]  ;;  %v5047_v9 = vld [vmem:[#allocation2 + $0xb4] sm:$0xfe]   ;;  %v1470_v35 = vsel %vm1278_vm10, %v1465_v52, %v1469_v34 }
 0x124   : > { %v955_v57 = vsel %vm5130_vm3, %v793_v46, %v954_v56  ;;  %vm6032_vm0 = vmmov %vm6030_vm14  ;;  %v2357_v3 = vrot.slane %v2355_v50, 1  ;;  %v2654_v38 = vrot.slane %v5047_v9, 1  ;;  %439 = vst [vmem:[#allocation2 + $0xd4] sm:$0x1] %v438_v29  ;;  %v5064_v41 = vld [vmem:[#allocation2 + $0x90] sm:$0xff]   ;;  %vm6033_vm3 = vcmask 294144  }
 0x125   : > { %v1488_v16 = vpop.permute.xlu1 %1487  ;;  %v1778_v10 = vpop.permute.xlu0 %1777  ;;  %1789 = vrot.lane.b32.xlu0 %v1757_v36, %s5077_s25  ;;  %956 = vst [vmem:[#allocation2 + $0xc8] sm:$0x1] %v955_v57  ;;  %1098 = vst.msk [vmem:[#allocation3 + $0x60] sm:$0xff] %vm1085_vm11, %v5064_v41  ;;  %v5065_v36 = vld [vmem:[#allocation2 + $0x9c] sm:$0xff]   ;;  %v5067_v9 = vld [vmem:[#allocation2 + $0xb4] sm:$0xff]  }
 0x126   : > { %1528 = vst.msk [vmem:[#allocation3 + $0x40] sm:$0xff] %vm1519_vm12, %v1488_v16  ;;  %1499 = vrot.lane.b32.xlu1 %v1458_v51, %s5080_s28  ;;  %v2358_v53 = vsel %vm1278_vm10, %v2353_v60, %v2357_v3  ;;  %v2656_v25 = vsel %vm1712_vm9, %v2654_v38, %v2655_v48  ;;  %v5066_v51 = vld [vmem:[#allocation2 + $0xa8] sm:$0xff]   ;;  %vm6034_vm5 = vmmov %vm6033_vm3 }
 0x127   : > { %1818 = vst.msk [vmem:[#allocation3 + $0x40] sm:$0xff] %vm6029_vm6, %v1778_v10  ;;  %v5044_v10 = vld [vmem:[#allocation2 + $0xc0] sm:$0xff]  }
 0x128   : > { %v5049_v62 = vld [vmem:[#allocation2 + $0xc0] sm:$0xfe]   ;;  %v2360_v63 = vshrl.u32 %v5044_v10, 16  ;;  %v2362_v1 = vshll.u32 %v5044_v10, 16  ;;  %1099 = vst.msk [vmem:[#allocation3 + $0x68] sm:$0xff] %vm1085_vm11, %v5065_v36  ;;  %1100 = vst.msk [vmem:[#allocation3 + $0x70] sm:$0xff] %vm1085_vm11, %v5066_v51 }
 0x129   : > { %v1490_v12 = vpop.permute.xlu1 %1489  ;;  %v1955_v13 = vpop.permute.xlu0 %1954  ;;  %1966 = vrot.lane.b32.xlu0 %v5040_v55, %s5078_s26  ;;  %v5054_v2 = vld [vmem:[#allocation2 + $0xc0] sm:$0xff]   ;;  %v2657_v17 = vrot.slane %v5049_v62, 1  ;;  %v5056_v28 = vld [vmem:[#allocation2 + $0xcc] sm:$0xff]   ;;  %1101 = vst.msk [vmem:[#allocation3 + $0x78] sm:$0xff] %vm1085_vm11, %v5067_v9  ;;  %vm6038_vm11 = vmmov %vm6032_vm0 }
 0x12a   : > { %1995 = vst.msk [vmem:[#allocation3 + $0x40] sm:$0xff] %vm6030_vm14, %v1955_v13  ;;  %v3632_v43 = vld [vmem:[#allocation3 + $0x38] sm:$0xff]  ;;  %1501 = vrot.lane.b32.xlu1 %v1470_v35, %s5080_s28  ;;  %v2364_v54 = vrot.slane %v2362_v1, 1  ;;  %v5052_v18 = vld [vmem:[#allocation2 + $0xc0] sm:$0xff]   ;;  %v3248_v20 = vshrl.u32 %v5054_v2, 16  ;;  %v3250_v21 = vshll.u32 %v5054_v2, 16  ;;  %vm6040_vm14 = vmmov %vm6033_vm3 }
 0x12b   : > { %1529 = vst.msk [vmem:[#allocation3 + $0x48] sm:$0xff] %vm1519_vm12, %v1490_v12  ;;  %4781 = vmatmul.mubr.msk.bf16.gmra.mrb[12].mxu0 %vm3661_vm13, %v3632_v43  ;;  %v5041_v12 = vld [vmem:[#allocation2 + $0xc0] sm:$0xff]   ;;  %v3260_v23 = vshrl.u32 %v5056_v28, 16  ;;  %v5053_v30 = vld [vmem:[#allocation2 + $0xcc] sm:$0xff]  }
 0x12c   : > { %v5045_v5 = vld [vmem:[#allocation2 + $0xc8] ss:$0 sps:$4 sm:$0x11]   ;;  %v2365_v14 = vor.u32 %v2364_v54, %v2360_v63  ;;  %v3252_v4 = vrot.slane %v3250_v21, 1  ;;  %v5058_v37 = vld [vmem:[#allocation2 + $0xc0] sm:$0xfe]  }
 0x12d   : > { %v1780_v33 = vpop.permute.xlu1 %1779  ;;  %v2388_v39 = vpop.permute.xlu0 %2387  ;;  %2399 = vrot.lane.b32.xlu0 %v2358_v53, %s5083_s7  ;;  %v5050_v7 = vld [vmem:[#allocation2 + $0xc8] ss:$0 sps:$4 sm:$0x11]   ;;  %v2367_v13 = vshll.u32 %v5045_v5, 16  ;;  %v3554_v34 = vrot.slane %v5058_v37, 1 }
 0x12e   : > { %1819 = vst.msk [vmem:[#allocation3 + $0x48] sm:$0xff] %vm6031_vm7, %v1780_v33  ;;  %1791 = vrot.lane.b32.xlu1 %v1760_v0, %s5077_s25  ;;  %v5055_v19 = vld [vmem:[#allocation2 + $0xc8] ss:$0 sps:$4 sm:$0x11]   ;;  %v2658_v33 = vrot.slane %v5050_v7, 1  ;;  %v3253_v45 = vor.u32 %v3252_v4, %v3248_v20 }
 0x12f   : > { %2428 = vst.msk [vmem:[#allocation3 + $0x40] sm:$0xff] %vm2419_vm15, %v2388_v39  ;;  %v2369_v32 = vrot.slane %v2367_v13, 1  ;;  %v3255_v61 = vshll.u32 %v5055_v19, 16  ;;  %v3262_v39 = vshll.u32 %v5056_v28, 16 }
 0x130   : > { %v5059_v6 = vld [vmem:[#allocation2 + $0xc8] ss:$0 sps:$4 sm:$0x11]   ;;  %v2659_v52 = vsel %vm1712_vm9, %v2657_v17, %v2658_v33  ;;  %v5061_v59 = vld [vmem:[#allocation2 + $0xd4] ss:$0 sps:$4 sm:$0x11]  }
 0x131   : > { %v1957_v47 = vpop.permute.xlu1 %1956  ;;  %v2677_v22 = vpop.permute.xlu0 %2676  ;;  %2688 = vrot.lane.b32.xlu0 %v2656_v25, %s5081_s29  ;;  %v2370_v42 = vsel %vm1278_vm10, %v2365_v14, %v2369_v32  ;;  %v3257_v44 = vrot.slane %v3255_v61, 1  ;;  %v3555_v50 = vrot.slane %v5059_v6, 1  ;;  %v3264_v55 = vrot.slane %v3262_v39, 1 }
 0x132   : > { %1996 = vst.msk [vmem:[#allocation3 + $0x48] sm:$0xff] %vm6032_vm0, %v1957_v47  ;;  %1968 = vrot.lane.b32.xlu1 %v5041_v12, %s5078_s26  ;;  %v5057_v47 = vld [vmem:[#allocation2 + $0xd4] ss:$0 sps:$4 sm:$0x11]  }
 0x133   : > { %2717 = vst.msk [vmem:[#allocation3 + $0x40] sm:$0xff] %vm2708_vm1, %v2677_v22  ;;  %v3258_v49 = vsel %vm1278_vm10, %v3253_v45, %v3257_v44  ;;  %v5060_v22 = vld [vmem:[#allocation2 + $0xcc] sm:$0xfe]   ;;  %v3556_v57 = vsel %vm1712_vm9, %v3554_v34, %v3555_v50  ;;  %v3265_v40 = vor.u32 %v3264_v55, %v3260_v23  ;;  %v3267_v58 = vshll.u32 %v5057_v47, 16 }
 0x134   : > { %v3557_v35 = vrot.slane %v5060_v22, 1 }
 0x135   : > { %v2855_v16 = vpop.permute.xlu0 %2854  ;;  %v2390_v24 = vpop.permute.xlu1 %2389  ;;  %2866 = vrot.lane.b32.xlu0 %v5052_v18, %s5079_s27  ;;  %v3269_v43 = vrot.slane %v3267_v58, 1 }
 0x136   : > { %2895 = vst.msk [vmem:[#allocation3 + $0x40] sm:$0xff] %vm2886_vm2, %v2855_v16  ;;  %2401 = vrot.lane.b32.xlu1 %v2370_v42, %s5083_s7  ;;  %v3558_v16 = vrot.slane %v5061_v59, 1 }
 0x137   : > { %2429 = vst.msk [vmem:[#allocation3 + $0x48] sm:$0xff] %vm2419_vm15, %v2390_v24  ;;  %v3270_v27 = vsel %vm1278_vm10, %v3265_v40, %v3269_v43  ;;  %vm6036_vm10 = vmmov %vm6032_vm0 }
 0x138   : > { %v3559_v48 = vsel %vm1712_vm9, %v3557_v35, %v3558_v16  ;;  %vm6037_vm9 = vmmov %vm6029_vm6 }
 0x139   : > { %v3288_v11 = vpop.permute.xlu0 %3287  ;;  %v2679_v31 = vpop.permute.xlu1 %2678  ;;  %3299 = vrot.lane.b32.xlu0 %v3258_v49, %s5084_s8  ;;  %vm6039_vm6 = vmmov %vm6033_vm3 }
 0x13a   : > { %3328 = vst.msk [vmem:[#allocation3 + $0x40] sm:$0xff] %vm3319_vm4, %v3288_v11  ;;  %2690 = vrot.lane.b32.xlu1 %v2659_v52, %s5081_s29 }
 0x13b   : > { %2718 = vst.msk [vmem:[#allocation3 + $0x48] sm:$0xff] %vm2708_vm1, %v2679_v31 }
 0x13d   : > { %v3577_v46 = vpop.permute.xlu0 %3576  ;;  %v2857_v56 = vpop.permute.xlu1 %2856  ;;  %3588 = vrot.lane.b32.xlu0 %v3556_v57, %s5082_s30 }
 0x13e   : > { %3617 = vst.msk [vmem:[#allocation3 + $0x40] sm:$0xff] %vm6033_vm3, %v3577_v46  ;;  %2868 = vrot.lane.b32.xlu1 %v5053_v30, %s5079_s27  ;;  %vm6041_vm3 = vmmov %vm6031_vm7 }
 0x13f   : > { %2896 = vst.msk [vmem:[#allocation3 + $0x48] sm:$0xff] %vm2886_vm2, %v2857_v56 }
 0x141   : > { %v3579_v3 = vpop.permute.xlu0 %3578 }
 0x142   : > { %3301 = vrot.lane.b32.xlu1 %v3270_v27, %s5084_s8 }
 0x144   : > { %v3290_v10 = vpop.permute.xlu1 %3289 }
 0x145   : > { %v3633_v60 = vld [vmem:[#allocation3 + $0x40] sm:$0xff]  ;;  %3329 = vst.msk [vmem:[#allocation3 + $0x48] sm:$0xff] %vm3319_vm4, %v3290_v10  ;;  %v1782_v38 = vpop.permute.xlu0 %1781 }
 0x146   : > { %4784 = vmatprep.mubr.msk.bf16.mxu1 %vm3661_vm13, %v3633_v60  ;;  %3618 = vst.msk [vmem:[#allocation3 + $0x48] sm:$0xff] %vm6034_vm5, %v3579_v3  ;;  %3590 = vrot.lane.b32.xlu1 %v3559_v48, %s5082_s30  ;;  %vm6042_vm5 = vmmov %vm6032_vm0 }
 0x148   : > { %v1492_v53 = vpop.permute.xlu1 %1491 }
 0x149   : > { %1530 = vst.msk [vmem:[#allocation3 + $0x50] sm:$0xff] %vm1519_vm12, %v1492_v53  ;;  %v1959_v62 = vpop.permute.xlu0 %1958 }
 0x14a   : > { %1820 = vst.msk [vmem:[#allocation3 + $0x50] sm:$0xff] %vm6035_vm8, %v1782_v38  ;;  %vm6043_vm8 = vmmov %vm6039_vm6 }
 0x14b   : > { %1997 = vst.msk [vmem:[#allocation3 + $0x50] sm:$0xff] %vm6036_vm10, %v1959_v62  ;;  %vm6044_vm10 = vmmov %vm6039_vm6 }
 0x14c   : > { %v1494_v0 = vpop.permute.xlu1 %1493 }
 0x14d   : > { %1531 = vst.msk [vmem:[#allocation3 + $0x58] sm:$0xff] %vm1519_vm12, %v1494_v0  ;;  %v3634_v63 = vld [vmem:[#allocation3 + $0x48] sm:$0xff]  ;;  %v2392_v1 = vpop.permute.xlu0 %2391 }
 0x14e   : > { %4785 = vmatmul.mubr.msk.bf16.vlgmr.msra.gmra.mrb[0].mxu1 %vm3661_vm13, %v3634_v63  ;;  %2430 = vst.msk [vmem:[#allocation3 + $0x50] sm:$0xff] %vm2419_vm15, %v2392_v1 }
 0x150   : > { %v1784_v2 = vpop.permute.xlu1 %1783 }
 0x151   : > { %1821 = vst.msk [vmem:[#allocation3 + $0x58] sm:$0xff] %vm6037_vm9, %v1784_v2  ;;  %v2681_v5 = vpop.permute.xlu0 %2680  ;;  %vm6045_vm9 = vmmov %vm6041_vm3 }
 0x152   : > { %2719 = vst.msk [vmem:[#allocation3 + $0x50] sm:$0xff] %vm2708_vm1, %v2681_v5 }
 0x154   : > { %v1961_v8 = vpop.permute.xlu1 %1960 }
 0x155   : > { %1998 = vst.msk [vmem:[#allocation3 + $0x58] sm:$0xff] %vm6038_vm11, %v1961_v8  ;;  %v2859_v54 = vpop.permute.xlu0 %2858  ;;  %vm6046_vm11 = vmmov %vm6032_vm0 }
 0x156   : > { %2897 = vst.msk [vmem:[#allocation3 + $0x50] sm:$0xff] %vm2886_vm2, %v2859_v54 }
 0x159   : > { %v2394_v7 = vpop.permute.xlu1 %2393 }
 0x15a   : > { %2431 = vst.msk [vmem:[#allocation3 + $0x58] sm:$0xff] %vm2419_vm15, %v2394_v7 }
 0x15c   : > { %v3292_v12 = vpop.permute.xlu0 %3291 }
 0x15d   : > { %v2683_v13 = vpop.permute.xlu1 %2682  ;;  %3330 = vst.msk [vmem:[#allocation3 + $0x50] sm:$0xff] %vm3319_vm4, %v3292_v12 }
 0x15e   : > { %2720 = vst.msk [vmem:[#allocation3 + $0x58] sm:$0xff] %vm2708_vm1, %v2683_v13 }
 0x160   : > { %v3581_v25 = vpop.permute.xlu0 %3580 }
 0x161   : > { %v2861_v14 = vpop.permute.xlu1 %2860  ;;  %3619 = vst.msk [vmem:[#allocation3 + $0x50] sm:$0xff] %vm6039_vm6, %v3581_v25  ;;  %vm6047_vm6 = vmmov %vm6041_vm3 }
 0x162   : > { %2898 = vst.msk [vmem:[#allocation3 + $0x58] sm:$0xff] %vm2886_vm2, %v2861_v14 }
 0x164   : > { %v3583_v17 = vpop.permute.xlu0 %3582 }
 0x165   : > { %v3294_v18 = vpop.permute.xlu1 %3293 }
 0x166   : > { %3331 = vst.msk [vmem:[#allocation3 + $0x58] sm:$0xff] %vm3319_vm4, %v3294_v18 }
 0x167   : > { %3620 = vst.msk [vmem:[#allocation3 + $0x58] sm:$0xff] %vm6040_vm14, %v3583_v17  ;;  %vm6048_vm14 = vmmov %vm6032_vm0 }
 0x168   : > { %v3635_v19 = vld [vmem:[#allocation3 + $0x50] sm:$0xff]  ;;  %v1786_v20 = vpop.permute.xlu0 %1785 }
 0x169   : > { %4788 = vmatprep.mubr.msk.bf16.mxu1 %vm3661_vm13, %v3635_v19  ;;  %v1496_v21 = vpop.permute.xlu1 %1495 }
 0x16a   : > { %1532 = vst.msk [vmem:[#allocation3 + $0x60] sm:$0xff] %vm1519_vm12, %v1496_v21 }
 0x16b   : > { %1822 = vst.msk [vmem:[#allocation3 + $0x60] sm:$0xff] %vm6031_vm7, %v1786_v20 }
 0x16c   : > { %v1963_v24 = vpop.permute.xlu0 %1962 }
 0x16d   : > { %v1498_v32 = vpop.permute.xlu1 %1497  ;;  %1999 = vst.msk [vmem:[#allocation3 + $0x60] sm:$0xff] %vm6032_vm0, %v1963_v24 }
 0x16e   : > { %1533 = vst.msk [vmem:[#allocation3 + $0x68] sm:$0xff] %vm1519_vm12, %v1498_v32  ;;  %v3636_v26 = vld [vmem:[#allocation3 + $0x58] sm:$0xff] }
 0x16f   : > { %4789 = vmatmul.mubr.msk.bf16.gmra.mrb[4].mxu1 %vm3661_vm13, %v3636_v26 }
 0x170   : > { %v2396_v28 = vpop.permute.xlu0 %2395 }
 0x171   : > { %v1788_v4 = vpop.permute.xlu1 %1787  ;;  %2432 = vst.msk [vmem:[#allocation3 + $0x60] sm:$0xff] %vm2419_vm15, %v2396_v28 }
 0x172   : > { %1823 = vst.msk [vmem:[#allocation3 + $0x68] sm:$0xff] %vm6041_vm3, %v1788_v4 }
 0x174   : > { %v2685_v61 = vpop.permute.xlu0 %2684 }
 0x175   : > { %v1965_v29 = vpop.permute.xlu1 %1964  ;;  %2721 = vst.msk [vmem:[#allocation3 + $0x60] sm:$0xff] %vm2708_vm1, %v2685_v61 }
 0x176   : > { %2000 = vst.msk [vmem:[#allocation3 + $0x68] sm:$0xff] %vm6042_vm5, %v1965_v29 }
 0x178   : > { %v2863_v11 = vpop.permute.xlu0 %2862 }
 0x179   : > { %2899 = vst.msk [vmem:[#allocation3 + $0x60] sm:$0xff] %vm2886_vm2, %v2863_v11  ;;  %v2398_v15 = vpop.permute.xlu1 %2397 }
 0x17a   : > { %2433 = vst.msk [vmem:[#allocation3 + $0x68] sm:$0xff] %vm2419_vm15, %v2398_v15 }
 0x17c   : > { %v3296_v33 = vpop.permute.xlu0 %3295 }
 0x17d   : > { %v2687_v39 = vpop.permute.xlu1 %2686  ;;  %3332 = vst.msk [vmem:[#allocation3 + $0x60] sm:$0xff] %vm3319_vm4, %v3296_v33 }
 0x17e   : > { %2722 = vst.msk [vmem:[#allocation3 + $0x68] sm:$0xff] %vm2708_vm1, %v2687_v39 }
 0x180   : > { %v3585_v42 = vpop.permute.xlu0 %3584 }
 0x181   : > { %3621 = vst.msk [vmem:[#allocation3 + $0x60] sm:$0xff] %vm6043_vm8, %v3585_v42  ;;  %v2865_v45 = vpop.permute.xlu1 %2864 }
 0x182   : > { %2900 = vst.msk [vmem:[#allocation3 + $0x68] sm:$0xff] %vm2886_vm2, %v2865_v45 }
 0x188   : > { %v3637_v44 = vld [vmem:[#allocation3 + $0x60] sm:$0xff] }
 0x189   : > { %4792 = vmatprep.mubr.msk.bf16.mxu1 %vm3661_vm13, %v3637_v44 }
 0x193   : > { %v3587_v41 = vpop.permute.xlu0 %3586 }
 0x194   : > { %v3298_v23 = vpop.permute.xlu1 %3297 }
 0x195   : > { %3333 = vst.msk [vmem:[#allocation3 + $0x68] sm:$0xff] %vm3319_vm4, %v3298_v23 }
 0x196   : > { %3622 = vst.msk [vmem:[#allocation3 + $0x68] sm:$0xff] %vm6044_vm10, %v3587_v41 }
 0x197   : > { %v4770_v37 = vpop.f32.mrb[0].mxu0  ;;  %v1790_v52 = vpop.permute.xlu0 %1789 }
 0x198   : > { %v3748_v31 = vpop.f32.mrb[1].mxu0  ;;  %v3915_v55 = vmul.f32 %v4770_v37, %v4770_v37  ;;  %v1500_v47 = vpop.permute.xlu1 %1499 }
 0x199   : > { %v4771_v6 = vpop.f32.mrb[2].mxu0  ;;  %v3913_v36 = vmul.f32 %v3748_v31, %v3748_v31  ;;  %1534 = vst.msk [vmem:[#allocation3 + $0x70] sm:$0xff] %vm1519_vm12, %v1500_v47 }
 0x19a   : > { %v4656_v34 = vpack.c.bf16 %v4771_v6, %v4770_v37  ;;  %v3751_v46 = vpop.f32.mrb[3].mxu0  ;;  %v3916_v22 = vmul.f32 %v4771_v6, %v4771_v6  ;;  %1824 = vst.msk [vmem:[#allocation3 + $0x70] sm:$0xff] %vm6045_vm9, %v1790_v52 }
 0x19b   : > { %v3875_v49 = vadd.f32 %v3751_v46, %v3748_v31  ;;  %v3914_v50 = vmul.f32 %v3751_v46, %v3751_v46  ;;  %v4651_v51 = vpack.c.bf16 %v3751_v46, %v3748_v31  ;;  %v1967_v59 = vpop.permute.xlu0 %1966 }
 0x19c   : > { %4728 = vst [vmem:[%s5951_s18 + $0x8] sm:$0xff] %v4656_v34   ;;  %v1502_v58 = vpop.permute.xlu1 %1501  ;;  %2001 = vst.msk [vmem:[#allocation3 + $0x70] sm:$0xff] %vm6046_vm11, %v1967_v59 }
 0x19d   : > { %v3876_v56 = vadd.f32 %v4770_v37, %v3875_v49  ;;  %v3945_v9 = vadd.f32 %v3914_v50, %v3913_v36  ;;  %4652 = vst [vmem:[%s5951_s18] sm:$0xff] %v4651_v51   ;;  %1535 = vst.msk [vmem:[#allocation3 + $0x78] sm:$0xff] %vm1519_vm12, %v1502_v58  ;;  %v3638_v43 = vld [vmem:[#allocation3 + $0x68] sm:$0xff] }
 0x19e   : > { %4793 = vmatmul.mubr.msk.bf16.gmra.mrb[8].mxu1 %vm3661_vm13, %v3638_v43  ;;  %vm6049_vm12 = vmmov %vm6043_vm8 }
 0x19f   : > { %v3946_v30 = vadd.f32 %v3945_v9, %v3915_v55  ;;  %v3877_v57 = vadd.f32 %v4771_v6, %v3876_v56  ;;  %v2400_v60 = vpop.permute.xlu0 %2399 }
 0x1a0   : > { %v1792_v3 = vpop.permute.xlu1 %1791  ;;  %2434 = vst.msk [vmem:[#allocation3 + $0x70] sm:$0xff] %vm2419_vm15, %v2400_v60 }
 0x1a1   : > { %v3947_v40 = vadd.f32 %v3946_v30, %v3916_v22  ;;  %1825 = vst.msk [vmem:[#allocation3 + $0x78] sm:$0xff] %vm6047_vm6, %v1792_v3 }
 0x1a3   : > { %v2689_v27 = vpop.permute.xlu0 %2688 }
 0x1a4   : > { %v1969_v35 = vpop.permute.xlu1 %1968  ;;  %2723 = vst.msk [vmem:[#allocation3 + $0x70] sm:$0xff] %vm2708_vm1, %v2689_v27 }
 0x1a5   : > { %2002 = vst.msk [vmem:[#allocation3 + $0x78] sm:$0xff] %vm6048_vm14, %v1969_v35 }
 0x1a7   : > { %v2867_v16 = vpop.permute.xlu0 %2866 }
 0x1a8   : > { %v2402_v10 = vpop.permute.xlu1 %2401  ;;  %2901 = vst.msk [vmem:[#allocation3 + $0x70] sm:$0xff] %vm2886_vm2, %v2867_v16 }
 0x1a9   : > { %2435 = vst.msk [vmem:[#allocation3 + $0x78] sm:$0xff] %vm2419_vm15, %v2402_v10  ;;  %vm6050_vm15 = vmmov %vm6043_vm8 }
 0x1ab   : > { %v3300_v38 = vpop.permute.xlu0 %3299 }
 0x1ac   : > { %v2691_v53 = vpop.permute.xlu1 %2690  ;;  %3334 = vst.msk [vmem:[#allocation3 + $0x70] sm:$0xff] %vm3319_vm4, %v3300_v38 }
 0x1ad   : > { %2724 = vst.msk [vmem:[#allocation3 + $0x78] sm:$0xff] %vm2708_vm1, %v2691_v53 }
 0x1af   : > { %v3589_v8 = vpop.permute.xlu0 %3588 }
 0x1b0   : > { %v4774_v48 = vpop.f32.mrb[4].mxu0  ;;  %v2869_v25 = vpop.permute.xlu1 %2868  ;;  %3623 = vst.msk [vmem:[#allocation3 + $0x70] sm:$0xff] %vm6049_vm12, %v3589_v8 }
 0x1b1   : > { %v3764_v62 = vpop.f32.mrb[5].mxu0  ;;  %2902 = vst.msk [vmem:[#allocation3 + $0x78] sm:$0xff] %vm2886_vm2, %v2869_v25  ;;  %v3919_v14 = vmul.f32 %v4774_v48, %v4774_v48 }
 0x1b2   : > { %v3878_v0 = vadd.f32 %v3877_v57, %v3764_v62  ;;  %v3917_v63 = vmul.f32 %v3764_v62, %v3764_v62  ;;  %v4775_v1 = vpop.f32.mrb[6].mxu0 }
 0x1b3   : > { %v4666_v2 = vpack.c.bf16 %v4775_v1, %v4774_v48  ;;  %v3767_v5 = vpop.f32.mrb[7].mxu0  ;;  %v3920_v19 = vmul.f32 %v4775_v1, %v4775_v1 }
 0x1b4   : > { %v3948_v54 = vadd.f32 %v3947_v40, %v3917_v63  ;;  %v3879_v7 = vadd.f32 %v3878_v0, %v3767_v5  ;;  %v3918_v12 = vmul.f32 %v3767_v5, %v3767_v5  ;;  %v4661_v13 = vpack.c.bf16 %v3767_v5, %v3764_v62  ;;  %v3302_v24 = vpop.permute.xlu1 %3301 }
 0x1b5   : > { %4730 = vst [vmem:[%s5951_s18 + $0x18] sm:$0xff] %v4666_v2   ;;  %3335 = vst.msk [vmem:[#allocation3 + $0x78] sm:$0xff] %vm3319_vm4, %v3302_v24 }
 0x1b6   : > { %v3880_v17 = vadd.f32 %v4774_v48, %v3879_v7  ;;  %v3949_v18 = vadd.f32 %v3948_v54, %v3918_v12  ;;  %4729 = vst [vmem:[%s5951_s18 + $0x10] sm:$0xff] %v4661_v13  }
 0x1b7   : > { %v3639_v26 = vld [vmem:[#allocation3 + $0x70] sm:$0xff] }
 0x1b8   : > { %v3950_v20 = vadd.f32 %v3949_v18, %v3919_v14  ;;  %v3881_v21 = vadd.f32 %v4775_v1, %v3880_v17  ;;  %v3591_v28 = vpop.permute.xlu1 %3590  ;;  %4796 = vmatprep.mubr.msk.bf16.mxu1 %vm3661_vm13, %v3639_v26 }
 0x1b9   : > { %3624 = vst.msk [vmem:[#allocation3 + $0x78] sm:$0xff] %vm6050_vm15, %v3591_v28 }
 0x1ba   : > { %v3951_v32 = vadd.f32 %v3950_v20, %v3920_v19 }
 0x1c0   : > { %v3640_v4 = vld [vmem:[#allocation3 + $0x78] sm:$0xff] }
 0x1c1   : > { %4797 = vmatmul.mubr.msk.bf16.gmra.mrb[12].mxu1 %vm3661_vm13, %v3640_v4 }
 0x1d0   : > { %v4778_v61 = vpop.f32.mrb[8].mxu0 }
 0x1d1   : > { %v3780_v29 = vpop.f32.mrb[9].mxu0  ;;  %v3923_v41 = vmul.f32 %v4778_v61, %v4778_v61 }
 0x1d2   : > { %v3882_v11 = vadd.f32 %v3881_v21, %v3780_v29  ;;  %v3921_v15 = vmul.f32 %v3780_v29, %v3780_v29  ;;  %v4779_v33 = vpop.f32.mrb[10].mxu0 }
 0x1d3   : > { %v4676_v39 = vpack.c.bf16 %v4779_v33, %v4778_v61  ;;  %v3783_v42 = vpop.f32.mrb[11].mxu0  ;;  %v3924_v34 = vmul.f32 %v4779_v33, %v4779_v33 }
 0x1d4   : > { %v3952_v45 = vadd.f32 %v3951_v32, %v3921_v15  ;;  %v3883_v44 = vadd.f32 %v3882_v11, %v3783_v42  ;;  %v3922_v37 = vmul.f32 %v3783_v42, %v3783_v42  ;;  %v4671_v31 = vpack.c.bf16 %v3783_v42, %v3780_v29 }
 0x1d5   : > { %4732 = vst [vmem:[%s5951_s18 + $0x28] sm:$0xff] %v4676_v39  }
 0x1d6   : > { %v3884_v6 = vadd.f32 %v4778_v61, %v3883_v44  ;;  %v3953_v23 = vadd.f32 %v3952_v45, %v3922_v37  ;;  %4731 = vst [vmem:[%s5951_s18 + $0x20] sm:$0xff] %v4671_v31  }
 0x1d8   : > { %v3954_v46 = vadd.f32 %v3953_v23, %v3923_v41  ;;  %v3885_v36 = vadd.f32 %v4779_v33, %v3884_v6 }
 0x1da   : > { %v3955_v49 = vadd.f32 %v3954_v46, %v3924_v34 }
 0x1fe   : > { %v4782_v50 = vpop.f32.mrb[12].mxu0 }
 0x1ff   : > { %v3796_v51 = vpop.f32.mrb[13].mxu0  ;;  %v3927_v40 = vmul.f32 %v4782_v50, %v4782_v50 }
 0x200   : > { %v3886_v52 = vadd.f32 %v3885_v36, %v3796_v51  ;;  %v3925_v55 = vmul.f32 %v3796_v51, %v3796_v51  ;;  %v4783_v56 = vpop.f32.mrb[14].mxu0 }
 0x201   : > { %v4686_v9 = vpack.c.bf16 %v4783_v56, %v4782_v50  ;;  %v3799_v47 = vpop.f32.mrb[15].mxu0  ;;  %v3928_v60 = vmul.f32 %v4783_v56, %v4783_v56 }
 0x202   : > { %v3956_v22 = vadd.f32 %v3955_v49, %v3925_v55  ;;  %v3887_v30 = vadd.f32 %v3886_v52, %v3799_v47  ;;  %v3926_v57 = vmul.f32 %v3799_v47, %v3799_v47  ;;  %v4681_v59 = vpack.c.bf16 %v3799_v47, %v3796_v51 }
 0x203   : > { %4734 = vst [vmem:[%s5951_s18 + $0x38] sm:$0xff] %v4686_v9  }
 0x204   : > { %v3888_v58 = vadd.f32 %v4782_v50, %v3887_v30  ;;  %v3957_v43 = vadd.f32 %v3956_v22, %v3926_v57  ;;  %4733 = vst [vmem:[%s5951_s18 + $0x30] sm:$0xff] %v4681_v59  }
 0x206   : > { %v3958_v3 = vadd.f32 %v3957_v43, %v3927_v40  ;;  %v3889_v27 = vadd.f32 %v4783_v56, %v3888_v58 }
 0x208   : > { %v3959_v35 = vadd.f32 %v3958_v3, %v3928_v60 }
 0x221   : > { %v4786_v16 = vpop.f32.mrb[0].mxu1 }
 0x222   : > { %v3812_v10 = vpop.f32.mrb[1].mxu1  ;;  %v3931_v8 = vmul.f32 %v4786_v16, %v4786_v16 }
 0x223   : > { %v3890_v38 = vadd.f32 %v3889_v27, %v3812_v10  ;;  %v3929_v48 = vmul.f32 %v3812_v10, %v3812_v10  ;;  %v4787_v53 = vpop.f32.mrb[2].mxu1 }
 0x224   : > { %v4696_v62 = vpack.c.bf16 %v4787_v53, %v4786_v16  ;;  %v3815_v0 = vpop.f32.mrb[3].mxu1  ;;  %v3932_v12 = vmul.f32 %v4787_v53, %v4787_v53 }
 0x225   : > { %v3960_v63 = vadd.f32 %v3959_v35, %v3929_v48  ;;  %v3891_v1 = vadd.f32 %v3890_v38, %v3815_v0  ;;  %v3930_v2 = vmul.f32 %v3815_v0, %v3815_v0  ;;  %v4691_v5 = vpack.c.bf16 %v3815_v0, %v3812_v10 }
 0x226   : > { %4736 = vst [vmem:[%s5951_s18 + $0x48] sm:$0xff] %v4696_v62  }
 0x227   : > { %v3892_v54 = vadd.f32 %v4786_v16, %v3891_v1  ;;  %v3961_v7 = vadd.f32 %v3960_v63, %v3930_v2  ;;  %4735 = vst [vmem:[%s5951_s18 + $0x40] sm:$0xff] %v4691_v5  }
 0x229   : > { %v3962_v13 = vadd.f32 %v3961_v7, %v3931_v8  ;;  %v3893_v25 = vadd.f32 %v4787_v53, %v3892_v54 }
 0x22b   : > { %v3963_v14 = vadd.f32 %v3962_v13, %v3932_v12 }
 0x242   : > { %v4790_v17 = vpop.f32.mrb[4].mxu1 }
 0x243   : > { %v3828_v18 = vpop.f32.mrb[5].mxu1  ;;  %v3935_v29 = vmul.f32 %v4790_v17, %v4790_v17 }
 0x244   : > { %v3894_v19 = vadd.f32 %v3893_v25, %v3828_v18  ;;  %v3933_v20 = vmul.f32 %v3828_v18, %v3828_v18  ;;  %v4791_v21 = vpop.f32.mrb[6].mxu1 }
 0x245   : > { %v4706_v24 = vpack.c.bf16 %v4791_v21, %v4790_v17  ;;  %v3831_v32 = vpop.f32.mrb[7].mxu1  ;;  %v3936_v33 = vmul.f32 %v4791_v21, %v4791_v21 }
 0x246   : > { %v3964_v26 = vadd.f32 %v3963_v14, %v3933_v20  ;;  %v3895_v28 = vadd.f32 %v3894_v19, %v3831_v32  ;;  %v3934_v4 = vmul.f32 %v3831_v32, %v3831_v32  ;;  %v4701_v61 = vpack.c.bf16 %v3831_v32, %v3828_v18 }
 0x247   : > { %4738 = vst [vmem:[%s5951_s18 + $0x58] sm:$0xff] %v4706_v24  }
 0x248   : > { %v3896_v11 = vadd.f32 %v4790_v17, %v3895_v28  ;;  %v3965_v15 = vadd.f32 %v3964_v26, %v3934_v4  ;;  %4737 = vst [vmem:[%s5951_s18 + $0x50] sm:$0xff] %v4701_v61  }
 0x24a   : > { %v3966_v39 = vadd.f32 %v3965_v15, %v3935_v29  ;;  %v3897_v42 = vadd.f32 %v4791_v21, %v3896_v11 }
 0x24c   : > { %v3967_v45 = vadd.f32 %v3966_v39, %v3936_v33 }
 0x271   : > { %v4794_v44 = vpop.f32.mrb[8].mxu1 }
 0x272   : > { %v3844_v37 = vpop.f32.mrb[9].mxu1  ;;  %v3939_v51 = vmul.f32 %v4794_v44, %v4794_v44 }
 0x273   : > { %v3898_v31 = vadd.f32 %v3897_v42, %v3844_v37  ;;  %v3937_v41 = vmul.f32 %v3844_v37, %v3844_v37  ;;  %v4795_v6 = vpop.f32.mrb[10].mxu1 }
 0x274   : > { %v4716_v23 = vpack.c.bf16 %v4795_v6, %v4794_v44  ;;  %v3847_v34 = vpop.f32.mrb[11].mxu1  ;;  %v3940_v56 = vmul.f32 %v4795_v6, %v4795_v6 }
 0x275   : > { %v3968_v46 = vadd.f32 %v3967_v45, %v3937_v41  ;;  %v3899_v36 = vadd.f32 %v3898_v31, %v3847_v34  ;;  %v3938_v49 = vmul.f32 %v3847_v34, %v3847_v34  ;;  %v4711_v50 = vpack.c.bf16 %v3847_v34, %v3844_v37 }
 0x276   : > { %4740 = vst [vmem:[%s5951_s18 + $0x68] sm:$0xff] %v4716_v23  }
 0x277   : > { %v3900_v52 = vadd.f32 %v4794_v44, %v3899_v36  ;;  %v3969_v55 = vadd.f32 %v3968_v46, %v3938_v49  ;;  %4739 = vst [vmem:[%s5951_s18 + $0x60] sm:$0xff] %v4711_v50  }
 0x279   : > { %v3970_v9 = vadd.f32 %v3969_v55, %v3939_v51  ;;  %v3901_v47 = vadd.f32 %v4795_v6, %v3900_v52 }
 0x27b   : > { %v3971_v22 = vadd.f32 %v3970_v9, %v3940_v56 }
 0x294   : > { %v4798_v30 = vpop.f32.mrb[12].mxu1 }
 0x295   : > { %v3860_v57 = vpop.f32.mrb[13].mxu1  ;;  %v3943_v10 = vmul.f32 %v4798_v30, %v4798_v30 }
 0x296   : > { %v3902_v59 = vadd.f32 %v3901_v47, %v3860_v57  ;;  %v3941_v40 = vmul.f32 %v3860_v57, %v3860_v57  ;;  %v4799_v58 = vpop.f32.mrb[14].mxu1 }
 0x297   : > { %v4726_v43 = vpack.c.bf16 %v4799_v58, %v4798_v30  ;;  %v3863_v60 = vpop.f32.mrb[15].mxu1  ;;  %v3944_v53 = vmul.f32 %v4799_v58, %v4799_v58 }
 0x298   : > { %v3972_v3 = vadd.f32 %v3971_v22, %v3941_v40  ;;  %v3903_v27 = vadd.f32 %v3902_v59, %v3863_v60  ;;  %v3942_v35 = vmul.f32 %v3863_v60, %v3863_v60  ;;  %v4721_v16 = vpack.c.bf16 %v3863_v60, %v3860_v57 }
 0x299   : > { %4742 = vst [vmem:[%s5951_s18 + $0x78] sm:$0xff] %v4726_v43  }
 0x29a   : > { %v3904_v38 = vadd.f32 %v4798_v30, %v3903_v27  ;;  %v3973_v48 = vadd.f32 %v3972_v3, %v3942_v35  ;;  %4741 = vst [vmem:[%s5951_s18 + $0x70] sm:$0xff] %v4721_v16  }
 0x29c   : > { %v3905_v62 = vadd.f32 %v4799_v58, %v3904_v38  ;;  %v3974_v0 = vadd.f32 %v3973_v48, %v3943_v10 }
 0x29e   : > { %v3906_v63 = vrot.slane %v3905_v62, 4  ;;  %v3975_v1 = vadd.f32 %v3974_v0, %v3944_v53 }
 0x2a0   : > { %v3907_v2 = vadd.f32 %v3906_v63, %v3905_v62  ;;  %v3976_v5 = vrot.slane %v3975_v1, 4 }
 0x2a2   : > { %v3908_v8 = vrot.slane %v3907_v2, 2  ;;  %v3977_v54 = vadd.f32 %v3976_v5, %v3975_v1 }
 0x2a4   : > { %v3909_v7 = vadd.f32 %v3908_v8, %v3907_v2  ;;  %v3978_v12 = vrot.slane %v3977_v54, 2 }
 0x2a6   : > { %v3910_v13 = vrot.slane %v3909_v7, 1  ;;  %v3979_v25 = vadd.f32 %v3978_v12, %v3977_v54 }
 0x2a8   : > { %v3911_v14 = vadd.f32 %v3910_v13, %v3909_v7  ;;  %v3980_v17 = vrot.slane %v3979_v25, 1 }
 0x2aa   : > { %3912 = vst [vmem:[%s265_s3] sm:$0x1] %v3911_v14  ;;  %v3981_v18 = vadd.f32 %v3980_v17, %v3979_v25 }
 0x2ac   : > { %3982 = vst [vmem:[%s268_s24] sm:$0x1] %v3981_v18 }
 0x2ad PF: > { %s17_s21 = sadd.s32 1, %s5074_s21  }
 0x2ae   : > { %p14_p4 = scmp.ge.s32.totalorder %s17_s21, 4  }
 0x2b0   :  { %16 = sbr.rel (!%p14_p4) target bundleno = 1 (0x1), region = 93 }

// kernel: conv_block_forward.4
= control target key start
LH: loop header
LB: loop body
LE: loop exit
PB: predicated region body
PF: predicated region fallthrough
CT: control target
= control target key end

     0   :  { %s6669_s21 = smov 0   ;;  %s7798_s0 = inlined_call_operand.vmem [shape: bf16[2,16,16,128], index: 0, kind: input, shape index: {}]   ;;  %s7799_s1 = inlined_call_operand.vmem [shape: bf16[1152,128], index: 1, kind: input, shape index: {}]   ;;  %s7800_s2 = inlined_call_operand.vmem [shape: f32[1,128], index: 2, kind: input, shape index: {}]   ;;  %s7801_s3 = inlined_call_operand.vmem [shape: f32[1,128], index: 3, kind: input, shape index: {}]   ;;  %s7802_s4 = inlined_call_operand.vmem [shape: bf16[2,16,16,128], index: 4, kind: output, shape index: {0}]   ;;  %s7803_s5 = inlined_call_operand.vmem [shape: f32[2,1,128], index: 5, kind: output, shape index: {1}]   ;;  %s7804_s6 = inlined_call_operand.vmem [shape: f32[2,1,128], index: 6, kind: output, shape index: {2}]  }
   0x1 LB: > { %s5282_s22 = sadd.s32 4294967295, %s6631_s21   ;;  %p5286_p0 = scmp.ge.s32.totalorder %s6631_s21, 1  ;;  %s6631_s21 = sphi %s6669_s21, %s17_s21  }
   0x2   : > { %p217_p1 = scmp.lt.s32.totalorder %s6631_s21, 3 }
   0x4   : > { %p218_p2 = pnand %p5286_p0, %p217_p1 }
   0x5   : > { %v6313_v0 = vld [vmem:[%s7799_s1 + $0x40] sm:$0xff] (!%p218_p2)   ;;  %v6633_v2 = vmov (!%p218_p2), 0   ;;  %v6315_v3 = vld [vmem:[%s7799_s1 + $0x48] sm:$0xff] (!%p218_p2)   ;;  %v6317_v5 = vld [vmem:[%s7799_s1 + $0x50] sm:$0xff] (!%p218_p2)   ;;  %p253_p3 = scmp.lt.s32.totalorder (!%p218_p2), %s5282_s22, 1  ;;  %v309_v9 = vlaneseq (!%p218_p2)  ;;  %vm431_vm0 = vcmask (!%p218_p2), 1040384  }
   0x6   : > { %221 = sbr.rel (%p218_p2) target bundleno = 607 (0x25f), region = 36  ;;  %v6314_v1 = vld [vmem:[%s7799_s1] sm:$0xff] (!%p218_p2)   ;;  %424 = vst [vmem:[#allocation2] sm:$0xf] (!%p218_p2), %v6633_v2  ;;  %425 = vst [vmem:[#allocation2 + $0x4] sm:$0xf] (!%p218_p2), %v6633_v2  ;;  %5768 = vmatprep.subr.bf16.mxu0 (!%p218_p2), %v6313_v0  ;;  %6288 = vmatprep.subr.bf16.mxu1 (!%p218_p2), %v6313_v0 }
   0x7   : > { %426 = vst [vmem:[#allocation2 + $0x8] sm:$0x1] (!%p218_p2), %v6633_v2  ;;  %428 = vst [vmem:[#allocation2 + $0xcc] sm:$0xf] (!%p218_p2), %v6633_v2  ;;  %5769 = vmatpush3.bf16.msra.mxu0 (!%p218_p2), %v6314_v1  ;;  %v6316_v4 = vld [vmem:[%s7799_s1 + $0x8] sm:$0xff] (!%p218_p2)   ;;  %6296 = vmatpush3.bf16.msra.mxu1 (!%p218_p2), %v6314_v1  ;;  %v6318_v6 = vld [vmem:[%s7799_s1 + $0x10] sm:$0xff] (!%p218_p2)  }
   0x8   : > { %429 = vst [vmem:[#allocation2 + $0xd0] sm:$0xf] (!%p218_p2), %v6633_v2  ;;  %430 = vst [vmem:[#allocation2 + $0xd4] sm:$0x1] (!%p218_p2), %v6633_v2  ;;  %5770 = vmatprep.subr.bf16.mxu0 (!%p218_p2), %v6315_v3  ;;  %6289 = vmatprep.subr.bf16.mxu1 (!%p218_p2), %v6315_v3  ;;  %v6319_v7 = vld [vmem:[%s7799_s1 + $0x58] sm:$0xff] (!%p218_p2)   ;;  %v6321_v10 = vld [vmem:[%s7799_s1 + $0x60] sm:$0xff] (!%p218_p2)  }
   0x9   : > { %v6320_v8 = vld [vmem:[%s7799_s1 + $0x18] sm:$0xff] (!%p218_p2)   ;;  %v6322_v11 = vld [vmem:[%s7799_s1 + $0x20] sm:$0xff] (!%p218_p2)   ;;  %v6323_v12 = vld [vmem:[%s7799_s1 + $0x68] sm:$0xff] (!%p218_p2)   ;;  %v310_v13 = vshrl.u32 (!%p218_p2), %v309_v9, 7  ;;  %vm432_vm1 = vsmask.f32 (!%p218_p2), 256 }
   0xa   : > { %vm488_vm2 = vsmask.f32 (!%p218_p2), 7938  ;;  %vm6724_vm3 = vmand (!%p218_p2), %vm431_vm0, %vm432_vm1  ;;  %v6324_v19 = vld [vmem:[%s7799_s1 + $0x28] sm:$0xff] (!%p218_p2)   ;;  %v6325_v20 = vld [vmem:[%s7799_s1 + $0x70] sm:$0xff] (!%p218_p2)   ;;  %vm1301_vm5 = vsmask.f32 (!%p218_p2), 7424 }
   0xb   : > { %5771 = vmatpush3.bf16.msra.mxu0 (!%p218_p2), %v6316_v4  ;;  %6297 = vmatpush3.bf16.msra.mxu1 (!%p218_p2), %v6316_v4  ;;  %vm6732_vm4 = vmand (!%p218_p2), %vm431_vm0, %vm488_vm2  ;;  %v302_v22 = vld [vmem:[%s7800_s2] sm:$0x1] (!%p218_p2)  ;;  %v311_v23 = vsub.s32 (!%p218_p2), 0, %v310_v13  ;;  %v470_v26 = vld [vmem:[#allocation2 + $0x90] sm:$0x1] (!%p218_p2)  ;;  %vm867_vm7 = vcmask (!%p218_p2), 1043456  }
   0xc   : > { %5772 = vmatprep.subr.bf16.mxu0 (!%p218_p2), %v6317_v5  ;;  %6290 = vmatprep.subr.bf16.mxu1 (!%p218_p2), %v6317_v5  ;;  %v303_v24 = vpack.c.bf16 (!%p218_p2), %v302_v22, %v302_v22  ;;  %v304_v25 = vld [vmem:[%s7801_s3] sm:$0x1] (!%p218_p2)  ;;  %v526_v27 = vld [vmem:[#allocation2 + $0x98] sm:$0x1] (!%p218_p2)  ;;  %v471_v29 = vsel (!%p218_p2), %vm6724_vm3, 0, %v470_v26  ;;  %v6326_v31 = vld [vmem:[%s7799_s1 + $0x30] sm:$0xff] (!%p218_p2)  }
   0xd   : > { %s7814_s22 = smov (!%p253_p3, %s5282_s22), 1  ;;  %v434_v14 = vld [vmem:[#allocation2] sm:$0x1]  ;;  %v305_v28 = vpack.c.bf16 %v304_v25, %v304_v25  ;;  %v527_v30 = vsel %vm6732_vm4, 0, %v526_v27  ;;  %v6327_v32 = vld [vmem:[%s7799_s1 + $0x78] sm:$0xff]   ;;  %vm6809_vm8 = vmand %vm867_vm7, %vm488_vm2  ;;  %vm1702_vm10 = vcmask 1046528  }
   0xe   : > { %v490_v16 = vld [vmem:[#allocation2 + $0x8] sm:$0x1]  ;;  %v435_v17 = vsel %vm6724_vm3, 0, %v434_v14  ;;  %s5639_s23 = sshll.u32 %s7814_s22, 7  ;;  %v307_v33 = vpack.i.b16 %v303_v24, %v303_v24  ;;  %472 = vst [vmem:[#allocation2 + $0x90] sm:$0x1] %v471_v29  ;;  %s265_s12 = scalar_lea.vmem %s7803_s5, %s7814_s22 }
   0xf   : > { %5773 = vmatpush3.bf16.msra.mxu0 %v6318_v6  ;;  %6298 = vmatpush3.bf16.msra.mxu1 %v6318_v6  ;;  %436 = vst [vmem:[#allocation2] sm:$0x1] %v435_v17  ;;  %v491_v21 = vsel %vm6732_vm4, 0, %v490_v16  ;;  %s6756_s10 = scalar_lea.vmem %s7798_s0, %s5639_s23  ;;  %528 = vst [vmem:[#allocation2 + $0x98] sm:$0x1] %v527_v30  ;;  %v350_v34 = vpack.i.b16 %v305_v28, %v305_v28  ;;  %v6328_v37 = vld [vmem:[%s7799_s1 + $0x38] sm:$0xff]   ;;  %s7722_s9 = scalar_lea.vmem %s7802_s4, %s5639_s23 }
  0x10   : > { %5774 = vmatprep.subr.bf16.mxu0 %v6319_v7  ;;  %6291 = vmatprep.subr.bf16.mxu1 %v6319_v7  ;;  %492 = vst [vmem:[#allocation2 + $0x8] sm:$0x1] %v491_v21  ;;  %v292_v35 = vld [vmem:[%s6756_s10 + $0x58] sm:$0xf]  ;;  %v312_v36 = vrot.slane %v307_v33, %v311_v23  ;;  %v293_v38 = vld [vmem:[%s6756_s10 + $0x5c] sm:$0xf]  ;;  %s268_s15 = scalar_lea.vmem %s7804_s6, %s7814_s22 }
  0x11   : > { %v355_v39 = vrot.slane %v350_v34, %v311_v23  ;;  %v6334_v42 = vld [vmem:[%s7799_s1 + $0xc0] sm:$0xff]   ;;  %vm544_vm6 = vsmask.f32 4368  ;;  %v437_v58 = vld [vmem:[#allocation2 + $0xc] sm:$0x1] }
  0x12   : > { %v6773_v41 = vcombine.low %v312_v36, %v312_v36  ;;  %v6335_v45 = vld [vmem:[%s7799_s1 + $0x140] sm:$0xff]   ;;  %v493_v59 = vld [vmem:[#allocation2 + $0x14] sm:$0x1]  ;;  %v438_v63 = vsel %vm6724_vm3, 0, %v437_v58  ;;  %v473_v16 = vld [vmem:[#allocation2 + $0x9c] sm:$0x1] }
  0x13   : > { %5775 = vmatpush3.bf16.msra.mxu0 %v6320_v8  ;;  %6299 = vmatpush3.bf16.msra.mxu1 %v6320_v8  ;;  %v6778_v44 = vcombine.low %v355_v39, %v355_v39  ;;  %v270_v50 = vld [vmem:[%s6756_s10] sm:$0xf]  ;;  %v271_v51 = vld [vmem:[%s6756_s10 + $0x4] sm:$0xf]  ;;  %439 = vst [vmem:[#allocation2 + $0xc] sm:$0x1] %v438_v63  ;;  %vm6816_vm9 = vmor %vm432_vm1, %vm544_vm6 }
  0x14   : > { %5776 = vmatprep.subr.bf16.mxu0 %v6321_v10  ;;  %6292 = vmatprep.subr.bf16.mxu1 %v6321_v10  ;;  %v339_v48 = vmul.bf16 %v6773_v41, %v292_v35  ;;  %v340_v49 = vmul.bf16 %v6773_v41, %v293_v38  ;;  %v317_v53 = vmul.bf16 %v6773_v41, %v270_v50  ;;  %v494_v5 = vsel %vm6732_vm4, 0, %v493_v59  ;;  %v6338_v6 = vld [vmem:[%s7799_s1 + $0x100] sm:$0xff]   ;;  %v6353_v35 = vld [vmem:[%s7799_s1 + $0x148] sm:$0xff]  }
  0x15   : > { %v318_v54 = vmul.bf16 %v6773_v41, %v271_v51  ;;  %495 = vst [vmem:[#allocation2 + $0x14] sm:$0x1] %v494_v5  ;;  %v294_v9 = vld [vmem:[%s6756_s10 + $0x60] sm:$0xf]  ;;  %v295_v10 = vld [vmem:[%s6756_s10 + $0x64] sm:$0xf] }
  0x16   : > { %v6329_v40 = vld [vmem:[#allocation2] sm:$0xff]   ;;  %v382_v56 = vadd.bf16 %v6778_v44, %v339_v48  ;;  %v383_v57 = vadd.bf16 %v6778_v44, %v340_v49  ;;  %v360_v61 = vadd.bf16 %v6778_v44, %v317_v53  ;;  %v341_v28 = vmul.bf16 %v6773_v41, %v294_v9  ;;  %v273_v48 = vld [vmem:[%s6756_s10 + $0xc] sm:$0xf]  ;;  %v296_v9 = vld [vmem:[%s6756_s10 + $0x68] sm:$0xf] }
  0x17   : > { %5777 = vmatpush3.bf16.msra.mxu0 %v6322_v11  ;;  %6300 = vmatpush3.bf16.msra.mxu1 %v6322_v11  ;;  %v6330_v43 = vld [vmem:[#allocation2 + $0x8] ss:$0 sps:$4 sm:$0x11]   ;;  %v1303_v46 = vshrl.u32 %v6329_v40, 16  ;;  %v1305_v47 = vshll.u32 %v6329_v40, 16  ;;  %v361_v62 = vadd.bf16 %v6778_v44, %v318_v54  ;;  %v6331_v1 = vld [vmem:[#allocation2] sm:$0xff]   ;;  %v320_v5 = vmul.bf16 %v6773_v41, %v273_v48 }
  0x18   : > { %5778 = vmatprep.subr.bf16.mxu0 %v6323_v12  ;;  %6293 = vmatprep.subr.bf16.mxu1 %v6323_v12  ;;  %v1310_v52 = vshll.u32 %v6330_v43, 16  ;;  %v414_v3 = vmax.bf16 %v6633_v2, %v382_v56  ;;  %v415_v4 = vmax.bf16 %v6633_v2, %v383_v57  ;;  %v392_v7 = vmax.bf16 %v6633_v2, %v360_v61  ;;  %v529_v34 = vld [vmem:[#allocation2 + $0xa4] sm:$0x1]  ;;  %v272_v40 = vld [vmem:[%s6756_s10 + $0x8] sm:$0xf] }
  0x19   : > { %v1307_v55 = vrot.slane %v1305_v47, 1  ;;  %v393_v8 = vmax.bf16 %v6633_v2, %v361_v62  ;;  %v474_v33 = vsel %vm6724_vm3, 0, %v473_v16  ;;  %v384_v53 = vadd.bf16 %v6778_v44, %v341_v28  ;;  %v440_v54 = vld [vmem:[#allocation2 + $0x18] sm:$0x1] }
  0x1a   : > { %v1312_v60 = vrot.slane %v1310_v52, 1  ;;  %v734_v12 = vshrl.u32 %v414_v3, 16  ;;  %v737_v13 = vshll.u32 %v414_v3, 16  ;;  %v742_v14 = vshrl.u32 %v415_v4, 16  ;;  %475 = vst [vmem:[#allocation2 + $0x9c] sm:$0x1] %v474_v33 }
  0x1b   : > { %5779 = vmatpush3.bf16.msra.mxu0 %v6324_v19  ;;  %6301 = vmatpush3.bf16.msra.mxu1 %v6324_v19  ;;  %v1308_v0 = vor.u32 %v1307_v55, %v1303_v46  ;;  %v745_v17 = vshll.u32 %v415_v4, 16  ;;  %v946_v19 = vld [vmem:[#allocation2 + $0x90] sm:$0xf]  ;;  %v547_v21 = vshrl.u32 %v392_v7, 16  ;;  %v550_v22 = vshll.u32 %v392_v7, 16 }
  0x1c   : > { %5780 = vmatprep.subr.bf16.mxu0 %v6325_v20  ;;  %6294 = vmatprep.subr.bf16.mxu1 %v6325_v20  ;;  %v950_v20 = vld [vmem:[#allocation2 + $0x98] sm:$0x1]  ;;  %v555_v23 = vshrl.u32 %v393_v8, 16  ;;  %v736_v24 = vrot.slane %v734_v12, 7  ;;  %v744_v25 = vrot.slane %v742_v14, 7  ;;  %v558_v27 = vshll.u32 %v393_v8, 16 }
  0x1d   : > { %v1313_v11 = vsel %vm1301_vm5, %v1308_v0, %v1312_v60  ;;  %v549_v30 = vrot.slane %v547_v21, 7  ;;  %v869_v47 = vld [vmem:[#allocation2 + $0xc] sm:$0xf]  ;;  %v873_v52 = vld [vmem:[#allocation2 + $0x14] sm:$0x1]  ;;  %v416_v60 = vmax.bf16 %v6633_v2, %v384_v53  ;;  %v530_v61 = vsel %vm6732_vm4, 0, %v529_v34 }
  0x1e   : > { %4136 = vmatprep.mubr.bf16.mxu0 %v1313_v11  ;;  %v739_v36 = vor.u32 %v737_v13, %v736_v24  ;;  %v747_v38 = vor.u32 %v745_v17, %v744_v25  ;;  %v749_v39 = vrot.slane %v744_v25, 4  ;;  %v496_v55 = vld [vmem:[#allocation2 + $0x20] sm:$0x1]  ;;  %531 = vst [vmem:[#allocation2 + $0xa4] sm:$0x1] %v530_v61  ;;  %v319_v63 = vmul.bf16 %v6773_v41, %v272_v40 }
  0x1f   : > { %5781 = vmatpush3.bf16.msra.mxu0 %v6326_v31  ;;  %6302 = vmatpush3.bf16.msra.mxu1 %v6326_v31  ;;  %v557_v31 = vrot.slane %v555_v23, 7  ;;  %v553_v43 = vrot.slane %v549_v30, 4  ;;  %v441_v0 = vsel %vm6724_vm3, 0, %v440_v54  ;;  %v751_v3 = vshrl.u32 %v416_v60, 16  ;;  %v297_v11 = vld [vmem:[%s6756_s10 + $0x6c] sm:$0xf] }
  0x20   : > { %5782 = vmatprep.subr.bf16.mxu0 %v6327_v32  ;;  %6295 = vmatprep.subr.bf16.mxu1 %v6327_v32  ;;  %v342_v32 = vmul.bf16 %v6773_v41, %v295_v10  ;;  %v947_v50 = vsel %vm6809_vm8, %v739_v36, %v946_v19  ;;  %v951_v51 = vsel %vm6724_vm3, %v749_v39, %v950_v20  ;;  %v754_v4 = vshll.u32 %v416_v60, 16  ;;  %v476_v13 = vld [vmem:[#allocation2 + $0xa8] sm:$0x1]  ;;  %v532_v40 = vld [vmem:[#allocation2 + $0xb0] sm:$0x1]  ;;  %v6337_v54 = vld [vmem:[%s7799_s1 + $0x80] sm:$0xff]  }
  0x21   : > { %v562_v46 = vrot.slane %v557_v31, 4  ;;  %948 = vst [vmem:[#allocation2 + $0x90] sm:$0xf] %v947_v50  ;;  %952 = vst [vmem:[#allocation2 + $0x98] sm:$0x1] %v951_v51  ;;  %v753_v10 = vrot.slane %v751_v3, 7  ;;  %v343_v12 = vmul.bf16 %v6773_v41, %v296_v9  ;;  %v362_v17 = vadd.bf16 %v6778_v44, %v319_v63 }
  0x22   : > { %v385_v59 = vadd.bf16 %v6778_v44, %v342_v32  ;;  %442 = vst [vmem:[#allocation2 + $0x18] sm:$0x1] %v441_v0  ;;  %v953_v16 = vld [vmem:[#allocation2 + $0x9c] sm:$0xf]  ;;  %v344_v19 = vmul.bf16 %v6773_v41, %v297_v11  ;;  %v477_v20 = vsel %vm6724_vm3, 0, %v476_v13 }
  0x23   : > { %5783 = vmatpush3.bf16.msra.mxu0 %v6328_v37  ;;  %6303 = vmatpush3.bf16.msra.mxu1 %v6328_v37  ;;  %v740_v37 = vrot.slane %v736_v24, 4  ;;  %v874_v58 = vsel %vm6724_vm3, %v562_v46, %v873_v52  ;;  %v756_v21 = vor.u32 %v754_v4, %v753_v10  ;;  %478 = vst [vmem:[#allocation2 + $0xa8] sm:$0x1] %v477_v20  ;;  %v6346_v20 = vld [vmem:[%s7799_s1 + $0xd0] sm:$0xff]  }
  0x24   : > { %5880 = vmatprep.subr.bf16.mxu1 %v6334_v42  ;;  %5992 = vmatprep.subr.bf16.mxu0 %v6335_v45  ;;  %v552_v42 = vor.u32 %v550_v22, %v549_v30  ;;  %v560_v45 = vor.u32 %v558_v27, %v557_v31  ;;  %875 = vst [vmem:[#allocation2 + $0x14] sm:$0x1] %v874_v58  ;;  %v757_v27 = vrot.slane %v753_v10, 4 }
  0x25   : > { %v748_v49 = vsel %vm6816_vm9, %v740_v37, %v747_v38  ;;  %v417_v62 = vmax.bf16 %v6633_v2, %v385_v59  ;;  %v363_v22 = vadd.bf16 %v6778_v44, %v320_v5  ;;  %v954_v28 = vsel %vm6809_vm8, %v756_v21, %v953_v16 }
  0x26   : > { %4137 = vmatmul.mubr.bf16.vlgmr.msra.gmra.mrb[0].mxu0 %v6331_v1  ;;  %949 = vst [vmem:[#allocation2 + $0x94] sm:$0xf] %v748_v49  ;;  %v561_v56 = vsel %vm6816_vm9, %v553_v43, %v560_v45  ;;  %v870_v57 = vsel %vm6809_vm8, %v552_v42, %v869_v47  ;;  %v497_v1 = vsel %vm6732_vm4, 0, %v496_v55  ;;  %v386_v30 = vadd.bf16 %v6778_v44, %v343_v12  ;;  %v957_v49 = vld [vmem:[#allocation2 + $0xa4] sm:$0x1] }
  0x27   : > { %5993 = vmatpush3.bf16.msra.mxu0 %v6338_v6  ;;  %871 = vst [vmem:[#allocation2 + $0xc] sm:$0xf] %v870_v57  ;;  %872 = vst [vmem:[#allocation2 + $0x10] sm:$0xf] %v561_v56  ;;  %v6355_v6 = vld [vmem:[%s7799_s1 + $0x108] sm:$0xff]   ;;  %v759_v7 = vshrl.u32 %v417_v62, 16  ;;  %v387_v31 = vadd.bf16 %v6778_v44, %v344_v19  ;;  %v394_v36 = vmax.bf16 %v6633_v2, %v362_v17 }
  0x28   : > { %5994 = vmatprep.subr.bf16.mxu0 %v6353_v35  ;;  %498 = vst [vmem:[#allocation2 + $0x20] sm:$0x1] %v497_v1  ;;  %v762_v8 = vshll.u32 %v417_v62, 16  ;;  %v6333_v24 = vld [vmem:[#allocation2 + $0x98] ss:$0 sps:$4 sm:$0x11]   ;;  %v395_v39 = vmax.bf16 %v6633_v2, %v363_v22  ;;  %v418_v50 = vmax.bf16 %v6633_v2, %v386_v30 }
  0x29   : > { %v761_v14 = vrot.slane %v759_v7, 7  ;;  %v1454_v34 = vshll.u32 %v6333_v24, 16  ;;  %955 = vst [vmem:[#allocation2 + $0x9c] sm:$0xf] %v954_v28  ;;  %v6873_v51 = vmax.bf16 %v6633_v2, %v387_v31  ;;  %v6342_v56 = vld [vmem:[%s7799_s1 + $0xc8] sm:$0xff]   ;;  %v564_v57 = vshrl.u32 %v394_v36, 16 }
  0x2a   : > { %v567_v58 = vshll.u32 %v394_v36, 16  ;;  %v572_v62 = vshrl.u32 %v395_v39, 16  ;;  %v575_v63 = vshll.u32 %v395_v39, 16  ;;  %v876_v0 = vld [vmem:[#allocation2 + $0x18] sm:$0xf]  ;;  %v6343_v7 = vld [vmem:[%s7799_s1 + $0x88] sm:$0xff]  }
  0x2b   : > { %5995 = vmatpush3.bf16.msra.mxu0 %v6355_v6  ;;  %v764_v25 = vor.u32 %v762_v8, %v761_v14  ;;  %v6340_v37 = vld [vmem:[#allocation2 + $0x14] ss:$0 sps:$4 sm:$0x11]   ;;  %v1456_v43 = vrot.slane %v1454_v34, 1  ;;  %v766_v48 = vrot.slane %v761_v14, 4  ;;  %v566_v4 = vrot.slane %v564_v57, 7 }
  0x2c   : > { %v1322_v47 = vshll.u32 %v6340_v37, 16  ;;  %v533_v6 = vsel %vm6732_vm4, 0, %v532_v40  ;;  %v574_v8 = vrot.slane %v572_v62, 7  ;;  %v768_v9 = vshrl.u32 %v418_v50, 16  ;;  %v960_v19 = vld [vmem:[#allocation2 + $0xa8] sm:$0xf] }
  0x2d   : > { %v6332_v23 = vld [vmem:[#allocation2 + $0x90] sm:$0xff]   ;;  %v765_v38 = vsel %vm6816_vm9, %v757_v27, %v764_v25  ;;  %v958_v61 = vsel %vm6724_vm3, %v766_v48, %v957_v49  ;;  %534 = vst [vmem:[#allocation2 + $0xb0] sm:$0x1] %v533_v6  ;;  %v569_v11 = vor.u32 %v567_v58, %v566_v4  ;;  %v570_v12 = vrot.slane %v566_v4, 4  ;;  %v443_v34 = vld [vmem:[#allocation2 + $0x24] sm:$0x1] }
  0x2e   : > { %v1447_v32 = vshrl.u32 %v6332_v23, 16  ;;  %v1449_v33 = vshll.u32 %v6332_v23, 16  ;;  %v6339_v35 = vld [vmem:[#allocation2 + $0xc] sm:$0xff]   ;;  %956 = vst [vmem:[#allocation2 + $0xa0] sm:$0xf] %v765_v38  ;;  %v1324_v59 = vrot.slane %v1322_v47, 1  ;;  %v577_v16 = vor.u32 %v575_v63, %v574_v8 }
  0x2f   : > { %v1315_v45 = vshrl.u32 %v6339_v35, 16  ;;  %v1317_v46 = vshll.u32 %v6339_v35, 16  ;;  %v6336_v53 = vld [vmem:[#allocation2 + $0x90] sm:$0xff]   ;;  %959 = vst [vmem:[#allocation2 + $0xa4] sm:$0x1] %v958_v61  ;;  %v771_v13 = vshll.u32 %v418_v50, 16  ;;  %v877_v21 = vsel %vm6809_vm8, %v569_v11, %v876_v0 }
  0x30   : > { %v1451_v42 = vrot.slane %v1449_v33, 1  ;;  %v6341_v60 = vld [vmem:[#allocation2 + $0xc] sm:$0xff]   ;;  %v880_v5 = vld [vmem:[#allocation2 + $0x20] sm:$0x1]  ;;  %v579_v17 = vrot.slane %v574_v8, 4  ;;  %v770_v22 = vrot.slane %v768_v9, 7  ;;  %v578_v31 = vsel %vm6816_vm9, %v570_v12, %v577_v16 }
  0x31   : > { %v1319_v55 = vrot.slane %v1317_v46, 1  ;;  %v776_v23 = vshrl.u32 %v6873_v51, 16  ;;  %v779_v24 = vshll.u32 %v6873_v51, 16  ;;  %v274_v25 = vld [vmem:[%s6756_s10 + $0x10] sm:$0xf]  ;;  %v6354_v0 = vld [vmem:[%s7799_s1 + $0x98] sm:$0xff]  }
  0x32   : > { %v1452_v52 = vor.u32 %v1451_v42, %v1447_v32  ;;  %v6348_v30 = vld [vmem:[%s7799_s1 + $0x90] sm:$0xff]   ;;  %878 = vst [vmem:[#allocation2 + $0x18] sm:$0xf] %v877_v21  ;;  %v881_v32 = vsel %vm6724_vm3, %v579_v17, %v880_v5  ;;  %879 = vst [vmem:[#allocation2 + $0x1c] sm:$0xf] %v578_v31  ;;  %v773_v35 = vor.u32 %v771_v13, %v770_v22  ;;  %v774_v36 = vrot.slane %v770_v22, 4 }
  0x33   : > { %v1320_v3 = vor.u32 %v1319_v55, %v1315_v45  ;;  %v275_v33 = vld [vmem:[%s6756_s10 + $0x14] sm:$0xf]  ;;  %882 = vst [vmem:[#allocation2 + $0x20] sm:$0x1] %v881_v32  ;;  %v778_v37 = vrot.slane %v776_v23, 7  ;;  %v321_v38 = vmul.bf16 %v6773_v41, %v274_v25  ;;  %v6352_v45 = vld [vmem:[%s7799_s1 + $0xd8] sm:$0xff]  }
  0x34   : > { %v1457_v1 = vsel %vm1301_vm5, %v1452_v52, %v1456_v43  ;;  %v499_v39 = vld [vmem:[#allocation2 + $0x2c] sm:$0x1]  ;;  %v322_v43 = vmul.bf16 %v6773_v41, %v275_v33  ;;  %v961_v48 = vsel %vm6809_vm8, %v773_v35, %v960_v19  ;;  %v964_v49 = vld [vmem:[#allocation2 + $0xb0] sm:$0x1]  ;;  %v6360_v12 = vld [vmem:[%s7799_s1 + $0xa0] sm:$0xff]  }
  0x35   : > { %4232 = vmatprep.mubr.bf16.mxu1 %v1457_v1  ;;  %v1325_v10 = vsel %vm1301_vm5, %v1320_v3, %v1324_v59  ;;  %v6344_v14 = vld [vmem:[#allocation2 + $0x9c] sm:$0xff]   ;;  %v781_v46 = vor.u32 %v779_v24, %v778_v37  ;;  %v783_v47 = vrot.slane %v778_v37, 4  ;;  %v364_v50 = vadd.bf16 %v6778_v44, %v321_v38  ;;  %962 = vst [vmem:[#allocation2 + $0xa8] sm:$0xf] %v961_v48  ;;  %v298_v59 = vld [vmem:[%s6756_s10 + $0x70] sm:$0xf] }
  0x36   : > { %4233 = vmatmul.mubr.bf16.vlgmr.msra.gmra.mrb[0].mxu1 %v6336_v53  ;;  %4144 = vmatprep.mubr.bf16.mxu0 %v1325_v10  ;;  %v1459_v27 = vshrl.u32 %v6344_v14, 16  ;;  %v1461_v28 = vshll.u32 %v6344_v14, 16  ;;  %v6345_v40 = vld [vmem:[#allocation2 + $0xa4] ss:$0 sps:$4 sm:$0x11]   ;;  %v365_v53 = vadd.bf16 %v6778_v44, %v322_v43  ;;  %v500_v58 = vsel %vm6732_vm4, 0, %v499_v39 }
  0x37   : > { %5881 = vmatpush3.bf16.msra.mxu1 %v6337_v54  ;;  %4145 = vmatmul.mubr.bf16.gmra.mrb[4].mxu0 %v6341_v60  ;;  %v1466_v52 = vshll.u32 %v6345_v40, 16  ;;  %v444_v54 = vsel %vm6724_vm3, 0, %v443_v34  ;;  %v782_v55 = vsel %vm6816_vm9, %v774_v36, %v781_v46  ;;  %v396_v57 = vmax.bf16 %v6633_v2, %v364_v50  ;;  %v299_v60 = vld [vmem:[%s6756_s10 + $0x74] sm:$0xf]  ;;  %v6347_v63 = vld [vmem:[#allocation2 + $0x9c] sm:$0xff]   ;;  %v6364_v21 = vld [vmem:[%s7799_s1 + $0xe8] sm:$0xff]  }
  0x38   : > { %5882 = vmatprep.subr.bf16.mxu1 %v6342_v56  ;;  %v1463_v42 = vrot.slane %v1461_v28, 1  ;;  %v965_v56 = vsel %vm6724_vm3, %v783_v47, %v964_v49  ;;  %445 = vst [vmem:[#allocation2 + $0x24] sm:$0x1] %v444_v54  ;;  %v6369_v61 = vld [vmem:[%s7799_s1 + $0x150] sm:$0xff]   ;;  %963 = vst [vmem:[#allocation2 + $0xac] sm:$0xf] %v782_v55  ;;  %v397_v3 = vmax.bf16 %v6633_v2, %v365_v53 }
  0x39   : > { %v1468_v62 = vrot.slane %v1466_v52, 1  ;;  %966 = vst [vmem:[#allocation2 + $0xb0] sm:$0x1] %v965_v56  ;;  %v6358_v1 = vld [vmem:[%s7799_s1 + $0xe0] sm:$0xff]   ;;  %501 = vst [vmem:[#allocation2 + $0x2c] sm:$0x1] %v500_v58  ;;  %v345_v4 = vmul.bf16 %v6773_v41, %v298_v59  ;;  %v346_v5 = vmul.bf16 %v6773_v41, %v299_v60  ;;  %5996 = vmatprep.subr.bf16.mxu0 %v6369_v61 }
  0x3a   : > { %v1464_v51 = vor.u32 %v1463_v42, %v1459_v27  ;;  %v581_v6 = vshrl.u32 %v396_v57, 16  ;;  %v6349_v9 = vld [vmem:[#allocation2 + $0x18] sm:$0xff]   ;;  %v589_v10 = vshrl.u32 %v397_v3, 16  ;;  %v6350_v11 = vld [vmem:[#allocation2 + $0x20] ss:$0 sps:$4 sm:$0x11]  }
  0x3b   : > { %5883 = vmatpush3.bf16.msra.mxu1 %v6343_v7  ;;  %v584_v7 = vshll.u32 %v396_v57, 16  ;;  %v388_v13 = vadd.bf16 %v6778_v44, %v345_v4  ;;  %v389_v14 = vadd.bf16 %v6778_v44, %v346_v5  ;;  %v1327_v16 = vshrl.u32 %v6349_v9, 16  ;;  %v479_v22 = vld [vmem:[#allocation2 + $0xb4] sm:$0x1]  ;;  %v535_v25 = vld [vmem:[#allocation2 + $0xbc] sm:$0x1] }
  0x3c   : > { %5884 = vmatprep.subr.bf16.mxu1 %v6346_v20  ;;  %v1469_v8 = vsel %vm1301_vm5, %v1464_v51, %v1468_v62  ;;  %v1329_v17 = vshll.u32 %v6349_v9, 16  ;;  %v583_v19 = vrot.slane %v581_v6, 7  ;;  %v591_v20 = vrot.slane %v589_v10, 7  ;;  %v6372_v33 = vld [vmem:[%s7799_s1 + $0x110] sm:$0xff]   ;;  %v6365_v37 = vld [vmem:[%s7799_s1 + $0xa8] sm:$0xff]   ;;  %v6351_v42 = vld [vmem:[#allocation2 + $0x18] sm:$0xff]  }
  0x3d   : > { %4240 = vmatprep.mubr.bf16.mxu1 %v1469_v8  ;;  %v1334_v23 = vshll.u32 %v6350_v11, 16  ;;  %v592_v24 = vshll.u32 %v397_v3, 16  ;;  %v420_v38 = vmax.bf16 %v6633_v2, %v388_v13  ;;  %v421_v39 = vmax.bf16 %v6633_v2, %v389_v14  ;;  %5997 = vmatpush3.bf16.msra.mxu0 %v6372_v33  ;;  %v6368_v51 = vld [vmem:[%s7799_s1 + $0xf0] sm:$0xff]   ;;  %v276_v4 = vld [vmem:[%s6756_s10 + $0x18] sm:$0xf] }
  0x3e   : > { %4241 = vmatmul.mubr.bf16.gmra.mrb[4].mxu1 %v6347_v63  ;;  %v1331_v27 = vrot.slane %v1329_v17, 1  ;;  %v586_v28 = vor.u32 %v584_v7, %v583_v19  ;;  %v596_v31 = vrot.slane %v591_v20, 4  ;;  %v480_v50 = vsel %vm6724_vm3, 0, %v479_v22  ;;  %v6371_v63 = vld [vmem:[%s7799_s1 + $0xb0] sm:$0xff]   ;;  %v277_v5 = vld [vmem:[%s6756_s10 + $0x1c] sm:$0xf] }
  0x3f   : > { %5885 = vmatpush3.bf16.msra.mxu1 %v6348_v30  ;;  %v587_v30 = vrot.slane %v583_v19, 4  ;;  %v883_v32 = vld [vmem:[#allocation2 + $0x24] sm:$0xf]  ;;  %v1336_v34 = vrot.slane %v1334_v23, 1  ;;  %v6356_v35 = vld [vmem:[#allocation2 + $0xa8] sm:$0xff]   ;;  %v594_v36 = vor.u32 %v592_v24, %v591_v20  ;;  %v536_v55 = vsel %vm6732_vm4, 0, %v535_v25 }
  0x40   : > { %5886 = vmatprep.subr.bf16.mxu1 %v6352_v45  ;;  %v1332_v40 = vor.u32 %v1331_v27, %v1327_v16  ;;  %v6357_v43 = vld [vmem:[#allocation2 + $0xb0] ss:$0 sps:$4 sm:$0x11]   ;;  %v884_v45 = vsel %vm6809_vm8, %v586_v28, %v883_v32  ;;  %v1471_v46 = vshrl.u32 %v6356_v35, 16  ;;  %v1473_v47 = vshll.u32 %v6356_v35, 16  ;;  %v6359_v57 = vld [vmem:[#allocation2 + $0xa8] sm:$0xff]  }
  0x41   : > { %v595_v48 = vsel %vm6816_vm9, %v587_v30, %v594_v36  ;;  %885 = vst [vmem:[#allocation2 + $0x24] sm:$0xf] %v884_v45  ;;  %v887_v49 = vld [vmem:[#allocation2 + $0x2c] sm:$0x1]  ;;  %v1478_v53 = vshll.u32 %v6357_v43, 16  ;;  %v785_v58 = vshrl.u32 %v420_v38, 16  ;;  %v323_v14 = vmul.bf16 %v6773_v41, %v276_v4 }
  0x42   : > { %v1337_v52 = vsel %vm1301_vm5, %v1332_v40, %v1336_v34  ;;  %886 = vst [vmem:[#allocation2 + $0x28] sm:$0xf] %v595_v48  ;;  %v888_v54 = vsel %vm6724_vm3, %v596_v31, %v887_v49  ;;  %481 = vst [vmem:[#allocation2 + $0xb4] sm:$0x1] %v480_v50  ;;  %v1475_v56 = vrot.slane %v1473_v47, 1  ;;  %v788_v59 = vshll.u32 %v420_v38, 16 }
  0x43   : > { %5887 = vmatpush3.bf16.msra.mxu1 %v6354_v0  ;;  %4152 = vmatprep.mubr.bf16.mxu0 %v1337_v52  ;;  %889 = vst [vmem:[#allocation2 + $0x2c] sm:$0x1] %v888_v54  ;;  %537 = vst [vmem:[#allocation2 + $0xbc] sm:$0x1] %v536_v55  ;;  %v793_v60 = vshrl.u32 %v421_v39, 16  ;;  %v1480_v61 = vrot.slane %v1478_v53, 1  ;;  %v324_v16 = vmul.bf16 %v6773_v41, %v277_v5 }
  0x44   : > { %5888 = vmatprep.subr.bf16.mxu1 %v6358_v1  ;;  %4153 = vmatmul.mubr.bf16.gmra.mrb[8].mxu0 %v6351_v42  ;;  %v796_v62 = vshll.u32 %v421_v39, 16  ;;  %v1476_v0 = vor.u32 %v1475_v56, %v1471_v46  ;;  %v787_v1 = vrot.slane %v785_v58, 7  ;;  %v446_v6 = vld [vmem:[#allocation2 + $0x30] sm:$0x1]  ;;  %v502_v11 = vld [vmem:[#allocation2 + $0x38] sm:$0x1]  ;;  %v366_v23 = vadd.bf16 %v6778_v44, %v323_v14 }
  0x45   : > { %v795_v3 = vrot.slane %v793_v60, 7  ;;  %v447_v17 = vsel %vm6724_vm3, 0, %v446_v6  ;;  %v367_v24 = vadd.bf16 %v6778_v44, %v324_v16  ;;  %v6377_v25 = vld [vmem:[%s7799_s1 + $0xb8] sm:$0xff]   ;;  %v6379_v38 = vld [vmem:[%s7799_s1 + $0x1c0] sm:$0xff]  }
  0x46   : > { %v1481_v7 = vsel %vm1301_vm5, %v1476_v0, %v1480_v61  ;;  %v790_v8 = vor.u32 %v788_v59, %v787_v1  ;;  %v791_v9 = vrot.slane %v787_v1, 4  ;;  %448 = vst [vmem:[#allocation2 + $0x30] sm:$0x1] %v447_v17  ;;  %v398_v35 = vmax.bf16 %v6633_v2, %v366_v23  ;;  %v6386_v50 = vld [vmem:[%s7799_s1 + $0x158] sm:$0xff]   ;;  %v6380_v4 = vld [vmem:[#allocation2] sm:$0xfe]  }
  0x47   : > { %5889 = vmatpush3.bf16.msra.mxu1 %v6360_v12  ;;  %v798_v10 = vor.u32 %v796_v62, %v795_v3  ;;  %v6376_v12 = vld [vmem:[%s7799_s1 + $0xf8] sm:$0xff]   ;;  %4248 = vmatprep.mubr.bf16.mxu1 %v1481_v7  ;;  %v800_v13 = vrot.slane %v795_v3, 4  ;;  %v6395_v5 = vld [vmem:[%s7799_s1 + $0x160] sm:$0xff]   ;;  %v6381_v7 = vld [vmem:[#allocation2 + $0x8] ss:$0 sps:$4 sm:$0x11]  }
  0x48   : > { %5890 = vmatprep.subr.bf16.mxu1 %v6364_v21  ;;  %4249 = vmatmul.mubr.bf16.gmra.mrb[8].mxu1 %v6359_v57  ;;  %v503_v21 = vsel %vm6732_vm4, 0, %v502_v11  ;;  %v598_v42 = vshrl.u32 %v398_v35, 16  ;;  %v601_v43 = vshll.u32 %v398_v35, 16  ;;  %v6387_v53 = vld [vmem:[%s7799_s1 + $0x118] sm:$0xff]   ;;  %v505_v17 = vld [vmem:[#allocation2 + $0x44] sm:$0x1] }
  0x49   : > { %v6361_v19 = vld [vmem:[#allocation2 + $0x24] sm:$0xff]   ;;  %v799_v20 = vsel %vm6816_vm9, %v791_v9, %v798_v10  ;;  %504 = vst [vmem:[#allocation2 + $0x38] sm:$0x1] %v503_v21  ;;  %v967_v30 = vld [vmem:[#allocation2 + $0xb4] sm:$0xf]  ;;  %5998 = vmatprep.subr.bf16.mxu0 %v6386_v50  ;;  %v506_v21 = vsel %vm6732_vm4, 0, %v505_v17 }
  0x4a   : > { %v6362_v22 = vld [vmem:[#allocation2 + $0x2c] ss:$0 sps:$4 sm:$0x11]   ;;  %970 = vst [vmem:[#allocation2 + $0xb8] sm:$0xf] %v799_v20  ;;  %v1339_v27 = vshrl.u32 %v6361_v19, 16  ;;  %v968_v33 = vsel %vm6809_vm8, %v790_v8, %v967_v30  ;;  %5999 = vmatpush3.bf16.msra.mxu0 %v6387_v53 }
  0x4b   : > { %5891 = vmatpush3.bf16.msra.mxu1 %v6365_v37  ;;  %v1341_v28 = vshll.u32 %v6361_v19, 16  ;;  %v971_v31 = vld [vmem:[#allocation2 + $0xbc] sm:$0x1]  ;;  %v1346_v32 = vshll.u32 %v6362_v22, 16  ;;  %969 = vst [vmem:[#allocation2 + $0xb4] sm:$0xf] %v968_v33  ;;  %v399_v37 = vmax.bf16 %v6633_v2, %v367_v24  ;;  %6000 = vmatprep.subr.bf16.mxu0 %v6395_v5 }
  0x4c   : > { %5892 = vmatprep.subr.bf16.mxu1 %v6368_v51  ;;  %v972_v34 = vsel %vm6724_vm3, %v800_v13, %v971_v31  ;;  %v6363_v40 = vld [vmem:[#allocation2 + $0x24] sm:$0xff]   ;;  %v600_v48 = vrot.slane %v598_v42, 7  ;;  %v278_v8 = vld [vmem:[%s6756_s10 + $0x20] sm:$0xf]  ;;  %v449_v16 = vld [vmem:[#allocation2 + $0x3c] sm:$0x1] }
  0x4d   : > { %v1343_v36 = vrot.slane %v1341_v28, 1  ;;  %973 = vst [vmem:[#allocation2 + $0xbc] sm:$0x1] %v972_v34  ;;  %v1348_v39 = vrot.slane %v1346_v32, 1  ;;  %v606_v46 = vshrl.u32 %v399_v37, 16  ;;  %v609_v47 = vshll.u32 %v399_v37, 16 }
  0x4e   : > { %v890_v49 = vld [vmem:[#allocation2 + $0x30] sm:$0xf]  ;;  %v603_v54 = vor.u32 %v601_v43, %v600_v48  ;;  %v604_v55 = vrot.slane %v600_v48, 4  ;;  %v279_v9 = vld [vmem:[%s6756_s10 + $0x24] sm:$0xf]  ;;  %v325_v13 = vmul.bf16 %v6773_v41, %v278_v8  ;;  %v450_v20 = vsel %vm6724_vm3, 0, %v449_v16 }
  0x4f   : > { %5893 = vmatpush3.bf16.msra.mxu1 %v6371_v63  ;;  %v1344_v45 = vor.u32 %v1343_v36, %v1339_v27  ;;  %v608_v52 = vrot.slane %v606_v46, 7  ;;  %v326_v14 = vmul.bf16 %v6773_v41, %v279_v9  ;;  %451 = vst [vmem:[#allocation2 + $0x3c] sm:$0x1] %v450_v20  ;;  %507 = vst [vmem:[#allocation2 + $0x44] sm:$0x1] %v506_v21  ;;  %v1703_v27 = vrot.slane %v6380_v4, 1 }
  0x50   : > { %5894 = vmatprep.subr.bf16.mxu1 %v6376_v12  ;;  %v894_v56 = vld [vmem:[#allocation2 + $0x38] sm:$0x1]  ;;  %v891_v60 = vsel %vm6809_vm8, %v603_v54, %v890_v49  ;;  %v6378_v12 = vld [vmem:[#allocation2 + $0xc] sm:$0xff]   ;;  %v368_v22 = vadd.bf16 %v6778_v44, %v325_v13  ;;  %v1704_v32 = vrot.slane %v6381_v7, 1  ;;  %v6382_v43 = vld [vmem:[%s7799_s1 + $0x180] sm:$0xff]  }
  0x51   : > { %v1349_v51 = vsel %vm1301_vm5, %v1344_v45, %v1348_v39  ;;  %v611_v57 = vor.u32 %v609_v47, %v608_v52  ;;  %v613_v58 = vrot.slane %v608_v52, 4  ;;  %892 = vst [vmem:[#allocation2 + $0x30] sm:$0xf] %v891_v60  ;;  %v369_v23 = vadd.bf16 %v6778_v44, %v326_v14  ;;  %v6389_v46 = vld [vmem:[#allocation2 + $0xc] sm:$0xfe]   ;;  %v6394_v21 = vld [vmem:[#allocation2 + $0x24] sm:$0xff]  }
  0x52   : > { %4160 = vmatprep.mubr.bf16.mxu0 %v1349_v51  ;;  %v6366_v59 = vld [vmem:[#allocation2 + $0xb4] sm:$0xff]   ;;  %v400_v28 = vmax.bf16 %v6633_v2, %v368_v22  ;;  %v6396_v52 = vld [vmem:[%s7799_s1 + $0x1c8] sm:$0xff]   ;;  %v1705_v54 = vsel %vm1702_vm10, %v1703_v27, %v1704_v32 }
  0x53   : > { %5895 = vmatpush3.bf16.msra.mxu1 %v6377_v25  ;;  %4161 = vmatmul.mubr.bf16.gmra.mrb[12].mxu0 %v6363_v40  ;;  %v612_v62 = vsel %vm6816_vm9, %v604_v55, %v611_v57  ;;  %v895_v63 = vsel %vm6724_vm3, %v613_v58, %v894_v56  ;;  %v1483_v0 = vshrl.u32 %v6366_v59, 16  ;;  %v1485_v1 = vshll.u32 %v6366_v59, 16  ;;  %v6370_v11 = vld [vmem:[#allocation2 + $0xb4] sm:$0xff]   ;;  %v6399_v40 = vld [vmem:[%s7799_s1 + $0x120] sm:$0xff]   ;;  %v452_v5 = vld [vmem:[#allocation2 + $0x48] sm:$0x1] }
  0x54   : > { %6104 = vmatprep.subr.bf16.mxu1 %v6379_v38  ;;  %v6367_v61 = vld [vmem:[#allocation2 + $0xbc] ss:$0 sps:$4 sm:$0x11]   ;;  %893 = vst [vmem:[#allocation2 + $0x34] sm:$0xf] %v612_v62  ;;  %v401_v30 = vmax.bf16 %v6633_v2, %v369_v23  ;;  %v615_v35 = vshrl.u32 %v400_v28, 16  ;;  %6001 = vmatpush3.bf16.msra.mxu0 %v6399_v40 }
  0x55   : > { %896 = vst [vmem:[#allocation2 + $0x38] sm:$0x1] %v895_v63  ;;  %v1490_v3 = vshll.u32 %v6367_v61, 16  ;;  %v1487_v6 = vrot.slane %v1485_v1, 1  ;;  %v618_v36 = vshll.u32 %v400_v28, 16  ;;  %v6388_v51 = vld [vmem:[#allocation2 + $0x18] sm:$0xff]  }
  0x56   : > { %v623_v38 = vshrl.u32 %v401_v30, 16  ;;  %v626_v39 = vshll.u32 %v401_v30, 16  ;;  %v617_v45 = vrot.slane %v615_v35, 7  ;;  %v897_v50 = vld [vmem:[#allocation2 + $0x3c] sm:$0xf]  ;;  %v1706_v61 = vrot.slane %v6389_v46, 1 }
  0x57   : > { %v1492_v10 = vrot.slane %v1490_v3, 1  ;;  %v1488_v19 = vor.u32 %v1487_v6, %v1483_v0  ;;  %v901_v57 = vld [vmem:[#allocation2 + $0x44] sm:$0x1]  ;;  %v6390_v58 = vld [vmem:[#allocation2 + $0x14] ss:$0 sps:$4 sm:$0x11]  }
  0x58   : > { %v625_v49 = vrot.slane %v623_v38, 7  ;;  %v620_v55 = vor.u32 %v618_v36, %v617_v45  ;;  %v621_v56 = vrot.slane %v617_v45, 4  ;;  %v280_v62 = vld [vmem:[%s6756_s10 + $0x28] sm:$0xf]  ;;  %v281_v63 = vld [vmem:[%s6756_s10 + $0x2c] sm:$0xf] }
  0x59   : > { %v1493_v24 = vsel %vm1301_vm5, %v1488_v19, %v1492_v10  ;;  %v1707_v3 = vrot.slane %v6390_v58, 1  ;;  %v327_v4 = vmul.bf16 %v6773_v41, %v280_v62  ;;  %v508_v6 = vld [vmem:[#allocation2 + $0x50] sm:$0x1]  ;;  %v6400_v7 = vld [vmem:[%s7799_s1 + $0x188] sm:$0xff]   ;;  %v6397_v22 = vld [vmem:[#allocation2 + $0x18] sm:$0xfe]  }
  0x5a   : > { %4256 = vmatprep.mubr.bf16.mxu1 %v1493_v24  ;;  %v628_v59 = vor.u32 %v626_v39, %v625_v49  ;;  %v630_v60 = vrot.slane %v625_v49, 4  ;;  %v898_v1 = vsel %vm6809_vm8, %v620_v55, %v897_v50  ;;  %v6410_v8 = vld [vmem:[%s7799_s1 + $0x168] sm:$0xff]   ;;  %v509_v16 = vsel %vm6732_vm4, 0, %v508_v6  ;;  %v6413_v17 = vld [vmem:[%s7799_s1 + $0x1d0] sm:$0xff]   ;;  %v6429_v38 = vld [vmem:[%s7799_s1 + $0x1d8] sm:$0xff]  }
  0x5b   : > { %v6373_v25 = vld [vmem:[#allocation2 + $0x30] sm:$0xff]   ;;  %4257 = vmatmul.mubr.bf16.gmra.mrb[12].mxu1 %v6370_v11  ;;  %899 = vst [vmem:[#allocation2 + $0x3c] sm:$0xf] %v898_v1  ;;  %v328_v11 = vmul.bf16 %v6773_v41, %v281_v63  ;;  %v6411_v13 = vld [vmem:[%s7799_s1 + $0x128] sm:$0xff]   ;;  %v370_v14 = vadd.bf16 %v6778_v44, %v327_v4  ;;  %510 = vst [vmem:[#allocation2 + $0x50] sm:$0x1] %v509_v16  ;;  %6002 = vmatprep.subr.bf16.mxu0 %v6410_v8 }
  0x5c   : > { %v6374_v31 = vld [vmem:[#allocation2 + $0x38] ss:$0 sps:$4 sm:$0x11]   ;;  %v1351_v33 = vshrl.u32 %v6373_v25, 16  ;;  %v1353_v34 = vshll.u32 %v6373_v25, 16  ;;  %4297 = vmatprep.mubr.bf16.mxu1 %v6378_v12  ;;  %v6375_v48 = vld [vmem:[#allocation2 + $0x30] sm:$0xff]   ;;  %v629_v9 = vsel %vm6816_vm9, %v621_v56, %v628_v59  ;;  %v902_v10 = vsel %vm6724_vm3, %v630_v60, %v901_v57  ;;  %6003 = vmatpush3.bf16.msra.mxu0 %v6411_v13 }
  0x5d   : > { %v1358_v37 = vshll.u32 %v6374_v31, 16  ;;  %v453_v12 = vsel %vm6724_vm3, 0, %v452_v5  ;;  %900 = vst [vmem:[#allocation2 + $0x40] sm:$0xf] %v629_v9  ;;  %903 = vst [vmem:[#allocation2 + $0x44] sm:$0x1] %v902_v10  ;;  %v371_v19 = vadd.bf16 %v6778_v44, %v328_v11  ;;  %v402_v20 = vmax.bf16 %v6633_v2, %v370_v14 }
  0x5e   : > { %v1355_v42 = vrot.slane %v1353_v34, 1  ;;  %454 = vst [vmem:[#allocation2 + $0x48] sm:$0x1] %v453_v12  ;;  %v6398_v24 = vld [vmem:[#allocation2 + $0x20] ss:$0 sps:$4 sm:$0x11]   ;;  %v1708_v27 = vsel %vm1702_vm10, %v1706_v61, %v1707_v3 }
  0x5f   : > { %v1360_v47 = vrot.slane %v1358_v37, 1  ;;  %v403_v23 = vmax.bf16 %v6633_v2, %v371_v19  ;;  %v6416_v25 = vld [vmem:[%s7799_s1 + $0x190] sm:$0xff]   ;;  %v632_v28 = vshrl.u32 %v402_v20, 16  ;;  %v635_v30 = vshll.u32 %v402_v20, 16  ;;  %v6432_v61 = vld [vmem:[%s7799_s1 + $0x198] sm:$0xff]  }
  0x60   : > { %v1356_v53 = vor.u32 %v1355_v42, %v1351_v33  ;;  %v1709_v31 = vrot.slane %v6397_v22, 1  ;;  %v6421_v32 = vld [vmem:[%s7799_s1 + $0x170] sm:$0xff]   ;;  %v1710_v35 = vrot.slane %v6398_v24, 1  ;;  %v511_v4 = vld [vmem:[#allocation2 + $0x5c] sm:$0x1] }
  0x61   : > { %v640_v33 = vshrl.u32 %v403_v23, 16  ;;  %v643_v34 = vshll.u32 %v403_v23, 16  ;;  %v6424_v36 = vld [vmem:[%s7799_s1 + $0x130] sm:$0xff]   ;;  %v634_v37 = vrot.slane %v632_v28, 7  ;;  %6004 = vmatprep.subr.bf16.mxu0 %v6421_v32  ;;  %v6436_v5 = vld [vmem:[%s7799_s1 + $0x178] sm:$0xff]   ;;  %v512_v8 = vsel %vm6732_vm4, 0, %v511_v4 }
  0x62   : > { %v1361_v0 = vsel %vm1301_vm5, %v1356_v53, %v1360_v47  ;;  %6005 = vmatpush3.bf16.msra.mxu0 %v6424_v36  ;;  %v908_v53 = vld [vmem:[#allocation2 + $0x50] sm:$0x1]  ;;  %v1711_v58 = vsel %vm1702_vm10, %v1709_v31, %v1710_v35  ;;  %v283_v60 = vld [vmem:[%s6756_s10 + $0x34] sm:$0xf]  ;;  %513 = vst [vmem:[#allocation2 + $0x5c] sm:$0x1] %v512_v8 }
  0x63   : > { %4168 = vmatprep.mubr.bf16.mxu0 %v1361_v0  ;;  %4298 = vmatmul.mubr.bf16.vlgmr.msra.gmra.mrb[16].mxu1 %v1705_v54  ;;  %v642_v40 = vrot.slane %v640_v33, 7  ;;  %v638_v47 = vrot.slane %v634_v37, 4  ;;  %v6404_v54 = vld [vmem:[#allocation2 + $0x30] sm:$0xff]   ;;  %v330_v1 = vmul.bf16 %v6773_v41, %v283_v60  ;;  %v6405_v12 = vld [vmem:[#allocation2 + $0x24] sm:$0xfe]   ;;  %v6437_v14 = vld [vmem:[%s7799_s1 + $0x138] sm:$0xff]  }
  0x64   : > { %4169 = vmatmul.mubr.bf16.gmra.mrb[16].mxu0 %v6375_v48  ;;  %6105 = vmatpush3.bf16.msra.mxu1 %v6382_v43  ;;  %v6383_v39 = vld [vmem:[#allocation2 + $0x3c] sm:$0xff]   ;;  %v6384_v42 = vld [vmem:[#allocation2 + $0x44] ss:$0 sps:$4 sm:$0x11]   ;;  %v637_v43 = vor.u32 %v635_v30, %v634_v37  ;;  %v282_v59 = vld [vmem:[%s6756_s10 + $0x30] sm:$0xf] }
  0x65   : > { %4305 = vmatprep.mubr.bf16.mxu1 %v6388_v51  ;;  %6106 = vmatprep.subr.bf16.mxu1 %v6396_v52  ;;  %v1363_v45 = vshrl.u32 %v6383_v39, 16  ;;  %v1365_v46 = vshll.u32 %v6383_v39, 16  ;;  %v645_v48 = vor.u32 %v643_v34, %v642_v40  ;;  %v904_v49 = vld [vmem:[#allocation2 + $0x48] sm:$0xf]  ;;  %v1370_v50 = vshll.u32 %v6384_v42, 16  ;;  %v6385_v56 = vld [vmem:[#allocation2 + $0x3c] sm:$0xff]  }
  0x66   : > { %v647_v51 = vrot.slane %v642_v40, 4  ;;  %v905_v52 = vsel %vm6809_vm8, %v637_v43, %v904_v49  ;;  %v329_v0 = vmul.bf16 %v6773_v41, %v282_v59  ;;  %v455_v3 = vld [vmem:[#allocation2 + $0x54] sm:$0x1]  ;;  %v373_v10 = vadd.bf16 %v6778_v44, %v330_v1  ;;  %6006 = vmatprep.subr.bf16.mxu0 %v6436_v5  ;;  %v6406_v13 = vld [vmem:[#allocation2 + $0x2c] ss:$0 sps:$4 sm:$0x11]  }
  0x67   : > { %v1367_v55 = vrot.slane %v1365_v46, 1  ;;  %v646_v57 = vsel %vm6816_vm9, %v638_v47, %v645_v48  ;;  %906 = vst [vmem:[#allocation2 + $0x48] sm:$0xf] %v905_v52  ;;  %v1372_v62 = vrot.slane %v1370_v50, 1  ;;  %v284_v19 = vld [vmem:[%s6756_s10 + $0x38] sm:$0xf]  ;;  %6007 = vmatpush3.bf16.msra.mxu0 %v6437_v14 }
  0x68   : > { %6107 = vmatpush3.bf16.msra.mxu1 %v6400_v7  ;;  %907 = vst [vmem:[#allocation2 + $0x4c] sm:$0xf] %v646_v57  ;;  %v909_v63 = vsel %vm6724_vm3, %v647_v51, %v908_v53  ;;  %v456_v7 = vsel %vm6724_vm3, 0, %v455_v3  ;;  %v372_v9 = vadd.bf16 %v6778_v44, %v329_v0  ;;  %v285_v20 = vld [vmem:[%s6756_s10 + $0x3c] sm:$0xf]  ;;  %v1713_v22 = vrot.slane %v6406_v13, 1 }
  0x69   : > { %6108 = vmatprep.subr.bf16.mxu1 %v6413_v17  ;;  %v1368_v6 = vor.u32 %v1367_v55, %v1363_v45  ;;  %910 = vst [vmem:[#allocation2 + $0x50] sm:$0x1] %v909_v63  ;;  %457 = vst [vmem:[#allocation2 + $0x54] sm:$0x1] %v456_v7  ;;  %v405_v17 = vmax.bf16 %v6633_v2, %v373_v10  ;;  %v331_v23 = vmul.bf16 %v6773_v41, %v284_v19  ;;  %v458_v33 = vld [vmem:[#allocation2 + $0x60] sm:$0x1] }
  0x6a   : > { %v404_v16 = vmax.bf16 %v6633_v2, %v372_v9  ;;  %v332_v24 = vmul.bf16 %v6773_v41, %v285_v20  ;;  %v514_v34 = vld [vmem:[#allocation2 + $0x68] sm:$0x1]  ;;  %v6412_v37 = vld [vmem:[#allocation2 + $0x3c] sm:$0xff]   ;;  %v459_v57 = vsel %vm6724_vm3, 0, %v458_v33 }
  0x6b   : > { %4306 = vmatmul.mubr.bf16.gmra.mrb[20].mxu1 %v1708_v27  ;;  %v1373_v11 = vsel %vm1301_vm5, %v1368_v6, %v1372_v62  ;;  %v657_v30 = vshrl.u32 %v405_v17, 16  ;;  %v374_v31 = vadd.bf16 %v6778_v44, %v331_v23  ;;  %v660_v46 = vshll.u32 %v405_v17, 16  ;;  %v915_v47 = vld [vmem:[#allocation2 + $0x5c] sm:$0x1]  ;;  %460 = vst [vmem:[#allocation2 + $0x60] sm:$0x1] %v459_v57 }
  0x6c   : > { %4313 = vmatprep.mubr.bf16.mxu1 %v6394_v21  ;;  %6109 = vmatpush3.bf16.msra.mxu1 %v6416_v25  ;;  %v1712_v21 = vrot.slane %v6405_v12, 1  ;;  %v649_v25 = vshrl.u32 %v404_v16, 16  ;;  %v652_v27 = vshll.u32 %v404_v16, 16  ;;  %v375_v32 = vadd.bf16 %v6778_v44, %v332_v24  ;;  %v6446_v63 = vld [vmem:[%s7799_s1 + $0x1e0] sm:$0xff]  }
  0x6d   : > { %6110 = vmatprep.subr.bf16.mxu1 %v6429_v38  ;;  %4176 = vmatprep.mubr.bf16.mxu0 %v1373_v11  ;;  %v659_v42 = vrot.slane %v657_v30, 7  ;;  %v406_v48 = vmax.bf16 %v6633_v2, %v374_v31  ;;  %v7137_v5 = vld [vmem:[%s7799_s1 + $0x200] sm:$0xff]   ;;  %v6414_v11 = vld [vmem:[#allocation2 + $0x30] sm:$0xfe]  }
  0x6e   : > { %4177 = vmatmul.mubr.bf16.gmra.mrb[20].mxu0 %v6385_v56  ;;  %v1714_v36 = vsel %vm1702_vm10, %v1712_v21, %v1713_v22  ;;  %v651_v40 = vrot.slane %v649_v25, 7  ;;  %v407_v49 = vmax.bf16 %v6633_v2, %v375_v32  ;;  %6240 = vmatprep.subr.bf16.mxu0 %v7137_v5  ;;  %v6415_v12 = vld [vmem:[#allocation2 + $0x38] ss:$0 sps:$4 sm:$0x11]   ;;  %v1715_v17 = vrot.slane %v6414_v11, 1 }
  0x6f   : > { %v6391_v28 = vld [vmem:[#allocation2 + $0x48] sm:$0xff]   ;;  %v664_v53 = vrot.slane %v659_v42, 4  ;;  %v662_v56 = vor.u32 %v660_v46, %v659_v42  ;;  %v666_v62 = vshrl.u32 %v406_v48, 16  ;;  %v669_v1 = vshll.u32 %v406_v48, 16  ;;  %v286_v20 = vld [vmem:[%s6756_s10 + $0x40] sm:$0xf] }
  0x70   : > { %6111 = vmatpush3.bf16.msra.mxu1 %v6432_v61  ;;  %v6392_v35 = vld [vmem:[#allocation2 + $0x50] ss:$0 sps:$4 sm:$0x11]   ;;  %v1375_v38 = vshrl.u32 %v6391_v28, 16  ;;  %v1377_v39 = vshll.u32 %v6391_v28, 16  ;;  %v654_v51 = vor.u32 %v652_v27, %v651_v40  ;;  %v655_v52 = vrot.slane %v651_v40, 4 }
  0x71   : > { %v911_v43 = vld [vmem:[#allocation2 + $0x54] sm:$0xf]  ;;  %v1382_v45 = vshll.u32 %v6392_v35, 16  ;;  %v6393_v55 = vld [vmem:[#allocation2 + $0x48] sm:$0xff]   ;;  %v916_v61 = vsel %vm6724_vm3, %v664_v53, %v915_v47  ;;  %v674_v3 = vshrl.u32 %v407_v49, 16  ;;  %v677_v4 = vshll.u32 %v407_v49, 16  ;;  %6112 = vmatprep.subr.bf16.mxu1 %v6446_v63 }
  0x72   : > { %v1379_v50 = vrot.slane %v1377_v39, 1  ;;  %v912_v60 = vsel %vm6809_vm8, %v654_v51, %v911_v43  ;;  %v663_v0 = vsel %vm6816_vm9, %v655_v52, %v662_v56  ;;  %917 = vst [vmem:[#allocation2 + $0x5c] sm:$0x1] %v916_v61  ;;  %v668_v7 = vrot.slane %v666_v62, 7  ;;  %v6420_v16 = vld [vmem:[#allocation2 + $0x48] sm:$0xff]   ;;  %v6450_v47 = vld [vmem:[%s7799_s1 + $0x1a0] sm:$0xff]  }
  0x73   : > { %4314 = vmatmul.mubr.bf16.gmra.mrb[24].mxu1 %v1711_v58  ;;  %v515_v58 = vsel %vm6732_vm4, 0, %v514_v34  ;;  %913 = vst [vmem:[#allocation2 + $0x54] sm:$0xf] %v912_v60  ;;  %914 = vst [vmem:[#allocation2 + $0x58] sm:$0xf] %v663_v0  ;;  %v676_v8 = vrot.slane %v674_v3, 7  ;;  %v333_v25 = vmul.bf16 %v6773_v41, %v286_v20 }
  0x74   : > { %4321 = vmatprep.mubr.bf16.mxu1 %v6404_v54  ;;  %v1384_v54 = vrot.slane %v1382_v45, 1  ;;  %v1380_v59 = vor.u32 %v1379_v50, %v1375_v38  ;;  %516 = vst [vmem:[#allocation2 + $0x68] sm:$0x1] %v515_v58  ;;  %v671_v9 = vor.u32 %v669_v1, %v668_v7  ;;  %v672_v10 = vrot.slane %v668_v7, 4  ;;  %v287_v21 = vld [vmem:[%s6756_s10 + $0x44] sm:$0xf]  ;;  %6113 = vmatpush3.bf16.msra.mxu1 %v6450_v47 }
  0x75   : > { %v679_v13 = vor.u32 %v677_v4, %v676_v8  ;;  %v681_v14 = vrot.slane %v676_v8, 4  ;;  %v1716_v19 = vrot.slane %v6415_v12, 1  ;;  %v918_v23 = vld [vmem:[#allocation2 + $0x60] sm:$0xf]  ;;  %v334_v27 = vmul.bf16 %v6773_v41, %v287_v21  ;;  %v461_v28 = vld [vmem:[#allocation2 + $0x6c] sm:$0x1] }
  0x76   : > { %v1385_v6 = vsel %vm1301_vm5, %v1380_v59, %v1384_v54  ;;  %v919_v30 = vsel %vm6809_vm8, %v671_v9, %v918_v23  ;;  %v376_v35 = vadd.bf16 %v6778_v44, %v333_v25  ;;  %v517_v38 = vld [vmem:[#allocation2 + $0x74] sm:$0x1]  ;;  %v6422_v8 = vld [vmem:[#allocation2 + $0x3c] sm:$0xfe]   ;;  %v289_v23 = vld [vmem:[%s6756_s10 + $0x4c] sm:$0xf] }
  0x77   : > { %4184 = vmatprep.mubr.bf16.mxu0 %v1385_v6  ;;  %v680_v22 = vsel %vm6816_vm9, %v672_v10, %v679_v13  ;;  %v1717_v32 = vsel %vm1702_vm10, %v1715_v17, %v1716_v19  ;;  %920 = vst [vmem:[#allocation2 + $0x60] sm:$0xf] %v919_v30  ;;  %v518_v46 = vsel %vm6732_vm4, 0, %v517_v38  ;;  %v6423_v12 = vld [vmem:[#allocation2 + $0x44] ss:$0 sps:$4 sm:$0x11]   ;;  %v336_v25 = vmul.bf16 %v6773_v41, %v289_v23 }
  0x78   : > { %4185 = vmatmul.mubr.bf16.gmra.mrb[24].mxu0 %v6393_v55  ;;  %921 = vst [vmem:[#allocation2 + $0x64] sm:$0xf] %v680_v22  ;;  %v408_v43 = vmax.bf16 %v6633_v2, %v376_v35  ;;  %519 = vst [vmem:[#allocation2 + $0x74] sm:$0x1] %v518_v46  ;;  %v1718_v17 = vrot.slane %v6422_v8, 1  ;;  %v1719_v21 = vrot.slane %v6423_v12, 1 }
  0x79   : > { %v6402_v34 = vld [vmem:[#allocation2 + $0x5c] ss:$0 sps:$4 sm:$0x11]   ;;  %v288_v22 = vld [vmem:[%s6756_s10 + $0x48] sm:$0xf]  ;;  %v379_v35 = vadd.bf16 %v6778_v44, %v336_v25 }
  0x7a   : > { %v6401_v33 = vld [vmem:[#allocation2 + $0x54] sm:$0xff]   ;;  %v1394_v42 = vshll.u32 %v6402_v34, 16  ;;  %v683_v50 = vshrl.u32 %v408_v43, 16  ;;  %v686_v51 = vshll.u32 %v408_v43, 16  ;;  %v467_v8 = vld [vmem:[#allocation2 + $0x84] sm:$0x1] }
  0x7b   : > { %4322 = vmatmul.mubr.bf16.gmra.mrb[28].mxu1 %v1714_v36  ;;  %v922_v24 = vld [vmem:[#allocation2 + $0x68] sm:$0x1]  ;;  %v377_v36 = vadd.bf16 %v6778_v44, %v334_v27  ;;  %v1387_v39 = vshrl.u32 %v6401_v33, 16  ;;  %v1389_v40 = vshll.u32 %v6401_v33, 16  ;;  %v6403_v55 = vld [vmem:[#allocation2 + $0x54] sm:$0xff]   ;;  %v411_v38 = vmax.bf16 %v6633_v2, %v379_v35 }
  0x7c   : > { %4329 = vmatprep.mubr.bf16.mxu1 %v6412_v37  ;;  %v923_v31 = vsel %vm6724_vm3, %v681_v14, %v922_v24  ;;  %v462_v37 = vsel %vm6724_vm3, 0, %v461_v28  ;;  %v1396_v49 = vrot.slane %v1394_v42, 1  ;;  %v685_v56 = vrot.slane %v683_v50, 7  ;;  %v6428_v13 = vld [vmem:[#allocation2 + $0x54] sm:$0xff]   ;;  %v520_v28 = vld [vmem:[#allocation2 + $0x80] sm:$0x1] }
  0x7d   : > { %924 = vst [vmem:[#allocation2 + $0x68] sm:$0x1] %v923_v31  ;;  %463 = vst [vmem:[#allocation2 + $0x6c] sm:$0x1] %v462_v37  ;;  %v409_v45 = vmax.bf16 %v6633_v2, %v377_v36  ;;  %v1391_v48 = vrot.slane %v1389_v40, 1  ;;  %v335_v24 = vmul.bf16 %v6773_v41, %v288_v22  ;;  %v1720_v31 = vsel %vm1702_vm10, %v1718_v17, %v1719_v21 }
  0x7e   : > { %v688_v61 = vor.u32 %v686_v51, %v685_v56  ;;  %v689_v0 = vrot.slane %v685_v56, 4  ;;  %v464_v27 = vld [vmem:[#allocation2 + $0x78] sm:$0x1]  ;;  %v521_v33 = vsel %vm6732_vm4, 0, %v520_v28  ;;  %v6430_v36 = vld [vmem:[#allocation2 + $0x48] sm:$0xfe]  }
  0x7f   : > { %v691_v52 = vshrl.u32 %v409_v45, 16  ;;  %v694_v53 = vshll.u32 %v409_v45, 16  ;;  %v1392_v54 = vor.u32 %v1391_v48, %v1387_v39  ;;  %v6407_v57 = vld [vmem:[#allocation2 + $0x60] sm:$0xff]   ;;  %v929_v11 = vld [vmem:[#allocation2 + $0x74] sm:$0x1]  ;;  %v378_v34 = vadd.bf16 %v6778_v44, %v335_v24 }
  0x80   : > { %v1399_v62 = vshrl.u32 %v6407_v57, 16  ;;  %v1401_v63 = vshll.u32 %v6407_v57, 16  ;;  %v6409_v20 = vld [vmem:[#allocation2 + $0x60] sm:$0xff]   ;;  %522 = vst [vmem:[#allocation2 + $0x80] sm:$0x1] %v521_v33  ;;  %v1721_v42 = vrot.slane %v6430_v36, 1 }
  0x81   : > { %v693_v58 = vrot.slane %v691_v52, 7  ;;  %v1397_v59 = vsel %vm1301_vm5, %v1392_v54, %v1396_v49  ;;  %v410_v37 = vmax.bf16 %v6633_v2, %v378_v34  ;;  %v290_v48 = vld [vmem:[%s6756_s10 + $0x50] sm:$0xf]  ;;  %v708_v50 = vshrl.u32 %v411_v38, 16 }
  0x82   : > { %4192 = vmatprep.mubr.bf16.mxu0 %v1397_v59  ;;  %v1403_v9 = vrot.slane %v1401_v63, 1  ;;  %v711_v51 = vshll.u32 %v411_v38, 16  ;;  %v6431_v52 = vld [vmem:[#allocation2 + $0x50] ss:$0 sps:$4 sm:$0x11]   ;;  %v6438_v63 = vld [vmem:[#allocation2 + $0x60] sm:$0xff]  }
  0x83   : > { %4330 = vmatmul.mubr.bf16.gmra.mrb[32].mxu1 %v1717_v32  ;;  %v696_v1 = vor.u32 %v694_v53, %v693_v58  ;;  %4193 = vmatmul.mubr.bf16.gmra.mrb[28].mxu0 %v6403_v55  ;;  %v698_v6 = vrot.slane %v693_v58, 4  ;;  %v465_v32 = vsel %vm6724_vm3, 0, %v464_v27  ;;  %v700_v46 = vshrl.u32 %v410_v37, 16  ;;  %v7209_v27 = vld [vmem:[#allocation2 + $0x18] sm:$0xff]  }
  0x84   : > { %4337 = vmatprep.mubr.bf16.mxu1 %v6420_v16  ;;  %v6408_v60 = vld [vmem:[#allocation2 + $0x68] ss:$0 sps:$4 sm:$0x11]   ;;  %v925_v3 = vld [vmem:[#allocation2 + $0x6c] sm:$0xf]  ;;  %v1404_v19 = vor.u32 %v1403_v9, %v1399_v62  ;;  %v703_v47 = vshll.u32 %v410_v37, 16  ;;  %v337_v53 = vmul.bf16 %v6773_v41, %v290_v48 }
  0x85   : > { %v1406_v4 = vshll.u32 %v6408_v60, 16  ;;  %v926_v7 = vsel %vm6809_vm8, %v688_v61, %v925_v3  ;;  %v697_v10 = vsel %vm6816_vm9, %v689_v0, %v696_v1  ;;  %v930_v16 = vsel %vm6724_vm3, %v698_v6, %v929_v11  ;;  %466 = vst [vmem:[#allocation2 + $0x78] sm:$0x1] %v465_v32  ;;  %v291_v61 = vld [vmem:[%s6756_s10 + $0x54] sm:$0xf]  ;;  %v7188_v0 = vld [vmem:[#allocation2 + $0xc] sm:$0xff]  }
  0x86   : > { %927 = vst [vmem:[#allocation2 + $0x6c] sm:$0xf] %v926_v7  ;;  %928 = vst [vmem:[#allocation2 + $0x70] sm:$0xf] %v697_v10  ;;  %v702_v55 = vrot.slane %v700_v46, 7  ;;  %v710_v59 = vrot.slane %v708_v50, 7  ;;  %v380_v62 = vadd.bf16 %v6778_v44, %v337_v53  ;;  %v338_v7 = vmul.bf16 %v6773_v41, %v291_v61 }
  0x87   : > { %v1408_v14 = vrot.slane %v1406_v4, 1  ;;  %931 = vst [vmem:[#allocation2 + $0x74] sm:$0x1] %v930_v16  ;;  %v936_v57 = vld [vmem:[#allocation2 + $0x80] sm:$0x1]  ;;  %v1722_v60 = vrot.slane %v6431_v52, 1 }
  0x88   : > { %v705_v4 = vor.u32 %v703_v47, %v702_v55  ;;  %v706_v6 = vrot.slane %v702_v55, 4  ;;  %v523_v9 = vld [vmem:[#allocation2 + $0x8c] sm:$0x1]  ;;  %v713_v10 = vor.u32 %v711_v51, %v710_v59  ;;  %v715_v11 = vrot.slane %v710_v59, 4  ;;  %v7217_v47 = vld [vmem:[#allocation2 + $0x24] sm:$0xff]  }
  0x89   : > { %v1409_v30 = vsel %vm1301_vm5, %v1404_v19, %v1408_v14  ;;  %v1723_v12 = vsel %vm1702_vm10, %v1721_v42, %v1722_v60  ;;  %v6463_v14 = vld [vmem:[%s7799_s1 + $0x1e8] sm:$0xff]   ;;  %v381_v19 = vadd.bf16 %v6778_v44, %v338_v7  ;;  %v524_v23 = vsel %vm6732_vm4, 0, %v523_v9  ;;  %v6440_v35 = vld [vmem:[#allocation2 + $0x5c] ss:$0 sps:$4 sm:$0x11]  }
  0x8a   : > { %4200 = vmatprep.mubr.bf16.mxu0 %v1409_v30  ;;  %v714_v21 = vsel %vm6816_vm9, %v706_v6, %v713_v10  ;;  %v937_v22 = vsel %vm6724_vm3, %v715_v11, %v936_v57  ;;  %525 = vst [vmem:[#allocation2 + $0x8c] sm:$0x1] %v524_v23  ;;  %6114 = vmatprep.subr.bf16.mxu1 %v6463_v14  ;;  %v6439_v30 = vld [vmem:[#allocation2 + $0x54] sm:$0xfe]   ;;  %v2118_v42 = vshll.u32 %v7209_v27, 16  ;;  %v2116_v46 = vshrl.u32 %v7209_v27, 16 }
  0x8b   : > { %4338 = vmatmul.mubr.bf16.gmra.mrb[36].mxu1 %v1720_v31  ;;  %4201 = vmatmul.mubr.bf16.gmra.mrb[32].mxu0 %v6409_v20  ;;  %v468_v20 = vsel %vm6724_vm3, 0, %v467_v8  ;;  %935 = vst [vmem:[#allocation2 + $0x7c] sm:$0xf] %v714_v21  ;;  %938 = vst [vmem:[#allocation2 + $0x80] sm:$0x1] %v937_v22  ;;  %v413_v25 = vmax.bf16 %v6633_v2, %v381_v19  ;;  %v2106_v31 = vshll.u32 %v7188_v0, 16 }
  0x8c   : > { %4345 = vmatprep.mubr.bf16.mxu1 %v6428_v13  ;;  %v932_v56 = vld [vmem:[#allocation2 + $0x78] sm:$0xf]  ;;  %v412_v13 = vmax.bf16 %v6633_v2, %v380_v62  ;;  %469 = vst [vmem:[#allocation2 + $0x84] sm:$0x1] %v468_v20  ;;  %v1724_v36 = vrot.slane %v6439_v30, 1  ;;  %v7223_v57 = vrot.slane %v2118_v42, 1 }
  0x8d   : > { %v6417_v39 = vld [vmem:[#allocation2 + $0x6c] sm:$0xff]   ;;  %v933_v17 = vsel %vm6809_vm8, %v705_v4, %v932_v56  ;;  %v725_v33 = vshrl.u32 %v413_v25, 16  ;;  %v728_v34 = vshll.u32 %v413_v25, 16  ;;  %v6442_v62 = vld [vmem:[#allocation2 + $0x14] ss:$0 sps:$4 sm:$0x11]  }
  0x8e   : > { %v6418_v40 = vld [vmem:[#allocation2 + $0x74] ss:$0 sps:$4 sm:$0x11]   ;;  %v1411_v43 = vshrl.u32 %v6417_v39, 16  ;;  %v1413_v45 = vshll.u32 %v6417_v39, 16  ;;  %v6419_v3 = vld [vmem:[#allocation2 + $0x6c] sm:$0xff]  }
  0x8f   : > { %v1418_v49 = vshll.u32 %v6418_v40, 16  ;;  %934 = vst [vmem:[#allocation2 + $0x78] sm:$0xf] %v933_v17  ;;  %v717_v24 = vshrl.u32 %v412_v13, 16  ;;  %v720_v32 = vshll.u32 %v412_v13, 16  ;;  %v6445_v37 = vld [vmem:[#allocation2 + $0x6c] sm:$0xff]  }
  0x90   : > { %v1415_v54 = vrot.slane %v1413_v45, 1  ;;  %v727_v39 = vrot.slane %v725_v33, 7  ;;  %v1725_v40 = vrot.slane %v6440_v35, 1  ;;  %v7214_v45 = vrot.slane %v2106_v31, 1  ;;  %v6441_v53 = vld [vmem:[#allocation2 + $0xc] sm:$0xfe]  }
  0x91   : > { %v1420_v58 = vrot.slane %v1418_v49, 1  ;;  %v719_v28 = vrot.slane %v717_v24, 7  ;;  %v943_v61 = vld [vmem:[#allocation2 + $0x8c] sm:$0x1]  ;;  %v2130_v4 = vshll.u32 %v7217_v47, 16  ;;  %v2503_v11 = vrot.slane %v6441_v53, 1 }
  0x92   : > { %v1416_v1 = vor.u32 %v1415_v54, %v1411_v43  ;;  %v2104_v43 = vshrl.u32 %v7188_v0, 16  ;;  %v730_v49 = vor.u32 %v728_v34, %v727_v39  ;;  %v732_v50 = vrot.slane %v727_v39, 4  ;;  %v6426_v55 = vld [vmem:[#allocation2 + $0x80] ss:$0 sps:$4 sm:$0x11]   ;;  %v7234_v20 = vld [vmem:[#allocation2 + $0x30] sm:$0xff]  }
  0x93   : > { %4346 = vmatmul.mubr.bf16.gmra.mrb[40].mxu1 %v1723_v12  ;;  %v723_v38 = vrot.slane %v719_v28, 4  ;;  %v722_v48 = vor.u32 %v720_v32, %v719_v28  ;;  %v1726_v51 = vsel %vm1702_vm10, %v1724_v36, %v1725_v40  ;;  %v2128_v54 = vshrl.u32 %v7217_v47, 16  ;;  %v939_v60 = vld [vmem:[#allocation2 + $0x84] sm:$0xf]  ;;  %v6467_v12 = vld [vmem:[%s7799_s1 + $0x1a8] sm:$0xff]   ;;  %v6480_v27 = vld [vmem:[%s7799_s1 + $0x1f0] sm:$0xff]  }
  0x94   : > { %v1421_v16 = vsel %vm1301_vm5, %v1416_v1, %v1420_v58  ;;  %4353 = vmatprep.mubr.bf16.mxu1 %v6438_v63  ;;  %v1430_v63 = vshll.u32 %v6426_v55, 16  ;;  %v6444_v7 = vld [vmem:[#allocation2 + $0x14] ss:$0 sps:$4 sm:$0x11]   ;;  %v2504_v14 = vrot.slane %v6442_v62, 1  ;;  %6115 = vmatpush3.bf16.msra.mxu1 %v6467_v12  ;;  %v7236_v31 = vrot.slane %v2130_v4, 1 }
  0x95   : > { %4208 = vmatprep.mubr.bf16.mxu0 %v1421_v16  ;;  %v731_v56 = vsel %vm6816_vm9, %v723_v38, %v730_v49  ;;  %v940_v1 = vsel %vm6809_vm8, %v722_v48, %v939_v60  ;;  %v2111_v16 = vshll.u32 %v6444_v7, 16  ;;  %v6448_v17 = vld [vmem:[#allocation2 + $0x60] sm:$0xfe]   ;;  %v6449_v19 = vld [vmem:[#allocation2 + $0x68] ss:$0 sps:$4 sm:$0x11]   ;;  %6116 = vmatprep.subr.bf16.mxu1 %v6480_v27 }
  0x96   : > { %4209 = vmatmul.mubr.bf16.gmra.mrb[36].mxu0 %v6419_v3  ;;  %v6425_v52 = vld [vmem:[#allocation2 + $0x78] sm:$0xff]   ;;  %942 = vst [vmem:[#allocation2 + $0x88] sm:$0xf] %v731_v56  ;;  %v944_v3 = vsel %vm6724_vm3, %v732_v50, %v943_v61  ;;  %941 = vst [vmem:[#allocation2 + $0x84] sm:$0xf] %v940_v1  ;;  %v1432_v8 = vrot.slane %v1430_v63, 1 }
  0x97   : > { %v1423_v58 = vshrl.u32 %v6425_v52, 16  ;;  %v1425_v59 = vshll.u32 %v6425_v52, 16  ;;  %945 = vst [vmem:[#allocation2 + $0x8c] sm:$0x1] %v944_v3  ;;  %v6427_v9 = vld [vmem:[#allocation2 + $0x78] sm:$0xff]   ;;  %v1727_v22 = vrot.slane %v6448_v17, 1  ;;  %v2505_v52 = vsel %vm1702_vm10, %v2503_v11, %v2504_v14 }
  0x98   : > { %v6455_v24 = vld [vmem:[#allocation2 + $0x78] sm:$0xff]   ;;  %v1728_v30 = vrot.slane %v6449_v19, 1  ;;  %v2142_v33 = vshll.u32 %v7234_v20, 16  ;;  %v2113_v35 = vrot.slane %v2111_v16, 1  ;;  %v6456_v55 = vld [vmem:[#allocation2 + $0x6c] sm:$0xfe]   ;;  %v2121_v19 = vor.u32 %v7223_v57, %v2116_v46 }
  0x99   : > { %v1427_v6 = vrot.slane %v1425_v59, 1  ;;  %v6452_v40 = vld [vmem:[#allocation2 + $0x20] ss:$0 sps:$4 sm:$0x11]   ;;  %v6451_v48 = vld [vmem:[#allocation2 + $0x18] sm:$0xfe]   ;;  %v2109_v59 = vor.u32 %v7214_v45, %v2104_v43 }
  0x9a   : > { %v1729_v36 = vsel %vm1702_vm10, %v1727_v22, %v1728_v30  ;;  %v6454_v49 = vld [vmem:[#allocation2 + $0x20] ss:$0 sps:$4 sm:$0x11]   ;;  %v7241_v50 = vrot.slane %v2142_v33, 1  ;;  %v2506_v60 = vrot.slane %v6451_v48, 1  ;;  %v2507_v61 = vrot.slane %v6452_v40, 1 }
  0x9b   : > { %4354 = vmatmul.mubr.bf16.gmra.mrb[44].mxu1 %v1726_v51  ;;  %v1428_v10 = vor.u32 %v1427_v6, %v1423_v58  ;;  %v2123_v53 = vshll.u32 %v6454_v49, 16  ;;  %v6457_v56 = vld [vmem:[#allocation2 + $0x74] ss:$0 sps:$4 sm:$0x11]   ;;  %v1730_v62 = vrot.slane %v6456_v55, 1  ;;  %v7248_v4 = vld [vmem:[#allocation2 + $0x3c] sm:$0xff]   ;;  %v2114_v45 = vsel %vm1301_vm5, %v2109_v59, %v2113_v35 }
  0x9c   : > { %4361 = vmatprep.mubr.bf16.mxu1 %v6445_v37  ;;  %v2140_v37 = vshrl.u32 %v7234_v20, 16  ;;  %v1731_v63 = vrot.slane %v6457_v56, 1  ;;  %v6458_v1 = vld [vmem:[#allocation2 + $0x24] sm:$0xfe]   ;;  %v2152_v43 = vshrl.u32 %v7248_v4, 16  ;;  %v6472_v16 = vld [vmem:[#allocation2 + $0x90] sm:$0xff]   ;;  %v2133_v40 = vor.u32 %v7236_v31, %v2128_v54 }
  0x9d   : > { %v1433_v13 = vsel %vm1301_vm5, %v1428_v10, %v1432_v8  ;;  %v6433_v21 = vld [vmem:[#allocation2 + $0x84] sm:$0xff]   ;;  %v6459_v3 = vld [vmem:[#allocation2 + $0x2c] ss:$0 sps:$4 sm:$0x11]   ;;  %v2125_v6 = vrot.slane %v2123_v53, 1  ;;  %v2509_v8 = vrot.slane %v6458_v1, 1  ;;  %v2508_v10 = vsel %vm1702_vm10, %v2506_v60, %v2507_v61 }
  0x9e   : > { %4216 = vmatprep.mubr.bf16.mxu0 %v1433_v13  ;;  %v6434_v23 = vld [vmem:[#allocation2 + $0x8c] ss:$0 sps:$4 sm:$0x11]   ;;  %v1435_v25 = vshrl.u32 %v6433_v21, 16  ;;  %v1437_v28 = vshll.u32 %v6433_v21, 16  ;;  %v6435_v39 = vld [vmem:[#allocation2 + $0x84] sm:$0xff]   ;;  %v1732_v7 = vsel %vm1702_vm10, %v1730_v62, %v1731_v63  ;;  %v2145_v63 = vor.u32 %v7241_v50, %v2140_v37 }
  0x9f   : > { %4217 = vmatmul.mubr.bf16.gmra.mrb[40].mxu0 %v6427_v9  ;;  %v1442_v32 = vshll.u32 %v6434_v23, 16  ;;  %v6462_v58 = vld [vmem:[#allocation2 + $0x84] sm:$0xff]   ;;  %v6461_v9 = vld [vmem:[#allocation2 + $0x2c] ss:$0 sps:$4 sm:$0x11]   ;;  %v2510_v11 = vrot.slane %v6459_v3, 1  ;;  %v2126_v30 = vsel %vm1301_vm5, %v2121_v19, %v2125_v6 }
  0xa0   : > { %v1439_v34 = vrot.slane %v1437_v28, 1  ;;  %v6464_v0 = vld [vmem:[%s7799_s1 + $0x208] sm:$0xff]   ;;  %v2135_v12 = vshll.u32 %v6461_v9, 16  ;;  %v6465_v13 = vld [vmem:[#allocation2 + $0x78] sm:$0xfe]   ;;  %v2154_v17 = vshll.u32 %v7248_v4, 16 }
  0xa1   : > { %v1444_v38 = vrot.slane %v1442_v32, 1  ;;  %v6466_v14 = vld [vmem:[#allocation2 + $0x80] ss:$0 sps:$4 sm:$0x11]   ;;  %v1733_v21 = vrot.slane %v6465_v13, 1  ;;  %v2511_v46 = vsel %vm1702_vm10, %v2509_v8, %v2510_v11  ;;  %v7277_v48 = vld [vmem:[#allocation2 + $0x48] sm:$0xff]  }
  0xa2   : > { %v1440_v42 = vor.u32 %v1439_v34, %v1435_v25  ;;  %v1734_v22 = vrot.slane %v6466_v14, 1  ;;  %v2137_v23 = vrot.slane %v2135_v12, 1  ;;  %v6469_v25 = vld [vmem:[#allocation2 + $0x38] ss:$0 sps:$4 sm:$0x11]   ;;  %v6481_v34 = vld [vmem:[%s7799_s1 + $0x210] sm:$0xff]  }
  0xa3   : > { %4362 = vmatmul.mubr.bf16.gmra.mrb[48].mxu1 %v1729_v36  ;;  %v6471_v33 = vld [vmem:[#allocation2 + $0x38] ss:$0 sps:$4 sm:$0x11]   ;;  %v6473_v35 = vld [vmem:[#allocation2 + $0x84] sm:$0xfe]   ;;  %v2164_v59 = vshrl.u32 %v7277_v48, 16 }
  0xa4   : > { %4369 = vmatprep.mubr.bf16.mxu1 %v6455_v24  ;;  %v1445_v51 = vsel %vm1301_vm5, %v1440_v42, %v1444_v38  ;;  %v6468_v24 = vld [vmem:[#allocation2 + $0x30] sm:$0xfe]   ;;  %v1735_v28 = vsel %vm1702_vm10, %v1733_v21, %v1734_v22  ;;  %v2147_v57 = vshll.u32 %v6471_v33, 16  ;;  %v6474_v36 = vld [vmem:[#allocation2 + $0x8c] ss:$0 sps:$4 sm:$0x11]   ;;  %v2138_v47 = vsel %vm1301_vm5, %v2133_v40, %v2137_v23 }
  0xa5   : > { %4224 = vmatprep.mubr.bf16.mxu0 %v1445_v51  ;;  %v2512_v32 = vrot.slane %v6468_v24, 1  ;;  %v6479_v38 = vld [vmem:[#allocation2 + $0x9c] sm:$0xff]   ;;  %v2513_v42 = vrot.slane %v6469_v25, 1  ;;  %v1736_v49 = vrot.slane %v6473_v35, 1  ;;  %v1737_v51 = vrot.slane %v6474_v36, 1  ;;  %v6496_v24 = vld [vmem:[#allocation2 + $0xb4] sm:$0xff]  }
  0xa6   : > { %v2149_v53 = vrot.slane %v2147_v57, 1  ;;  %v6476_v55 = vld [vmem:[#allocation2 + $0x44] ss:$0 sps:$4 sm:$0x11]   ;;  %v2166_v31 = vshll.u32 %v7277_v48, 16  ;;  %v6497_v4 = vld [vmem:[%s7799_s1 + $0x1f8] sm:$0xff]  }
  0xa7   : > { %4225 = vmatmul.mubr.bf16.gmra.mrb[44].mxu0 %v6435_v39  ;;  %v6484_v39 = vld [vmem:[%s7799_s1 + $0x1b0] sm:$0xff]   ;;  %v1738_v56 = vsel %vm1702_vm10, %v1736_v49, %v1737_v51  ;;  %v6478_v54 = vld [vmem:[#allocation2 + $0x44] ss:$0 sps:$4 sm:$0x11]   ;;  %v2514_v60 = vsel %vm1702_vm10, %v2512_v32, %v2513_v42  ;;  %v2516_v61 = vrot.slane %v6476_v55, 1  ;;  %v6498_v36 = vld [vmem:[%s7799_s1 + $0x218] sm:$0xff]  }
  0xa8   : > { %4458 = vmatprep.mubr.bf16.mxu0 %v2505_v52  ;;  %v6475_v52 = vld [vmem:[#allocation2 + $0x3c] sm:$0xfe]   ;;  %6117 = vmatpush3.bf16.msra.mxu1 %v6484_v39  ;;  %v2159_v62 = vshll.u32 %v6478_v54, 16  ;;  %v6482_v1 = vld [vmem:[#allocation2 + $0x90] sm:$0xfe]   ;;  %v2168_v6 = vrot.slane %v2166_v31, 1 }
  0xa9   : > { %v6483_v3 = vld [vmem:[#allocation2 + $0x98] ss:$0 sps:$4 sm:$0x11]   ;;  %v6485_v9 = vld [vmem:[#allocation2 + $0x48] sm:$0xfe]   ;;  %6118 = vmatprep.subr.bf16.mxu1 %v6497_v4 }
  0xaa   : > { %v1740_v8 = vrot.slane %v6483_v3, 1  ;;  %v2161_v13 = vrot.slane %v2159_v62, 1  ;;  %v2518_v14 = vrot.slane %v6485_v9, 1  ;;  %v6488_v20 = vld [vmem:[#allocation2 + $0x50] ss:$0 sps:$4 sm:$0x11]  }
  0xab   : > { %4370 = vmatmul.mubr.bf16.gmra.mrb[52].mxu1 %v1732_v7  ;;  %v1739_v7 = vrot.slane %v6482_v1, 1  ;;  %v2171_v50 = vshll.u32 %v6488_v20, 16  ;;  %v6490_v19 = vld [vmem:[#allocation2 + $0x9c] sm:$0xfe]   ;;  %v6499_v40 = vld [vmem:[#allocation2 + $0xa8] sm:$0xfe]  }
  0xac   : > { %4377 = vmatprep.mubr.bf16.mxu1 %v6462_v58  ;;  %v2515_v58 = vrot.slane %v6475_v52, 1  ;;  %v6491_v21 = vld [vmem:[#allocation2 + $0xa4] ss:$0 sps:$4 sm:$0x11]   ;;  %v1742_v25 = vrot.slane %v6490_v19, 1  ;;  %v6501_v48 = vld [vmem:[%s7799_s1 + $0x1b8] sm:$0xff]  }
  0xad   : > { %v1741_v11 = vsel %vm1702_vm10, %v1739_v7, %v1740_v8  ;;  %v2173_v32 = vrot.slane %v2171_v50, 1  ;;  %v6493_v33 = vld [vmem:[#allocation2 + $0x5c] ss:$0 sps:$4 sm:$0x11]   ;;  %v1745_v51 = vrot.slane %v6499_v40, 1  ;;  %6119 = vmatpush3.bf16.msra.mxu1 %v6501_v48 }
  0xae   : > { %v2517_v12 = vsel %vm1702_vm10, %v2515_v58, %v2516_v61  ;;  %v2522_v35 = vrot.slane %v6493_v33, 1  ;;  %v6500_v42 = vld [vmem:[#allocation2 + $0xb0] ss:$0 sps:$4 sm:$0x11]   ;;  %v6502_v55 = vld [vmem:[#allocation2 + $0x60] sm:$0xfe]  }
  0xaf   : > { %4459 = vmatmul.mubr.bf16.vlgmr.msra.gmra.mrb[48].mxu0 %v2114_v45  ;;  %v6489_v45 = vld [vmem:[#allocation2 + $0xa8] sm:$0xff]   ;;  %v1746_v52 = vrot.slane %v6500_v42, 1  ;;  %v300_v62 = vld [vmem:[%s6756_s10 + $0x78] sm:$0xf]  ;;  %v482_v8 = vld [vmem:[#allocation2 + $0xc0] sm:$0x1] }
  0xb0   : > { %6241 = vmatpush3.bf16.msra.mxu0 %v7137_v5  ;;  %4466 = vmatprep.mubr.bf16.mxu0 %v2508_v10  ;;  %v2156_v5 = vrot.slane %v2154_v17, 1  ;;  %v2150_v10 = vsel %vm1301_vm5, %v2145_v63, %v2149_v53  ;;  %v6505_v54 = vld [vmem:[#allocation2 + $0x68] ss:$0 sps:$4 sm:$0x11]   ;;  %v347_v7 = vmul.bf16 %v6773_v41, %v300_v62  ;;  %v6513_v20 = vld [vmem:[#allocation2 + $0x18] sm:$0xff]   ;;  %v6515_v33 = vld [vmem:[%s7799_s1 + $0x220] sm:$0xff]  }
  0xb1   : > { %6242 = vmatprep.subr.bf16.mxu0 %v6464_v0  ;;  %v1747_v58 = vsel %vm1702_vm10, %v1745_v51, %v1746_v52  ;;  %v2195_v3 = vshll.u32 %v6505_v54, 16  ;;  %v6512_v4 = vld [vmem:[#allocation2 + $0x74] ss:$0 sps:$4 sm:$0x11]   ;;  %v6519_v62 = vld [vmem:[#allocation2 + $0x78] sm:$0xff]  }
  0xb2   : > { %v2157_v17 = vor.u32 %v2156_v5, %v2152_v43  ;;  %v2207_v48 = vshll.u32 %v6512_v4, 16  ;;  %v6514_v51 = vld [vmem:[#allocation2 + $0x20] ss:$0 sps:$4 sm:$0x11]   ;;  %v2214_v29 = vshll.u32 %v6519_v62, 16  ;;  %v6530_v4 = vld [vmem:[%s7799_s1 + $0x228] sm:$0xff]  }
  0xb3   : > { %4378 = vmatmul.mubr.bf16.gmra.mrb[56].mxu1 %v1735_v28  ;;  %v1743_v28 = vrot.slane %v6491_v21, 1  ;;  %v6508_v21 = vld [vmem:[#allocation2 + $0xbc] ss:$0 sps:$4 sm:$0x11]  }
  0xb4   : > { %6243 = vmatpush3.bf16.msra.mxu0 %v6464_v0  ;;  %4385 = vmatprep.mubr.bf16.mxu1 %v6472_v16  ;;  %v6486_v0 = vld [vmem:[#allocation2 + $0x50] ss:$0 sps:$4 sm:$0x11]   ;;  %v6494_v16 = vld [vmem:[#allocation2 + $0x54] sm:$0xff]   ;;  %v2162_v27 = vsel %vm1301_vm5, %v2157_v17, %v2161_v13  ;;  %v1749_v40 = vrot.slane %v6508_v21, 1  ;;  %v2209_v54 = vrot.slane %v2207_v48, 1 }
  0xb5   : > { %6244 = vmatprep.subr.bf16.mxu0 %v6481_v34  ;;  %v2519_v37 = vrot.slane %v6486_v0, 1  ;;  %v2178_v22 = vshll.u32 %v6494_v16, 16  ;;  %v2176_v23 = vshrl.u32 %v6494_v16, 16  ;;  %v483_v0 = vsel %vm6724_vm3, 0, %v482_v8  ;;  %v6521_v8 = vld [vmem:[#allocation2 + $0x24] sm:$0xff]  }
  0xb6   : > { %484 = vst [vmem:[#allocation2 + $0xc0] sm:$0x1] %v483_v0  ;;  %v6520_v26 = vld [vmem:[#allocation2 + $0x80] ss:$0 sps:$4 sm:$0x11]  }
  0xb7   : > { %4467 = vmatmul.mubr.bf16.gmra.mrb[52].mxu0 %v2126_v30  ;;  %v6492_v30 = vld [vmem:[#allocation2 + $0x54] sm:$0xfe]   ;;  %v2180_v57 = vrot.slane %v2178_v22, 1  ;;  %v2520_v43 = vsel %vm1702_vm10, %v2518_v14, %v2519_v37  ;;  %v2197_v37 = vrot.slane %v2195_v3, 1  ;;  %v6509_v22 = vld [vmem:[#allocation2 + $0x6c] sm:$0xfe]  }
  0xb8   : > { %4474 = vmatprep.mubr.bf16.mxu0 %v2511_v46  ;;  %6245 = vmatpush3.bf16.msra.mxu0 %v6481_v34  ;;  %v1744_v46 = vsel %vm1702_vm10, %v1742_v25, %v1743_v28  ;;  %v2521_v5 = vrot.slane %v6492_v30, 1  ;;  %v6495_v34 = vld [vmem:[#allocation2 + $0x5c] ss:$0 sps:$4 sm:$0x11]   ;;  %v7317_v14 = vld [vmem:[#allocation2 + $0xb4] sm:$0xfe]  }
  0xb9   : > { %v2183_v39 = vshll.u32 %v6495_v34, 16  ;;  %6246 = vmatprep.subr.bf16.mxu0 %v6498_v36  ;;  %v2181_v63 = vor.u32 %v2180_v57, %v2176_v23  ;;  %v6510_v23 = vld [vmem:[#allocation2 + $0x74] ss:$0 sps:$4 sm:$0x11]   ;;  %v2527_v57 = vrot.slane %v6509_v22, 1  ;;  %v2907_v34 = vshll.u32 %v6513_v20, 16 }
  0xbb   : > { %4386 = vmatmul.mubr.bf16.gmra.mrb[60].mxu1 %v1738_v56  ;;  %v2523_v56 = vsel %vm1702_vm10, %v2521_v5, %v2522_v35  ;;  %v2185_v31 = vrot.slane %v2183_v39, 1 }
  0xbc   : > { %4393 = vmatprep.mubr.bf16.mxu1 %v6479_v38  ;;  %v2169_v38 = vor.u32 %v2168_v6, %v2164_v59  ;;  %6247 = vmatpush3.bf16.msra.mxu0 %v6498_v36  ;;  %v6503_v59 = vld [vmem:[#allocation2 + $0x68] ss:$0 sps:$4 sm:$0x11]   ;;  %v301_v6 = vld [vmem:[%s6756_s10 + $0x7c] sm:$0xf] }
  0xbd   : > { %v2525_v1 = vrot.slane %v6503_v59, 1  ;;  %v348_v9 = vmul.bf16 %v6773_v41, %v301_v6  ;;  %v2186_v16 = vsel %vm1301_vm5, %v2181_v63, %v2185_v31  ;;  %v974_v5 = vld [vmem:[#allocation2 + $0xc0] sm:$0xf]  ;;  %6248 = vmatprep.subr.bf16.mxu0 %v6515_v33  ;;  %v2912_v59 = vshll.u32 %v6514_v51, 16 }
  0xbe   : > { %v2174_v53 = vsel %vm1301_vm5, %v2169_v38, %v2173_v32  ;;  %v1748_v32 = vrot.slane %v7317_v14, 1  ;;  %v2905_v38 = vshrl.u32 %v6513_v20, 16  ;;  %v6518_v31 = vld [vmem:[#allocation2 + $0x80] ss:$0 sps:$4 sm:$0x11]   ;;  %v2212_v6 = vshrl.u32 %v6519_v62, 16 }
  0xbf   : > { %4475 = vmatmul.mubr.bf16.gmra.mrb[56].mxu0 %v2138_v47  ;;  %v6504_v47 = vld [vmem:[#allocation2 + $0x60] sm:$0xff]   ;;  %v391_v13 = vadd.bf16 %v6778_v44, %v348_v9  ;;  %v2531_v63 = vrot.slane %v6518_v31, 1  ;;  %v2914_v3 = vrot.slane %v2912_v59, 1  ;;  %v6522_v9 = vld [vmem:[#allocation2 + $0x2c] ss:$0 sps:$4 sm:$0x11]  }
  0xc0   : > { %4482 = vmatprep.mubr.bf16.mxu0 %v2514_v60  ;;  %v2524_v60 = vrot.slane %v6502_v55, 1  ;;  %v2190_v61 = vshll.u32 %v6504_v47, 16  ;;  %6249 = vmatpush3.bf16.msra.mxu0 %v6515_v33  ;;  %v1750_v0 = vsel %vm1702_vm10, %v1748_v32, %v1749_v40  ;;  %v2917_v20 = vshrl.u32 %v6521_v8, 16  ;;  %v6527_v32 = vld [vmem:[#allocation2 + $0x8c] ss:$0 sps:$4 sm:$0x11]  }
  0xc1   : > { %v423_v19 = vmax.bf16 %v6633_v2, %v391_v13  ;;  %6250 = vmatprep.subr.bf16.mxu0 %v6530_v4 }
  0xc2   : > { %v2526_v17 = vsel %vm1702_vm10, %v2524_v60, %v2525_v1 }
  0xc3   : > { %4394 = vmatmul.mubr.bf16.gmra.mrb[64].mxu1 %v1741_v11  ;;  %v390_v11 = vadd.bf16 %v6778_v44, %v347_v7  ;;  %v810_v44 = vshrl.u32 %v423_v19, 16  ;;  %v813_v30 = vshll.u32 %v423_v19, 16  ;;  %v2219_v7 = vshll.u32 %v6520_v26, 16 }
  0xc4   : > { %4401 = vmatprep.mubr.bf16.mxu1 %v6489_v45  ;;  %v6511_v45 = vld [vmem:[#allocation2 + $0x6c] sm:$0xff]   ;;  %6251 = vmatpush3.bf16.msra.mxu0 %v6530_v4 }
  0xc5   : > { %v422_v50 = vmax.bf16 %v6633_v2, %v390_v11  ;;  %v2200_v41 = vshrl.u32 %v6511_v45, 16  ;;  %v2528_v2 = vrot.slane %v6510_v23, 1  ;;  %v6526_v11 = vld [vmem:[#allocation2 + $0x84] sm:$0xff]   ;;  %v2221_v14 = vrot.slane %v2219_v7, 1 }
  0xc6   : > { %v2226_v19 = vshll.u32 %v6526_v11, 16  ;;  %v6524_v23 = vld [vmem:[#allocation2 + $0x84] sm:$0xfe]  }
  0xc7   : > { %4483 = vmatmul.mubr.bf16.gmra.mrb[60].mxu0 %v2150_v10  ;;  %v2188_v10 = vshrl.u32 %v6504_v47, 16  ;;  %v802_v25 = vshrl.u32 %v422_v50, 16  ;;  %v805_v28 = vshll.u32 %v422_v50, 16  ;;  %v6517_v47 = vld [vmem:[#allocation2 + $0x78] sm:$0xfe]   ;;  %v2924_v50 = vshll.u32 %v6522_v9, 16 }
  0xc8   : > { %4490 = vmatprep.mubr.bf16.mxu0 %v2517_v12  ;;  %v2192_v12 = vrot.slane %v2190_v61, 1  ;;  %v2530_v61 = vrot.slane %v6517_v47, 1  ;;  %v2228_v33 = vrot.slane %v2226_v19, 1  ;;  %v6543_v19 = vld [vmem:[#allocation2 + $0x48] sm:$0xff]  }
  0xc9   : > { %v2926_v22 = vrot.slane %v2924_v50, 1  ;;  %v6547_v4 = vld [vmem:[#allocation2 + $0xa8] sm:$0xfe]  }
  0xca   : > { %v2532_v13 = vsel %vm1702_vm10, %v2530_v61, %v2531_v63 }
  0xcb   : > { %4402 = vmatmul.mubr.bf16.gmra.mrb[68].mxu1 %v1744_v46  ;;  %v804_v46 = vrot.slane %v802_v25, 7  ;;  %v6516_v25 = vld [vmem:[#allocation2 + $0x18] sm:$0xff]  }
  0xcc   : > { %4409 = vmatprep.mubr.bf16.mxu1 %v6496_v24  ;;  %v2202_v24 = vshll.u32 %v6511_v45, 16 }
  0xcd   : > { %v807_v35 = vor.u32 %v805_v28, %v804_v46  ;;  %v808_v36 = vrot.slane %v804_v46, 4  ;;  %v2231_v46 = vshll.u32 %v6527_v32, 16  ;;  %v6545_v32 = vld [vmem:[%s7799_s1 + $0x230] sm:$0xff]  }
  0xce   : > { %v2204_v42 = vrot.slane %v2202_v24, 1  ;;  %v6525_v24 = vld [vmem:[#allocation2 + $0x8c] ss:$0 sps:$4 sm:$0x11]   ;;  %6252 = vmatprep.subr.bf16.mxu0 %v6545_v32 }
  0xcf   : > { %4491 = vmatmul.mubr.bf16.gmra.mrb[64].mxu0 %v2162_v27  ;;  %v2193_v27 = vor.u32 %v2192_v12, %v2188_v10  ;;  %v2216_v10 = vrot.slane %v2214_v29, 1 }
  0xd0   : > { %4498 = vmatprep.mubr.bf16.mxu0 %v2520_v43  ;;  %v7327_v43 = vrot.slane %v810_v44, 7  ;;  %v2205_v60 = vor.u32 %v2204_v42, %v2200_v41  ;;  %v2224_v41 = vshrl.u32 %v6526_v11, 16  ;;  %v2533_v44 = vrot.slane %v6524_v23, 1  ;;  %v6541_v11 = vld [vmem:[#allocation2 + $0x9c] sm:$0xff]   ;;  %6253 = vmatpush3.bf16.msra.mxu0 %v6545_v32 }
  0xd1   : > { %v2198_v52 = vsel %vm1301_vm5, %v2193_v27, %v2197_v37  ;;  %v2217_v21 = vor.u32 %v2216_v10, %v2212_v6  ;;  %v6539_v10 = vld [vmem:[#allocation2 + $0x9c] sm:$0xfe]  }
  0xd2   : > { %v815_v39 = vor.u32 %v813_v30, %v7327_v43  ;;  %v2210_v45 = vsel %vm1301_vm5, %v2205_v60, %v2209_v54  ;;  %v2534_v30 = vrot.slane %v6525_v24, 1  ;;  %v2229_v42 = vor.u32 %v2228_v33, %v2224_v41  ;;  %v6536_v54 = vld [vmem:[#allocation2 + $0x3c] sm:$0xff]   ;;  %v6535_v60 = vld [vmem:[#allocation2 + $0x98] ss:$0 sps:$4 sm:$0x11]  }
  0xd3   : > { %4410 = vmatmul.mubr.bf16.gmra.mrb[72].mxu1 %v1747_v58  ;;  %v2909_v58 = vrot.slane %v2907_v34, 1  ;;  %v2222_v27 = vsel %vm1301_vm5, %v2217_v21, %v2221_v14  ;;  %v2941_v6 = vshrl.u32 %v6536_v54, 16  ;;  %v2943_v7 = vshll.u32 %v6536_v54, 16  ;;  %v6531_v14 = vld [vmem:[#allocation2 + $0x30] sm:$0xff]  }
  0xd4   : > { %v816_v55 = vsel %vm6816_vm9, %v808_v36, %v815_v39  ;;  %v2233_v39 = vrot.slane %v2231_v46, 1  ;;  %v6542_v41 = vld [vmem:[#allocation2 + $0xa4] ss:$0 sps:$4 sm:$0x11]  }
  0xd5   : > { %977 = vst [vmem:[#allocation2 + $0xc4] sm:$0xf] %v816_v55  ;;  %v2910_v1 = vor.u32 %v2909_v58, %v2905_v38  ;;  %v6533_v55 = vld [vmem:[#allocation2 + $0x98] ss:$0 sps:$4 sm:$0x11]   ;;  %v6523_v58 = vld [vmem:[#allocation2 + $0x24] sm:$0xff]  }
  0xd6   : > { %v2537_v31 = vrot.slane %v6533_v55, 1  ;;  %v2234_v63 = vsel %vm1301_vm5, %v2229_v42, %v2233_v39  ;;  %v2255_v24 = vshll.u32 %v6542_v41, 16  ;;  %v2542_v39 = vrot.slane %v6547_v4, 1  ;;  %v6552_v54 = vld [vmem:[#allocation2 + $0x5c] ss:$0 sps:$4 sm:$0x11]  }
  0xd7   : > { %4499 = vmatmul.mubr.bf16.gmra.mrb[68].mxu0 %v2174_v53  ;;  %v975_v53 = vsel %vm6809_vm8, %v807_v35, %v974_v5  ;;  %v2915_v37 = vsel %vm1301_vm5, %v2910_v1, %v2914_v3  ;;  %v2535_v5 = vsel %vm1702_vm10, %v2533_v44, %v2534_v30  ;;  %v2243_v3 = vshll.u32 %v6535_v60, 16  ;;  %v6566_v4 = vld [vmem:[#allocation2 + $0x6c] sm:$0xff]  }
  0xd8   : > { %4506 = vmatprep.mubr.bf16.mxu0 %v2523_v56  ;;  %976 = vst [vmem:[#allocation2 + $0xc0] sm:$0xf] %v975_v53  ;;  %v2529_v56 = vsel %vm1702_vm10, %v2527_v57, %v2528_v2  ;;  %v6528_v57 = vld [vmem:[#allocation2 + $0x30] sm:$0xff]   ;;  %v6529_v2 = vld [vmem:[#allocation2 + $0x38] ss:$0 sps:$4 sm:$0x11]  }
  0xd9   : > { %v2929_v35 = vshrl.u32 %v6528_v57, 16  ;;  %v2931_v36 = vshll.u32 %v6528_v57, 16  ;;  %v2936_v38 = vshll.u32 %v6529_v2, 16  ;;  %v2955_v30 = vshll.u32 %v6543_v19, 16 }
  0xda   : > { %v2257_v46 = vrot.slane %v2255_v24, 1  ;;  %v538_v24 = vld [vmem:[#allocation2 + $0xc8] sm:$0x1] }
  0xdb   : > { %v2933_v48 = vrot.slane %v2931_v36, 1  ;;  %v2938_v51 = vrot.slane %v2936_v38, 1  ;;  %v2957_v57 = vrot.slane %v2955_v30, 1  ;;  %v6548_v36 = vld [vmem:[#allocation2 + $0xb0] ss:$0 sps:$4 sm:$0x11]  }
  0xdc   : > { %v6551_v38 = vld [vmem:[#allocation2 + $0x54] sm:$0xff]  }
  0xdd   : > { %v2934_v59 = vor.u32 %v2933_v48, %v2929_v35  ;;  %v2543_v48 = vrot.slane %v6548_v36, 1  ;;  %v2965_v55 = vshrl.u32 %v6551_v38, 16 }
  0xdf   : > { %4507 = vmatmul.mubr.bf16.gmra.mrb[72].mxu0 %v2186_v16  ;;  %v6506_v12 = vld [vmem:[#allocation2 + $0xc0] sm:$0xff]   ;;  %v2919_v16 = vshll.u32 %v6521_v8, 16  ;;  %v2939_v29 = vsel %vm1301_vm5, %v2934_v59, %v2938_v51  ;;  %v2245_v8 = vrot.slane %v2243_v3, 1  ;;  %v6550_v51 = vld [vmem:[#allocation2 + $0xb0] ss:$0 sps:$4 sm:$0x11]  }
  0xe0   : > { %4514 = vmatprep.mubr.bf16.mxu0 %v2526_v17  ;;  %4417 = vmatprep.mubr.bf16.mxu1 %v6506_v12  ;;  %v6554_v3 = vld [vmem:[#allocation2 + $0xb4] sm:$0xfe]   ;;  %v7369_v30 = vld [vmem:[#allocation2 + $0xc0] sm:$0xff]  }
  0xe1   : > { %v2921_v17 = vrot.slane %v2919_v16, 1  ;;  %4418 = vmatmul.mubr.bf16.gmra.mrb[76].mxu1 %v1750_v0  ;;  %v2539_v16 = vrot.slane %v6539_v10, 1  ;;  %v6557_v10 = vld [vmem:[#allocation2 + $0xbc] ss:$0 sps:$4 sm:$0x11]  }
  0xe2   : > { %4619 = vmatprep.mubr.bf16.mxu1 %v2915_v37  ;;  %v2248_v37 = vshrl.u32 %v6541_v11, 16 }
  0xe3   : > { %v2922_v28 = vor.u32 %v2921_v17, %v2917_v20  ;;  %v2250_v17 = vshll.u32 %v6541_v11, 16 }
  0xe5   : > { %v2927_v34 = vsel %vm1301_vm5, %v2922_v28, %v2926_v22  ;;  %v2252_v23 = vrot.slane %v2250_v17, 1  ;;  %v2953_v28 = vshrl.u32 %v6543_v19, 16  ;;  %v6560_v17 = vld [vmem:[%s7799_s1 + $0x238] sm:$0xff]  }
  0xe6   : > { %6254 = vmatprep.subr.bf16.mxu0 %v6560_v17 }
  0xe7   : > { %4515 = vmatmul.mubr.bf16.gmra.mrb[76].mxu0 %v2198_v52  ;;  %v6532_v52 = vld [vmem:[#allocation2 + $0x90] sm:$0xfe]   ;;  %v2958_v35 = vor.u32 %v2957_v57, %v2953_v28  ;;  %v539_v28 = vsel %vm6732_vm4, 0, %v538_v24 }
  0xe8   : > { %4522 = vmatprep.mubr.bf16.mxu0 %v2529_v56  ;;  %v6534_v56 = vld [vmem:[#allocation2 + $0x90] sm:$0xff]   ;;  %v2536_v47 = vrot.slane %v6532_v52, 1  ;;  %6255 = vmatpush3.bf16.msra.mxu0 %v6560_v17  ;;  %540 = vst [vmem:[#allocation2 + $0xc8] sm:$0x1] %v539_v28 }
  0xe9   : > { %4620 = vmatmul.mubr.bf16.vlgmr.msra.gmra.mrb[80].mxu1 %v6516_v25  ;;  %v2236_v61 = vshrl.u32 %v6534_v56, 16  ;;  %v2238_v62 = vshll.u32 %v6534_v56, 16  ;;  %v6544_v25 = vld [vmem:[#allocation2 + $0x50] ss:$0 sps:$4 sm:$0x11]  }
  0xea   : > { %4627 = vmatprep.mubr.bf16.mxu1 %v2927_v34  ;;  %v2538_v26 = vsel %vm1702_vm10, %v2536_v47, %v2537_v31  ;;  %v2960_v33 = vshll.u32 %v6544_v25, 16  ;;  %v6538_v34 = vld [vmem:[#allocation2 + $0x3c] sm:$0xff]   ;;  %v2267_v47 = vshll.u32 %v6550_v51, 16  ;;  %v2967_v31 = vshll.u32 %v6551_v38, 16 }
  0xeb   : > { %v2240_v1 = vrot.slane %v2238_v62, 1  ;;  %v6567_v38 = vld [vmem:[#allocation2 + $0x74] ss:$0 sps:$4 sm:$0x11]   ;;  %v2989_v51 = vshrl.u32 %v6566_v4, 16 }
  0xec   : > { %v2962_v2 = vrot.slane %v2960_v33, 1  ;;  %v2269_v62 = vrot.slane %v2267_v47, 1  ;;  %v6553_v33 = vld [vmem:[#allocation2 + $0x54] sm:$0xff]  }
  0xed   : > { %v2241_v0 = vor.u32 %v2240_v1, %v2236_v61  ;;  %v6556_v1 = vld [vmem:[#allocation2 + $0xb4] sm:$0xff]  }
  0xee   : > { %v2963_v56 = vsel %vm1301_vm5, %v2958_v35, %v2962_v2  ;;  %v2274_v11 = vshll.u32 %v6556_v1, 16 }
  0xef   : > { %4523 = vmatmul.mubr.bf16.gmra.mrb[80].mxu0 %v2210_v45  ;;  %v2945_v45 = vrot.slane %v2943_v7, 1  ;;  %v2246_v21 = vsel %vm1301_vm5, %v2241_v0, %v2245_v8  ;;  %v6555_v7 = vld [vmem:[#allocation2 + $0xbc] ss:$0 sps:$4 sm:$0x11]   ;;  %v2545_v8 = vrot.slane %v6554_v3, 1 }
  0xf0   : > { %4530 = vmatprep.mubr.bf16.mxu0 %v2532_v13  ;;  %v6540_v13 = vld [vmem:[#allocation2 + $0xa4] ss:$0 sps:$4 sm:$0x11]  }
  0xf1   : > { %4628 = vmatmul.mubr.bf16.gmra.mrb[84].mxu1 %v6523_v58  ;;  %v2946_v20 = vor.u32 %v2945_v45, %v2941_v6  ;;  %v2540_v50 = vrot.slane %v6540_v13, 1  ;;  %v2544_v58 = vsel %vm1702_vm10, %v2542_v39, %v2543_v48  ;;  %v2546_v45 = vrot.slane %v6555_v7, 1 }
  0xf2   : > { %4635 = vmatprep.mubr.bf16.mxu1 %v2939_v29  ;;  %v2284_v7 = vshrl.u32 %v7369_v30, 16 }
  0xf3   : > { %v2541_v22 = vsel %vm1702_vm10, %v2539_v16, %v2540_v50  ;;  %v2279_v16 = vshll.u32 %v6557_v10, 16 }
  0xf7   : > { %4531 = vmatmul.mubr.bf16.gmra.mrb[84].mxu0 %v2222_v27  ;;  %v2253_v27 = vor.u32 %v2252_v23, %v2248_v37  ;;  %v6559_v37 = vld [vmem:[#allocation2 + $0x68] ss:$0 sps:$4 sm:$0x11]  }
  0xf8   : > { %4538 = vmatprep.mubr.bf16.mxu0 %v2535_v5  ;;  %v6549_v5 = vld [vmem:[#allocation2 + $0xa8] sm:$0xff]  }
  0xf9   : > { %v7304_v49 = vpop.f32.mrb[0].mxu0  ;;  %4636 = vmatmul.mubr.bf16.gmra.mrb[88].mxu1 %v6531_v14  ;;  %v2258_v42 = vsel %vm1301_vm5, %v2253_v27, %v2257_v46  ;;  %v2262_v52 = vshll.u32 %v6549_v5, 16  ;;  %v2547_v14 = vsel %vm1702_vm10, %v2545_v8, %v2546_v45  ;;  %v6573_v45 = vld [vmem:[#allocation2 + $0x78] sm:$0xff]  }
  0xfa   : > { %v5785_v40 = vpop.f32.mrb[1].mxu0 }
  0xfb   : > { %v7347_v53 = vadd.f32 %v5785_v40, %v7304_v49  ;;  %v6537_v49 = vld [vmem:[#allocation2 + $0x44] ss:$0 sps:$4 sm:$0x11]   ;;  %v2260_v40 = vshrl.u32 %v6549_v5, 16  ;;  %v2264_v59 = vrot.slane %v2262_v52, 1  ;;  %v5787_v60 = vpop.f32.mrb[2].mxu0 }
  0xfc   : > { %v2948_v9 = vshll.u32 %v6537_v49, 16  ;;  %v6546_v49 = vld [vmem:[#allocation2 + $0x48] sm:$0xff]   ;;  %v5788_v32 = vpop.f32.mrb[3].mxu0  ;;  %v817_v5 = vrot.slane %v7327_v43, 4  ;;  %v2991_v52 = vshll.u32 %v6566_v4, 16 }
  0xfd   : > { %v2265_v61 = vor.u32 %v2264_v59, %v2260_v40  ;;  %v7372_v46 = vadd.f32 %v5788_v32, %v5787_v60  ;;  %v7378_v40 = vld [vmem:[#allocation2 + $0xc0] sm:$0xfe]   ;;  %v6569_v60 = vld [vmem:[#allocation2 + $0x18] sm:$0xfe]  }
  0xfe   : > { %v2950_v12 = vrot.slane %v2948_v9, 1  ;;  %v2272_v9 = vshrl.u32 %v6556_v1, 16 }
  0xff   : > { %4539 = vmatmul.mubr.bf16.gmra.mrb[88].mxu0 %v2234_v63  ;;  %v2969_v63 = vrot.slane %v2967_v31, 1  ;;  %v2270_v0 = vsel %vm1301_vm5, %v2265_v61, %v2269_v62 }
 0x100   : > { %4546 = vmatprep.mubr.bf16.mxu0 %v2538_v26  ;;  %v2951_v44 = vsel %vm1301_vm5, %v2946_v20, %v2950_v12  ;;  %v2972_v26 = vshll.u32 %v6552_v54, 16  ;;  %v6558_v12 = vld [vmem:[#allocation2 + $0x60] sm:$0xff]   ;;  %v2276_v20 = vrot.slane %v2274_v11, 1  ;;  %v978_v54 = vld [vmem:[#allocation2 + $0xc8] sm:$0x1]  ;;  %v3304_v11 = vrot.slane %v6569_v60, 1 }
 0x101   : > { %4643 = vmatprep.mubr.bf16.mxu1 %v2951_v44  ;;  %v2970_v29 = vor.u32 %v2969_v63, %v2965_v55  ;;  %v2977_v50 = vshrl.u32 %v6558_v12, 16  ;;  %v2979_v41 = vshll.u32 %v6558_v12, 16  ;;  %v979_v62 = vsel %vm6724_vm3, %v817_v5, %v978_v54 }
 0x102   : > { %4644 = vmatmul.mubr.bf16.gmra.mrb[92].mxu1 %v6538_v34  ;;  %v2974_v6 = vrot.slane %v2972_v26, 1  ;;  %v2277_v19 = vor.u32 %v2276_v20, %v2272_v9  ;;  %v6570_v26 = vld [vmem:[#allocation2 + $0x20] ss:$0 sps:$4 sm:$0x11]   ;;  %980 = vst [vmem:[#allocation2 + $0xc8] sm:$0x1] %v979_v62 }
 0x103   : > { %4651 = vmatprep.mubr.bf16.mxu1 %v2963_v56  ;;  %v2981_v23 = vrot.slane %v2979_v41, 1  ;;  %v2996_v56 = vshll.u32 %v6567_v38, 16 }
 0x104   : > { %v2975_v13 = vsel %vm1301_vm5, %v2970_v29, %v2974_v6  ;;  %v2548_v6 = vrot.slane %v7378_v40, 1 }
 0x105   : > { %v2982_v44 = vor.u32 %v2981_v23, %v2977_v50  ;;  %v2998_v31 = vrot.slane %v2996_v56, 1  ;;  %v3003_v50 = vshll.u32 %v6573_v45, 16 }
 0x107   : > { %4547 = vmatmul.mubr.bf16.gmra.mrb[92].mxu0 %v2246_v21  ;;  %v2281_v21 = vrot.slane %v2279_v16, 1  ;;  %v6574_v16 = vld [vmem:[#allocation2 + $0x80] ss:$0 sps:$4 sm:$0x11]  }
 0x108   : > { %4554 = vmatprep.mubr.bf16.mxu0 %v2541_v22  ;;  %v2984_v22 = vshll.u32 %v6559_v37, 16  ;;  %v3001_v37 = vshrl.u32 %v6573_v45, 16 }
 0x109   : > { %v2282_v27 = vsel %vm1301_vm5, %v2277_v19, %v2281_v21  ;;  %v5856_v57 = vpop.f32.mrb[0].mxu1  ;;  %v6568_v19 = vld [vmem:[#allocation2 + $0x6c] sm:$0xff]   ;;  %v3005_v21 = vrot.slane %v3003_v50, 1  ;;  %v6563_v24 = vld [vmem:[#allocation2 + $0xc8] ss:$0 sps:$4 sm:$0x11]  }
 0x10a   : > { %4652 = vmatmul.mubr.bf16.gmra.mrb[96].mxu1 %v6546_v49  ;;  %v2986_v25 = vrot.slane %v2984_v22, 1  ;;  %v5857_v2 = vpop.f32.mrb[1].mxu1  ;;  %v5790_v39 = vpop.f32.mrb[4].mxu0  ;;  %v6561_v49 = vld [vmem:[#allocation2 + $0x60] sm:$0xff]   ;;  %v3008_v22 = vshll.u32 %v6574_v16, 16 }
 0x10b   : > { %4659 = vmatprep.mubr.bf16.mxu1 %v2975_v13  ;;  %v7376_v35 = vadd.f32 %v5857_v2, %v5856_v57  ;;  %v5859_v36 = vpop.f32.mrb[2].mxu1  ;;  %v5791_v43 = vpop.f32.mrb[5].mxu0  ;;  %v6584_v16 = vld [vmem:[#allocation2 + $0x50] ss:$0 sps:$4 sm:$0x11]  }
 0x10c   : > { %v2987_v34 = vsel %vm1301_vm5, %v2982_v44, %v2986_v25  ;;  %v5860_v48 = vpop.f32.mrb[3].mxu1  ;;  %v7383_v59 = vadd.f32 %v5791_v43, %v5790_v39  ;;  %v5793_v47 = vpop.f32.mrb[6].mxu0  ;;  %v6572_v25 = vld [vmem:[#allocation2 + $0x2c] ss:$0 sps:$4 sm:$0x11]   ;;  %v3010_v32 = vrot.slane %v3008_v22, 1 }
 0x10d   : > { %v7381_v55 = vadd.f32 %v5860_v48, %v5859_v36  ;;  %v5794_v61 = vpop.f32.mrb[7].mxu0  ;;  %v6565_v44 = vld [vmem:[#allocation2 + $0xc8] ss:$0 sps:$4 sm:$0x11]   ;;  %v7413_v22 = vld [vmem:[#allocation2 + $0x54] sm:$0xfe]  }
 0x10e   : > { %v7387_v1 = vadd.f32 %v5794_v61, %v5793_v47  ;;  %v2291_v4 = vshll.u32 %v6565_v44, 16  ;;  %v6587_v44 = vld [vmem:[#allocation2 + $0x90] sm:$0xff]  }
 0x10f   : > { %4555 = vmatmul.mubr.bf16.gmra.mrb[96].mxu0 %v2258_v42  ;;  %v2286_v42 = vshll.u32 %v7369_v30, 16  ;;  %v3006_v30 = vor.u32 %v3005_v21, %v3001_v37 }
 0x110   : > { %4562 = vmatprep.mubr.bf16.mxu0 %v2544_v58  ;;  %v2993_v58 = vrot.slane %v2991_v52, 1  ;;  %v2293_v40 = vrot.slane %v2291_v4, 1  ;;  %v6580_v52 = vld [vmem:[#allocation2 + $0x84] sm:$0xff]  }
 0x111   : > { %v5862_v3 = vpop.f32.mrb[4].mxu1  ;;  %v2288_v10 = vrot.slane %v2286_v42, 1  ;;  %v3011_v5 = vsel %vm1301_vm5, %v3006_v30, %v3010_v32  ;;  %v6577_v42 = vld [vmem:[#allocation2 + $0x38] ss:$0 sps:$4 sm:$0x11]   ;;  %v3317_v32 = vrot.slane %v6584_v16, 1 }
 0x112   : > { %4660 = vmatmul.mubr.bf16.gmra.mrb[100].mxu1 %v6553_v33  ;;  %v2994_v63 = vor.u32 %v2993_v58, %v2989_v51  ;;  %v5863_v29 = vpop.f32.mrb[5].mxu1  ;;  %v2549_v33 = vrot.slane %v6563_v24, 1  ;;  %v3308_v58 = vrot.slane %v6572_v25, 1  ;;  %v6582_v25 = vld [vmem:[#allocation2 + $0x84] sm:$0xff]  }
 0x113   : > { %4667 = vmatprep.mubr.bf16.mxu1 %v2987_v34  ;;  %v7391_v8 = vadd.f32 %v5863_v29, %v5862_v3  ;;  %v2289_v2 = vor.u32 %v2288_v10, %v2284_v7  ;;  %v6576_v34 = vld [vmem:[#allocation2 + $0x30] sm:$0xfe]   ;;  %v6581_v3 = vld [vmem:[#allocation2 + $0x8c] ss:$0 sps:$4 sm:$0x11]   ;;  %v3015_v29 = vshll.u32 %v6580_v52, 16 }
 0x114   : > { %v2999_v9 = vsel %vm1301_vm5, %v2994_v63, %v2998_v31  ;;  %v2550_v38 = vsel %vm1702_vm10, %v2548_v6, %v2549_v33  ;;  %v6575_v31 = vld [vmem:[#allocation2 + $0x78] sm:$0xff]   ;;  %v3310_v62 = vrot.slane %v6576_v34, 1  ;;  %v3311_v6 = vrot.slane %v6577_v42, 1  ;;  %v6583_v10 = vld [vmem:[#allocation2 + $0x48] sm:$0xfe]  }
 0x115   : > { %v2294_v54 = vsel %vm1301_vm5, %v2289_v2, %v2293_v40  ;;  %v6578_v63 = vld [vmem:[#allocation2 + $0x3c] sm:$0xfe]   ;;  %v3316_v30 = vrot.slane %v6583_v10, 1  ;;  %v6586_v33 = vld [vmem:[#allocation2 + $0x5c] ss:$0 sps:$4 sm:$0x11]  }
 0x116   : > { %v3312_v50 = vsel %vm1702_vm10, %v3310_v62, %v3311_v6  ;;  %v3025_v34 = vshrl.u32 %v6587_v44, 16  ;;  %v6591_v62 = vld [vmem:[#allocation2 + $0x68] ss:$0 sps:$4 sm:$0x11]  }
 0x117   : > { %4563 = vmatmul.mubr.bf16.gmra.mrb[100].mxu0 %v2270_v0  ;;  %v5865_v0 = vpop.f32.mrb[6].mxu1  ;;  %v5796_v13 = vpop.f32.mrb[8].mxu0 }
 0x118   : > { %4570 = vmatprep.mubr.bf16.mxu0 %v2547_v14  ;;  %v5866_v12 = vpop.f32.mrb[7].mxu1  ;;  %v3305_v14 = vrot.slane %v6570_v26, 1  ;;  %v5797_v41 = vpop.f32.mrb[9].mxu0  ;;  %v6579_v26 = vld [vmem:[#allocation2 + $0x44] ss:$0 sps:$4 sm:$0x11]  }
 0x119   : > { %v7394_v20 = vadd.f32 %v5866_v12, %v5865_v0  ;;  %v7396_v23 = vadd.f32 %v5797_v41, %v5796_v13  ;;  %v5799_v28 = vpop.f32.mrb[10].mxu0  ;;  %v3020_v0 = vshll.u32 %v6581_v3, 16 }
 0x11a   : > { %4668 = vmatmul.mubr.bf16.gmra.mrb[104].mxu1 %v6561_v49  ;;  %v5800_v57 = vpop.f32.mrb[11].mxu0  ;;  %v3306_v56 = vsel %vm1702_vm10, %v3304_v11, %v3305_v14  ;;  %v3013_v49 = vshrl.u32 %v6580_v52, 16 }
 0x11b   : > { %4675 = vmatprep.mubr.bf16.mxu1 %v2999_v9  ;;  %v5868_v17 = vpop.f32.mrb[8].mxu1  ;;  %v7399_v36 = vadd.f32 %v5800_v57, %v5799_v28  ;;  %v3017_v9 = vrot.slane %v3015_v29, 1  ;;  %v3022_v14 = vrot.slane %v3020_v0, 1  ;;  %v6589_v29 = vld [vmem:[#allocation2 + $0x90] sm:$0xff]  }
 0x11c   : > { %v5869_v39 = vpop.f32.mrb[9].mxu1 }
 0x11d   : > { %v7402_v48 = vadd.f32 %v5869_v39, %v5868_v17  ;;  %v5871_v51 = vpop.f32.mrb[10].mxu1  ;;  %v3018_v13 = vor.u32 %v3017_v9, %v3013_v49  ;;  %v3313_v17 = vrot.slane %v6578_v63, 1  ;;  %v3319_v39 = vrot.slane %v7413_v22, 1  ;;  %v6593_v9 = vld [vmem:[#allocation2 + $0x74] ss:$0 sps:$4 sm:$0x11]  }
 0x11e   : > { %v5872_v47 = vpop.f32.mrb[11].mxu1  ;;  %v3318_v63 = vsel %vm1702_vm10, %v3316_v30, %v3317_v32 }
 0x11f   : > { %4571 = vmatmul.mubr.bf16.gmra.mrb[104].mxu0 %v2282_v27  ;;  %v6571_v27 = vld [vmem:[#allocation2 + $0x24] sm:$0xfe]   ;;  %v7406_v60 = vadd.f32 %v5872_v47, %v5871_v51  ;;  %v3023_v21 = vsel %vm1301_vm5, %v3018_v13, %v3022_v14 }
 0x120   : > { %4578 = vmatprep.mubr.bf16.mxu0 %v2550_v38  ;;  %v3307_v43 = vrot.slane %v6571_v27, 1  ;;  %v3027_v38 = vshll.u32 %v6587_v44, 16 }
 0x122   : > { %4676 = vmatmul.mubr.bf16.gmra.mrb[108].mxu1 %v6568_v19  ;;  %v3309_v37 = vsel %vm1702_vm10, %v3307_v43, %v3308_v58  ;;  %v3314_v19 = vrot.slane %v6579_v26, 1  ;;  %v3029_v51 = vrot.slane %v3027_v38, 1  ;;  %v6590_v43 = vld [vmem:[#allocation2 + $0x60] sm:$0xfe]   ;;  %v3320_v26 = vrot.slane %v6586_v33, 1 }
 0x123   : > { %4683 = vmatprep.mubr.bf16.mxu1 %v3011_v5  ;;  %v6588_v5 = vld [vmem:[#allocation2 + $0x98] ss:$0 sps:$4 sm:$0x11]   ;;  %v3322_v6 = vrot.slane %v6590_v43, 1 }
 0x124   : > { %v3032_v52 = vshll.u32 %v6588_v5, 16  ;;  %v3321_v33 = vsel %vm1702_vm10, %v3319_v39, %v3320_v26  ;;  %v6600_v39 = vld [vmem:[#allocation2 + $0x8c] ss:$0 sps:$4 sm:$0x11]  }
 0x126   : > { %v5802_v61 = vpop.f32.mrb[12].mxu0 }
 0x127   : > { %4579 = vmatmul.mubr.bf16.gmra.mrb[108].mxu0 %v2294_v54  ;;  %v5803_v7 = vpop.f32.mrb[13].mxu0  ;;  %v3315_v54 = vsel %vm1702_vm10, %v3313_v17, %v3314_v19 }
 0x128   : > { %6256 = vmatprep.mubr.bf16.mxu0 %v3306_v56  ;;  %v7408_v45 = vadd.f32 %v5803_v7, %v5802_v61  ;;  %v5805_v11 = vpop.f32.mrb[14].mxu0  ;;  %v3034_v61 = vrot.slane %v3032_v52, 1  ;;  %v6592_v7 = vld [vmem:[#allocation2 + $0x6c] sm:$0xfe]  }
 0x129   : > { %v5806_v41 = vpop.f32.mrb[15].mxu0  ;;  %v3325_v13 = vrot.slane %v6592_v7, 1 }
 0x12a   : > { %4684 = vmatmul.mubr.bf16.gmra.mrb[112].mxu1 %v6575_v31  ;;  %v7415_v24 = vadd.f32 %v5806_v41, %v5805_v11  ;;  %v3030_v31 = vor.u32 %v3029_v51, %v3025_v34  ;;  %v6594_v11 = vld [vmem:[#allocation2 + $0x9c] sm:$0xff]   ;;  %v6595_v41 = vld [vmem:[#allocation2 + $0xa4] ss:$0 sps:$4 sm:$0x11]  }
 0x12b   : > { %4691 = vmatprep.mubr.bf16.mxu1 %v3023_v21  ;;  %v3037_v17 = vshrl.u32 %v6594_v11, 16  ;;  %v3039_v19 = vshll.u32 %v6594_v11, 16  ;;  %v3326_v21 = vrot.slane %v6593_v9, 1  ;;  %v3044_v30 = vshll.u32 %v6595_v41, 16  ;;  %v6596_v51 = vld [vmem:[#allocation2 + $0x9c] sm:$0xff]  }
 0x12c   : > { %v3035_v49 = vsel %vm1301_vm5, %v3030_v31, %v3034_v61  ;;  %v6601_v31 = vld [vmem:[#allocation2 + $0xa8] sm:$0xff]   ;;  %v3332_v9 = vrot.slane %v6600_v39, 1 }
 0x12d   : > { %v3041_v44 = vrot.slane %v3039_v19, 1  ;;  %v3051_v7 = vshll.u32 %v6601_v31, 16  ;;  %v6604_v19 = vld [vmem:[#allocation2 + $0x90] sm:$0xfe]  }
 0x12e   : > { %v5874_v12 = vpop.f32.mrb[12].mxu1 }
 0x12f   : > { %v5875_v28 = vpop.f32.mrb[13].mxu1  ;;  %6257 = vmatmul.mubr.bf16.vlgmr.msra.gmra.mrb[112].mxu0 %v3309_v37  ;;  %v3042_v38 = vor.u32 %v3041_v44, %v3037_v17 }
 0x130   : > { %v7417_v27 = vadd.f32 %v5875_v28, %v5874_v12  ;;  %v5877_v57 = vpop.f32.mrb[14].mxu1  ;;  %6260 = vmatprep.mubr.bf16.mxu0 %v3312_v50  ;;  %v3323_v12 = vrot.slane %v6591_v62, 1 }
 0x131   : > { %v5878_v4 = vpop.f32.mrb[15].mxu1 }
 0x132   : > { %v7420_v40 = vadd.f32 %v5878_v4, %v5877_v57  ;;  %4692 = vmatmul.mubr.bf16.gmra.mrb[116].mxu1 %v6582_v25  ;;  %v3324_v34 = vsel %vm1702_vm10, %v3322_v6, %v3323_v12  ;;  %v3049_v6 = vshrl.u32 %v6601_v31, 16 }
 0x133   : > { %4699 = vmatprep.mubr.bf16.mxu1 %v3035_v49 }
 0x136   : > { %v5896_v47 = vpop.f32.mrb[16].mxu1 }
 0x137   : > { %v5808_v2 = vpop.f32.mrb[16].mxu0  ;;  %6261 = vmatmul.mubr.bf16.gmra.mrb[116].mxu0 %v3315_v54  ;;  %v5897_v10 = vpop.f32.mrb[17].mxu1 }
 0x138   : > { %v5809_v42 = vpop.f32.mrb[17].mxu0  ;;  %6264 = vmatprep.mubr.bf16.mxu0 %v3318_v63  ;;  %v5898_v14 = vadd.f32 %v5897_v10, %v5896_v47  ;;  %v5899_v16 = vpop.f32.mrb[18].mxu1  ;;  %v6599_v47 = vld [vmem:[#allocation2 + $0x84] sm:$0xfe]  }
 0x139   : > { %v7422_v56 = vadd.f32 %v5809_v42, %v5808_v2  ;;  %v5811_v58 = vpop.f32.mrb[18].mxu0  ;;  %v5900_v50 = vpop.f32.mrb[19].mxu1  ;;  %v6597_v2 = vld [vmem:[#allocation2 + $0x78] sm:$0xfe]   ;;  %v3331_v62 = vrot.slane %v6599_v47, 1 }
 0x13a   : > { %v5812_v3 = vpop.f32.mrb[19].mxu0  ;;  %v7430_v22 = vadd.f32 %v5898_v14, %v7347_v53  ;;  %v5901_v25 = vadd.f32 %v5900_v50, %v5899_v16  ;;  %4700 = vmatmul.mubr.bf16.gmra.mrb[120].mxu1 %v6589_v29  ;;  %v3046_v53 = vrot.slane %v3044_v30, 1  ;;  %v6598_v42 = vld [vmem:[#allocation2 + $0x80] ss:$0 sps:$4 sm:$0x11]   ;;  %v3327_v14 = vsel %vm1702_vm10, %v3325_v13, %v3326_v21  ;;  %v6603_v30 = vld [vmem:[#allocation2 + $0xa8] sm:$0xff]  }
 0x13b   : > { %v7427_v0 = vadd.f32 %v5812_v3, %v5811_v58  ;;  %v3328_v58 = vrot.slane %v6597_v2, 1  ;;  %v3329_v61 = vrot.slane %v6598_v42, 1  ;;  %v6602_v29 = vld [vmem:[#allocation2 + $0xb0] ss:$0 sps:$4 sm:$0x11]   ;;  %v3053_v16 = vrot.slane %v3051_v7, 1 }
 0x13c   : > { %v7436_v57 = vadd.f32 %v5901_v25, %v7372_v46  ;;  %v3047_v43 = vsel %vm1301_vm5, %v3042_v38, %v3046_v53  ;;  %v3334_v2 = vrot.slane %v6604_v19, 1  ;;  %v6608_v53 = vld [vmem:[#allocation2 + $0xb4] sm:$0xff]   ;;  %v6609_v47 = vld [vmem:[#allocation2 + $0xbc] ss:$0 sps:$4 sm:$0x11]   ;;  %v3333_v31 = vsel %vm1702_vm10, %v3331_v62, %v3332_v9 }
 0x13d   : > { %4707 = vmatprep.mubr.bf16.mxu1 %v3047_v43  ;;  %v3330_v41 = vsel %vm1702_vm10, %v3328_v58, %v3329_v61  ;;  %v3054_v44 = vor.u32 %v3053_v16, %v3049_v6  ;;  %v3061_v39 = vshrl.u32 %v6608_v53, 16  ;;  %v3068_v6 = vshll.u32 %v6609_v47, 16 }
 0x13e   : > { %v5902_v5 = vpop.f32.mrb[20].mxu1 }
 0x13f   : > { %6265 = vmatmul.mubr.bf16.gmra.mrb[120].mxu0 %v3321_v33  ;;  %v5903_v46 = vpop.f32.mrb[21].mxu1  ;;  %v6605_v33 = vld [vmem:[#allocation2 + $0x98] ss:$0 sps:$4 sm:$0x11]  }
 0x140   : > { %6268 = vmatprep.mubr.bf16.mxu0 %v3324_v34  ;;  %v5904_v63 = vadd.f32 %v5903_v46, %v5902_v5  ;;  %v5905_v26 = vpop.f32.mrb[22].mxu1  ;;  %v6606_v5 = vld [vmem:[#allocation2 + $0x9c] sm:$0xfe]   ;;  %v6607_v34 = vld [vmem:[#allocation2 + $0xa4] ss:$0 sps:$4 sm:$0x11]  }
 0x141   : > { %v5814_v37 = vpop.f32.mrb[20].mxu0  ;;  %v5906_v49 = vpop.f32.mrb[23].mxu1  ;;  %v3337_v42 = vrot.slane %v6606_v5, 1  ;;  %v3063_v46 = vshll.u32 %v6608_v53, 16  ;;  %v3338_v61 = vrot.slane %v6607_v34, 1 }
 0x142   : > { %v5815_v28 = vpop.f32.mrb[21].mxu0  ;;  %v7443_v10 = vadd.f32 %v5904_v63, %v7383_v59  ;;  %v5907_v11 = vadd.f32 %v5906_v49, %v5905_v26  ;;  %4708 = vmatmul.mubr.bf16.gmra.mrb[124].mxu1 %v6596_v51 }
 0x143   : > { %v7432_v32 = vadd.f32 %v5815_v28, %v5814_v37  ;;  %v5817_v4 = vpop.f32.mrb[22].mxu0  ;;  %v3056_v37 = vshll.u32 %v6602_v29, 16  ;;  %v3065_v29 = vrot.slane %v3063_v46, 1  ;;  %v3339_v5 = vsel %vm1702_vm10, %v3337_v42, %v3338_v61 }
 0x144   : > { %v5818_v52 = vpop.f32.mrb[23].mxu0  ;;  %v7450_v17 = vadd.f32 %v5907_v11, %v7387_v1 }
 0x145   : > { %v7440_v54 = vadd.f32 %v5818_v52, %v5817_v4  ;;  %v3058_v59 = vrot.slane %v3056_v37, 1  ;;  %v3335_v4 = vrot.slane %v6605_v33, 1  ;;  %v3066_v9 = vor.u32 %v3065_v29, %v3061_v39  ;;  %v6615_v33 = vld [vmem:[#allocation2 + $0xc0] sm:$0xff]  }
 0x146   : > { %v5908_v28 = vpop.f32.mrb[24].mxu1  ;;  %v3070_v37 = vrot.slane %v3068_v6, 1  ;;  %v3073_v53 = vshrl.u32 %v6615_v33, 16 }
 0x147   : > { %6269 = vmatmul.mubr.bf16.gmra.mrb[124].mxu0 %v3327_v14  ;;  %v3059_v21 = vsel %vm1301_vm5, %v3054_v44, %v3058_v59  ;;  %v5909_v1 = vpop.f32.mrb[25].mxu1  ;;  %v3336_v49 = vsel %vm1702_vm10, %v3334_v2, %v3335_v4  ;;  %v6611_v14 = vld [vmem:[#allocation2 + $0xa8] sm:$0xfe]   ;;  %v6613_v44 = vld [vmem:[#allocation2 + $0xb4] sm:$0xfe]  }
 0x148   : > { %6272 = vmatprep.mubr.bf16.mxu0 %v3330_v41  ;;  %4715 = vmatprep.mubr.bf16.mxu1 %v3059_v21  ;;  %v5910_v51 = vadd.f32 %v5909_v1, %v5908_v28  ;;  %v5911_v52 = vpop.f32.mrb[26].mxu1  ;;  %v3340_v41 = vrot.slane %v6611_v14, 1  ;;  %v6614_v59 = vld [vmem:[#allocation2 + $0xbc] ss:$0 sps:$4 sm:$0x11]   ;;  %v3343_v2 = vrot.slane %v6613_v44, 1 }
 0x149   : > { %v5912_v58 = vpop.f32.mrb[27].mxu1  ;;  %v6616_v1 = vld [vmem:[#allocation2 + $0xc8] ss:$0 sps:$4 sm:$0x11]  }
 0x14a   : > { %4716 = vmatmul.mubr.bf16.gmra.mrb[128].mxu1 %v6603_v30  ;;  %v7457_v63 = vadd.f32 %v5910_v51, %v7396_v23  ;;  %v5913_v26 = vadd.f32 %v5912_v58, %v5911_v52  ;;  %v6612_v23 = vld [vmem:[#allocation2 + $0xb0] ss:$0 sps:$4 sm:$0x11]   ;;  %v3075_v51 = vshll.u32 %v6615_v33, 16 }
 0x14b   : > { %v5820_v3 = vpop.f32.mrb[24].mxu0  ;;  %v3341_v28 = vrot.slane %v6612_v23, 1 }
 0x14c   : > { %v5821_v12 = vpop.f32.mrb[25].mxu0  ;;  %v7463_v11 = vadd.f32 %v5913_v26, %v7399_v36  ;;  %v3077_v46 = vrot.slane %v3075_v51, 1  ;;  %v6617_v26 = vld [vmem:[#allocation2 + $0xc0] sm:$0xff]  }
 0x14d   : > { %v7446_v50 = vadd.f32 %v5821_v12, %v5820_v3  ;;  %v5823_v25 = vpop.f32.mrb[26].mxu0  ;;  %v6610_v12 = vld [vmem:[#allocation2 + $0xb4] sm:$0xff]   ;;  %v3342_v52 = vsel %vm1702_vm10, %v3340_v41, %v3341_v28 }
 0x14e   : > { %v5824_v13 = vpop.f32.mrb[27].mxu0  ;;  %v5914_v62 = vpop.f32.mrb[28].mxu1 }
 0x14f   : > { %v7453_v38 = vadd.f32 %v5824_v13, %v5823_v25  ;;  %6273 = vmatmul.mubr.bf16.gmra.mrb[128].mxu0 %v3333_v31  ;;  %v3071_v25 = vsel %vm1301_vm5, %v3066_v9, %v3070_v37  ;;  %v5915_v36 = vpop.f32.mrb[29].mxu1  ;;  %v3080_v31 = vshll.u32 %v6616_v1, 16  ;;  %v541_v37 = vld [vmem:[#allocation2 + $0xd4] sm:$0x1] }
 0x150   : > { %6276 = vmatprep.mubr.bf16.mxu0 %v3336_v49  ;;  %4723 = vmatprep.mubr.bf16.mxu1 %v3071_v25  ;;  %v5916_v13 = vadd.f32 %v5915_v36, %v5914_v62  ;;  %v5917_v21 = vpop.f32.mrb[30].mxu1  ;;  %v6619_v62 = vld [vmem:[#allocation2 + $0xc8] ss:$0 sps:$4 sm:$0x11]   ;;  %v542_v44 = vsel %vm6732_vm4, 0, %v541_v37 }
 0x151   : > { %v5918_v34 = vpop.f32.mrb[31].mxu1  ;;  %v3082_v14 = vrot.slane %v3080_v31, 1  ;;  %v485_v36 = vld [vmem:[#allocation2 + $0xcc] sm:$0x1]  ;;  %543 = vst [vmem:[#allocation2 + $0xd4] sm:$0x1] %v542_v44 }
 0x152   : > { %4724 = vmatmul.mubr.bf16.gmra.mrb[132].mxu1 %v6610_v12  ;;  %v7471_v58 = vadd.f32 %v5916_v13, %v7408_v45  ;;  %v5919_v47 = vadd.f32 %v5918_v34, %v5917_v21  ;;  %v3078_v12 = vor.u32 %v3077_v46, %v3073_v53  ;;  %v486_v21 = vsel %vm6724_vm3, 0, %v485_v36  ;;  %v6620_v53 = vld [vmem:[#allocation2 + $0xcc] sm:$0xfe]  }
 0x153   : > { %487 = vst [vmem:[#allocation2 + $0xcc] sm:$0x1] %v486_v21 }
 0x154   : > { %v7476_v61 = vadd.f32 %v5919_v47, %v7415_v24  ;;  %v3083_v23 = vsel %vm1301_vm5, %v3078_v12, %v3082_v14 }
 0x155   : > { %4731 = vmatprep.mubr.bf16.mxu1 %v3083_v23 }
 0x156   : > { %v5826_v43 = vpop.f32.mrb[28].mxu0  ;;  %v5920_v42 = vpop.f32.mrb[32].mxu1 }
 0x157   : > { %v5827_v3 = vpop.f32.mrb[29].mxu0  ;;  %6277 = vmatmul.mubr.bf16.gmra.mrb[132].mxu0 %v3339_v5  ;;  %v5921_v6 = vpop.f32.mrb[33].mxu1 }
 0x158   : > { %v7460_v7 = vadd.f32 %v5827_v3, %v5826_v43  ;;  %v5829_v16 = vpop.f32.mrb[30].mxu0  ;;  %v3344_v43 = vrot.slane %v6614_v59, 1  ;;  %6280 = vmatprep.mubr.bf16.mxu0 %v3342_v52  ;;  %v5922_v9 = vadd.f32 %v5921_v6, %v5920_v42  ;;  %v5923_v24 = vpop.f32.mrb[34].mxu1  ;;  %v6621_v6 = vld [vmem:[#allocation2 + $0xd4] ss:$0 sps:$4 sm:$0x11]  }
 0x159   : > { %v5830_v19 = vpop.f32.mrb[31].mxu0  ;;  %v5924_v59 = vpop.f32.mrb[35].mxu1  ;;  %v6623_v37 = vld [vmem:[#allocation2 + $0xd4] ss:$0 sps:$4 sm:$0x11]  }
 0x15a   : > { %v7466_v30 = vadd.f32 %v5830_v19, %v5829_v16  ;;  %v6618_v16 = vld [vmem:[#allocation2 + $0xc0] sm:$0xfe]   ;;  %v3347_v19 = vrot.slane %v6619_v62, 1  ;;  %v7482_v25 = vadd.f32 %v5922_v9, %v7422_v56  ;;  %v3345_v33 = vsel %vm1702_vm10, %v3343_v2, %v3344_v43  ;;  %4732 = vmatmul.mubr.bf16.gmra.mrb[136].mxu1 %v6617_v26  ;;  %v6622_v14 = vld [vmem:[#allocation2 + $0xcc] sm:$0xff]  }
 0x15b   : > { %v3346_v41 = vrot.slane %v6618_v16, 1  ;;  %v5925_v13 = vadd.f32 %v5924_v59, %v5923_v24  ;;  %v3350_v9 = vrot.slane %v6621_v6, 1  ;;  %v3085_v23 = vshrl.u32 %v6622_v14, 16 }
 0x15d   : > { %v3348_v56 = vsel %vm1702_vm10, %v3346_v41, %v3347_v19  ;;  %v7493_v51 = vadd.f32 %v5925_v13, %v7427_v0  ;;  %v3087_v41 = vshll.u32 %v6622_v14, 16 }
 0x15e   : > { %v5832_v4 = vpop.f32.mrb[32].mxu0  ;;  %v5926_v5 = vpop.f32.mrb[36].mxu1 }
 0x15f   : > { %v5833_v39 = vpop.f32.mrb[33].mxu0  ;;  %v5927_v18 = vpop.f32.mrb[37].mxu1  ;;  %6281 = vmatmul.mubr.bf16.gmra.mrb[136].mxu0 %v3345_v33  ;;  %v3089_v33 = vrot.slane %v3087_v41, 1 }
 0x160   : > { %v7473_v3 = vadd.f32 %v5833_v39, %v5832_v4  ;;  %v5835_v49 = vpop.f32.mrb[34].mxu0  ;;  %v5928_v52 = vadd.f32 %v5927_v18, %v5926_v5  ;;  %v5929_v43 = vpop.f32.mrb[38].mxu1  ;;  %6284 = vmatprep.mubr.bf16.mxu0 %v3348_v56  ;;  %v6624_v18 = vld [vmem:[#allocation2 + $0xcc] sm:$0xff]  }
 0x161   : > { %v5836_v29 = vpop.f32.mrb[35].mxu0  ;;  %v5930_v15 = vpop.f32.mrb[39].mxu1 }
 0x162   : > { %v7478_v45 = vadd.f32 %v5836_v29, %v5835_v49  ;;  %v7498_v39 = vadd.f32 %v5928_v52, %v7432_v32  ;;  %v5931_v46 = vadd.f32 %v5930_v15, %v5929_v43  ;;  %v3349_v49 = vrot.slane %v6620_v53, 1 }
 0x164   : > { %v7501_v42 = vadd.f32 %v5931_v46, %v7440_v54  ;;  %v3351_v54 = vsel %vm1702_vm10, %v3349_v49, %v3350_v9 }
 0x166   : > { %v5932_v31 = vpop.f32.mrb[40].mxu1 }
 0x167   : > { %v5933_v26 = vpop.f32.mrb[41].mxu1  ;;  %6285 = vmatmul.mubr.bf16.gmra.mrb[140].mxu0 %v3351_v54 }
 0x168   : > { %v5934_v0 = vadd.f32 %v5933_v26, %v5932_v31  ;;  %v5935_v29 = vpop.f32.mrb[42].mxu1 }
 0x169   : > { %v5838_v28 = vpop.f32.mrb[36].mxu0  ;;  %v5936_v24 = vpop.f32.mrb[43].mxu1 }
 0x16a   : > { %v5839_v4 = vpop.f32.mrb[37].mxu0  ;;  %v7504_v62 = vadd.f32 %v5934_v0, %v7446_v50  ;;  %v5937_v59 = vadd.f32 %v5936_v24, %v5935_v29 }
 0x16b   : > { %v7490_v34 = vadd.f32 %v5839_v4, %v5838_v28  ;;  %v5841_v1 = vpop.f32.mrb[38].mxu0  ;;  %v3092_v28 = vshll.u32 %v6623_v37, 16 }
 0x16c   : > { %v5842_v2 = vpop.f32.mrb[39].mxu0  ;;  %v7510_v4 = vadd.f32 %v5937_v59, %v7453_v38 }
 0x16d   : > { %v7495_v47 = vadd.f32 %v5842_v2, %v5841_v1  ;;  %v3094_v50 = vrot.slane %v3092_v28, 1  ;;  %v3090_v1 = vor.u32 %v3089_v33, %v3085_v23 }
 0x16e   : > { %v5938_v36 = vpop.f32.mrb[44].mxu1 }
 0x16f   : > { %v5939_v21 = vpop.f32.mrb[45].mxu1  ;;  %v3095_v15 = vsel %vm1301_vm5, %v3090_v1, %v3094_v50 }
 0x170   : > { %v5940_v5 = vadd.f32 %v5939_v21, %v5938_v36  ;;  %v5941_v56 = vpop.f32.mrb[46].mxu1  ;;  %4739 = vmatprep.mubr.bf16.mxu1 %v3095_v15 }
 0x171   : > { %v5942_v53 = vpop.f32.mrb[47].mxu1  ;;  %4740 = vmatmul.mubr.bf16.gmra.mrb[140].mxu1 %v6624_v18 }
 0x172   : > { %v5844_v12 = vpop.f32.mrb[40].mxu0  ;;  %v7513_v2 = vadd.f32 %v5940_v5, %v7460_v7  ;;  %v5943_v52 = vadd.f32 %v5942_v53, %v5941_v56 }
 0x173   : > { %v5845_v16 = vpop.f32.mrb[41].mxu0 }
 0x174   : > { %v7506_v32 = vadd.f32 %v5845_v16, %v5844_v12  ;;  %v5847_v19 = vpop.f32.mrb[42].mxu0  ;;  %v7517_v31 = vadd.f32 %v5943_v52, %v7466_v30 }
 0x175   : > { %v5848_v44 = vpop.f32.mrb[43].mxu0 }
 0x176   : > { %v5849_v13 = vadd.f32 %v5848_v44, %v5847_v19  ;;  %v5944_v43 = vpop.f32.mrb[48].mxu1 }
 0x177   : > { %v5945_v46 = vpop.f32.mrb[49].mxu1 }
 0x178   : > { %v5946_v26 = vadd.f32 %v5945_v46, %v5944_v43  ;;  %v5947_v38 = vpop.f32.mrb[50].mxu1 }
 0x179   : > { %v5948_v0 = vpop.f32.mrb[51].mxu1 }
 0x17a   : > { %v5850_v49 = vpop.f32.mrb[44].mxu0  ;;  %v7520_v6 = vadd.f32 %v5946_v26, %v7473_v3  ;;  %v5949_v7 = vadd.f32 %v5948_v0, %v5947_v38 }
 0x17b   : > { %v5851_v29 = vpop.f32.mrb[45].mxu0 }
 0x17c   : > { %v5852_v12 = vadd.f32 %v5851_v29, %v5850_v49  ;;  %v5853_v14 = vpop.f32.mrb[46].mxu0  ;;  %v7523_v9 = vadd.f32 %v5949_v7, %v7478_v45 }
 0x17d   : > { %v5854_v16 = vpop.f32.mrb[47].mxu0 }
 0x17e   : > { %v5855_v37 = vadd.f32 %v5854_v16, %v5853_v14  ;;  %v5950_v23 = vpop.f32.mrb[52].mxu1 }
 0x17f   : > { %v5951_v30 = vpop.f32.mrb[53].mxu1 }
 0x180   : > { %v5952_v41 = vadd.f32 %v5951_v30, %v5950_v23  ;;  %v5953_v19 = vpop.f32.mrb[54].mxu1 }
 0x181   : > { %v5954_v24 = vpop.f32.mrb[55].mxu1 }
 0x182   : > { %v6008_v54 = vpop.f32.mrb[48].mxu0  ;;  %v7526_v28 = vadd.f32 %v5952_v41, %v7490_v34  ;;  %v5955_v44 = vadd.f32 %v5954_v24, %v5953_v19 }
 0x183   : > { %v6009_v3 = vpop.f32.mrb[49].mxu0 }
 0x184   : > { %v6010_v59 = vadd.f32 %v6009_v3, %v6008_v54  ;;  %v6011_v36 = vpop.f32.mrb[50].mxu0  ;;  %v7529_v33 = vadd.f32 %v5955_v44, %v7495_v47 }
 0x185   : > { %v6012_v21 = vpop.f32.mrb[51].mxu0 }
 0x186   : > { %v7532_v45 = vadd.f32 %v6010_v59, %v7430_v22  ;;  %v6013_v50 = vadd.f32 %v6012_v21, %v6011_v36  ;;  %v5956_v5 = vpop.f32.mrb[56].mxu1 }
 0x187   : > { %v5957_v1 = vpop.f32.mrb[57].mxu1 }
 0x188   : > { %v7535_v56 = vadd.f32 %v6013_v50, %v7436_v57  ;;  %v5958_v18 = vadd.f32 %v5957_v1, %v5956_v5  ;;  %v5959_v34 = vpop.f32.mrb[58].mxu1 }
 0x189   : > { %v5960_v52 = vpop.f32.mrb[59].mxu1 }
 0x18a   : > { %v6014_v53 = vpop.f32.mrb[52].mxu0  ;;  %v7538_v15 = vadd.f32 %v5958_v18, %v7506_v32  ;;  %v5961_v47 = vadd.f32 %v5960_v52, %v5959_v34 }
 0x18b   : > { %v6015_v43 = vpop.f32.mrb[53].mxu0 }
 0x18c   : > { %v6016_v46 = vadd.f32 %v6015_v43, %v6014_v53  ;;  %v6017_v26 = vpop.f32.mrb[54].mxu0  ;;  %v7540_v22 = vadd.f32 %v5961_v47, %v5849_v13 }
 0x18d   : > { %v6018_v38 = vpop.f32.mrb[55].mxu0 }
 0x18e   : > { %v7543_v49 = vadd.f32 %v6016_v46, %v7443_v10  ;;  %v6019_v57 = vadd.f32 %v6018_v38, %v6017_v26  ;;  %v5962_v0 = vpop.f32.mrb[60].mxu1 }
 0x18f   : > { %v5963_v7 = vpop.f32.mrb[61].mxu1 }
 0x190   : > { %v7546_v29 = vadd.f32 %v6019_v57, %v7450_v17  ;;  %v5964_v14 = vadd.f32 %v5963_v7, %v5962_v0  ;;  %v5965_v16 = vpop.f32.mrb[62].mxu1 }
 0x191   : > { %v5966_v32 = vpop.f32.mrb[63].mxu1 }
 0x192   : > { %v6020_v23 = vpop.f32.mrb[56].mxu0  ;;  %v7548_v41 = vadd.f32 %v5964_v14, %v5852_v12  ;;  %v5967_v19 = vadd.f32 %v5966_v32, %v5965_v16 }
 0x193   : > { %v6021_v30 = vpop.f32.mrb[57].mxu0 }
 0x194   : > { %v6022_v24 = vadd.f32 %v6021_v30, %v6020_v23  ;;  %v6023_v13 = vpop.f32.mrb[58].mxu0  ;;  %v7550_v44 = vadd.f32 %v5967_v19, %v5855_v37 }
 0x195   : > { %v6024_v54 = vpop.f32.mrb[59].mxu0 }
 0x196   : > { %v7553_v10 = vadd.f32 %v6022_v24, %v7457_v63  ;;  %v6025_v3 = vadd.f32 %v6024_v54, %v6023_v13  ;;  %v5968_v59 = vpop.f32.mrb[64].mxu1 }
 0x197   : > { %v5969_v36 = vpop.f32.mrb[65].mxu1 }
 0x198   : > { %v7556_v17 = vadd.f32 %v6025_v3, %v7463_v11  ;;  %v5970_v50 = vadd.f32 %v5969_v36, %v5968_v59  ;;  %v5971_v5 = vpop.f32.mrb[66].mxu1 }
 0x199   : > { %v5972_v1 = vpop.f32.mrb[67].mxu1 }
 0x19a   : > { %v6026_v21 = vpop.f32.mrb[60].mxu0  ;;  %v7559_v53 = vadd.f32 %v5970_v50, %v7376_v35  ;;  %v5973_v37 = vadd.f32 %v5972_v1, %v5971_v5 }
 0x19b   : > { %v6027_v12 = vpop.f32.mrb[61].mxu0 }
 0x19c   : > { %v6028_v18 = vadd.f32 %v6027_v12, %v6026_v21  ;;  %v6029_v34 = vpop.f32.mrb[62].mxu0  ;;  %v7565_v11 = vadd.f32 %v5973_v37, %v7381_v55 }
 0x19d   : > { %v6030_v52 = vpop.f32.mrb[63].mxu0 }
 0x19e   : > { %v7562_v63 = vadd.f32 %v6028_v18, %v7471_v58  ;;  %v6031_v43 = vadd.f32 %v6030_v52, %v6029_v34  ;;  %v5974_v46 = vpop.f32.mrb[68].mxu1 }
 0x19f   : > { %v5975_v26 = vpop.f32.mrb[69].mxu1 }
 0x1a0   : > { %v7568_v47 = vadd.f32 %v6031_v43, %v7476_v61  ;;  %v5976_v57 = vadd.f32 %v5975_v26, %v5974_v46  ;;  %v5977_v0 = vpop.f32.mrb[70].mxu1 }
 0x1a1   : > { %v5978_v35 = vpop.f32.mrb[71].mxu1 }
 0x1a2   : > { %v6032_v38 = vpop.f32.mrb[64].mxu0  ;;  %v7571_v23 = vadd.f32 %v5976_v57, %v7391_v8  ;;  %v5979_v58 = vadd.f32 %v5978_v35, %v5977_v0 }
 0x1a3   : > { %v6033_v7 = vpop.f32.mrb[65].mxu0 }
 0x1a4   : > { %v6034_v14 = vadd.f32 %v6033_v7, %v6032_v38  ;;  %v6035_v16 = vpop.f32.mrb[66].mxu0  ;;  %v7577_v61 = vadd.f32 %v5979_v58, %v7394_v20 }
 0x1a5   : > { %v6036_v32 = vpop.f32.mrb[67].mxu0 }
 0x1a6   : > { %v7574_v55 = vadd.f32 %v6034_v14, %v7482_v25  ;;  %v6037_v30 = vadd.f32 %v6036_v32, %v6035_v16  ;;  %v5980_v24 = vpop.f32.mrb[72].mxu1 }
 0x1a7   : > { %v5981_v54 = vpop.f32.mrb[73].mxu1 }
 0x1a8   : > { %v7580_v19 = vadd.f32 %v6037_v30, %v7493_v51  ;;  %v5982_v59 = vadd.f32 %v5981_v54, %v5980_v24  ;;  %v5983_v36 = vpop.f32.mrb[74].mxu1 }
 0x1a9   : > { %v5984_v50 = vpop.f32.mrb[75].mxu1 }
 0x1aa   : > { %v6038_v13 = vpop.f32.mrb[68].mxu0  ;;  %v7583_v25 = vadd.f32 %v5982_v59, %v7402_v48  ;;  %v5985_v12 = vadd.f32 %v5984_v50, %v5983_v36 }
 0x1ab   : > { %v6039_v3 = vpop.f32.mrb[69].mxu0 }
 0x1ac   : > { %v6040_v8 = vadd.f32 %v6039_v3, %v6038_v13  ;;  %v6041_v21 = vpop.f32.mrb[70].mxu0  ;;  %v7589_v51 = vadd.f32 %v5985_v12, %v7406_v60 }
 0x1ad   : > { %v6042_v5 = vpop.f32.mrb[71].mxu0 }
 0x1ae   : > { %v7586_v20 = vadd.f32 %v6040_v8, %v7498_v39  ;;  %v6043_v1 = vadd.f32 %v6042_v5, %v6041_v21 }
 0x1b0   : > { %v7592_v18 = vadd.f32 %v6043_v1, %v7501_v42 }
 0x1b2   : > { %v6044_v34 = vpop.f32.mrb[72].mxu0 }
 0x1b3   : > { %v6045_v37 = vpop.f32.mrb[73].mxu0 }
 0x1b4   : > { %v6046_v52 = vadd.f32 %v6045_v37, %v6044_v34  ;;  %v6047_v43 = vpop.f32.mrb[74].mxu0  ;;  %v5986_v58 = vpop.f32.mrb[76].mxu1 }
 0x1b5   : > { %v6048_v46 = vpop.f32.mrb[75].mxu0  ;;  %v5987_v32 = vpop.f32.mrb[77].mxu1 }
 0x1b6   : > { %v7595_v26 = vadd.f32 %v6046_v52, %v7504_v62  ;;  %v6049_v48 = vadd.f32 %v6048_v46, %v6047_v43  ;;  %v5989_v13 = vpop.f32.mrb[78].mxu1 }
 0x1b7   : > { %v5990_v3 = vpop.f32.mrb[79].mxu1 }
 0x1b8   : > { %v7598_v38 = vadd.f32 %v6049_v48, %v7510_v4  ;;  %v5988_v4 = vadd.f32 %v5987_v32, %v5986_v58  ;;  %v5991_v8 = vadd.f32 %v5990_v3, %v5989_v13 }
 0x1ba   : > { %v6050_v39 = vpop.f32.mrb[76].mxu0  ;;  %v7616_v21 = vadd.f32 %v5991_v8, %v7420_v40 }
 0x1bb   : > { %v6051_v57 = vpop.f32.mrb[77].mxu0 }
 0x1bc   : > { %v6052_v0 = vadd.f32 %v6051_v57, %v6050_v39  ;;  %v6053_v60 = vpop.f32.mrb[78].mxu0  ;;  %v6120_v5 = vpop.f32.mrb[80].mxu1 }
 0x1bd   : > { %v6054_v7 = vpop.f32.mrb[79].mxu0  ;;  %v6121_v1 = vpop.f32.mrb[81].mxu1 }
 0x1be   : > { %v7601_v42 = vadd.f32 %v6052_v0, %v7513_v2  ;;  %v6055_v35 = vadd.f32 %v6054_v7, %v6053_v60  ;;  %v7610_v2 = vadd.f32 %v5988_v4, %v7417_v27  ;;  %v6122_v52 = vadd.f32 %v6121_v1, %v6120_v5 }
 0x1c0   : > { %v7604_v14 = vadd.f32 %v6055_v35, %v7517_v31 }
 0x1c2   : > { %v6056_v16 = vpop.f32.mrb[80].mxu0 }
 0x1c3   : > { %v6057_v62 = vpop.f32.mrb[81].mxu0 }
 0x1c4   : > { %v6058_v30 = vadd.f32 %v6057_v62, %v6056_v16  ;;  %v6059_v24 = vpop.f32.mrb[82].mxu0 }
 0x1c5   : > { %v6060_v54 = vpop.f32.mrb[83].mxu0 }
 0x1c6   : > { %v7607_v59 = vadd.f32 %v6058_v30, %v7520_v6  ;;  %v6061_v36 = vadd.f32 %v6060_v54, %v6059_v24  ;;  %v6123_v6 = vpop.f32.mrb[82].mxu1 }
 0x1c7   : > { %v6124_v27 = vpop.f32.mrb[83].mxu1 }
 0x1c8   : > { %v7613_v31 = vadd.f32 %v6061_v36, %v7523_v9  ;;  %v6125_v39 = vadd.f32 %v6124_v27, %v6123_v6  ;;  %v7622_v9 = vadd.f32 %v6122_v52, %v7532_v45  ;;  %v6126_v60 = vpop.f32.mrb[84].mxu1 }
 0x1c9   : > { %v6127_v35 = vpop.f32.mrb[85].mxu1 }
 0x1ca   : > { %v6062_v50 = vpop.f32.mrb[84].mxu0  ;;  %v7628_v57 = vadd.f32 %v6125_v39, %v7535_v56  ;;  %v6129_v62 = vpop.f32.mrb[86].mxu1 }
 0x1cb   : > { %v6063_v12 = vpop.f32.mrb[85].mxu0  ;;  %v6130_v45 = vpop.f32.mrb[87].mxu1 }
 0x1cc   : > { %v6064_v34 = vadd.f32 %v6063_v12, %v6062_v50  ;;  %v6065_v37 = vpop.f32.mrb[86].mxu0  ;;  %v6131_v4 = vadd.f32 %v6130_v45, %v6129_v62  ;;  %v6132_v3 = vpop.f32.mrb[88].mxu1 }
 0x1cd   : > { %v6066_v43 = vpop.f32.mrb[87].mxu0  ;;  %v6133_v8 = vpop.f32.mrb[89].mxu1 }
 0x1ce   : > { %v7619_v46 = vadd.f32 %v6064_v34, %v7526_v28  ;;  %v6067_v48 = vadd.f32 %v6066_v43, %v6065_v37  ;;  %v6128_v28 = vadd.f32 %v6127_v35, %v6126_v60  ;;  %v7640_v13 = vadd.f32 %v6131_v4, %v7546_v29  ;;  %v6135_v12 = vpop.f32.mrb[90].mxu1 }
 0x1d0   : > { %v7625_v40 = vadd.f32 %v6067_v48, %v7529_v33  ;;  %v7634_v33 = vadd.f32 %v6128_v28, %v7543_v49  ;;  %v6136_v49 = vpop.f32.mrb[91].mxu1 }
 0x1d1   : > { %v6137_v52 = vadd.f32 %v6136_v49, %v6135_v12 }
 0x1d2   : > { %v6068_v0 = vpop.f32.mrb[88].mxu0 }
 0x1d3   : > { %v6069_v7 = vpop.f32.mrb[89].mxu0  ;;  %v7652_v6 = vadd.f32 %v6137_v52, %v7556_v17 }
 0x1d4   : > { %v6070_v16 = vadd.f32 %v6069_v7, %v6068_v0  ;;  %v6071_v58 = vpop.f32.mrb[90].mxu0 }
 0x1d5   : > { %v6072_v32 = vpop.f32.mrb[91].mxu0  ;;  %v6138_v27 = vpop.f32.mrb[92].mxu1 }
 0x1d6   : > { %v7631_v30 = vadd.f32 %v6070_v16, %v7538_v15  ;;  %v6073_v24 = vadd.f32 %v6072_v32, %v6071_v58  ;;  %v6134_v15 = vadd.f32 %v6133_v8, %v6132_v3  ;;  %v6139_v39 = vpop.f32.mrb[93].mxu1 }
 0x1d7   : > { %v6141_v7 = vpop.f32.mrb[94].mxu1 }
 0x1d8   : > { %v7637_v56 = vadd.f32 %v6073_v24, %v7540_v22  ;;  %v7646_v22 = vadd.f32 %v6134_v15, %v7553_v10  ;;  %v6142_v10 = vpop.f32.mrb[95].mxu1 }
 0x1d9   : > { %v6143_v28 = vadd.f32 %v6142_v10, %v6141_v7 }
 0x1da   : > { %v6074_v54 = vpop.f32.mrb[92].mxu0 }
 0x1db   : > { %v6075_v36 = vpop.f32.mrb[93].mxu0  ;;  %v7664_v62 = vadd.f32 %v6143_v28, %v7568_v47 }
 0x1dc   : > { %v6076_v50 = vadd.f32 %v6075_v36, %v6074_v54  ;;  %v6077_v5 = vpop.f32.mrb[94].mxu0 }
 0x1dd   : > { %v6078_v1 = vpop.f32.mrb[95].mxu0  ;;  %v6144_v45 = vpop.f32.mrb[96].mxu1 }
 0x1de   : > { %v7643_v34 = vadd.f32 %v6076_v50, %v7548_v41  ;;  %v6079_v37 = vadd.f32 %v6078_v1, %v6077_v5  ;;  %v6140_v41 = vadd.f32 %v6139_v39, %v6138_v27  ;;  %v6145_v4 = vpop.f32.mrb[97].mxu1 }
 0x1df   : > { %v6147_v36 = vpop.f32.mrb[98].mxu1 }
 0x1e0   : > { %v7649_v29 = vadd.f32 %v6079_v37, %v7550_v44  ;;  %v7658_v44 = vadd.f32 %v6140_v41, %v7562_v63  ;;  %v6148_v63 = vpop.f32.mrb[99].mxu1 }
 0x1e1   : > { %v6149_v15 = vadd.f32 %v6148_v63, %v6147_v36 }
 0x1e2   : > { %v6080_v43 = vpop.f32.mrb[96].mxu0 }
 0x1e3   : > { %v6081_v48 = vpop.f32.mrb[97].mxu0  ;;  %v7676_v12 = vadd.f32 %v6149_v15, %v7580_v19 }
 0x1e4   : > { %v6082_v0 = vadd.f32 %v6081_v48, %v6080_v43  ;;  %v6083_v60 = vpop.f32.mrb[98].mxu0 }
 0x1e5   : > { %v6084_v35 = vpop.f32.mrb[99].mxu0  ;;  %v6150_v49 = vpop.f32.mrb[100].mxu1 }
 0x1e6   : > { %v7655_v16 = vadd.f32 %v6082_v0, %v7559_v53  ;;  %v6085_v58 = vadd.f32 %v6084_v35, %v6083_v60  ;;  %v6146_v53 = vadd.f32 %v6145_v4, %v6144_v45  ;;  %v6151_v52 = vpop.f32.mrb[101].mxu1 }
 0x1e7   : > { %v6153_v48 = vpop.f32.mrb[102].mxu1 }
 0x1e8   : > { %v7661_v17 = vadd.f32 %v6085_v58, %v7565_v11  ;;  %v7670_v11 = vadd.f32 %v6146_v53, %v7574_v55  ;;  %v6154_v55 = vpop.f32.mrb[103].mxu1 }
 0x1e9   : > { %v6155_v41 = vadd.f32 %v6154_v55, %v6153_v48 }
 0x1ea   : > { %v6086_v32 = vpop.f32.mrb[100].mxu0 }
 0x1eb   : > { %v6087_v24 = vpop.f32.mrb[101].mxu0  ;;  %v7688_v7 = vadd.f32 %v6155_v41, %v7592_v18 }
 0x1ec   : > { %v6088_v54 = vadd.f32 %v6087_v24, %v6086_v32  ;;  %v6089_v3 = vpop.f32.mrb[102].mxu0 }
 0x1ed   : > { %v6090_v8 = vpop.f32.mrb[103].mxu0  ;;  %v6156_v35 = vpop.f32.mrb[104].mxu1 }
 0x1ee   : > { %v7667_v50 = vadd.f32 %v6088_v54, %v7571_v23  ;;  %v6091_v5 = vadd.f32 %v6090_v8, %v6089_v3  ;;  %v6152_v23 = vadd.f32 %v6151_v52, %v6150_v49  ;;  %v6157_v10 = vpop.f32.mrb[105].mxu1 }
 0x1ef   : > { %v6158_v58 = vadd.f32 %v6157_v10, %v6156_v35  ;;  %v6159_v28 = vpop.f32.mrb[106].mxu1 }
 0x1f0   : > { %v7673_v47 = vadd.f32 %v6091_v5, %v7577_v61  ;;  %v7682_v61 = vadd.f32 %v6152_v23, %v7586_v20  ;;  %v6160_v32 = vpop.f32.mrb[107].mxu1 }
 0x1f1   : > { %v6161_v45 = vadd.f32 %v6160_v32, %v6159_v28 }
 0x1f2   : > { %v6092_v1 = vpop.f32.mrb[104].mxu0 }
 0x1f3   : > { %v6093_v37 = vpop.f32.mrb[105].mxu0  ;;  %v7694_v24 = vadd.f32 %v6161_v45, %v7598_v38 }
 0x1f4   : > { %v6094_v43 = vadd.f32 %v6093_v37, %v6092_v1  ;;  %v6095_v27 = vpop.f32.mrb[106].mxu0 }
 0x1f5   : > { %v6096_v39 = vpop.f32.mrb[107].mxu0  ;;  %v6162_v20 = vpop.f32.mrb[108].mxu1 }
 0x1f6   : > { %v7679_v0 = vadd.f32 %v6094_v43, %v7583_v25  ;;  %v6097_v60 = vadd.f32 %v6096_v39, %v6095_v27  ;;  %v7691_v25 = vadd.f32 %v6158_v58, %v7595_v26  ;;  %v6163_v4 = vpop.f32.mrb[109].mxu1 }
 0x1f7   : > { %v6164_v54 = vadd.f32 %v6163_v4, %v6162_v20 }
 0x1f8   : > { %v7685_v19 = vadd.f32 %v6097_v60, %v7589_v51  ;;  %v6165_v51 = vpop.f32.mrb[110].mxu1 }
 0x1f9   : > { %v6166_v53 = vpop.f32.mrb[111].mxu1  ;;  %v7697_v8 = vadd.f32 %v6164_v54, %v7601_v42 }
 0x1fa   : > { %v6098_v3 = vpop.f32.mrb[108].mxu0  ;;  %v6167_v36 = vadd.f32 %v6166_v53, %v6165_v51 }
 0x1fb   : > { %v6099_v18 = vpop.f32.mrb[109].mxu0 }
 0x1fc   : > { %v6100_v63 = vadd.f32 %v6099_v18, %v6098_v3  ;;  %v6101_v5 = vpop.f32.mrb[110].mxu0  ;;  %v7700_v26 = vadd.f32 %v6167_v36, %v7604_v14 }
 0x1fd   : > { %v6102_v15 = vpop.f32.mrb[111].mxu0  ;;  %v6168_v49 = vpop.f32.mrb[112].mxu1 }
 0x1fe   : > { %v7703_v38 = vadd.f32 %v6100_v63, %v7610_v2  ;;  %v6103_v1 = vadd.f32 %v6102_v15, %v6101_v5  ;;  %v6169_v52 = vpop.f32.mrb[113].mxu1 }
 0x1ff   : > { %v6170_v43 = vadd.f32 %v6169_v52, %v6168_v49  ;;  %v6171_v27 = vpop.f32.mrb[114].mxu1 }
 0x200   : > { %v7706_v37 = vadd.f32 %v6103_v1, %v7616_v21  ;;  %v6172_v23 = vpop.f32.mrb[115].mxu1 }
 0x201   : > { %v6173_v55 = vadd.f32 %v6172_v23, %v6171_v27  ;;  %v7710_v14 = vadd.f32 %v6170_v43, %v7607_v59 }
 0x202   : > { %v6258_v42 = vpop.f32.mrb[112].mxu0 }
 0x203   : > { %v4791_v48 = vadd.f32 %v6258_v42, %v7634_v33  ;;  %v4782_v39 = vpop.f32.mrb[113].mxu0  ;;  %v7715_v21 = vadd.f32 %v6173_v55, %v7613_v31 }
 0x204   : > { %v4783_v2 = vadd.f32 %v4782_v39, %v7622_v9  ;;  %v6259_v60 = vpop.f32.mrb[114].mxu0 }
 0x205   : > { %v4794_v41 = vadd.f32 %v6259_v60, %v7640_v13  ;;  %v4785_v35 = vpop.f32.mrb[115].mxu0  ;;  %v6174_v10 = vpop.f32.mrb[116].mxu1  ;;  %v4949_v20 = vmul.f32 %v4791_v48, %v4791_v48 }
 0x206   : > { %v4786_v59 = vadd.f32 %v4785_v35, %v7628_v57  ;;  %v4947_v9 = vmul.f32 %v4783_v2, %v4783_v2  ;;  %v6175_v32 = vpop.f32.mrb[117].mxu1 }
 0x207   : > { %v5681_v33 = vpack.c.bf16 %v4794_v41, %v4791_v48  ;;  %v6176_v31 = vadd.f32 %v6175_v32, %v6174_v10  ;;  %v6177_v45 = vpop.f32.mrb[118].mxu1  ;;  %v4950_v63 = vmul.f32 %v4794_v41, %v4794_v41 }
 0x208   : > { %v4909_v58 = vadd.f32 %v4786_v59, %v4783_v2  ;;  %v4948_v28 = vmul.f32 %v4786_v59, %v4786_v59  ;;  %v5676_v13 = vpack.c.bf16 %v4786_v59, %v4783_v2  ;;  %v6178_v3 = vpop.f32.mrb[119].mxu1 }
 0x209   : > { %5753 = vst [vmem:[%s7722_s9 + $0x8] sm:$0xff] %v5681_v33   ;;  %v6179_v57 = vadd.f32 %v6178_v3, %v6177_v45  ;;  %v7729_v36 = vadd.f32 %v6176_v31, %v7619_v46 }
 0x20a   : > { %v4910_v4 = vadd.f32 %v4909_v58, %v4791_v48  ;;  %v4979_v54 = vadd.f32 %v4948_v28, %v4947_v9  ;;  %5677 = vst [vmem:[%s7722_s9] sm:$0xff] %v5676_v13   ;;  %v6262_v51 = vpop.f32.mrb[116].mxu0 }
 0x20b   : > { %v4807_v53 = vadd.f32 %v6262_v51, %v7658_v44  ;;  %v4798_v18 = vpop.f32.mrb[117].mxu0  ;;  %v7734_v27 = vadd.f32 %v6179_v57, %v7625_v40 }
 0x20c   : > { %v4980_v5 = vadd.f32 %v4979_v54, %v4949_v20  ;;  %v4799_v15 = vadd.f32 %v4798_v18, %v7646_v22  ;;  %v4911_v1 = vadd.f32 %v4910_v4, %v4794_v41  ;;  %v6263_v49 = vpop.f32.mrb[118].mxu0 }
 0x20d   : > { %v4810_v52 = vadd.f32 %v6263_v49, %v7664_v62  ;;  %v4801_v43 = vpop.f32.mrb[119].mxu0  ;;  %v6180_v39 = vpop.f32.mrb[120].mxu1  ;;  %v4953_v59 = vmul.f32 %v4807_v53, %v4807_v53 }
 0x20e   : > { %v4912_v42 = vadd.f32 %v4911_v1, %v4799_v15  ;;  %v4951_v44 = vmul.f32 %v4799_v15, %v4799_v15  ;;  %v4981_v23 = vadd.f32 %v4980_v5, %v4950_v63  ;;  %v4802_v46 = vadd.f32 %v4801_v43, %v7652_v6  ;;  %v6181_v41 = vpop.f32.mrb[121].mxu1 }
 0x20f   : > { %v5691_v48 = vpack.c.bf16 %v4810_v52, %v4807_v53  ;;  %v6182_v35 = vadd.f32 %v6181_v41, %v6180_v39  ;;  %v6183_v62 = vpop.f32.mrb[122].mxu1  ;;  %v4954_v32 = vmul.f32 %v4810_v52, %v4810_v52 }
 0x210   : > { %v4982_v55 = vadd.f32 %v4981_v23, %v4951_v44  ;;  %v4913_v2 = vadd.f32 %v4912_v42, %v4802_v46  ;;  %v4952_v22 = vmul.f32 %v4802_v46, %v4802_v46  ;;  %v5686_v60 = vpack.c.bf16 %v4802_v46, %v4799_v15  ;;  %v6184_v9 = vpop.f32.mrb[123].mxu1 }
 0x211   : > { %5755 = vst [vmem:[%s7722_s9 + $0x18] sm:$0xff] %v5691_v48   ;;  %v6185_v6 = vadd.f32 %v6184_v9, %v6183_v62  ;;  %v7741_v13 = vadd.f32 %v6182_v35, %v7631_v30 }
 0x212   : > { %v4914_v33 = vadd.f32 %v4913_v2, %v4807_v53  ;;  %v4983_v40 = vadd.f32 %v4982_v55, %v4952_v22  ;;  %5754 = vst [vmem:[%s7722_s9 + $0x10] sm:$0xff] %v5686_v60   ;;  %v6266_v10 = vpop.f32.mrb[120].mxu0 }
 0x213   : > { %v4823_v58 = vadd.f32 %v6266_v10, %v7682_v61  ;;  %v4814_v28 = vpop.f32.mrb[121].mxu0  ;;  %v7746_v3 = vadd.f32 %v6185_v6, %v7637_v56 }
 0x214   : > { %v4984_v31 = vadd.f32 %v4983_v40, %v4953_v59  ;;  %v4815_v45 = vadd.f32 %v4814_v28, %v7670_v11  ;;  %v4915_v20 = vadd.f32 %v4914_v33, %v4810_v52  ;;  %v6267_v4 = vpop.f32.mrb[122].mxu0 }
 0x215   : > { %v4826_v54 = vadd.f32 %v6267_v4, %v7688_v7  ;;  %v4817_v51 = vpop.f32.mrb[123].mxu0  ;;  %v6186_v63 = vpop.f32.mrb[124].mxu1  ;;  %v4957_v43 = vmul.f32 %v4823_v58, %v4823_v58 }
 0x216   : > { %v4916_v53 = vadd.f32 %v4915_v20, %v4815_v45  ;;  %v4955_v61 = vmul.f32 %v4815_v45, %v4815_v45  ;;  %v4985_v18 = vadd.f32 %v4984_v31, %v4954_v32  ;;  %v4818_v30 = vadd.f32 %v4817_v51, %v7676_v12  ;;  %v6187_v49 = vpop.f32.mrb[125].mxu1 }
 0x217   : > { %v5701_v57 = vpack.c.bf16 %v4826_v54, %v4823_v58  ;;  %v6188_v52 = vadd.f32 %v6187_v49, %v6186_v63  ;;  %v6189_v7 = vpop.f32.mrb[126].mxu1  ;;  %v4958_v55 = vmul.f32 %v4826_v54, %v4826_v54 }
 0x218   : > { %v4986_v5 = vadd.f32 %v4985_v18, %v4955_v61  ;;  %v4917_v15 = vadd.f32 %v4916_v53, %v4818_v30  ;;  %v4956_v11 = vmul.f32 %v4818_v30, %v4818_v30  ;;  %v5696_v1 = vpack.c.bf16 %v4818_v30, %v4815_v45  ;;  %v6190_v23 = vpop.f32.mrb[127].mxu1 }
 0x219   : > { %5757 = vst [vmem:[%s7722_s9 + $0x28] sm:$0xff] %v5701_v57   ;;  %v6191_v12 = vadd.f32 %v6190_v23, %v6189_v7  ;;  %v4710_v39 = vadd.f32 %v6188_v52, %v7643_v34 }
 0x21a   : > { %v4918_v42 = vadd.f32 %v4917_v15, %v4823_v58  ;;  %v4987_v56 = vadd.f32 %v4986_v5, %v4956_v11  ;;  %5756 = vst [vmem:[%s7722_s9 + $0x20] sm:$0xff] %v5696_v1   ;;  %v6270_v44 = vpop.f32.mrb[124].mxu0 }
 0x21b   : > { %v4839_v46 = vadd.f32 %v6270_v44, %v7697_v8  ;;  %v4830_v48 = vpop.f32.mrb[125].mxu0  ;;  %v4713_v59 = vadd.f32 %v6191_v12, %v7649_v29 }
 0x21c   : > { %v4988_v2 = vadd.f32 %v4987_v56, %v4957_v43  ;;  %v4831_v22 = vadd.f32 %v4830_v48, %v7691_v25  ;;  %v4919_v60 = vadd.f32 %v4918_v42, %v4826_v54  ;;  %v6271_v41 = vpop.f32.mrb[126].mxu0 }
 0x21d   : > { %v4842_v35 = vadd.f32 %v6271_v41, %v7700_v26  ;;  %v4833_v62 = vpop.f32.mrb[127].mxu0  ;;  %v6192_v34 = vpop.f32.mrb[128].mxu1  ;;  %v4961_v26 = vmul.f32 %v4839_v46, %v4839_v46 }
 0x21e   : > { %v4920_v33 = vadd.f32 %v4919_v60, %v4831_v22  ;;  %v4959_v40 = vmul.f32 %v4831_v22, %v4831_v22  ;;  %v4989_v8 = vadd.f32 %v4988_v2, %v4958_v55  ;;  %v4834_v10 = vadd.f32 %v4833_v62, %v7694_v24  ;;  %v6193_v32 = vpop.f32.mrb[129].mxu1 }
 0x21f   : > { %v5711_v9 = vpack.c.bf16 %v4842_v35, %v4839_v46  ;;  %v6194_v31 = vadd.f32 %v6193_v32, %v6192_v34  ;;  %v6195_v45 = vpop.f32.mrb[130].mxu1  ;;  %v4962_v18 = vmul.f32 %v4842_v35, %v4842_v35 }
 0x220   : > { %v4990_v58 = vadd.f32 %v4989_v8, %v4959_v40  ;;  %v4921_v28 = vadd.f32 %v4920_v33, %v4834_v10  ;;  %v4960_v6 = vmul.f32 %v4834_v10, %v4834_v10  ;;  %v5706_v25 = vpack.c.bf16 %v4834_v10, %v4831_v22  ;;  %v6196_v54 = vpop.f32.mrb[131].mxu1 }
 0x221   : > { %5759 = vst [vmem:[%s7722_s9 + $0x38] sm:$0xff] %v5711_v9   ;;  %v6197_v24 = vadd.f32 %v6196_v54, %v6195_v45  ;;  %v7761_v61 = vadd.f32 %v6194_v31, %v7655_v16 }
 0x222   : > { %v4922_v20 = vadd.f32 %v4921_v28, %v4839_v46  ;;  %v4991_v4 = vadd.f32 %v4990_v58, %v4960_v6  ;;  %5758 = vst [vmem:[%s7722_s9 + $0x30] sm:$0xff] %v5706_v25   ;;  %v6274_v29 = vpop.f32.mrb[128].mxu0 }
 0x223   : > { %v4855_v51 = vadd.f32 %v6274_v29, %v7729_v36  ;;  %v4846_v53 = vpop.f32.mrb[129].mxu0  ;;  %v7766_v1 = vadd.f32 %v6197_v24, %v7661_v17 }
 0x224   : > { %v4992_v30 = vadd.f32 %v4991_v4, %v4961_v26  ;;  %v4847_v57 = vadd.f32 %v4846_v53, %v7710_v14  ;;  %v4923_v63 = vadd.f32 %v4922_v20, %v4842_v35  ;;  %v6275_v5 = vpop.f32.mrb[130].mxu0 }
 0x225   : > { %v4858_v15 = vadd.f32 %v6275_v5, %v7734_v27  ;;  %v4849_v11 = vpop.f32.mrb[131].mxu0  ;;  %v6198_v43 = vpop.f32.mrb[132].mxu1  ;;  %v4965_v48 = vmul.f32 %v4855_v51, %v4855_v51 }
 0x226   : > { %v4924_v49 = vadd.f32 %v4923_v63, %v4847_v57  ;;  %v4963_v36 = vmul.f32 %v4847_v57, %v4847_v57  ;;  %v4993_v52 = vadd.f32 %v4992_v30, %v4962_v18  ;;  %v4850_v16 = vadd.f32 %v4849_v11, %v7715_v21  ;;  %v6199_v23 = vpop.f32.mrb[133].mxu1 }
 0x227   : > { %v5721_v7 = vpack.c.bf16 %v4858_v15, %v4855_v51  ;;  %v6200_v46 = vadd.f32 %v6199_v23, %v6198_v43  ;;  %v6201_v27 = vpop.f32.mrb[134].mxu1  ;;  %v4966_v35 = vmul.f32 %v4858_v15, %v4858_v15 }
 0x228   : > { %v4994_v42 = vadd.f32 %v4993_v52, %v4963_v36  ;;  %v4925_v56 = vadd.f32 %v4924_v49, %v4850_v16  ;;  %v4964_v14 = vmul.f32 %v4850_v16, %v4850_v16  ;;  %v5716_v44 = vpack.c.bf16 %v4850_v16, %v4847_v57  ;;  %v6202_v2 = vpop.f32.mrb[135].mxu1 }
 0x229   : > { %5761 = vst [vmem:[%s7722_s9 + $0x48] sm:$0xff] %v5721_v7   ;;  %v4726_v21 = vadd.f32 %v6200_v46, %v7667_v50  ;;  %v6203_v41 = vadd.f32 %v6202_v2, %v6201_v27 }
 0x22a   : > { %v4926_v12 = vadd.f32 %v4925_v56, %v4855_v51  ;;  %v4995_v17 = vadd.f32 %v4994_v42, %v4964_v14  ;;  %5760 = vst [vmem:[%s7722_s9 + $0x40] sm:$0xff] %v5716_v44   ;;  %v6278_v55 = vpop.f32.mrb[132].mxu0 }
 0x22b   : > { %v4871_v22 = vadd.f32 %v6278_v55, %v4710_v39  ;;  %v4862_v60 = vpop.f32.mrb[133].mxu0  ;;  %v4729_v34 = vadd.f32 %v6203_v41, %v7673_v47 }
 0x22c   : > { %v4996_v62 = vadd.f32 %v4995_v17, %v4965_v48  ;;  %v4863_v33 = vadd.f32 %v4862_v60, %v7741_v13  ;;  %v4927_v40 = vadd.f32 %v4926_v12, %v4858_v15  ;;  %v6279_v8 = vpop.f32.mrb[134].mxu0 }
 0x22d   : > { %v4874_v10 = vadd.f32 %v6279_v8, %v4713_v59  ;;  %v4865_v9 = vpop.f32.mrb[135].mxu0  ;;  %v6204_v50 = vpop.f32.mrb[136].mxu1  ;;  %v4969_v59 = vmul.f32 %v4871_v22, %v4871_v22 }
 0x22e   : > { %v4928_v58 = vadd.f32 %v4927_v40, %v4863_v33  ;;  %v4967_v28 = vmul.f32 %v4863_v33, %v4863_v33  ;;  %v4997_v6 = vadd.f32 %v4996_v62, %v4966_v35  ;;  %v4866_v39 = vadd.f32 %v4865_v9, %v7746_v3  ;;  %v6205_v13 = vpop.f32.mrb[137].mxu1 }
 0x22f   : > { %v5731_v25 = vpack.c.bf16 %v4874_v10, %v4871_v22  ;;  %v6206_v20 = vadd.f32 %v6205_v13, %v6204_v50  ;;  %v6207_v4 = vpop.f32.mrb[138].mxu1  ;;  %v4970_v30 = vmul.f32 %v4874_v10, %v4874_v10 }
 0x230   : > { %v4998_v32 = vadd.f32 %v4997_v6, %v4967_v28  ;;  %v4929_v31 = vadd.f32 %v4928_v58, %v4866_v39  ;;  %v4968_v45 = vmul.f32 %v4866_v39, %v4866_v39  ;;  %v5726_v26 = vpack.c.bf16 %v4866_v39, %v4863_v33  ;;  %v6208_v51 = vpop.f32.mrb[139].mxu1 }
 0x231   : > { %5763 = vst [vmem:[%s7722_s9 + $0x58] sm:$0xff] %v5731_v25   ;;  %v6209_v18 = vadd.f32 %v6208_v51, %v6207_v4  ;;  %v4734_v3 = vadd.f32 %v6206_v20, %v7679_v0 }
 0x232   : > { %v4930_v29 = vadd.f32 %v4929_v31, %v4871_v22  ;;  %v4999_v54 = vadd.f32 %v4998_v32, %v4968_v45  ;;  %5762 = vst [vmem:[%s7722_s9 + $0x50] sm:$0xff] %v5726_v26   ;;  %v6282_v47 = vpop.f32.mrb[136].mxu0 }
 0x233   : > { %v4887_v53 = vadd.f32 %v6282_v47, %v4726_v21  ;;  %v4878_v24 = vpop.f32.mrb[137].mxu0  ;;  %v4737_v36 = vadd.f32 %v6209_v18, %v7685_v19 }
 0x234   : > { %v5000_v57 = vadd.f32 %v4999_v54, %v4969_v59  ;;  %v4879_v63 = vadd.f32 %v4878_v24, %v7761_v61  ;;  %v4931_v5 = vadd.f32 %v4930_v29, %v4874_v10  ;;  %v6283_v15 = vpop.f32.mrb[138].mxu0 }
 0x235   : > { %v4890_v11 = vadd.f32 %v6283_v15, %v4729_v34  ;;  %v4881_v49 = vpop.f32.mrb[139].mxu0  ;;  %v4973_v23 = vmul.f32 %v4887_v53, %v4887_v53 }
 0x236   : > { %v4932_v52 = vadd.f32 %v4931_v5, %v4879_v63  ;;  %v4971_v16 = vmul.f32 %v4879_v63, %v4879_v63  ;;  %v5001_v7 = vadd.f32 %v5000_v57, %v4970_v30  ;;  %v4882_v43 = vadd.f32 %v4881_v49, %v7766_v1 }
 0x237   : > { %v5741_v42 = vpack.c.bf16 %v4890_v11, %v4887_v53  ;;  %v4974_v48 = vmul.f32 %v4890_v11, %v4890_v11 }
 0x238   : > { %v5002_v56 = vadd.f32 %v5001_v7, %v4971_v16  ;;  %v4933_v0 = vadd.f32 %v4932_v52, %v4882_v43  ;;  %v4972_v14 = vmul.f32 %v4882_v43, %v4882_v43  ;;  %v5736_v44 = vpack.c.bf16 %v4882_v43, %v4879_v63 }
 0x239   : > { %5765 = vst [vmem:[%s7722_s9 + $0x68] sm:$0xff] %v5741_v42  }
 0x23a   : > { %v4934_v61 = vadd.f32 %v4933_v0, %v4887_v53  ;;  %v5003_v46 = vadd.f32 %v5002_v56, %v4972_v14  ;;  %5764 = vst [vmem:[%s7722_s9 + $0x60] sm:$0xff] %v5736_v44   ;;  %v6286_v27 = vpop.f32.mrb[140].mxu0 }
 0x23b   : > { %v4894_v17 = vpop.f32.mrb[141].mxu0 }
 0x23c   : > { %v5004_v12 = vadd.f32 %v5003_v46, %v4973_v23  ;;  %v4935_v19 = vadd.f32 %v4934_v61, %v4890_v11  ;;  %v4895_v55 = vadd.f32 %v4894_v17, %v4734_v3  ;;  %v6287_v2 = vpop.f32.mrb[142].mxu0 }
 0x23d   : > { %v4897_v1 = vpop.f32.mrb[143].mxu0 }
 0x23e   : > { %v5005_v22 = vadd.f32 %v5004_v12, %v4974_v48  ;;  %v4936_v60 = vadd.f32 %v4935_v19, %v4895_v55  ;;  %v4975_v21 = vmul.f32 %v4895_v55, %v4895_v55  ;;  %v4898_v41 = vadd.f32 %v4897_v1, %v4737_v36 }
 0x240   : > { %v5006_v35 = vadd.f32 %v5005_v22, %v4975_v21  ;;  %v4937_v62 = vadd.f32 %v4936_v60, %v4898_v41  ;;  %v4976_v33 = vmul.f32 %v4898_v41, %v4898_v41  ;;  %v5746_v40 = vpack.c.bf16 %v4898_v41, %v4895_v55 }
 0x242   : > { %v5007_v9 = vadd.f32 %v5006_v35, %v4976_v33  ;;  %5766 = vst [vmem:[%s7722_s9 + $0x70] sm:$0xff] %v5746_v40  }
 0x244   : > { %v6210_v8 = vpop.f32.mrb[140].mxu1 }
 0x245   : > { %v6211_v10 = vpop.f32.mrb[141].mxu1 }
 0x246   : > { %v6212_v34 = vadd.f32 %v6211_v10, %v6210_v8  ;;  %v6213_v58 = vpop.f32.mrb[142].mxu1 }
 0x247   : > { %v6214_v28 = vpop.f32.mrb[143].mxu1 }
 0x248   : > { %v4742_v6 = vadd.f32 %v6212_v34, %v7703_v38  ;;  %v6215_v39 = vadd.f32 %v6214_v28, %v6213_v58 }
 0x24a   : > { %v4903_v25 = vadd.f32 %v6286_v27, %v4742_v6  ;;  %v4745_v50 = vadd.f32 %v6215_v39, %v7706_v37 }
 0x24c   : > { %v4938_v32 = vadd.f32 %v4937_v62, %v4903_v25  ;;  %v4977_v31 = vmul.f32 %v4903_v25, %v4903_v25  ;;  %v4906_v45 = vadd.f32 %v6287_v2, %v4745_v50 }
 0x24e   : > { %v5008_v26 = vadd.f32 %v5007_v9, %v4977_v31  ;;  %v4939_v13 = vadd.f32 %v4938_v32, %v4906_v45  ;;  %v4978_v20 = vmul.f32 %v4906_v45, %v4906_v45  ;;  %v5751_v4 = vpack.c.bf16 %v4906_v45, %v4903_v25 }
 0x250   : > { %v4940_v59 = vrot.slane %v4939_v13, 4  ;;  %v5009_v29 = vadd.f32 %v5008_v26, %v4978_v20  ;;  %5767 = vst [vmem:[%s7722_s9 + $0x78] sm:$0xff] %v5751_v4  }
 0x252   : > { %v4941_v54 = vadd.f32 %v4940_v59, %v4939_v13  ;;  %v5010_v47 = vrot.slane %v5009_v29, 4 }
 0x254   : > { %v4942_v51 = vrot.slane %v4941_v54, 2  ;;  %v5011_v38 = vadd.f32 %v5010_v47, %v5009_v29 }
 0x256   : > { %v4943_v53 = vadd.f32 %v4942_v51, %v4941_v54  ;;  %v5012_v24 = vrot.slane %v5011_v38, 2 }
 0x258   : > { %v4944_v18 = vrot.slane %v4943_v53, 1  ;;  %v5013_v37 = vadd.f32 %v5012_v24, %v5011_v38 }
 0x25a   : > { %v4945_v3 = vadd.f32 %v4944_v18, %v4943_v53  ;;  %v5014_v30 = vrot.slane %v5013_v37, 1 }
 0x25c   : > { %4946 = vst [vmem:[%s265_s12] sm:$0x1] %v4945_v3  ;;  %v5015_v57 = vadd.f32 %v5014_v30, %v5013_v37 }
 0x25e   : > { %5016 = vst [vmem:[%s268_s15] sm:$0x1] %v5015_v57 }
 0x25f PF: > { %s17_s21 = sadd.s32 1, %s6631_s21  }
 0x260   : > { %p14_p4 = scmp.ge.s32.totalorder %s17_s21, 4  }
 0x262   :  { %16 = sbr.rel (!%p14_p4) target bundleno = 1 (0x1), region = 93 }

</bundles_post_ra>
